<compile_context>
chip_gen: v6e
topology: v6e:2x2x1
jax: 0.10.0
libtpu: 0.0.40
codegen_flags: <defaults>
</compile_context>

<pallas_src>
import numpy as np
import jax
import jax.numpy as jnp
from jax.experimental import pallas as pl
from jax.experimental.pallas import tpu as pltpu

LEAKY_SLOPE = 0.4
KH, KW = 3, 32
STRIDE_W = 16


def _build_k(w):
    """Rearrange ConvTranspose2d weight W[kh, kw] (3, 32) into K[kh, c, r] (3, 3, 16).

    c in {0,1,2} corresponds to contributing input column j-1, j, j+1 for output
    column 16*j + r:
      c=0 (j-1): kw = r + 24, valid r < 8
      c=1 (j  ): kw = r + 8,  always valid
      c=2 (j+1): kw = r - 8,  valid r >= 8
    """
    zeros8 = jnp.zeros((3, 8), w.dtype)
    k_left = jnp.concatenate([w[:, 24:32], zeros8], axis=1)     # (3, 16)
    k_center = w[:, 8:24]                                       # (3, 16)
    k_right = jnp.concatenate([zeros8, w[:, 0:8]], axis=1)      # (3, 16)
    return jnp.stack([k_left, k_center, k_right], axis=1)       # (3, 3, 16)


def _pick_tile(T, tile_t):
    """Prefer a tile that divides T exactly (no dead tail); else ragged last tile."""
    if T <= tile_t:
        return T
    best = 1
    for cand in range(tile_t, 0, -1):
        if T % cand == 0:
            best = cand
            break
    if 4 * best >= tile_t:
        return best
    return tile_t   # fallback: last output block is partial (masked writes)


def _make_kernel(H, tT, T_real):
    """Fused [convT + leaky] x2 kernel emitting the final interleaved layout.

    Per grid point (b, t) the kernel produces output columns
    [256*t*tT, 256*(t+1)*tT) for all n_mels rows.
    """
    Wr = 256 * (tT + 2)   # 16x-expanded layer-1 scratch width (+/-1 input col halo)

    def kernel(bias_ref, k1q_ref, k2q_ref, x_ref, o_ref, y1rep_ref):
        # bias_ref : (2,)  f32 SMEM       -- [bias1, bias2]
        # k1q_ref  : (3, 3, 256) VMEM     -- K1[kh, c, s // 16]  (repeat-16 pattern)
        # k2q_ref  : (3, 3, 256) VMEM     -- K2[kh, c, s %  16]  (tile-16  pattern)
        # x_ref    : (1, 1, H+2, tT+4)    -- zero-padded input window (raw, tiny)
        # o_ref    : (1, H, 256*tT)       -- final interleaved output block
        # y1rep_ref: (H+2, Wr) VMEM       -- layer-1 result in the 16x-expanded
        #                                    (interleave-ready) domain; rows 0 and
        #                                    H+1 are conv2's zero padding rows.
        t = pl.program_id(1)
        b1 = bias_ref[0]
        b2 = bias_ref[1]

        # conv2 height zero-padding rows.
        y1rep_ref[0:1, :] = jnp.zeros((1, Wr), jnp.float32)
        y1rep_ref[H + 1:H + 2, :] = jnp.zeros((1, Wr), jnp.float32)

        # ---------------- layer 1: 16x-expanded, lane-dense slabs ----------------
        # Chunk a covers layer-1 columns of input column J = t*tT - 1 + a, laid out
        # as y1rep[:, 256*a + s] = y1[:, 16*J + s//16] (each value repeated 16x so
        # layer 2 can be computed directly in interleaved order).
        for a in range(tT + 2):
            J = t * tT - 1 + a
            valid = jnp.logical_and(J >= 0, J < T_real)

            @pl.when(valid)
            def _():
                acc = jnp.zeros((H, 256), jnp.float32) + b1
                for c1 in range(3):
                    xcol = x_ref[0, 0, :, a + c1:a + c1 + 1]        # (H+2, 1)
                    for kh1 in range(3):
                        acc = acc + xcol[2 - kh1:2 - kh1 + H, :] * k1q_ref[kh1, c1, :]
                y1rep_ref[1:H + 1, 256 * a:256 * a + 256] = (
                    jnp.maximum(acc, LEAKY_SLOPE * acc))

            # Only the signal edges / ragged tail pay for zeroing (conv2's width
            # zero padding); interior chunks skip this entirely.
            @pl.when(jnp.logical_not(valid))
            def _():
                y1rep_ref[1:H + 1, 256 * a:256 * a + 256] = (
                    jnp.zeros((H, 256), jnp.float32))

        # ---------------- layer 2: flat, already interleaved ----------------
        # out[0, :, 256*j + q] = final column 256*(t*tT + j) + q, q = 16*r1 + r2.
        for j in range(tT):
            acc = jnp.zeros((H, 256), jnp.float32) + b2
            for c2 in range(3):
                off = 256 * (j + 1) + 16 * (c2 - 1)
                s = y1rep_ref[:, off:off + 256]                     # (H+2, 256)
                for kh2 in range(3):
                    acc = acc + s[2 - kh2:2 - kh2 + H, :] * k2q_ref[kh2, c2, :]
            o_ref[0, :, 256 * j:256 * j + 256] = jnp.maximum(acc, LEAKY_SLOPE * acc)

    return kernel


def spectrogram_upsampler(x, params, tile_t=32):
    """x: (B, n_mels, T) -> (B, n_mels, 256*T), single fused Pallas kernel."""
    w1, b1, w2, b2 = params
    x = x.astype(jnp.float32)
    B, H, T = x.shape

    tT = _pick_tile(T, tile_t)
    nT = -(-T // tT)
    T_pad = nT * tT

    k1r = _build_k(w1.astype(jnp.float32))                       # (3, 3, 16)
    k2r = _build_k(w2.astype(jnp.float32))                       # (3, 3, 16)
    k1q = jnp.repeat(k1r, 16, axis=2)                            # (3, 3, 256): K1[.., s//16]
    k2q = jnp.tile(k2r, (1, 1, 16))                              # (3, 3, 256): K2[.., s%16]
    biases = jnp.stack([jnp.reshape(b1, ()), jnp.reshape(b2, ())]).astype(jnp.float32)

    # Tiny overlapping, zero-padded input windows (+/-2 column halo, +/-1 row pad).
    # No 16x repeat is materialized in HBM anymore.
    x_pad = jnp.pad(x, ((0, 0), (1, 1), (2, 2 + T_pad - T)))     # (B, H+2, T_pad+4)
    starts = jnp.arange(nT) * tT
    idx = starts[:, None] + jnp.arange(tT + 4)[None, :]          # (nT, tT+4)
    x_win = jnp.transpose(x_pad[:, :, idx], (0, 2, 1, 3))        # (B, nT, H+2, tT+4)

    kernel = _make_kernel(H, tT, T)

    out = pl.pallas_call(
        kernel,
        out_shape=jax.ShapeDtypeStruct((B, H, 256 * T), jnp.float32),
        grid=(B, nT),
        in_specs=[
            pl.BlockSpec(memory_space=pltpu.MemorySpace.SMEM),            # biases
            pl.BlockSpec((3, 3, 256), lambda b, t: (0, 0, 0)),            # K1 pattern
            pl.BlockSpec((3, 3, 256), lambda b, t: (0, 0, 0)),            # K2 pattern
            pl.BlockSpec((1, 1, H + 2, tT + 4), lambda b, t: (b, t, 0, 0)),
        ],
        out_specs=pl.BlockSpec((1, H, 256 * tT), lambda b, t: (b, 0, t)),
        scratch_shapes=[pltpu.VMEM((H + 2, 256 * (tT + 2)), jnp.float32)],
        compiler_params=pltpu.CompilerParams(
            dimension_semantics=("parallel", "parallel"),
            vmem_limit_bytes=32 * 1024 * 1024,
        ),
    )(biases, k1q, k2q, x_win)
    return out


# ---------------- numpy reference (direct transposed-conv scatter) ----------------
def _ref_conv_transpose_leaky(x, w, b):
    B, H, T = x.shape
    out = np.full((B, H, 16 * T), float(b), dtype=np.float64)
    iw = np.arange(T)
    for kh in range(KH):
        for kw in range(KW):
            ow = iw * STRIDE_W - 8 + kw
            m = (ow >= 0) & (ow < 16 * T)
            for ih in range(H):
                oh = ih - 1 + kh
                if 0 <= oh < H:
                    out[:, oh, ow[m]] += x[:, ih, iw[m]].astype(np.float64) * float(w[kh, kw])
    return np.where(out >= 0, out, LEAKY_SLOPE * out)


def _ref_model(x, params):
    w1, b1, w2, b2 = [np.asarray(p) for p in params]
    y = _ref_conv_transpose_leaky(np.asarray(x, dtype=np.float64), w1, float(b1))
    y = _ref_conv_transpose_leaky(y, w2, float(b2))
    return y


if __name__ == "__main__":
    B, n_mels = 2, 8

    key = jax.random.PRNGKey(0)
    kx1, kx2, kw1, kb1, kw2, kb2 = jax.random.split(key, 6)

    # ConvTranspose2d(1, 1, [3, 32]) weight: (1, 1, 3, 32) (squeezed to (3, 32)); bias: (1,)
    bound = 1.0 / np.sqrt(1 * KH * KW)
    w1 = jax.random.uniform(kw1, (3, 32), jnp.float32, -bound, bound)
    b1 = jax.random.uniform(kb1, (), jnp.float32, -bound, bound)
    w2 = jax.random.uniform(kw2, (3, 32), jnp.float32, -bound, bound)
    b2 = jax.random.uniform(kb2, (), jnp.float32, -bound, bound)
    params = (w1, b1, w2, b2)

    fwd = jax.jit(spectrogram_upsampler, static_argnames=("tile_t",))

    # Case 1: single-tile path (T <= tile).
    x_small = jax.random.normal(kx1, (B, n_mels, 8), jnp.float32)
    out_small = jax.block_until_ready(fwd(x_small, params))
    assert out_small.shape == (B, n_mels, 256 * 8), out_small.shape
    ref_small = _ref_model(np.asarray(x_small), params)
    np.testing.assert_allclose(np.asarray(out_small), ref_small, rtol=1e-4, atol=1e-4)

    # Case 2: multi-tile path (grid over T with halos; 80 -> 4 tiles of 20 columns).
    x_big = jax.random.normal(kx2, (B, n_mels, 80), jnp.float32)
    out_big = jax.block_until_ready(fwd(x_big, params, tile_t=32))
    assert out_big.shape == (B, n_mels, 256 * 80), out_big.shape
    ref_big = _ref_model(np.asarray(x_big), params)
    np.testing.assert_allclose(np.asarray(out_big), ref_big, rtol=1e-4, atol=1e-4)

    print("KERNEL_OK")
</pallas_src>

<mosaic_0001>
module attributes {stable_mosaic.version = 11 : i64} {
  func.func @kernel(%arg0: i32, %arg1: i32, %arg2: memref<2xf32, #tpu.memory_space<smem>>, %arg3: memref<3x3x256xf32, #tpu.memory_space<vmem>>, %arg4: memref<3x3x256xf32, #tpu.memory_space<vmem>>, %arg5: memref<1x1x10x12xf32, #tpu.memory_space<vmem>>, %arg6: memref<1x8x2048xf32, #tpu.memory_space<vmem>>, %arg7: memref<10x2560xf32, #tpu.memory_space<vmem>>) attributes {dimension_semantics = [#tpu.dimension_semantics<parallel>, #tpu.dimension_semantics<parallel>], iteration_bounds = array<i64: 2, 1>, scalar_prefetch = 0 : i64, scratch_operands = 1 : i64, tpu.core_type = #tpu.core_type<tc>, window_params = [{transform_indices = @transform_0, window_bounds = array<i64: 2>}, {pipeline_mode = #tpu.pipeline_mode<synchronous>, transform_indices = @transform_1, window_bounds = array<i64: 3, 3, 256>}, {pipeline_mode = #tpu.pipeline_mode<synchronous>, transform_indices = @transform_2, window_bounds = array<i64: 3, 3, 256>}, {transform_indices = @transform_3, window_bounds = array<i64: 1, 1, 10, 12>}, {transform_indices = @transform_4, window_bounds = array<i64: 1, 8, 2048>}]} {
    %c0 = arith.constant 0 : index
    %0 = memref.load %arg2[%c0] : memref<2xf32, #tpu.memory_space<smem>>
    %c1 = arith.constant 1 : index
    %1 = memref.load %arg2[%c1] : memref<2xf32, #tpu.memory_space<smem>>
    %cst = arith.constant 0.000000e+00 : f32
    %2 = vector.broadcast %cst : f32 to vector<1x2560xf32>
    %c0_0 = arith.constant 0 : index
    %c0_1 = arith.constant 0 : index
    %3 = vector.load %arg7[%c0_0, %c0_1] : memref<10x2560xf32, #tpu.memory_space<vmem>>, vector<1x2560xf32>
    tpu.vector_store %arg7[%c0_0, %c0_1], %2 {strides = array<i32>} : memref<10x2560xf32, #tpu.memory_space<vmem>>, vector<1x2560xf32>,
    %cst_2 = arith.constant 0.000000e+00 : f32
    %4 = vector.broadcast %cst_2 : f32 to vector<1x2560xf32>
    %c9 = arith.constant 9 : index
    %c0_3 = arith.constant 0 : index
    %5 = vector.load %arg7[%c9, %c0_3] : memref<10x2560xf32, #tpu.memory_space<vmem>>, vector<1x2560xf32>
    tpu.vector_store %arg7[%c9, %c0_3], %4 {strides = array<i32>} : memref<10x2560xf32, #tpu.memory_space<vmem>>, vector<1x2560xf32>,
    %c8_i32 = arith.constant 8 : i32
    %6 = arith.muli %arg1, %c8_i32 : i32
    %c1_i32 = arith.constant 1 : i32
    %7 = arith.subi %6, %c1_i32 : i32
    %c0_i32 = arith.constant 0 : i32
    %8 = arith.addi %7, %c0_i32 : i32
    %c0_i32_4 = arith.constant 0 : i32
    %9 = arith.cmpi sge, %8, %c0_i32_4 : i32
    %c8_i32_5 = arith.constant 8 : i32
    %10 = arith.cmpi slt, %8, %c8_i32_5 : i32
    %11 = arith.andi %9, %10 : i1
    %12 = arith.extui %11 : i1 to i32
    %c0_i32_6 = arith.constant 0 : i32
    %13 = arith.cmpi ne, %12, %c0_i32_6 : i32
    scf.if %13 {
      %cst_352 = arith.constant 0.000000e+00 : f32
      %716 = vector.broadcast %cst_352 : f32 to vector<8x256xf32>
      %717 = vector.broadcast %0 : f32 to vector<8x256xf32>
      %718 = arith.addf %716, %717 : vector<8x256xf32>
      %c0_353 = arith.constant 0 : index
      %c0_354 = arith.constant 0 : index
      %c0_355 = arith.constant 0 : index
      %c0_356 = arith.constant 0 : index
      %719 = vector.load %arg5[%c0_353, %c0_354, %c0_355, %c0_356] : memref<1x1x10x12xf32, #tpu.memory_space<vmem>>, vector<1x1x10x1xf32>
      %720 = vector.shape_cast %719 : vector<1x1x10x1xf32> to vector<10x1xf32>
      %721 = vector.extract_strided_slice %720 {offsets = [2, 0], sizes = [8, 1], strides = [1, 1]} : vector<10x1xf32> to vector<8x1xf32>
      %c0_357 = arith.constant 0 : index
      %c0_358 = arith.constant 0 : index
      %c0_359 = arith.constant 0 : index
      %722 = vector.load %arg3[%c0_357, %c0_358, %c0_359] : memref<3x3x256xf32, #tpu.memory_space<vmem>>, vector<1x1x256xf32>
      %723 = vector.shape_cast %722 : vector<1x1x256xf32> to vector<256xf32>
      %724 = vector.shape_cast %723 : vector<256xf32> to vector<1x256xf32>
      %725 = vector.broadcast %721 : vector<8x1xf32> to vector<8x256xf32>
      %726 = vector.broadcast %724 : vector<1x256xf32> to vector<8x256xf32>
      %727 = arith.mulf %725, %726 : vector<8x256xf32>
      %728 = arith.addf %718, %727 : vector<8x256xf32>
      %729 = vector.extract_strided_slice %720 {offsets = [1, 0], sizes = [8, 1], strides = [1, 1]} : vector<10x1xf32> to vector<8x1xf32>
      %c1_360 = arith.constant 1 : index
      %c0_361 = arith.constant 0 : index
      %c0_362 = arith.constant 0 : index
      %730 = vector.load %arg3[%c1_360, %c0_361, %c0_362] : memref<3x3x256xf32, #tpu.memory_space<vmem>>, vector<1x1x256xf32>
      %731 = vector.shape_cast %730 : vector<1x1x256xf32> to vector<256xf32>
      %732 = vector.shape_cast %731 : vector<256xf32> to vector<1x256xf32>
      %733 = vector.broadcast %729 : vector<8x1xf32> to vector<8x256xf32>
      %734 = vector.broadcast %732 : vector<1x256xf32> to vector<8x256xf32>
      %735 = arith.mulf %733, %734 : vector<8x256xf32>
      %736 = arith.addf %728, %735 : vector<8x256xf32>
      %737 = vector.extract_strided_slice %720 {offsets = [0, 0], sizes = [8, 1], strides = [1, 1]} : vector<10x1xf32> to vector<8x1xf32>
      %c2_363 = arith.constant 2 : index
      %c0_364 = arith.constant 0 : index
      %c0_365 = arith.constant 0 : index
      %738 = vector.load %arg3[%c2_363, %c0_364, %c0_365] : memref<3x3x256xf32, #tpu.memory_space<vmem>>, vector<1x1x256xf32>
      %739 = vector.shape_cast %738 : vector<1x1x256xf32> to vector<256xf32>
      %740 = vector.shape_cast %739 : vector<256xf32> to vector<1x256xf32>
      %741 = vector.broadcast %737 : vector<8x1xf32> to vector<8x256xf32>
      %742 = vector.broadcast %740 : vector<1x256xf32> to vector<8x256xf32>
      %743 = arith.mulf %741, %742 : vector<8x256xf32>
      %744 = arith.addf %736, %743 : vector<8x256xf32>
      %c0_366 = arith.constant 0 : index
      %c0_367 = arith.constant 0 : index
      %c0_368 = arith.constant 0 : index
      %c1_369 = arith.constant 1 : index
      %745 = vector.load %arg5[%c0_366, %c0_367, %c0_368, %c1_369] : memref<1x1x10x12xf32, #tpu.memory_space<vmem>>, vector<1x1x10x1xf32>
      %746 = vector.shape_cast %745 : vector<1x1x10x1xf32> to vector<10x1xf32>
      %747 = vector.extract_strided_slice %746 {offsets = [2, 0], sizes = [8, 1], strides = [1, 1]} : vector<10x1xf32> to vector<8x1xf32>
      %c0_370 = arith.constant 0 : index
      %c1_371 = arith.constant 1 : index
      %c0_372 = arith.constant 0 : index
      %748 = vector.load %arg3[%c0_370, %c1_371, %c0_372] : memref<3x3x256xf32, #tpu.memory_space<vmem>>, vector<1x1x256xf32>
      %749 = vector.shape_cast %748 : vector<1x1x256xf32> to vector<256xf32>
      %750 = vector.shape_cast %749 : vector<256xf32> to vector<1x256xf32>
      %751 = vector.broadcast %747 : vector<8x1xf32> to vector<8x256xf32>
      %752 = vector.broadcast %750 : vector<1x256xf32> to vector<8x256xf32>
      %753 = arith.mulf %751, %752 : vector<8x256xf32>
      %754 = arith.addf %744, %753 : vector<8x256xf32>
      %755 = vector.extract_strided_slice %746 {offsets = [1, 0], sizes = [8, 1], strides = [1, 1]} : vector<10x1xf32> to vector<8x1xf32>
      %c1_373 = arith.constant 1 : index
      %c1_374 = arith.constant 1 : index
      %c0_375 = arith.constant 0 : index
      %756 = vector.load %arg3[%c1_373, %c1_374, %c0_375] : memref<3x3x256xf32, #tpu.memory_space<vmem>>, vector<1x1x256xf32>
      %757 = vector.shape_cast %756 : vector<1x1x256xf32> to vector<256xf32>
      %758 = vector.shape_cast %757 : vector<256xf32> to vector<1x256xf32>
      %759 = vector.broadcast %755 : vector<8x1xf32> to vector<8x256xf32>
      %760 = vector.broadcast %758 : vector<1x256xf32> to vector<8x256xf32>
      %761 = arith.mulf %759, %760 : vector<8x256xf32>
      %762 = arith.addf %754, %761 : vector<8x256xf32>
      %763 = vector.extract_strided_slice %746 {offsets = [0, 0], sizes = [8, 1], strides = [1, 1]} : vector<10x1xf32> to vector<8x1xf32>
      %c2_376 = arith.constant 2 : index
      %c1_377 = arith.constant 1 : index
      %c0_378 = arith.constant 0 : index
      %764 = vector.load %arg3[%c2_376, %c1_377, %c0_378] : memref<3x3x256xf32, #tpu.memory_space<vmem>>, vector<1x1x256xf32>
      %765 = vector.shape_cast %764 : vector<1x1x256xf32> to vector<256xf32>
      %766 = vector.shape_cast %765 : vector<256xf32> to vector<1x256xf32>
      %767 = vector.broadcast %763 : vector<8x1xf32> to vector<8x256xf32>
      %768 = vector.broadcast %766 : vector<1x256xf32> to vector<8x256xf32>
      %769 = arith.mulf %767, %768 : vector<8x256xf32>
      %770 = arith.addf %762, %769 : vector<8x256xf32>
      %c0_379 = arith.constant 0 : index
      %c0_380 = arith.constant 0 : index
      %c0_381 = arith.constant 0 : index
      %c2_382 = arith.constant 2 : index
      %771 = vector.load %arg5[%c0_379, %c0_380, %c0_381, %c2_382] : memref<1x1x10x12xf32, #tpu.memory_space<vmem>>, vector<1x1x10x1xf32>
      %772 = vector.shape_cast %771 : vector<1x1x10x1xf32> to vector<10x1xf32>
      %773 = vector.extract_strided_slice %772 {offsets = [2, 0], sizes = [8, 1], strides = [1, 1]} : vector<10x1xf32> to vector<8x1xf32>
      %c0_383 = arith.constant 0 : index
      %c2_384 = arith.constant 2 : index
      %c0_385 = arith.constant 0 : index
      %774 = vector.load %arg3[%c0_383, %c2_384, %c0_385] : memref<3x3x256xf32, #tpu.memory_space<vmem>>, vector<1x1x256xf32>
      %775 = vector.shape_cast %774 : vector<1x1x256xf32> to vector<256xf32>
      %776 = vector.shape_cast %775 : vector<256xf32> to vector<1x256xf32>
      %777 = vector.broadcast %773 : vector<8x1xf32> to vector<8x256xf32>
      %778 = vector.broadcast %776 : vector<1x256xf32> to vector<8x256xf32>
      %779 = arith.mulf %777, %778 : vector<8x256xf32>
      %780 = arith.addf %770, %779 : vector<8x256xf32>
      %781 = vector.extract_strided_slice %772 {offsets = [1, 0], sizes = [8, 1], strides = [1, 1]} : vector<10x1xf32> to vector<8x1xf32>
      %c1_386 = arith.constant 1 : index
      %c2_387 = arith.constant 2 : index
      %c0_388 = arith.constant 0 : index
      %782 = vector.load %arg3[%c1_386, %c2_387, %c0_388] : memref<3x3x256xf32, #tpu.memory_space<vmem>>, vector<1x1x256xf32>
      %783 = vector.shape_cast %782 : vector<1x1x256xf32> to vector<256xf32>
      %784 = vector.shape_cast %783 : vector<256xf32> to vector<1x256xf32>
      %785 = vector.broadcast %781 : vector<8x1xf32> to vector<8x256xf32>
      %786 = vector.broadcast %784 : vector<1x256xf32> to vector<8x256xf32>
      %787 = arith.mulf %785, %786 : vector<8x256xf32>
      %788 = arith.addf %780, %787 : vector<8x256xf32>
      %789 = vector.extract_strided_slice %772 {offsets = [0, 0], sizes = [8, 1], strides = [1, 1]} : vector<10x1xf32> to vector<8x1xf32>
      %c2_389 = arith.constant 2 : index
      %c2_390 = arith.constant 2 : index
      %c0_391 = arith.constant 0 : index
      %790 = vector.load %arg3[%c2_389, %c2_390, %c0_391] : memref<3x3x256xf32, #tpu.memory_space<vmem>>, vector<1x1x256xf32>
      %791 = vector.shape_cast %790 : vector<1x1x256xf32> to vector<256xf32>
      %792 = vector.shape_cast %791 : vector<256xf32> to vector<1x256xf32>
      %793 = vector.broadcast %789 : vector<8x1xf32> to vector<8x256xf32>
      %794 = vector.broadcast %792 : vector<1x256xf32> to vector<8x256xf32>
      %795 = arith.mulf %793, %794 : vector<8x256xf32>
      %796 = arith.addf %788, %795 : vector<8x256xf32>
      %cst_392 = arith.constant 4.000000e-01 : f32
      %797 = vector.broadcast %cst_392 : f32 to vector<8x256xf32>
      %798 = arith.mulf %797, %796 : vector<8x256xf32>
      %799 = arith.maximumf %796, %798 : vector<8x256xf32>
      %c1_393 = arith.constant 1 : index
      %c0_394 = arith.constant 0 : index
      %800 = vector.load %arg7[%c1_393, %c0_394] : memref<10x2560xf32, #tpu.memory_space<vmem>>, vector<8x256xf32>
      tpu.vector_store %arg7[%c1_393, %c0_394], %799 {strides = array<i32>} : memref<10x2560xf32, #tpu.memory_space<vmem>>, vector<8x256xf32>,
    } else {
    }
    %true = arith.constant true
    %14 = arith.xori %11, %true : i1
    %15 = arith.extui %14 : i1 to i32
    %c0_i32_7 = arith.constant 0 : i32
    %16 = arith.cmpi ne, %15, %c0_i32_7 : i32
    scf.if %16 {
      %cst_352 = arith.constant 0.000000e+00 : f32
      %716 = vector.broadcast %cst_352 : f32 to vector<8x256xf32>
      %c1_353 = arith.constant 1 : index
      %c0_354 = arith.constant 0 : index
      %717 = vector.load %arg7[%c1_353, %c0_354] : memref<10x2560xf32, #tpu.memory_space<vmem>>, vector<8x256xf32>
      tpu.vector_store %arg7[%c1_353, %c0_354], %716 {strides = array<i32>} : memref<10x2560xf32, #tpu.memory_space<vmem>>, vector<8x256xf32>,
    } else {
    }
    %c8_i32_8 = arith.constant 8 : i32
    %17 = arith.muli %arg1, %c8_i32_8 : i32
    %c1_i32_9 = arith.constant 1 : i32
    %18 = arith.subi %17, %c1_i32_9 : i32
    %c1_i32_10 = arith.constant 1 : i32
    %19 = arith.addi %18, %c1_i32_10 : i32
    %c0_i32_11 = arith.constant 0 : i32
    %20 = arith.cmpi sge, %19, %c0_i32_11 : i32
    %c8_i32_12 = arith.constant 8 : i32
    %21 = arith.cmpi slt, %19, %c8_i32_12 : i32
    %22 = arith.andi %20, %21 : i1
    %23 = arith.extui %22 : i1 to i32
    %c0_i32_13 = arith.constant 0 : i32
    %24 = arith.cmpi ne, %23, %c0_i32_13 : i32
    scf.if %24 {
      %cst_352 = arith.constant 0.000000e+00 : f32
      %716 = vector.broadcast %cst_352 : f32 to vector<8x256xf32>
      %717 = vector.broadcast %0 : f32 to vector<8x256xf32>
      %718 = arith.addf %716, %717 : vector<8x256xf32>
      %c0_353 = arith.constant 0 : index
      %c0_354 = arith.constant 0 : index
      %c0_355 = arith.constant 0 : index
      %c1_356 = arith.constant 1 : index
      %719 = vector.load %arg5[%c0_353, %c0_354, %c0_355, %c1_356] : memref<1x1x10x12xf32, #tpu.memory_space<vmem>>, vector<1x1x10x1xf32>
      %720 = vector.shape_cast %719 : vector<1x1x10x1xf32> to vector<10x1xf32>
      %721 = vector.extract_strided_slice %720 {offsets = [2, 0], sizes = [8, 1], strides = [1, 1]} : vector<10x1xf32> to vector<8x1xf32>
      %c0_357 = arith.constant 0 : index
      %c0_358 = arith.constant 0 : index
      %c0_359 = arith.constant 0 : index
      %722 = vector.load %arg3[%c0_357, %c0_358, %c0_359] : memref<3x3x256xf32, #tpu.memory_space<vmem>>, vector<1x1x256xf32>
      %723 = vector.shape_cast %722 : vector<1x1x256xf32> to vector<256xf32>
      %724 = vector.shape_cast %723 : vector<256xf32> to vector<1x256xf32>
      %725 = vector.broadcast %721 : vector<8x1xf32> to vector<8x256xf32>
      %726 = vector.broadcast %724 : vector<1x256xf32> to vector<8x256xf32>
      %727 = arith.mulf %725, %726 : vector<8x256xf32>
      %728 = arith.addf %718, %727 : vector<8x256xf32>
      %729 = vector.extract_strided_slice %720 {offsets = [1, 0], sizes = [8, 1], strides = [1, 1]} : vector<10x1xf32> to vector<8x1xf32>
      %c1_360 = arith.constant 1 : index
      %c0_361 = arith.constant 0 : index
      %c0_362 = arith.constant 0 : index
      %730 = vector.load %arg3[%c1_360, %c0_361, %c0_362] : memref<3x3x256xf32, #tpu.memory_space<vmem>>, vector<1x1x256xf32>
      %731 = vector.shape_cast %730 : vector<1x1x256xf32> to vector<256xf32>
      %732 = vector.shape_cast %731 : vector<256xf32> to vector<1x256xf32>
      %733 = vector.broadcast %729 : vector<8x1xf32> to vector<8x256xf32>
      %734 = vector.broadcast %732 : vector<1x256xf32> to vector<8x256xf32>
      %735 = arith.mulf %733, %734 : vector<8x256xf32>
      %736 = arith.addf %728, %735 : vector<8x256xf32>
      %737 = vector.extract_strided_slice %720 {offsets = [0, 0], sizes = [8, 1], strides = [1, 1]} : vector<10x1xf32> to vector<8x1xf32>
      %c2_363 = arith.constant 2 : index
      %c0_364 = arith.constant 0 : index
      %c0_365 = arith.constant 0 : index
      %738 = vector.load %arg3[%c2_363, %c0_364, %c0_365] : memref<3x3x256xf32, #tpu.memory_space<vmem>>, vector<1x1x256xf32>
      %739 = vector.shape_cast %738 : vector<1x1x256xf32> to vector<256xf32>
      %740 = vector.shape_cast %739 : vector<256xf32> to vector<1x256xf32>
      %741 = vector.broadcast %737 : vector<8x1xf32> to vector<8x256xf32>
      %742 = vector.broadcast %740 : vector<1x256xf32> to vector<8x256xf32>
      %743 = arith.mulf %741, %742 : vector<8x256xf32>
      %744 = arith.addf %736, %743 : vector<8x256xf32>
      %c0_366 = arith.constant 0 : index
      %c0_367 = arith.constant 0 : index
      %c0_368 = arith.constant 0 : index
      %c2_369 = arith.constant 2 : index
      %745 = vector.load %arg5[%c0_366, %c0_367, %c0_368, %c2_369] : memref<1x1x10x12xf32, #tpu.memory_space<vmem>>, vector<1x1x10x1xf32>
      %746 = vector.shape_cast %745 : vector<1x1x10x1xf32> to vector<10x1xf32>
      %747 = vector.extract_strided_slice %746 {offsets = [2, 0], sizes = [8, 1], strides = [1, 1]} : vector<10x1xf32> to vector<8x1xf32>
      %c0_370 = arith.constant 0 : index
      %c1_371 = arith.constant 1 : index
      %c0_372 = arith.constant 0 : index
      %748 = vector.load %arg3[%c0_370, %c1_371, %c0_372] : memref<3x3x256xf32, #tpu.memory_space<vmem>>, vector<1x1x256xf32>
      %749 = vector.shape_cast %748 : vector<1x1x256xf32> to vector<256xf32>
      %750 = vector.shape_cast %749 : vector<256xf32> to vector<1x256xf32>
      %751 = vector.broadcast %747 : vector<8x1xf32> to vector<8x256xf32>
      %752 = vector.broadcast %750 : vector<1x256xf32> to vector<8x256xf32>
      %753 = arith.mulf %751, %752 : vector<8x256xf32>
      %754 = arith.addf %744, %753 : vector<8x256xf32>
      %755 = vector.extract_strided_slice %746 {offsets = [1, 0], sizes = [8, 1], strides = [1, 1]} : vector<10x1xf32> to vector<8x1xf32>
      %c1_373 = arith.constant 1 : index
      %c1_374 = arith.constant 1 : index
      %c0_375 = arith.constant 0 : index
      %756 = vector.load %arg3[%c1_373, %c1_374, %c0_375] : memref<3x3x256xf32, #tpu.memory_space<vmem>>, vector<1x1x256xf32>
      %757 = vector.shape_cast %756 : vector<1x1x256xf32> to vector<256xf32>
      %758 = vector.shape_cast %757 : vector<256xf32> to vector<1x256xf32>
      %759 = vector.broadcast %755 : vector<8x1xf32> to vector<8x256xf32>
      %760 = vector.broadcast %758 : vector<1x256xf32> to vector<8x256xf32>
      %761 = arith.mulf %759, %760 : vector<8x256xf32>
      %762 = arith.addf %754, %761 : vector<8x256xf32>
      %763 = vector.extract_strided_slice %746 {offsets = [0, 0], sizes = [8, 1], strides = [1, 1]} : vector<10x1xf32> to vector<8x1xf32>
      %c2_376 = arith.constant 2 : index
      %c1_377 = arith.constant 1 : index
      %c0_378 = arith.constant 0 : index
      %764 = vector.load %arg3[%c2_376, %c1_377, %c0_378] : memref<3x3x256xf32, #tpu.memory_space<vmem>>, vector<1x1x256xf32>
      %765 = vector.shape_cast %764 : vector<1x1x256xf32> to vector<256xf32>
      %766 = vector.shape_cast %765 : vector<256xf32> to vector<1x256xf32>
      %767 = vector.broadcast %763 : vector<8x1xf32> to vector<8x256xf32>
      %768 = vector.broadcast %766 : vector<1x256xf32> to vector<8x256xf32>
      %769 = arith.mulf %767, %768 : vector<8x256xf32>
      %770 = arith.addf %762, %769 : vector<8x256xf32>
      %c0_379 = arith.constant 0 : index
      %c0_380 = arith.constant 0 : index
      %c0_381 = arith.constant 0 : index
      %c3 = arith.constant 3 : index
      %771 = vector.load %arg5[%c0_379, %c0_380, %c0_381, %c3] : memref<1x1x10x12xf32, #tpu.memory_space<vmem>>, vector<1x1x10x1xf32>
      %772 = vector.shape_cast %771 : vector<1x1x10x1xf32> to vector<10x1xf32>
      %773 = vector.extract_strided_slice %772 {offsets = [2, 0], sizes = [8, 1], strides = [1, 1]} : vector<10x1xf32> to vector<8x1xf32>
      %c0_382 = arith.constant 0 : index
      %c2_383 = arith.constant 2 : index
      %c0_384 = arith.constant 0 : index
      %774 = vector.load %arg3[%c0_382, %c2_383, %c0_384] : memref<3x3x256xf32, #tpu.memory_space<vmem>>, vector<1x1x256xf32>
      %775 = vector.shape_cast %774 : vector<1x1x256xf32> to vector<256xf32>
      %776 = vector.shape_cast %775 : vector<256xf32> to vector<1x256xf32>
      %777 = vector.broadcast %773 : vector<8x1xf32> to vector<8x256xf32>
      %778 = vector.broadcast %776 : vector<1x256xf32> to vector<8x256xf32>
      %779 = arith.mulf %777, %778 : vector<8x256xf32>
      %780 = arith.addf %770, %779 : vector<8x256xf32>
      %781 = vector.extract_strided_slice %772 {offsets = [1, 0], sizes = [8, 1], strides = [1, 1]} : vector<10x1xf32> to vector<8x1xf32>
      %c1_385 = arith.constant 1 : index
      %c2_386 = arith.constant 2 : index
      %c0_387 = arith.constant 0 : index
      %782 = vector.load %arg3[%c1_385, %c2_386, %c0_387] : memref<3x3x256xf32, #tpu.memory_space<vmem>>, vector<1x1x256xf32>
      %783 = vector.shape_cast %782 : vector<1x1x256xf32> to vector<256xf32>
      %784 = vector.shape_cast %783 : vector<256xf32> to vector<1x256xf32>
      %785 = vector.broadcast %781 : vector<8x1xf32> to vector<8x256xf32>
      %786 = vector.broadcast %784 : vector<1x256xf32> to vector<8x256xf32>
      %787 = arith.mulf %785, %786 : vector<8x256xf32>
      %788 = arith.addf %780, %787 : vector<8x256xf32>
      %789 = vector.extract_strided_slice %772 {offsets = [0, 0], sizes = [8, 1], strides = [1, 1]} : vector<10x1xf32> to vector<8x1xf32>
      %c2_388 = arith.constant 2 : index
      %c2_389 = arith.constant 2 : index
      %c0_390 = arith.constant 0 : index
      %790 = vector.load %arg3[%c2_388, %c2_389, %c0_390] : memref<3x3x256xf32, #tpu.memory_space<vmem>>, vector<1x1x256xf32>
      %791 = vector.shape_cast %790 : vector<1x1x256xf32> to vector<256xf32>
      %792 = vector.shape_cast %791 : vector<256xf32> to vector<1x256xf32>
      %793 = vector.broadcast %789 : vector<8x1xf32> to vector<8x256xf32>
      %794 = vector.broadcast %792 : vector<1x256xf32> to vector<8x256xf32>
      %795 = arith.mulf %793, %794 : vector<8x256xf32>
      %796 = arith.addf %788, %795 : vector<8x256xf32>
      %cst_391 = arith.constant 4.000000e-01 : f32
      %797 = vector.broadcast %cst_391 : f32 to vector<8x256xf32>
      %798 = arith.mulf %797, %796 : vector<8x256xf32>
      %799 = arith.maximumf %796, %798 : vector<8x256xf32>
      %c1_392 = arith.constant 1 : index
      %c256_393 = arith.constant 256 : index
      %800 = vector.load %arg7[%c1_392, %c256_393] : memref<10x2560xf32, #tpu.memory_space<vmem>>, vector<8x256xf32>
      tpu.vector_store %arg7[%c1_392, %c256_393], %799 {strides = array<i32>} : memref<10x2560xf32, #tpu.memory_space<vmem>>, vector<8x256xf32>,
    } else {
    }
    %true_14 = arith.constant true
    %25 = arith.xori %22, %true_14 : i1
    %26 = arith.extui %25 : i1 to i32
    %c0_i32_15 = arith.constant 0 : i32
    %27 = arith.cmpi ne, %26, %c0_i32_15 : i32
    scf.if %27 {
      %cst_352 = arith.constant 0.000000e+00 : f32
      %716 = vector.broadcast %cst_352 : f32 to vector<8x256xf32>
      %c1_353 = arith.constant 1 : index
      %c256_354 = arith.constant 256 : index
      %717 = vector.load %arg7[%c1_353, %c256_354] : memref<10x2560xf32, #tpu.memory_space<vmem>>, vector<8x256xf32>
      tpu.vector_store %arg7[%c1_353, %c256_354], %716 {strides = array<i32>} : memref<10x2560xf32, #tpu.memory_space<vmem>>, vector<8x256xf32>,
    } else {
    }
    %c8_i32_16 = arith.constant 8 : i32
    %28 = arith.muli %arg1, %c8_i32_16 : i32
    %c1_i32_17 = arith.constant 1 : i32
    %29 = arith.subi %28, %c1_i32_17 : i32
    %c2_i32 = arith.constant 2 : i32
    %30 = arith.addi %29, %c2_i32 : i32
    %c0_i32_18 = arith.constant 0 : i32
    %31 = arith.cmpi sge, %30, %c0_i32_18 : i32
    %c8_i32_19 = arith.constant 8 : i32
    %32 = arith.cmpi slt, %30, %c8_i32_19 : i32
    %33 = arith.andi %31, %32 : i1
    %34 = arith.extui %33 : i1 to i32
    %c0_i32_20 = arith.constant 0 : i32
    %35 = arith.cmpi ne, %34, %c0_i32_20 : i32
    scf.if %35 {
      %cst_352 = arith.constant 0.000000e+00 : f32
      %716 = vector.broadcast %cst_352 : f32 to vector<8x256xf32>
      %717 = vector.broadcast %0 : f32 to vector<8x256xf32>
      %718 = arith.addf %716, %717 : vector<8x256xf32>
      %c0_353 = arith.constant 0 : index
      %c0_354 = arith.constant 0 : index
      %c0_355 = arith.constant 0 : index
      %c2_356 = arith.constant 2 : index
      %719 = vector.load %arg5[%c0_353, %c0_354, %c0_355, %c2_356] : memref<1x1x10x12xf32, #tpu.memory_space<vmem>>, vector<1x1x10x1xf32>
      %720 = vector.shape_cast %719 : vector<1x1x10x1xf32> to vector<10x1xf32>
      %721 = vector.extract_strided_slice %720 {offsets = [2, 0], sizes = [8, 1], strides = [1, 1]} : vector<10x1xf32> to vector<8x1xf32>
      %c0_357 = arith.constant 0 : index
      %c0_358 = arith.constant 0 : index
      %c0_359 = arith.constant 0 : index
      %722 = vector.load %arg3[%c0_357, %c0_358, %c0_359] : memref<3x3x256xf32, #tpu.memory_space<vmem>>, vector<1x1x256xf32>
      %723 = vector.shape_cast %722 : vector<1x1x256xf32> to vector<256xf32>
      %724 = vector.shape_cast %723 : vector<256xf32> to vector<1x256xf32>
      %725 = vector.broadcast %721 : vector<8x1xf32> to vector<8x256xf32>
      %726 = vector.broadcast %724 : vector<1x256xf32> to vector<8x256xf32>
      %727 = arith.mulf %725, %726 : vector<8x256xf32>
      %728 = arith.addf %718, %727 : vector<8x256xf32>
      %729 = vector.extract_strided_slice %720 {offsets = [1, 0], sizes = [8, 1], strides = [1, 1]} : vector<10x1xf32> to vector<8x1xf32>
      %c1_360 = arith.constant 1 : index
      %c0_361 = arith.constant 0 : index
      %c0_362 = arith.constant 0 : index
      %730 = vector.load %arg3[%c1_360, %c0_361, %c0_362] : memref<3x3x256xf32, #tpu.memory_space<vmem>>, vector<1x1x256xf32>
      %731 = vector.shape_cast %730 : vector<1x1x256xf32> to vector<256xf32>
      %732 = vector.shape_cast %731 : vector<256xf32> to vector<1x256xf32>
      %733 = vector.broadcast %729 : vector<8x1xf32> to vector<8x256xf32>
      %734 = vector.broadcast %732 : vector<1x256xf32> to vector<8x256xf32>
      %735 = arith.mulf %733, %734 : vector<8x256xf32>
      %736 = arith.addf %728, %735 : vector<8x256xf32>
      %737 = vector.extract_strided_slice %720 {offsets = [0, 0], sizes = [8, 1], strides = [1, 1]} : vector<10x1xf32> to vector<8x1xf32>
      %c2_363 = arith.constant 2 : index
      %c0_364 = arith.constant 0 : index
      %c0_365 = arith.constant 0 : index
      %738 = vector.load %arg3[%c2_363, %c0_364, %c0_365] : memref<3x3x256xf32, #tpu.memory_space<vmem>>, vector<1x1x256xf32>
      %739 = vector.shape_cast %738 : vector<1x1x256xf32> to vector<256xf32>
      %740 = vector.shape_cast %739 : vector<256xf32> to vector<1x256xf32>
      %741 = vector.broadcast %737 : vector<8x1xf32> to vector<8x256xf32>
      %742 = vector.broadcast %740 : vector<1x256xf32> to vector<8x256xf32>
      %743 = arith.mulf %741, %742 : vector<8x256xf32>
      %744 = arith.addf %736, %743 : vector<8x256xf32>
      %c0_366 = arith.constant 0 : index
      %c0_367 = arith.constant 0 : index
      %c0_368 = arith.constant 0 : index
      %c3 = arith.constant 3 : index
      %745 = vector.load %arg5[%c0_366, %c0_367, %c0_368, %c3] : memref<1x1x10x12xf32, #tpu.memory_space<vmem>>, vector<1x1x10x1xf32>
      %746 = vector.shape_cast %745 : vector<1x1x10x1xf32> to vector<10x1xf32>
      %747 = vector.extract_strided_slice %746 {offsets = [2, 0], sizes = [8, 1], strides = [1, 1]} : vector<10x1xf32> to vector<8x1xf32>
      %c0_369 = arith.constant 0 : index
      %c1_370 = arith.constant 1 : index
      %c0_371 = arith.constant 0 : index
      %748 = vector.load %arg3[%c0_369, %c1_370, %c0_371] : memref<3x3x256xf32, #tpu.memory_space<vmem>>, vector<1x1x256xf32>
      %749 = vector.shape_cast %748 : vector<1x1x256xf32> to vector<256xf32>
      %750 = vector.shape_cast %749 : vector<256xf32> to vector<1x256xf32>
      %751 = vector.broadcast %747 : vector<8x1xf32> to vector<8x256xf32>
      %752 = vector.broadcast %750 : vector<1x256xf32> to vector<8x256xf32>
      %753 = arith.mulf %751, %752 : vector<8x256xf32>
      %754 = arith.addf %744, %753 : vector<8x256xf32>
      %755 = vector.extract_strided_slice %746 {offsets = [1, 0], sizes = [8, 1], strides = [1, 1]} : vector<10x1xf32> to vector<8x1xf32>
      %c1_372 = arith.constant 1 : index
      %c1_373 = arith.constant 1 : index
      %c0_374 = arith.constant 0 : index
      %756 = vector.load %arg3[%c1_372, %c1_373, %c0_374] : memref<3x3x256xf32, #tpu.memory_space<vmem>>, vector<1x1x256xf32>
      %757 = vector.shape_cast %756 : vector<1x1x256xf32> to vector<256xf32>
      %758 = vector.shape_cast %757 : vector<256xf32> to vector<1x256xf32>
      %759 = vector.broadcast %755 : vector<8x1xf32> to vector<8x256xf32>
      %760 = vector.broadcast %758 : vector<1x256xf32> to vector<8x256xf32>
      %761 = arith.mulf %759, %760 : vector<8x256xf32>
      %762 = arith.addf %754, %761 : vector<8x256xf32>
      %763 = vector.extract_strided_slice %746 {offsets = [0, 0], sizes = [8, 1], strides = [1, 1]} : vector<10x1xf32> to vector<8x1xf32>
      %c2_375 = arith.constant 2 : index
      %c1_376 = arith.constant 1 : index
      %c0_377 = arith.constant 0 : index
      %764 = vector.load %arg3[%c2_375, %c1_376, %c0_377] : memref<3x3x256xf32, #tpu.memory_space<vmem>>, vector<1x1x256xf32>
      %765 = vector.shape_cast %764 : vector<1x1x256xf32> to vector<256xf32>
      %766 = vector.shape_cast %765 : vector<256xf32> to vector<1x256xf32>
      %767 = vector.broadcast %763 : vector<8x1xf32> to vector<8x256xf32>
      %768 = vector.broadcast %766 : vector<1x256xf32> to vector<8x256xf32>
      %769 = arith.mulf %767, %768 : vector<8x256xf32>
      %770 = arith.addf %762, %769 : vector<8x256xf32>
      %c0_378 = arith.constant 0 : index
      %c0_379 = arith.constant 0 : index
      %c0_380 = arith.constant 0 : index
      %c4 = arith.constant 4 : index
      %771 = vector.load %arg5[%c0_378, %c0_379, %c0_380, %c4] : memref<1x1x10x12xf32, #tpu.memory_space<vmem>>, vector<1x1x10x1xf32>
      %772 = vector.shape_cast %771 : vector<1x1x10x1xf32> to vector<10x1xf32>
      %773 = vector.extract_strided_slice %772 {offsets = [2, 0], sizes = [8, 1], strides = [1, 1]} : vector<10x1xf32> to vector<8x1xf32>
      %c0_381 = arith.constant 0 : index
      %c2_382 = arith.constant 2 : index
      %c0_383 = arith.constant 0 : index
      %774 = vector.load %arg3[%c0_381, %c2_382, %c0_383] : memref<3x3x256xf32, #tpu.memory_space<vmem>>, vector<1x1x256xf32>
      %775 = vector.shape_cast %774 : vector<1x1x256xf32> to vector<256xf32>
      %776 = vector.shape_cast %775 : vector<256xf32> to vector<1x256xf32>
      %777 = vector.broadcast %773 : vector<8x1xf32> to vector<8x256xf32>
      %778 = vector.broadcast %776 : vector<1x256xf32> to vector<8x256xf32>
      %779 = arith.mulf %777, %778 : vector<8x256xf32>
      %780 = arith.addf %770, %779 : vector<8x256xf32>
      %781 = vector.extract_strided_slice %772 {offsets = [1, 0], sizes = [8, 1], strides = [1, 1]} : vector<10x1xf32> to vector<8x1xf32>
      %c1_384 = arith.constant 1 : index
      %c2_385 = arith.constant 2 : index
      %c0_386 = arith.constant 0 : index
      %782 = vector.load %arg3[%c1_384, %c2_385, %c0_386] : memref<3x3x256xf32, #tpu.memory_space<vmem>>, vector<1x1x256xf32>
      %783 = vector.shape_cast %782 : vector<1x1x256xf32> to vector<256xf32>
      %784 = vector.shape_cast %783 : vector<256xf32> to vector<1x256xf32>
      %785 = vector.broadcast %781 : vector<8x1xf32> to vector<8x256xf32>
      %786 = vector.broadcast %784 : vector<1x256xf32> to vector<8x256xf32>
      %787 = arith.mulf %785, %786 : vector<8x256xf32>
      %788 = arith.addf %780, %787 : vector<8x256xf32>
      %789 = vector.extract_strided_slice %772 {offsets = [0, 0], sizes = [8, 1], strides = [1, 1]} : vector<10x1xf32> to vector<8x1xf32>
      %c2_387 = arith.constant 2 : index
      %c2_388 = arith.constant 2 : index
      %c0_389 = arith.constant 0 : index
      %790 = vector.load %arg3[%c2_387, %c2_388, %c0_389] : memref<3x3x256xf32, #tpu.memory_space<vmem>>, vector<1x1x256xf32>
      %791 = vector.shape_cast %790 : vector<1x1x256xf32> to vector<256xf32>
      %792 = vector.shape_cast %791 : vector<256xf32> to vector<1x256xf32>
      %793 = vector.broadcast %789 : vector<8x1xf32> to vector<8x256xf32>
      %794 = vector.broadcast %792 : vector<1x256xf32> to vector<8x256xf32>
      %795 = arith.mulf %793, %794 : vector<8x256xf32>
      %796 = arith.addf %788, %795 : vector<8x256xf32>
      %cst_390 = arith.constant 4.000000e-01 : f32
      %797 = vector.broadcast %cst_390 : f32 to vector<8x256xf32>
      %798 = arith.mulf %797, %796 : vector<8x256xf32>
      %799 = arith.maximumf %796, %798 : vector<8x256xf32>
      %c1_391 = arith.constant 1 : index
      %c512_392 = arith.constant 512 : index
      %800 = vector.load %arg7[%c1_391, %c512_392] : memref<10x2560xf32, #tpu.memory_space<vmem>>, vector<8x256xf32>
      tpu.vector_store %arg7[%c1_391, %c512_392], %799 {strides = array<i32>} : memref<10x2560xf32, #tpu.memory_space<vmem>>, vector<8x256xf32>,
    } else {
    }
    %true_21 = arith.constant true
    %36 = arith.xori %33, %true_21 : i1
    %37 = arith.extui %36 : i1 to i32
    %c0_i32_22 = arith.constant 0 : i32
    %38 = arith.cmpi ne, %37, %c0_i32_22 : i32
    scf.if %38 {
      %cst_352 = arith.constant 0.000000e+00 : f32
      %716 = vector.broadcast %cst_352 : f32 to vector<8x256xf32>
      %c1_353 = arith.constant 1 : index
      %c512_354 = arith.constant 512 : index
      %717 = vector.load %arg7[%c1_353, %c512_354] : memref<10x2560xf32, #tpu.memory_space<vmem>>, vector<8x256xf32>
      tpu.vector_store %arg7[%c1_353, %c512_354], %716 {strides = array<i32>} : memref<10x2560xf32, #tpu.memory_space<vmem>>, vector<8x256xf32>,
    } else {
    }
    %c8_i32_23 = arith.constant 8 : i32
    %39 = arith.muli %arg1, %c8_i32_23 : i32
    %c1_i32_24 = arith.constant 1 : i32
    %40 = arith.subi %39, %c1_i32_24 : i32
    %c3_i32 = arith.constant 3 : i32
    %41 = arith.addi %40, %c3_i32 : i32
    %c0_i32_25 = arith.constant 0 : i32
    %42 = arith.cmpi sge, %41, %c0_i32_25 : i32
    %c8_i32_26 = arith.constant 8 : i32
    %43 = arith.cmpi slt, %41, %c8_i32_26 : i32
    %44 = arith.andi %42, %43 : i1
    %45 = arith.extui %44 : i1 to i32
    %c0_i32_27 = arith.constant 0 : i32
    %46 = arith.cmpi ne, %45, %c0_i32_27 : i32
    scf.if %46 {
      %cst_352 = arith.constant 0.000000e+00 : f32
      %716 = vector.broadcast %cst_352 : f32 to vector<8x256xf32>
      %717 = vector.broadcast %0 : f32 to vector<8x256xf32>
      %718 = arith.addf %716, %717 : vector<8x256xf32>
      %c0_353 = arith.constant 0 : index
      %c0_354 = arith.constant 0 : index
      %c0_355 = arith.constant 0 : index
      %c3 = arith.constant 3 : index
      %719 = vector.load %arg5[%c0_353, %c0_354, %c0_355, %c3] : memref<1x1x10x12xf32, #tpu.memory_space<vmem>>, vector<1x1x10x1xf32>
      %720 = vector.shape_cast %719 : vector<1x1x10x1xf32> to vector<10x1xf32>
      %721 = vector.extract_strided_slice %720 {offsets = [2, 0], sizes = [8, 1], strides = [1, 1]} : vector<10x1xf32> to vector<8x1xf32>
      %c0_356 = arith.constant 0 : index
      %c0_357 = arith.constant 0 : index
      %c0_358 = arith.constant 0 : index
      %722 = vector.load %arg3[%c0_356, %c0_357, %c0_358] : memref<3x3x256xf32, #tpu.memory_space<vmem>>, vector<1x1x256xf32>
      %723 = vector.shape_cast %722 : vector<1x1x256xf32> to vector<256xf32>
      %724 = vector.shape_cast %723 : vector<256xf32> to vector<1x256xf32>
      %725 = vector.broadcast %721 : vector<8x1xf32> to vector<8x256xf32>
      %726 = vector.broadcast %724 : vector<1x256xf32> to vector<8x256xf32>
      %727 = arith.mulf %725, %726 : vector<8x256xf32>
      %728 = arith.addf %718, %727 : vector<8x256xf32>
      %729 = vector.extract_strided_slice %720 {offsets = [1, 0], sizes = [8, 1], strides = [1, 1]} : vector<10x1xf32> to vector<8x1xf32>
      %c1_359 = arith.constant 1 : index
      %c0_360 = arith.constant 0 : index
      %c0_361 = arith.constant 0 : index
      %730 = vector.load %arg3[%c1_359, %c0_360, %c0_361] : memref<3x3x256xf32, #tpu.memory_space<vmem>>, vector<1x1x256xf32>
      %731 = vector.shape_cast %730 : vector<1x1x256xf32> to vector<256xf32>
      %732 = vector.shape_cast %731 : vector<256xf32> to vector<1x256xf32>
      %733 = vector.broadcast %729 : vector<8x1xf32> to vector<8x256xf32>
      %734 = vector.broadcast %732 : vector<1x256xf32> to vector<8x256xf32>
      %735 = arith.mulf %733, %734 : vector<8x256xf32>
      %736 = arith.addf %728, %735 : vector<8x256xf32>
      %737 = vector.extract_strided_slice %720 {offsets = [0, 0], sizes = [8, 1], strides = [1, 1]} : vector<10x1xf32> to vector<8x1xf32>
      %c2_362 = arith.constant 2 : index
      %c0_363 = arith.constant 0 : index
      %c0_364 = arith.constant 0 : index
      %738 = vector.load %arg3[%c2_362, %c0_363, %c0_364] : memref<3x3x256xf32, #tpu.memory_space<vmem>>, vector<1x1x256xf32>
      %739 = vector.shape_cast %738 : vector<1x1x256xf32> to vector<256xf32>
      %740 = vector.shape_cast %739 : vector<256xf32> to vector<1x256xf32>
      %741 = vector.broadcast %737 : vector<8x1xf32> to vector<8x256xf32>
      %742 = vector.broadcast %740 : vector<1x256xf32> to vector<8x256xf32>
      %743 = arith.mulf %741, %742 : vector<8x256xf32>
      %744 = arith.addf %736, %743 : vector<8x256xf32>
      %c0_365 = arith.constant 0 : index
      %c0_366 = arith.constant 0 : index
      %c0_367 = arith.constant 0 : index
      %c4 = arith.constant 4 : index
      %745 = vector.load %arg5[%c0_365, %c0_366, %c0_367, %c4] : memref<1x1x10x12xf32, #tpu.memory_space<vmem>>, vector<1x1x10x1xf32>
      %746 = vector.shape_cast %745 : vector<1x1x10x1xf32> to vector<10x1xf32>
      %747 = vector.extract_strided_slice %746 {offsets = [2, 0], sizes = [8, 1], strides = [1, 1]} : vector<10x1xf32> to vector<8x1xf32>
      %c0_368 = arith.constant 0 : index
      %c1_369 = arith.constant 1 : index
      %c0_370 = arith.constant 0 : index
      %748 = vector.load %arg3[%c0_368, %c1_369, %c0_370] : memref<3x3x256xf32, #tpu.memory_space<vmem>>, vector<1x1x256xf32>
      %749 = vector.shape_cast %748 : vector<1x1x256xf32> to vector<256xf32>
      %750 = vector.shape_cast %749 : vector<256xf32> to vector<1x256xf32>
      %751 = vector.broadcast %747 : vector<8x1xf32> to vector<8x256xf32>
      %752 = vector.broadcast %750 : vector<1x256xf32> to vector<8x256xf32>
      %753 = arith.mulf %751, %752 : vector<8x256xf32>
      %754 = arith.addf %744, %753 : vector<8x256xf32>
      %755 = vector.extract_strided_slice %746 {offsets = [1, 0], sizes = [8, 1], strides = [1, 1]} : vector<10x1xf32> to vector<8x1xf32>
      %c1_371 = arith.constant 1 : index
      %c1_372 = arith.constant 1 : index
      %c0_373 = arith.constant 0 : index
      %756 = vector.load %arg3[%c1_371, %c1_372, %c0_373] : memref<3x3x256xf32, #tpu.memory_space<vmem>>, vector<1x1x256xf32>
      %757 = vector.shape_cast %756 : vector<1x1x256xf32> to vector<256xf32>
      %758 = vector.shape_cast %757 : vector<256xf32> to vector<1x256xf32>
      %759 = vector.broadcast %755 : vector<8x1xf32> to vector<8x256xf32>
      %760 = vector.broadcast %758 : vector<1x256xf32> to vector<8x256xf32>
      %761 = arith.mulf %759, %760 : vector<8x256xf32>
      %762 = arith.addf %754, %761 : vector<8x256xf32>
      %763 = vector.extract_strided_slice %746 {offsets = [0, 0], sizes = [8, 1], strides = [1, 1]} : vector<10x1xf32> to vector<8x1xf32>
      %c2_374 = arith.constant 2 : index
      %c1_375 = arith.constant 1 : index
      %c0_376 = arith.constant 0 : index
      %764 = vector.load %arg3[%c2_374, %c1_375, %c0_376] : memref<3x3x256xf32, #tpu.memory_space<vmem>>, vector<1x1x256xf32>
      %765 = vector.shape_cast %764 : vector<1x1x256xf32> to vector<256xf32>
      %766 = vector.shape_cast %765 : vector<256xf32> to vector<1x256xf32>
      %767 = vector.broadcast %763 : vector<8x1xf32> to vector<8x256xf32>
      %768 = vector.broadcast %766 : vector<1x256xf32> to vector<8x256xf32>
      %769 = arith.mulf %767, %768 : vector<8x256xf32>
      %770 = arith.addf %762, %769 : vector<8x256xf32>
      %c0_377 = arith.constant 0 : index
      %c0_378 = arith.constant 0 : index
      %c0_379 = arith.constant 0 : index
      %c5 = arith.constant 5 : index
      %771 = vector.load %arg5[%c0_377, %c0_378, %c0_379, %c5] : memref<1x1x10x12xf32, #tpu.memory_space<vmem>>, vector<1x1x10x1xf32>
      %772 = vector.shape_cast %771 : vector<1x1x10x1xf32> to vector<10x1xf32>
      %773 = vector.extract_strided_slice %772 {offsets = [2, 0], sizes = [8, 1], strides = [1, 1]} : vector<10x1xf32> to vector<8x1xf32>
      %c0_380 = arith.constant 0 : index
      %c2_381 = arith.constant 2 : index
      %c0_382 = arith.constant 0 : index
      %774 = vector.load %arg3[%c0_380, %c2_381, %c0_382] : memref<3x3x256xf32, #tpu.memory_space<vmem>>, vector<1x1x256xf32>
      %775 = vector.shape_cast %774 : vector<1x1x256xf32> to vector<256xf32>
      %776 = vector.shape_cast %775 : vector<256xf32> to vector<1x256xf32>
      %777 = vector.broadcast %773 : vector<8x1xf32> to vector<8x256xf32>
      %778 = vector.broadcast %776 : vector<1x256xf32> to vector<8x256xf32>
      %779 = arith.mulf %777, %778 : vector<8x256xf32>
      %780 = arith.addf %770, %779 : vector<8x256xf32>
      %781 = vector.extract_strided_slice %772 {offsets = [1, 0], sizes = [8, 1], strides = [1, 1]} : vector<10x1xf32> to vector<8x1xf32>
      %c1_383 = arith.constant 1 : index
      %c2_384 = arith.constant 2 : index
      %c0_385 = arith.constant 0 : index
      %782 = vector.load %arg3[%c1_383, %c2_384, %c0_385] : memref<3x3x256xf32, #tpu.memory_space<vmem>>, vector<1x1x256xf32>
      %783 = vector.shape_cast %782 : vector<1x1x256xf32> to vector<256xf32>
      %784 = vector.shape_cast %783 : vector<256xf32> to vector<1x256xf32>
      %785 = vector.broadcast %781 : vector<8x1xf32> to vector<8x256xf32>
      %786 = vector.broadcast %784 : vector<1x256xf32> to vector<8x256xf32>
      %787 = arith.mulf %785, %786 : vector<8x256xf32>
      %788 = arith.addf %780, %787 : vector<8x256xf32>
      %789 = vector.extract_strided_slice %772 {offsets = [0, 0], sizes = [8, 1], strides = [1, 1]} : vector<10x1xf32> to vector<8x1xf32>
      %c2_386 = arith.constant 2 : index
      %c2_387 = arith.constant 2 : index
      %c0_388 = arith.constant 0 : index
      %790 = vector.load %arg3[%c2_386, %c2_387, %c0_388] : memref<3x3x256xf32, #tpu.memory_space<vmem>>, vector<1x1x256xf32>
      %791 = vector.shape_cast %790 : vector<1x1x256xf32> to vector<256xf32>
      %792 = vector.shape_cast %791 : vector<256xf32> to vector<1x256xf32>
      %793 = vector.broadcast %789 : vector<8x1xf32> to vector<8x256xf32>
      %794 = vector.broadcast %792 : vector<1x256xf32> to vector<8x256xf32>
      %795 = arith.mulf %793, %794 : vector<8x256xf32>
      %796 = arith.addf %788, %795 : vector<8x256xf32>
      %cst_389 = arith.constant 4.000000e-01 : f32
      %797 = vector.broadcast %cst_389 : f32 to vector<8x256xf32>
      %798 = arith.mulf %797, %796 : vector<8x256xf32>
      %799 = arith.maximumf %796, %798 : vector<8x256xf32>
      %c1_390 = arith.constant 1 : index
      %c768_391 = arith.constant 768 : index
      %800 = vector.load %arg7[%c1_390, %c768_391] : memref<10x2560xf32, #tpu.memory_space<vmem>>, vector<8x256xf32>
      tpu.vector_store %arg7[%c1_390, %c768_391], %799 {strides = array<i32>} : memref<10x2560xf32, #tpu.memory_space<vmem>>, vector<8x256xf32>,
    } else {
    }
    %true_28 = arith.constant true
    %47 = arith.xori %44, %true_28 : i1
    %48 = arith.extui %47 : i1 to i32
    %c0_i32_29 = arith.constant 0 : i32
    %49 = arith.cmpi ne, %48, %c0_i32_29 : i32
    scf.if %49 {
      %cst_352 = arith.constant 0.000000e+00 : f32
      %716 = vector.broadcast %cst_352 : f32 to vector<8x256xf32>
      %c1_353 = arith.constant 1 : index
      %c768_354 = arith.constant 768 : index
      %717 = vector.load %arg7[%c1_353, %c768_354] : memref<10x2560xf32, #tpu.memory_space<vmem>>, vector<8x256xf32>
      tpu.vector_store %arg7[%c1_353, %c768_354], %716 {strides = array<i32>} : memref<10x2560xf32, #tpu.memory_space<vmem>>, vector<8x256xf32>,
    } else {
    }
    %c8_i32_30 = arith.constant 8 : i32
    %50 = arith.muli %arg1, %c8_i32_30 : i32
    %c1_i32_31 = arith.constant 1 : i32
    %51 = arith.subi %50, %c1_i32_31 : i32
    %c4_i32 = arith.constant 4 : i32
    %52 = arith.addi %51, %c4_i32 : i32
    %c0_i32_32 = arith.constant 0 : i32
    %53 = arith.cmpi sge, %52, %c0_i32_32 : i32
    %c8_i32_33 = arith.constant 8 : i32
    %54 = arith.cmpi slt, %52, %c8_i32_33 : i32
    %55 = arith.andi %53, %54 : i1
    %56 = arith.extui %55 : i1 to i32
    %c0_i32_34 = arith.constant 0 : i32
    %57 = arith.cmpi ne, %56, %c0_i32_34 : i32
    scf.if %57 {
      %cst_352 = arith.constant 0.000000e+00 : f32
      %716 = vector.broadcast %cst_352 : f32 to vector<8x256xf32>
      %717 = vector.broadcast %0 : f32 to vector<8x256xf32>
      %718 = arith.addf %716, %717 : vector<8x256xf32>
      %c0_353 = arith.constant 0 : index
      %c0_354 = arith.constant 0 : index
      %c0_355 = arith.constant 0 : index
      %c4 = arith.constant 4 : index
      %719 = vector.load %arg5[%c0_353, %c0_354, %c0_355, %c4] : memref<1x1x10x12xf32, #tpu.memory_space<vmem>>, vector<1x1x10x1xf32>
      %720 = vector.shape_cast %719 : vector<1x1x10x1xf32> to vector<10x1xf32>
      %721 = vector.extract_strided_slice %720 {offsets = [2, 0], sizes = [8, 1], strides = [1, 1]} : vector<10x1xf32> to vector<8x1xf32>
      %c0_356 = arith.constant 0 : index
      %c0_357 = arith.constant 0 : index
      %c0_358 = arith.constant 0 : index
      %722 = vector.load %arg3[%c0_356, %c0_357, %c0_358] : memref<3x3x256xf32, #tpu.memory_space<vmem>>, vector<1x1x256xf32>
      %723 = vector.shape_cast %722 : vector<1x1x256xf32> to vector<256xf32>
      %724 = vector.shape_cast %723 : vector<256xf32> to vector<1x256xf32>
      %725 = vector.broadcast %721 : vector<8x1xf32> to vector<8x256xf32>
      %726 = vector.broadcast %724 : vector<1x256xf32> to vector<8x256xf32>
      %727 = arith.mulf %725, %726 : vector<8x256xf32>
      %728 = arith.addf %718, %727 : vector<8x256xf32>
      %729 = vector.extract_strided_slice %720 {offsets = [1, 0], sizes = [8, 1], strides = [1, 1]} : vector<10x1xf32> to vector<8x1xf32>
      %c1_359 = arith.constant 1 : index
      %c0_360 = arith.constant 0 : index
      %c0_361 = arith.constant 0 : index
      %730 = vector.load %arg3[%c1_359, %c0_360, %c0_361] : memref<3x3x256xf32, #tpu.memory_space<vmem>>, vector<1x1x256xf32>
      %731 = vector.shape_cast %730 : vector<1x1x256xf32> to vector<256xf32>
      %732 = vector.shape_cast %731 : vector<256xf32> to vector<1x256xf32>
      %733 = vector.broadcast %729 : vector<8x1xf32> to vector<8x256xf32>
      %734 = vector.broadcast %732 : vector<1x256xf32> to vector<8x256xf32>
      %735 = arith.mulf %733, %734 : vector<8x256xf32>
      %736 = arith.addf %728, %735 : vector<8x256xf32>
      %737 = vector.extract_strided_slice %720 {offsets = [0, 0], sizes = [8, 1], strides = [1, 1]} : vector<10x1xf32> to vector<8x1xf32>
      %c2_362 = arith.constant 2 : index
      %c0_363 = arith.constant 0 : index
      %c0_364 = arith.constant 0 : index
      %738 = vector.load %arg3[%c2_362, %c0_363, %c0_364] : memref<3x3x256xf32, #tpu.memory_space<vmem>>, vector<1x1x256xf32>
      %739 = vector.shape_cast %738 : vector<1x1x256xf32> to vector<256xf32>
      %740 = vector.shape_cast %739 : vector<256xf32> to vector<1x256xf32>
      %741 = vector.broadcast %737 : vector<8x1xf32> to vector<8x256xf32>
      %742 = vector.broadcast %740 : vector<1x256xf32> to vector<8x256xf32>
      %743 = arith.mulf %741, %742 : vector<8x256xf32>
      %744 = arith.addf %736, %743 : vector<8x256xf32>
      %c0_365 = arith.constant 0 : index
      %c0_366 = arith.constant 0 : index
      %c0_367 = arith.constant 0 : index
      %c5 = arith.constant 5 : index
      %745 = vector.load %arg5[%c0_365, %c0_366, %c0_367, %c5] : memref<1x1x10x12xf32, #tpu.memory_space<vmem>>, vector<1x1x10x1xf32>
      %746 = vector.shape_cast %745 : vector<1x1x10x1xf32> to vector<10x1xf32>
      %747 = vector.extract_strided_slice %746 {offsets = [2, 0], sizes = [8, 1], strides = [1, 1]} : vector<10x1xf32> to vector<8x1xf32>
      %c0_368 = arith.constant 0 : index
      %c1_369 = arith.constant 1 : index
      %c0_370 = arith.constant 0 : index
      %748 = vector.load %arg3[%c0_368, %c1_369, %c0_370] : memref<3x3x256xf32, #tpu.memory_space<vmem>>, vector<1x1x256xf32>
      %749 = vector.shape_cast %748 : vector<1x1x256xf32> to vector<256xf32>
      %750 = vector.shape_cast %749 : vector<256xf32> to vector<1x256xf32>
      %751 = vector.broadcast %747 : vector<8x1xf32> to vector<8x256xf32>
      %752 = vector.broadcast %750 : vector<1x256xf32> to vector<8x256xf32>
      %753 = arith.mulf %751, %752 : vector<8x256xf32>
      %754 = arith.addf %744, %753 : vector<8x256xf32>
      %755 = vector.extract_strided_slice %746 {offsets = [1, 0], sizes = [8, 1], strides = [1, 1]} : vector<10x1xf32> to vector<8x1xf32>
      %c1_371 = arith.constant 1 : index
      %c1_372 = arith.constant 1 : index
      %c0_373 = arith.constant 0 : index
      %756 = vector.load %arg3[%c1_371, %c1_372, %c0_373] : memref<3x3x256xf32, #tpu.memory_space<vmem>>, vector<1x1x256xf32>
      %757 = vector.shape_cast %756 : vector<1x1x256xf32> to vector<256xf32>
      %758 = vector.shape_cast %757 : vector<256xf32> to vector<1x256xf32>
      %759 = vector.broadcast %755 : vector<8x1xf32> to vector<8x256xf32>
      %760 = vector.broadcast %758 : vector<1x256xf32> to vector<8x256xf32>
      %761 = arith.mulf %759, %760 : vector<8x256xf32>
      %762 = arith.addf %754, %761 : vector<8x256xf32>
      %763 = vector.extract_strided_slice %746 {offsets = [0, 0], sizes = [8, 1], strides = [1, 1]} : vector<10x1xf32> to vector<8x1xf32>
      %c2_374 = arith.constant 2 : index
      %c1_375 = arith.constant 1 : index
      %c0_376 = arith.constant 0 : index
      %764 = vector.load %arg3[%c2_374, %c1_375, %c0_376] : memref<3x3x256xf32, #tpu.memory_space<vmem>>, vector<1x1x256xf32>
      %765 = vector.shape_cast %764 : vector<1x1x256xf32> to vector<256xf32>
      %766 = vector.shape_cast %765 : vector<256xf32> to vector<1x256xf32>
      %767 = vector.broadcast %763 : vector<8x1xf32> to vector<8x256xf32>
      %768 = vector.broadcast %766 : vector<1x256xf32> to vector<8x256xf32>
      %769 = arith.mulf %767, %768 : vector<8x256xf32>
      %770 = arith.addf %762, %769 : vector<8x256xf32>
      %c0_377 = arith.constant 0 : index
      %c0_378 = arith.constant 0 : index
      %c0_379 = arith.constant 0 : index
      %c6 = arith.constant 6 : index
      %771 = vector.load %arg5[%c0_377, %c0_378, %c0_379, %c6] : memref<1x1x10x12xf32, #tpu.memory_space<vmem>>, vector<1x1x10x1xf32>
      %772 = vector.shape_cast %771 : vector<1x1x10x1xf32> to vector<10x1xf32>
      %773 = vector.extract_strided_slice %772 {offsets = [2, 0], sizes = [8, 1], strides = [1, 1]} : vector<10x1xf32> to vector<8x1xf32>
      %c0_380 = arith.constant 0 : index
      %c2_381 = arith.constant 2 : index
      %c0_382 = arith.constant 0 : index
      %774 = vector.load %arg3[%c0_380, %c2_381, %c0_382] : memref<3x3x256xf32, #tpu.memory_space<vmem>>, vector<1x1x256xf32>
      %775 = vector.shape_cast %774 : vector<1x1x256xf32> to vector<256xf32>
      %776 = vector.shape_cast %775 : vector<256xf32> to vector<1x256xf32>
      %777 = vector.broadcast %773 : vector<8x1xf32> to vector<8x256xf32>
      %778 = vector.broadcast %776 : vector<1x256xf32> to vector<8x256xf32>
      %779 = arith.mulf %777, %778 : vector<8x256xf32>
      %780 = arith.addf %770, %779 : vector<8x256xf32>
      %781 = vector.extract_strided_slice %772 {offsets = [1, 0], sizes = [8, 1], strides = [1, 1]} : vector<10x1xf32> to vector<8x1xf32>
      %c1_383 = arith.constant 1 : index
      %c2_384 = arith.constant 2 : index
      %c0_385 = arith.constant 0 : index
      %782 = vector.load %arg3[%c1_383, %c2_384, %c0_385] : memref<3x3x256xf32, #tpu.memory_space<vmem>>, vector<1x1x256xf32>
      %783 = vector.shape_cast %782 : vector<1x1x256xf32> to vector<256xf32>
      %784 = vector.shape_cast %783 : vector<256xf32> to vector<1x256xf32>
      %785 = vector.broadcast %781 : vector<8x1xf32> to vector<8x256xf32>
      %786 = vector.broadcast %784 : vector<1x256xf32> to vector<8x256xf32>
      %787 = arith.mulf %785, %786 : vector<8x256xf32>
      %788 = arith.addf %780, %787 : vector<8x256xf32>
      %789 = vector.extract_strided_slice %772 {offsets = [0, 0], sizes = [8, 1], strides = [1, 1]} : vector<10x1xf32> to vector<8x1xf32>
      %c2_386 = arith.constant 2 : index
      %c2_387 = arith.constant 2 : index
      %c0_388 = arith.constant 0 : index
      %790 = vector.load %arg3[%c2_386, %c2_387, %c0_388] : memref<3x3x256xf32, #tpu.memory_space<vmem>>, vector<1x1x256xf32>
      %791 = vector.shape_cast %790 : vector<1x1x256xf32> to vector<256xf32>
      %792 = vector.shape_cast %791 : vector<256xf32> to vector<1x256xf32>
      %793 = vector.broadcast %789 : vector<8x1xf32> to vector<8x256xf32>
      %794 = vector.broadcast %792 : vector<1x256xf32> to vector<8x256xf32>
      %795 = arith.mulf %793, %794 : vector<8x256xf32>
      %796 = arith.addf %788, %795 : vector<8x256xf32>
      %cst_389 = arith.constant 4.000000e-01 : f32
      %797 = vector.broadcast %cst_389 : f32 to vector<8x256xf32>
      %798 = arith.mulf %797, %796 : vector<8x256xf32>
      %799 = arith.maximumf %796, %798 : vector<8x256xf32>
      %c1_390 = arith.constant 1 : index
      %c1024_391 = arith.constant 1024 : index
      %800 = vector.load %arg7[%c1_390, %c1024_391] : memref<10x2560xf32, #tpu.memory_space<vmem>>, vector<8x256xf32>
      tpu.vector_store %arg7[%c1_390, %c1024_391], %799 {strides = array<i32>} : memref<10x2560xf32, #tpu.memory_space<vmem>>, vector<8x256xf32>,
    } else {
    }
    %true_35 = arith.constant true
    %58 = arith.xori %55, %true_35 : i1
    %59 = arith.extui %58 : i1 to i32
    %c0_i32_36 = arith.constant 0 : i32
    %60 = arith.cmpi ne, %59, %c0_i32_36 : i32
    scf.if %60 {
      %cst_352 = arith.constant 0.000000e+00 : f32
      %716 = vector.broadcast %cst_352 : f32 to vector<8x256xf32>
      %c1_353 = arith.constant 1 : index
      %c1024_354 = arith.constant 1024 : index
      %717 = vector.load %arg7[%c1_353, %c1024_354] : memref<10x2560xf32, #tpu.memory_space<vmem>>, vector<8x256xf32>
      tpu.vector_store %arg7[%c1_353, %c1024_354], %716 {strides = array<i32>} : memref<10x2560xf32, #tpu.memory_space<vmem>>, vector<8x256xf32>,
    } else {
    }
    %c8_i32_37 = arith.constant 8 : i32
    %61 = arith.muli %arg1, %c8_i32_37 : i32
    %c1_i32_38 = arith.constant 1 : i32
    %62 = arith.subi %61, %c1_i32_38 : i32
    %c5_i32 = arith.constant 5 : i32
    %63 = arith.addi %62, %c5_i32 : i32
    %c0_i32_39 = arith.constant 0 : i32
    %64 = arith.cmpi sge, %63, %c0_i32_39 : i32
    %c8_i32_40 = arith.constant 8 : i32
    %65 = arith.cmpi slt, %63, %c8_i32_40 : i32
    %66 = arith.andi %64, %65 : i1
    %67 = arith.extui %66 : i1 to i32
    %c0_i32_41 = arith.constant 0 : i32
    %68 = arith.cmpi ne, %67, %c0_i32_41 : i32
    scf.if %68 {
      %cst_352 = arith.constant 0.000000e+00 : f32
      %716 = vector.broadcast %cst_352 : f32 to vector<8x256xf32>
      %717 = vector.broadcast %0 : f32 to vector<8x256xf32>
      %718 = arith.addf %716, %717 : vector<8x256xf32>
      %c0_353 = arith.constant 0 : index
      %c0_354 = arith.constant 0 : index
      %c0_355 = arith.constant 0 : index
      %c5 = arith.constant 5 : index
      %719 = vector.load %arg5[%c0_353, %c0_354, %c0_355, %c5] : memref<1x1x10x12xf32, #tpu.memory_space<vmem>>, vector<1x1x10x1xf32>
      %720 = vector.shape_cast %719 : vector<1x1x10x1xf32> to vector<10x1xf32>
      %721 = vector.extract_strided_slice %720 {offsets = [2, 0], sizes = [8, 1], strides = [1, 1]} : vector<10x1xf32> to vector<8x1xf32>
      %c0_356 = arith.constant 0 : index
      %c0_357 = arith.constant 0 : index
      %c0_358 = arith.constant 0 : index
      %722 = vector.load %arg3[%c0_356, %c0_357, %c0_358] : memref<3x3x256xf32, #tpu.memory_space<vmem>>, vector<1x1x256xf32>
      %723 = vector.shape_cast %722 : vector<1x1x256xf32> to vector<256xf32>
      %724 = vector.shape_cast %723 : vector<256xf32> to vector<1x256xf32>
      %725 = vector.broadcast %721 : vector<8x1xf32> to vector<8x256xf32>
      %726 = vector.broadcast %724 : vector<1x256xf32> to vector<8x256xf32>
      %727 = arith.mulf %725, %726 : vector<8x256xf32>
      %728 = arith.addf %718, %727 : vector<8x256xf32>
      %729 = vector.extract_strided_slice %720 {offsets = [1, 0], sizes = [8, 1], strides = [1, 1]} : vector<10x1xf32> to vector<8x1xf32>
      %c1_359 = arith.constant 1 : index
      %c0_360 = arith.constant 0 : index
      %c0_361 = arith.constant 0 : index
      %730 = vector.load %arg3[%c1_359, %c0_360, %c0_361] : memref<3x3x256xf32, #tpu.memory_space<vmem>>, vector<1x1x256xf32>
      %731 = vector.shape_cast %730 : vector<1x1x256xf32> to vector<256xf32>
      %732 = vector.shape_cast %731 : vector<256xf32> to vector<1x256xf32>
      %733 = vector.broadcast %729 : vector<8x1xf32> to vector<8x256xf32>
      %734 = vector.broadcast %732 : vector<1x256xf32> to vector<8x256xf32>
      %735 = arith.mulf %733, %734 : vector<8x256xf32>
      %736 = arith.addf %728, %735 : vector<8x256xf32>
      %737 = vector.extract_strided_slice %720 {offsets = [0, 0], sizes = [8, 1], strides = [1, 1]} : vector<10x1xf32> to vector<8x1xf32>
      %c2_362 = arith.constant 2 : index
      %c0_363 = arith.constant 0 : index
      %c0_364 = arith.constant 0 : index
      %738 = vector.load %arg3[%c2_362, %c0_363, %c0_364] : memref<3x3x256xf32, #tpu.memory_space<vmem>>, vector<1x1x256xf32>
      %739 = vector.shape_cast %738 : vector<1x1x256xf32> to vector<256xf32>
      %740 = vector.shape_cast %739 : vector<256xf32> to vector<1x256xf32>
      %741 = vector.broadcast %737 : vector<8x1xf32> to vector<8x256xf32>
      %742 = vector.broadcast %740 : vector<1x256xf32> to vector<8x256xf32>
      %743 = arith.mulf %741, %742 : vector<8x256xf32>
      %744 = arith.addf %736, %743 : vector<8x256xf32>
      %c0_365 = arith.constant 0 : index
      %c0_366 = arith.constant 0 : index
      %c0_367 = arith.constant 0 : index
      %c6 = arith.constant 6 : index
      %745 = vector.load %arg5[%c0_365, %c0_366, %c0_367, %c6] : memref<1x1x10x12xf32, #tpu.memory_space<vmem>>, vector<1x1x10x1xf32>
      %746 = vector.shape_cast %745 : vector<1x1x10x1xf32> to vector<10x1xf32>
      %747 = vector.extract_strided_slice %746 {offsets = [2, 0], sizes = [8, 1], strides = [1, 1]} : vector<10x1xf32> to vector<8x1xf32>
      %c0_368 = arith.constant 0 : index
      %c1_369 = arith.constant 1 : index
      %c0_370 = arith.constant 0 : index
      %748 = vector.load %arg3[%c0_368, %c1_369, %c0_370] : memref<3x3x256xf32, #tpu.memory_space<vmem>>, vector<1x1x256xf32>
      %749 = vector.shape_cast %748 : vector<1x1x256xf32> to vector<256xf32>
      %750 = vector.shape_cast %749 : vector<256xf32> to vector<1x256xf32>
      %751 = vector.broadcast %747 : vector<8x1xf32> to vector<8x256xf32>
      %752 = vector.broadcast %750 : vector<1x256xf32> to vector<8x256xf32>
      %753 = arith.mulf %751, %752 : vector<8x256xf32>
      %754 = arith.addf %744, %753 : vector<8x256xf32>
      %755 = vector.extract_strided_slice %746 {offsets = [1, 0], sizes = [8, 1], strides = [1, 1]} : vector<10x1xf32> to vector<8x1xf32>
      %c1_371 = arith.constant 1 : index
      %c1_372 = arith.constant 1 : index
      %c0_373 = arith.constant 0 : index
      %756 = vector.load %arg3[%c1_371, %c1_372, %c0_373] : memref<3x3x256xf32, #tpu.memory_space<vmem>>, vector<1x1x256xf32>
      %757 = vector.shape_cast %756 : vector<1x1x256xf32> to vector<256xf32>
      %758 = vector.shape_cast %757 : vector<256xf32> to vector<1x256xf32>
      %759 = vector.broadcast %755 : vector<8x1xf32> to vector<8x256xf32>
      %760 = vector.broadcast %758 : vector<1x256xf32> to vector<8x256xf32>
      %761 = arith.mulf %759, %760 : vector<8x256xf32>
      %762 = arith.addf %754, %761 : vector<8x256xf32>
      %763 = vector.extract_strided_slice %746 {offsets = [0, 0], sizes = [8, 1], strides = [1, 1]} : vector<10x1xf32> to vector<8x1xf32>
      %c2_374 = arith.constant 2 : index
      %c1_375 = arith.constant 1 : index
      %c0_376 = arith.constant 0 : index
      %764 = vector.load %arg3[%c2_374, %c1_375, %c0_376] : memref<3x3x256xf32, #tpu.memory_space<vmem>>, vector<1x1x256xf32>
      %765 = vector.shape_cast %764 : vector<1x1x256xf32> to vector<256xf32>
      %766 = vector.shape_cast %765 : vector<256xf32> to vector<1x256xf32>
      %767 = vector.broadcast %763 : vector<8x1xf32> to vector<8x256xf32>
      %768 = vector.broadcast %766 : vector<1x256xf32> to vector<8x256xf32>
      %769 = arith.mulf %767, %768 : vector<8x256xf32>
      %770 = arith.addf %762, %769 : vector<8x256xf32>
      %c0_377 = arith.constant 0 : index
      %c0_378 = arith.constant 0 : index
      %c0_379 = arith.constant 0 : index
      %c7 = arith.constant 7 : index
      %771 = vector.load %arg5[%c0_377, %c0_378, %c0_379, %c7] : memref<1x1x10x12xf32, #tpu.memory_space<vmem>>, vector<1x1x10x1xf32>
      %772 = vector.shape_cast %771 : vector<1x1x10x1xf32> to vector<10x1xf32>
      %773 = vector.extract_strided_slice %772 {offsets = [2, 0], sizes = [8, 1], strides = [1, 1]} : vector<10x1xf32> to vector<8x1xf32>
      %c0_380 = arith.constant 0 : index
      %c2_381 = arith.constant 2 : index
      %c0_382 = arith.constant 0 : index
      %774 = vector.load %arg3[%c0_380, %c2_381, %c0_382] : memref<3x3x256xf32, #tpu.memory_space<vmem>>, vector<1x1x256xf32>
      %775 = vector.shape_cast %774 : vector<1x1x256xf32> to vector<256xf32>
      %776 = vector.shape_cast %775 : vector<256xf32> to vector<1x256xf32>
      %777 = vector.broadcast %773 : vector<8x1xf32> to vector<8x256xf32>
      %778 = vector.broadcast %776 : vector<1x256xf32> to vector<8x256xf32>
      %779 = arith.mulf %777, %778 : vector<8x256xf32>
      %780 = arith.addf %770, %779 : vector<8x256xf32>
      %781 = vector.extract_strided_slice %772 {offsets = [1, 0], sizes = [8, 1], strides = [1, 1]} : vector<10x1xf32> to vector<8x1xf32>
      %c1_383 = arith.constant 1 : index
      %c2_384 = arith.constant 2 : index
      %c0_385 = arith.constant 0 : index
      %782 = vector.load %arg3[%c1_383, %c2_384, %c0_385] : memref<3x3x256xf32, #tpu.memory_space<vmem>>, vector<1x1x256xf32>
      %783 = vector.shape_cast %782 : vector<1x1x256xf32> to vector<256xf32>
      %784 = vector.shape_cast %783 : vector<256xf32> to vector<1x256xf32>
      %785 = vector.broadcast %781 : vector<8x1xf32> to vector<8x256xf32>
      %786 = vector.broadcast %784 : vector<1x256xf32> to vector<8x256xf32>
      %787 = arith.mulf %785, %786 : vector<8x256xf32>
      %788 = arith.addf %780, %787 : vector<8x256xf32>
      %789 = vector.extract_strided_slice %772 {offsets = [0, 0], sizes = [8, 1], strides = [1, 1]} : vector<10x1xf32> to vector<8x1xf32>
      %c2_386 = arith.constant 2 : index
      %c2_387 = arith.constant 2 : index
      %c0_388 = arith.constant 0 : index
      %790 = vector.load %arg3[%c2_386, %c2_387, %c0_388] : memref<3x3x256xf32, #tpu.memory_space<vmem>>, vector<1x1x256xf32>
      %791 = vector.shape_cast %790 : vector<1x1x256xf32> to vector<256xf32>
      %792 = vector.shape_cast %791 : vector<256xf32> to vector<1x256xf32>
      %793 = vector.broadcast %789 : vector<8x1xf32> to vector<8x256xf32>
      %794 = vector.broadcast %792 : vector<1x256xf32> to vector<8x256xf32>
      %795 = arith.mulf %793, %794 : vector<8x256xf32>
      %796 = arith.addf %788, %795 : vector<8x256xf32>
      %cst_389 = arith.constant 4.000000e-01 : f32
      %797 = vector.broadcast %cst_389 : f32 to vector<8x256xf32>
      %798 = arith.mulf %797, %796 : vector<8x256xf32>
      %799 = arith.maximumf %796, %798 : vector<8x256xf32>
      %c1_390 = arith.constant 1 : index
      %c1280_391 = arith.constant 1280 : index
      %800 = vector.load %arg7[%c1_390, %c1280_391] : memref<10x2560xf32, #tpu.memory_space<vmem>>, vector<8x256xf32>
      tpu.vector_store %arg7[%c1_390, %c1280_391], %799 {strides = array<i32>} : memref<10x2560xf32, #tpu.memory_space<vmem>>, vector<8x256xf32>,
    } else {
    }
    %true_42 = arith.constant true
    %69 = arith.xori %66, %true_42 : i1
    %70 = arith.extui %69 : i1 to i32
    %c0_i32_43 = arith.constant 0 : i32
    %71 = arith.cmpi ne, %70, %c0_i32_43 : i32
    scf.if %71 {
      %cst_352 = arith.constant 0.000000e+00 : f32
      %716 = vector.broadcast %cst_352 : f32 to vector<8x256xf32>
      %c1_353 = arith.constant 1 : index
      %c1280_354 = arith.constant 1280 : index
      %717 = vector.load %arg7[%c1_353, %c1280_354] : memref<10x2560xf32, #tpu.memory_space<vmem>>, vector<8x256xf32>
      tpu.vector_store %arg7[%c1_353, %c1280_354], %716 {strides = array<i32>} : memref<10x2560xf32, #tpu.memory_space<vmem>>, vector<8x256xf32>,
    } else {
    }
    %c8_i32_44 = arith.constant 8 : i32
    %72 = arith.muli %arg1, %c8_i32_44 : i32
    %c1_i32_45 = arith.constant 1 : i32
    %73 = arith.subi %72, %c1_i32_45 : i32
    %c6_i32 = arith.constant 6 : i32
    %74 = arith.addi %73, %c6_i32 : i32
    %c0_i32_46 = arith.constant 0 : i32
    %75 = arith.cmpi sge, %74, %c0_i32_46 : i32
    %c8_i32_47 = arith.constant 8 : i32
    %76 = arith.cmpi slt, %74, %c8_i32_47 : i32
    %77 = arith.andi %75, %76 : i1
    %78 = arith.extui %77 : i1 to i32
    %c0_i32_48 = arith.constant 0 : i32
    %79 = arith.cmpi ne, %78, %c0_i32_48 : i32
    scf.if %79 {
      %cst_352 = arith.constant 0.000000e+00 : f32
      %716 = vector.broadcast %cst_352 : f32 to vector<8x256xf32>
      %717 = vector.broadcast %0 : f32 to vector<8x256xf32>
      %718 = arith.addf %716, %717 : vector<8x256xf32>
      %c0_353 = arith.constant 0 : index
      %c0_354 = arith.constant 0 : index
      %c0_355 = arith.constant 0 : index
      %c6 = arith.constant 6 : index
      %719 = vector.load %arg5[%c0_353, %c0_354, %c0_355, %c6] : memref<1x1x10x12xf32, #tpu.memory_space<vmem>>, vector<1x1x10x1xf32>
      %720 = vector.shape_cast %719 : vector<1x1x10x1xf32> to vector<10x1xf32>
      %721 = vector.extract_strided_slice %720 {offsets = [2, 0], sizes = [8, 1], strides = [1, 1]} : vector<10x1xf32> to vector<8x1xf32>
      %c0_356 = arith.constant 0 : index
      %c0_357 = arith.constant 0 : index
      %c0_358 = arith.constant 0 : index
      %722 = vector.load %arg3[%c0_356, %c0_357, %c0_358] : memref<3x3x256xf32, #tpu.memory_space<vmem>>, vector<1x1x256xf32>
      %723 = vector.shape_cast %722 : vector<1x1x256xf32> to vector<256xf32>
      %724 = vector.shape_cast %723 : vector<256xf32> to vector<1x256xf32>
      %725 = vector.broadcast %721 : vector<8x1xf32> to vector<8x256xf32>
      %726 = vector.broadcast %724 : vector<1x256xf32> to vector<8x256xf32>
      %727 = arith.mulf %725, %726 : vector<8x256xf32>
      %728 = arith.addf %718, %727 : vector<8x256xf32>
      %729 = vector.extract_strided_slice %720 {offsets = [1, 0], sizes = [8, 1], strides = [1, 1]} : vector<10x1xf32> to vector<8x1xf32>
      %c1_359 = arith.constant 1 : index
      %c0_360 = arith.constant 0 : index
      %c0_361 = arith.constant 0 : index
      %730 = vector.load %arg3[%c1_359, %c0_360, %c0_361] : memref<3x3x256xf32, #tpu.memory_space<vmem>>, vector<1x1x256xf32>
      %731 = vector.shape_cast %730 : vector<1x1x256xf32> to vector<256xf32>
      %732 = vector.shape_cast %731 : vector<256xf32> to vector<1x256xf32>
      %733 = vector.broadcast %729 : vector<8x1xf32> to vector<8x256xf32>
      %734 = vector.broadcast %732 : vector<1x256xf32> to vector<8x256xf32>
      %735 = arith.mulf %733, %734 : vector<8x256xf32>
      %736 = arith.addf %728, %735 : vector<8x256xf32>
      %737 = vector.extract_strided_slice %720 {offsets = [0, 0], sizes = [8, 1], strides = [1, 1]} : vector<10x1xf32> to vector<8x1xf32>
      %c2_362 = arith.constant 2 : index
      %c0_363 = arith.constant 0 : index
      %c0_364 = arith.constant 0 : index
      %738 = vector.load %arg3[%c2_362, %c0_363, %c0_364] : memref<3x3x256xf32, #tpu.memory_space<vmem>>, vector<1x1x256xf32>
      %739 = vector.shape_cast %738 : vector<1x1x256xf32> to vector<256xf32>
      %740 = vector.shape_cast %739 : vector<256xf32> to vector<1x256xf32>
      %741 = vector.broadcast %737 : vector<8x1xf32> to vector<8x256xf32>
      %742 = vector.broadcast %740 : vector<1x256xf32> to vector<8x256xf32>
      %743 = arith.mulf %741, %742 : vector<8x256xf32>
      %744 = arith.addf %736, %743 : vector<8x256xf32>
      %c0_365 = arith.constant 0 : index
      %c0_366 = arith.constant 0 : index
      %c0_367 = arith.constant 0 : index
      %c7 = arith.constant 7 : index
      %745 = vector.load %arg5[%c0_365, %c0_366, %c0_367, %c7] : memref<1x1x10x12xf32, #tpu.memory_space<vmem>>, vector<1x1x10x1xf32>
      %746 = vector.shape_cast %745 : vector<1x1x10x1xf32> to vector<10x1xf32>
      %747 = vector.extract_strided_slice %746 {offsets = [2, 0], sizes = [8, 1], strides = [1, 1]} : vector<10x1xf32> to vector<8x1xf32>
      %c0_368 = arith.constant 0 : index
      %c1_369 = arith.constant 1 : index
      %c0_370 = arith.constant 0 : index
      %748 = vector.load %arg3[%c0_368, %c1_369, %c0_370] : memref<3x3x256xf32, #tpu.memory_space<vmem>>, vector<1x1x256xf32>
      %749 = vector.shape_cast %748 : vector<1x1x256xf32> to vector<256xf32>
      %750 = vector.shape_cast %749 : vector<256xf32> to vector<1x256xf32>
      %751 = vector.broadcast %747 : vector<8x1xf32> to vector<8x256xf32>
      %752 = vector.broadcast %750 : vector<1x256xf32> to vector<8x256xf32>
      %753 = arith.mulf %751, %752 : vector<8x256xf32>
      %754 = arith.addf %744, %753 : vector<8x256xf32>
      %755 = vector.extract_strided_slice %746 {offsets = [1, 0], sizes = [8, 1], strides = [1, 1]} : vector<10x1xf32> to vector<8x1xf32>
      %c1_371 = arith.constant 1 : index
      %c1_372 = arith.constant 1 : index
      %c0_373 = arith.constant 0 : index
      %756 = vector.load %arg3[%c1_371, %c1_372, %c0_373] : memref<3x3x256xf32, #tpu.memory_space<vmem>>, vector<1x1x256xf32>
      %757 = vector.shape_cast %756 : vector<1x1x256xf32> to vector<256xf32>
      %758 = vector.shape_cast %757 : vector<256xf32> to vector<1x256xf32>
      %759 = vector.broadcast %755 : vector<8x1xf32> to vector<8x256xf32>
      %760 = vector.broadcast %758 : vector<1x256xf32> to vector<8x256xf32>
      %761 = arith.mulf %759, %760 : vector<8x256xf32>
      %762 = arith.addf %754, %761 : vector<8x256xf32>
      %763 = vector.extract_strided_slice %746 {offsets = [0, 0], sizes = [8, 1], strides = [1, 1]} : vector<10x1xf32> to vector<8x1xf32>
      %c2_374 = arith.constant 2 : index
      %c1_375 = arith.constant 1 : index
      %c0_376 = arith.constant 0 : index
      %764 = vector.load %arg3[%c2_374, %c1_375, %c0_376] : memref<3x3x256xf32, #tpu.memory_space<vmem>>, vector<1x1x256xf32>
      %765 = vector.shape_cast %764 : vector<1x1x256xf32> to vector<256xf32>
      %766 = vector.shape_cast %765 : vector<256xf32> to vector<1x256xf32>
      %767 = vector.broadcast %763 : vector<8x1xf32> to vector<8x256xf32>
      %768 = vector.broadcast %766 : vector<1x256xf32> to vector<8x256xf32>
      %769 = arith.mulf %767, %768 : vector<8x256xf32>
      %770 = arith.addf %762, %769 : vector<8x256xf32>
      %c0_377 = arith.constant 0 : index
      %c0_378 = arith.constant 0 : index
      %c0_379 = arith.constant 0 : index
      %c8 = arith.constant 8 : index
      %771 = vector.load %arg5[%c0_377, %c0_378, %c0_379, %c8] : memref<1x1x10x12xf32, #tpu.memory_space<vmem>>, vector<1x1x10x1xf32>
      %772 = vector.shape_cast %771 : vector<1x1x10x1xf32> to vector<10x1xf32>
      %773 = vector.extract_strided_slice %772 {offsets = [2, 0], sizes = [8, 1], strides = [1, 1]} : vector<10x1xf32> to vector<8x1xf32>
      %c0_380 = arith.constant 0 : index
      %c2_381 = arith.constant 2 : index
      %c0_382 = arith.constant 0 : index
      %774 = vector.load %arg3[%c0_380, %c2_381, %c0_382] : memref<3x3x256xf32, #tpu.memory_space<vmem>>, vector<1x1x256xf32>
      %775 = vector.shape_cast %774 : vector<1x1x256xf32> to vector<256xf32>
      %776 = vector.shape_cast %775 : vector<256xf32> to vector<1x256xf32>
      %777 = vector.broadcast %773 : vector<8x1xf32> to vector<8x256xf32>
      %778 = vector.broadcast %776 : vector<1x256xf32> to vector<8x256xf32>
      %779 = arith.mulf %777, %778 : vector<8x256xf32>
      %780 = arith.addf %770, %779 : vector<8x256xf32>
      %781 = vector.extract_strided_slice %772 {offsets = [1, 0], sizes = [8, 1], strides = [1, 1]} : vector<10x1xf32> to vector<8x1xf32>
      %c1_383 = arith.constant 1 : index
      %c2_384 = arith.constant 2 : index
      %c0_385 = arith.constant 0 : index
      %782 = vector.load %arg3[%c1_383, %c2_384, %c0_385] : memref<3x3x256xf32, #tpu.memory_space<vmem>>, vector<1x1x256xf32>
      %783 = vector.shape_cast %782 : vector<1x1x256xf32> to vector<256xf32>
      %784 = vector.shape_cast %783 : vector<256xf32> to vector<1x256xf32>
      %785 = vector.broadcast %781 : vector<8x1xf32> to vector<8x256xf32>
      %786 = vector.broadcast %784 : vector<1x256xf32> to vector<8x256xf32>
      %787 = arith.mulf %785, %786 : vector<8x256xf32>
      %788 = arith.addf %780, %787 : vector<8x256xf32>
      %789 = vector.extract_strided_slice %772 {offsets = [0, 0], sizes = [8, 1], strides = [1, 1]} : vector<10x1xf32> to vector<8x1xf32>
      %c2_386 = arith.constant 2 : index
      %c2_387 = arith.constant 2 : index
      %c0_388 = arith.constant 0 : index
      %790 = vector.load %arg3[%c2_386, %c2_387, %c0_388] : memref<3x3x256xf32, #tpu.memory_space<vmem>>, vector<1x1x256xf32>
      %791 = vector.shape_cast %790 : vector<1x1x256xf32> to vector<256xf32>
      %792 = vector.shape_cast %791 : vector<256xf32> to vector<1x256xf32>
      %793 = vector.broadcast %789 : vector<8x1xf32> to vector<8x256xf32>
      %794 = vector.broadcast %792 : vector<1x256xf32> to vector<8x256xf32>
      %795 = arith.mulf %793, %794 : vector<8x256xf32>
      %796 = arith.addf %788, %795 : vector<8x256xf32>
      %cst_389 = arith.constant 4.000000e-01 : f32
      %797 = vector.broadcast %cst_389 : f32 to vector<8x256xf32>
      %798 = arith.mulf %797, %796 : vector<8x256xf32>
      %799 = arith.maximumf %796, %798 : vector<8x256xf32>
      %c1_390 = arith.constant 1 : index
      %c1536_391 = arith.constant 1536 : index
      %800 = vector.load %arg7[%c1_390, %c1536_391] : memref<10x2560xf32, #tpu.memory_space<vmem>>, vector<8x256xf32>
      tpu.vector_store %arg7[%c1_390, %c1536_391], %799 {strides = array<i32>} : memref<10x2560xf32, #tpu.memory_space<vmem>>, vector<8x256xf32>,
    } else {
    }
    %true_49 = arith.constant true
    %80 = arith.xori %77, %true_49 : i1
    %81 = arith.extui %80 : i1 to i32
    %c0_i32_50 = arith.constant 0 : i32
    %82 = arith.cmpi ne, %81, %c0_i32_50 : i32
    scf.if %82 {
      %cst_352 = arith.constant 0.000000e+00 : f32
      %716 = vector.broadcast %cst_352 : f32 to vector<8x256xf32>
      %c1_353 = arith.constant 1 : index
      %c1536_354 = arith.constant 1536 : index
      %717 = vector.load %arg7[%c1_353, %c1536_354] : memref<10x2560xf32, #tpu.memory_space<vmem>>, vector<8x256xf32>
      tpu.vector_store %arg7[%c1_353, %c1536_354], %716 {strides = array<i32>} : memref<10x2560xf32, #tpu.memory_space<vmem>>, vector<8x256xf32>,
    } else {
    }
    %c8_i32_51 = arith.constant 8 : i32
    %83 = arith.muli %arg1, %c8_i32_51 : i32
    %c1_i32_52 = arith.constant 1 : i32
    %84 = arith.subi %83, %c1_i32_52 : i32
    %c7_i32 = arith.constant 7 : i32
    %85 = arith.addi %84, %c7_i32 : i32
    %c0_i32_53 = arith.constant 0 : i32
    %86 = arith.cmpi sge, %85, %c0_i32_53 : i32
    %c8_i32_54 = arith.constant 8 : i32
    %87 = arith.cmpi slt, %85, %c8_i32_54 : i32
    %88 = arith.andi %86, %87 : i1
    %89 = arith.extui %88 : i1 to i32
    %c0_i32_55 = arith.constant 0 : i32
    %90 = arith.cmpi ne, %89, %c0_i32_55 : i32
    scf.if %90 {
      %cst_352 = arith.constant 0.000000e+00 : f32
      %716 = vector.broadcast %cst_352 : f32 to vector<8x256xf32>
      %717 = vector.broadcast %0 : f32 to vector<8x256xf32>
      %718 = arith.addf %716, %717 : vector<8x256xf32>
      %c0_353 = arith.constant 0 : index
      %c0_354 = arith.constant 0 : index
      %c0_355 = arith.constant 0 : index
      %c7 = arith.constant 7 : index
      %719 = vector.load %arg5[%c0_353, %c0_354, %c0_355, %c7] : memref<1x1x10x12xf32, #tpu.memory_space<vmem>>, vector<1x1x10x1xf32>
      %720 = vector.shape_cast %719 : vector<1x1x10x1xf32> to vector<10x1xf32>
      %721 = vector.extract_strided_slice %720 {offsets = [2, 0], sizes = [8, 1], strides = [1, 1]} : vector<10x1xf32> to vector<8x1xf32>
      %c0_356 = arith.constant 0 : index
      %c0_357 = arith.constant 0 : index
      %c0_358 = arith.constant 0 : index
      %722 = vector.load %arg3[%c0_356, %c0_357, %c0_358] : memref<3x3x256xf32, #tpu.memory_space<vmem>>, vector<1x1x256xf32>
      %723 = vector.shape_cast %722 : vector<1x1x256xf32> to vector<256xf32>
      %724 = vector.shape_cast %723 : vector<256xf32> to vector<1x256xf32>
      %725 = vector.broadcast %721 : vector<8x1xf32> to vector<8x256xf32>
      %726 = vector.broadcast %724 : vector<1x256xf32> to vector<8x256xf32>
      %727 = arith.mulf %725, %726 : vector<8x256xf32>
      %728 = arith.addf %718, %727 : vector<8x256xf32>
      %729 = vector.extract_strided_slice %720 {offsets = [1, 0], sizes = [8, 1], strides = [1, 1]} : vector<10x1xf32> to vector<8x1xf32>
      %c1_359 = arith.constant 1 : index
      %c0_360 = arith.constant 0 : index
      %c0_361 = arith.constant 0 : index
      %730 = vector.load %arg3[%c1_359, %c0_360, %c0_361] : memref<3x3x256xf32, #tpu.memory_space<vmem>>, vector<1x1x256xf32>
      %731 = vector.shape_cast %730 : vector<1x1x256xf32> to vector<256xf32>
      %732 = vector.shape_cast %731 : vector<256xf32> to vector<1x256xf32>
      %733 = vector.broadcast %729 : vector<8x1xf32> to vector<8x256xf32>
      %734 = vector.broadcast %732 : vector<1x256xf32> to vector<8x256xf32>
      %735 = arith.mulf %733, %734 : vector<8x256xf32>
      %736 = arith.addf %728, %735 : vector<8x256xf32>
      %737 = vector.extract_strided_slice %720 {offsets = [0, 0], sizes = [8, 1], strides = [1, 1]} : vector<10x1xf32> to vector<8x1xf32>
      %c2_362 = arith.constant 2 : index
      %c0_363 = arith.constant 0 : index
      %c0_364 = arith.constant 0 : index
      %738 = vector.load %arg3[%c2_362, %c0_363, %c0_364] : memref<3x3x256xf32, #tpu.memory_space<vmem>>, vector<1x1x256xf32>
      %739 = vector.shape_cast %738 : vector<1x1x256xf32> to vector<256xf32>
      %740 = vector.shape_cast %739 : vector<256xf32> to vector<1x256xf32>
      %741 = vector.broadcast %737 : vector<8x1xf32> to vector<8x256xf32>
      %742 = vector.broadcast %740 : vector<1x256xf32> to vector<8x256xf32>
      %743 = arith.mulf %741, %742 : vector<8x256xf32>
      %744 = arith.addf %736, %743 : vector<8x256xf32>
      %c0_365 = arith.constant 0 : index
      %c0_366 = arith.constant 0 : index
      %c0_367 = arith.constant 0 : index
      %c8 = arith.constant 8 : index
      %745 = vector.load %arg5[%c0_365, %c0_366, %c0_367, %c8] : memref<1x1x10x12xf32, #tpu.memory_space<vmem>>, vector<1x1x10x1xf32>
      %746 = vector.shape_cast %745 : vector<1x1x10x1xf32> to vector<10x1xf32>
      %747 = vector.extract_strided_slice %746 {offsets = [2, 0], sizes = [8, 1], strides = [1, 1]} : vector<10x1xf32> to vector<8x1xf32>
      %c0_368 = arith.constant 0 : index
      %c1_369 = arith.constant 1 : index
      %c0_370 = arith.constant 0 : index
      %748 = vector.load %arg3[%c0_368, %c1_369, %c0_370] : memref<3x3x256xf32, #tpu.memory_space<vmem>>, vector<1x1x256xf32>
      %749 = vector.shape_cast %748 : vector<1x1x256xf32> to vector<256xf32>
      %750 = vector.shape_cast %749 : vector<256xf32> to vector<1x256xf32>
      %751 = vector.broadcast %747 : vector<8x1xf32> to vector<8x256xf32>
      %752 = vector.broadcast %750 : vector<1x256xf32> to vector<8x256xf32>
      %753 = arith.mulf %751, %752 : vector<8x256xf32>
      %754 = arith.addf %744, %753 : vector<8x256xf32>
      %755 = vector.extract_strided_slice %746 {offsets = [1, 0], sizes = [8, 1], strides = [1, 1]} : vector<10x1xf32> to vector<8x1xf32>
      %c1_371 = arith.constant 1 : index
      %c1_372 = arith.constant 1 : index
      %c0_373 = arith.constant 0 : index
      %756 = vector.load %arg3[%c1_371, %c1_372, %c0_373] : memref<3x3x256xf32, #tpu.memory_space<vmem>>, vector<1x1x256xf32>
      %757 = vector.shape_cast %756 : vector<1x1x256xf32> to vector<256xf32>
      %758 = vector.shape_cast %757 : vector<256xf32> to vector<1x256xf32>
      %759 = vector.broadcast %755 : vector<8x1xf32> to vector<8x256xf32>
      %760 = vector.broadcast %758 : vector<1x256xf32> to vector<8x256xf32>
      %761 = arith.mulf %759, %760 : vector<8x256xf32>
      %762 = arith.addf %754, %761 : vector<8x256xf32>
      %763 = vector.extract_strided_slice %746 {offsets = [0, 0], sizes = [8, 1], strides = [1, 1]} : vector<10x1xf32> to vector<8x1xf32>
      %c2_374 = arith.constant 2 : index
      %c1_375 = arith.constant 1 : index
      %c0_376 = arith.constant 0 : index
      %764 = vector.load %arg3[%c2_374, %c1_375, %c0_376] : memref<3x3x256xf32, #tpu.memory_space<vmem>>, vector<1x1x256xf32>
      %765 = vector.shape_cast %764 : vector<1x1x256xf32> to vector<256xf32>
      %766 = vector.shape_cast %765 : vector<256xf32> to vector<1x256xf32>
      %767 = vector.broadcast %763 : vector<8x1xf32> to vector<8x256xf32>
      %768 = vector.broadcast %766 : vector<1x256xf32> to vector<8x256xf32>
      %769 = arith.mulf %767, %768 : vector<8x256xf32>
      %770 = arith.addf %762, %769 : vector<8x256xf32>
      %c0_377 = arith.constant 0 : index
      %c0_378 = arith.constant 0 : index
      %c0_379 = arith.constant 0 : index
      %c9_380 = arith.constant 9 : index
      %771 = vector.load %arg5[%c0_377, %c0_378, %c0_379, %c9_380] : memref<1x1x10x12xf32, #tpu.memory_space<vmem>>, vector<1x1x10x1xf32>
      %772 = vector.shape_cast %771 : vector<1x1x10x1xf32> to vector<10x1xf32>
      %773 = vector.extract_strided_slice %772 {offsets = [2, 0], sizes = [8, 1], strides = [1, 1]} : vector<10x1xf32> to vector<8x1xf32>
      %c0_381 = arith.constant 0 : index
      %c2_382 = arith.constant 2 : index
      %c0_383 = arith.constant 0 : index
      %774 = vector.load %arg3[%c0_381, %c2_382, %c0_383] : memref<3x3x256xf32, #tpu.memory_space<vmem>>, vector<1x1x256xf32>
      %775 = vector.shape_cast %774 : vector<1x1x256xf32> to vector<256xf32>
      %776 = vector.shape_cast %775 : vector<256xf32> to vector<1x256xf32>
      %777 = vector.broadcast %773 : vector<8x1xf32> to vector<8x256xf32>
      %778 = vector.broadcast %776 : vector<1x256xf32> to vector<8x256xf32>
      %779 = arith.mulf %777, %778 : vector<8x256xf32>
      %780 = arith.addf %770, %779 : vector<8x256xf32>
      %781 = vector.extract_strided_slice %772 {offsets = [1, 0], sizes = [8, 1], strides = [1, 1]} : vector<10x1xf32> to vector<8x1xf32>
      %c1_384 = arith.constant 1 : index
      %c2_385 = arith.constant 2 : index
      %c0_386 = arith.constant 0 : index
      %782 = vector.load %arg3[%c1_384, %c2_385, %c0_386] : memref<3x3x256xf32, #tpu.memory_space<vmem>>, vector<1x1x256xf32>
      %783 = vector.shape_cast %782 : vector<1x1x256xf32> to vector<256xf32>
      %784 = vector.shape_cast %783 : vector<256xf32> to vector<1x256xf32>
      %785 = vector.broadcast %781 : vector<8x1xf32> to vector<8x256xf32>
      %786 = vector.broadcast %784 : vector<1x256xf32> to vector<8x256xf32>
      %787 = arith.mulf %785, %786 : vector<8x256xf32>
      %788 = arith.addf %780, %787 : vector<8x256xf32>
      %789 = vector.extract_strided_slice %772 {offsets = [0, 0], sizes = [8, 1], strides = [1, 1]} : vector<10x1xf32> to vector<8x1xf32>
      %c2_387 = arith.constant 2 : index
      %c2_388 = arith.constant 2 : index
      %c0_389 = arith.constant 0 : index
      %790 = vector.load %arg3[%c2_387, %c2_388, %c0_389] : memref<3x3x256xf32, #tpu.memory_space<vmem>>, vector<1x1x256xf32>
      %791 = vector.shape_cast %790 : vector<1x1x256xf32> to vector<256xf32>
      %792 = vector.shape_cast %791 : vector<256xf32> to vector<1x256xf32>
      %793 = vector.broadcast %789 : vector<8x1xf32> to vector<8x256xf32>
      %794 = vector.broadcast %792 : vector<1x256xf32> to vector<8x256xf32>
      %795 = arith.mulf %793, %794 : vector<8x256xf32>
      %796 = arith.addf %788, %795 : vector<8x256xf32>
      %cst_390 = arith.constant 4.000000e-01 : f32
      %797 = vector.broadcast %cst_390 : f32 to vector<8x256xf32>
      %798 = arith.mulf %797, %796 : vector<8x256xf32>
      %799 = arith.maximumf %796, %798 : vector<8x256xf32>
      %c1_391 = arith.constant 1 : index
      %c1792_392 = arith.constant 1792 : index
      %800 = vector.load %arg7[%c1_391, %c1792_392] : memref<10x2560xf32, #tpu.memory_space<vmem>>, vector<8x256xf32>
      tpu.vector_store %arg7[%c1_391, %c1792_392], %799 {strides = array<i32>} : memref<10x2560xf32, #tpu.memory_space<vmem>>, vector<8x256xf32>,
    } else {
    }
    %true_56 = arith.constant true
    %91 = arith.xori %88, %true_56 : i1
    %92 = arith.extui %91 : i1 to i32
    %c0_i32_57 = arith.constant 0 : i32
    %93 = arith.cmpi ne, %92, %c0_i32_57 : i32
    scf.if %93 {
      %cst_352 = arith.constant 0.000000e+00 : f32
      %716 = vector.broadcast %cst_352 : f32 to vector<8x256xf32>
      %c1_353 = arith.constant 1 : index
      %c1792_354 = arith.constant 1792 : index
      %717 = vector.load %arg7[%c1_353, %c1792_354] : memref<10x2560xf32, #tpu.memory_space<vmem>>, vector<8x256xf32>
      tpu.vector_store %arg7[%c1_353, %c1792_354], %716 {strides = array<i32>} : memref<10x2560xf32, #tpu.memory_space<vmem>>, vector<8x256xf32>,
    } else {
    }
    %c8_i32_58 = arith.constant 8 : i32
    %94 = arith.muli %arg1, %c8_i32_58 : i32
    %c1_i32_59 = arith.constant 1 : i32
    %95 = arith.subi %94, %c1_i32_59 : i32
    %c8_i32_60 = arith.constant 8 : i32
    %96 = arith.addi %95, %c8_i32_60 : i32
    %c0_i32_61 = arith.constant 0 : i32
    %97 = arith.cmpi sge, %96, %c0_i32_61 : i32
    %c8_i32_62 = arith.constant 8 : i32
    %98 = arith.cmpi slt, %96, %c8_i32_62 : i32
    %99 = arith.andi %97, %98 : i1
    %100 = arith.extui %99 : i1 to i32
    %c0_i32_63 = arith.constant 0 : i32
    %101 = arith.cmpi ne, %100, %c0_i32_63 : i32
    scf.if %101 {
      %cst_352 = arith.constant 0.000000e+00 : f32
      %716 = vector.broadcast %cst_352 : f32 to vector<8x256xf32>
      %717 = vector.broadcast %0 : f32 to vector<8x256xf32>
      %718 = arith.addf %716, %717 : vector<8x256xf32>
      %c0_353 = arith.constant 0 : index
      %c0_354 = arith.constant 0 : index
      %c0_355 = arith.constant 0 : index
      %c8 = arith.constant 8 : index
      %719 = vector.load %arg5[%c0_353, %c0_354, %c0_355, %c8] : memref<1x1x10x12xf32, #tpu.memory_space<vmem>>, vector<1x1x10x1xf32>
      %720 = vector.shape_cast %719 : vector<1x1x10x1xf32> to vector<10x1xf32>
      %721 = vector.extract_strided_slice %720 {offsets = [2, 0], sizes = [8, 1], strides = [1, 1]} : vector<10x1xf32> to vector<8x1xf32>
      %c0_356 = arith.constant 0 : index
      %c0_357 = arith.constant 0 : index
      %c0_358 = arith.constant 0 : index
      %722 = vector.load %arg3[%c0_356, %c0_357, %c0_358] : memref<3x3x256xf32, #tpu.memory_space<vmem>>, vector<1x1x256xf32>
      %723 = vector.shape_cast %722 : vector<1x1x256xf32> to vector<256xf32>
      %724 = vector.shape_cast %723 : vector<256xf32> to vector<1x256xf32>
      %725 = vector.broadcast %721 : vector<8x1xf32> to vector<8x256xf32>
      %726 = vector.broadcast %724 : vector<1x256xf32> to vector<8x256xf32>
      %727 = arith.mulf %725, %726 : vector<8x256xf32>
      %728 = arith.addf %718, %727 : vector<8x256xf32>
      %729 = vector.extract_strided_slice %720 {offsets = [1, 0], sizes = [8, 1], strides = [1, 1]} : vector<10x1xf32> to vector<8x1xf32>
      %c1_359 = arith.constant 1 : index
      %c0_360 = arith.constant 0 : index
      %c0_361 = arith.constant 0 : index
      %730 = vector.load %arg3[%c1_359, %c0_360, %c0_361] : memref<3x3x256xf32, #tpu.memory_space<vmem>>, vector<1x1x256xf32>
      %731 = vector.shape_cast %730 : vector<1x1x256xf32> to vector<256xf32>
      %732 = vector.shape_cast %731 : vector<256xf32> to vector<1x256xf32>
      %733 = vector.broadcast %729 : vector<8x1xf32> to vector<8x256xf32>
      %734 = vector.broadcast %732 : vector<1x256xf32> to vector<8x256xf32>
      %735 = arith.mulf %733, %734 : vector<8x256xf32>
      %736 = arith.addf %728, %735 : vector<8x256xf32>
      %737 = vector.extract_strided_slice %720 {offsets = [0, 0], sizes = [8, 1], strides = [1, 1]} : vector<10x1xf32> to vector<8x1xf32>
      %c2_362 = arith.constant 2 : index
      %c0_363 = arith.constant 0 : index
      %c0_364 = arith.constant 0 : index
      %738 = vector.load %arg3[%c2_362, %c0_363, %c0_364] : memref<3x3x256xf32, #tpu.memory_space<vmem>>, vector<1x1x256xf32>
      %739 = vector.shape_cast %738 : vector<1x1x256xf32> to vector<256xf32>
      %740 = vector.shape_cast %739 : vector<256xf32> to vector<1x256xf32>
      %741 = vector.broadcast %737 : vector<8x1xf32> to vector<8x256xf32>
      %742 = vector.broadcast %740 : vector<1x256xf32> to vector<8x256xf32>
      %743 = arith.mulf %741, %742 : vector<8x256xf32>
      %744 = arith.addf %736, %743 : vector<8x256xf32>
      %c0_365 = arith.constant 0 : index
      %c0_366 = arith.constant 0 : index
      %c0_367 = arith.constant 0 : index
      %c9_368 = arith.constant 9 : index
      %745 = vector.load %arg5[%c0_365, %c0_366, %c0_367, %c9_368] : memref<1x1x10x12xf32, #tpu.memory_space<vmem>>, vector<1x1x10x1xf32>
      %746 = vector.shape_cast %745 : vector<1x1x10x1xf32> to vector<10x1xf32>
      %747 = vector.extract_strided_slice %746 {offsets = [2, 0], sizes = [8, 1], strides = [1, 1]} : vector<10x1xf32> to vector<8x1xf32>
      %c0_369 = arith.constant 0 : index
      %c1_370 = arith.constant 1 : index
      %c0_371 = arith.constant 0 : index
      %748 = vector.load %arg3[%c0_369, %c1_370, %c0_371] : memref<3x3x256xf32, #tpu.memory_space<vmem>>, vector<1x1x256xf32>
      %749 = vector.shape_cast %748 : vector<1x1x256xf32> to vector<256xf32>
      %750 = vector.shape_cast %749 : vector<256xf32> to vector<1x256xf32>
      %751 = vector.broadcast %747 : vector<8x1xf32> to vector<8x256xf32>
      %752 = vector.broadcast %750 : vector<1x256xf32> to vector<8x256xf32>
      %753 = arith.mulf %751, %752 : vector<8x256xf32>
      %754 = arith.addf %744, %753 : vector<8x256xf32>
      %755 = vector.extract_strided_slice %746 {offsets = [1, 0], sizes = [8, 1], strides = [1, 1]} : vector<10x1xf32> to vector<8x1xf32>
      %c1_372 = arith.constant 1 : index
      %c1_373 = arith.constant 1 : index
      %c0_374 = arith.constant 0 : index
      %756 = vector.load %arg3[%c1_372, %c1_373, %c0_374] : memref<3x3x256xf32, #tpu.memory_space<vmem>>, vector<1x1x256xf32>
      %757 = vector.shape_cast %756 : vector<1x1x256xf32> to vector<256xf32>
      %758 = vector.shape_cast %757 : vector<256xf32> to vector<1x256xf32>
      %759 = vector.broadcast %755 : vector<8x1xf32> to vector<8x256xf32>
      %760 = vector.broadcast %758 : vector<1x256xf32> to vector<8x256xf32>
      %761 = arith.mulf %759, %760 : vector<8x256xf32>
      %762 = arith.addf %754, %761 : vector<8x256xf32>
      %763 = vector.extract_strided_slice %746 {offsets = [0, 0], sizes = [8, 1], strides = [1, 1]} : vector<10x1xf32> to vector<8x1xf32>
      %c2_375 = arith.constant 2 : index
      %c1_376 = arith.constant 1 : index
      %c0_377 = arith.constant 0 : index
      %764 = vector.load %arg3[%c2_375, %c1_376, %c0_377] : memref<3x3x256xf32, #tpu.memory_space<vmem>>, vector<1x1x256xf32>
      %765 = vector.shape_cast %764 : vector<1x1x256xf32> to vector<256xf32>
      %766 = vector.shape_cast %765 : vector<256xf32> to vector<1x256xf32>
      %767 = vector.broadcast %763 : vector<8x1xf32> to vector<8x256xf32>
      %768 = vector.broadcast %766 : vector<1x256xf32> to vector<8x256xf32>
      %769 = arith.mulf %767, %768 : vector<8x256xf32>
      %770 = arith.addf %762, %769 : vector<8x256xf32>
      %c0_378 = arith.constant 0 : index
      %c0_379 = arith.constant 0 : index
      %c0_380 = arith.constant 0 : index
      %c10 = arith.constant 10 : index
      %771 = vector.load %arg5[%c0_378, %c0_379, %c0_380, %c10] : memref<1x1x10x12xf32, #tpu.memory_space<vmem>>, vector<1x1x10x1xf32>
      %772 = vector.shape_cast %771 : vector<1x1x10x1xf32> to vector<10x1xf32>
      %773 = vector.extract_strided_slice %772 {offsets = [2, 0], sizes = [8, 1], strides = [1, 1]} : vector<10x1xf32> to vector<8x1xf32>
      %c0_381 = arith.constant 0 : index
      %c2_382 = arith.constant 2 : index
      %c0_383 = arith.constant 0 : index
      %774 = vector.load %arg3[%c0_381, %c2_382, %c0_383] : memref<3x3x256xf32, #tpu.memory_space<vmem>>, vector<1x1x256xf32>
      %775 = vector.shape_cast %774 : vector<1x1x256xf32> to vector<256xf32>
      %776 = vector.shape_cast %775 : vector<256xf32> to vector<1x256xf32>
      %777 = vector.broadcast %773 : vector<8x1xf32> to vector<8x256xf32>
      %778 = vector.broadcast %776 : vector<1x256xf32> to vector<8x256xf32>
      %779 = arith.mulf %777, %778 : vector<8x256xf32>
      %780 = arith.addf %770, %779 : vector<8x256xf32>
      %781 = vector.extract_strided_slice %772 {offsets = [1, 0], sizes = [8, 1], strides = [1, 1]} : vector<10x1xf32> to vector<8x1xf32>
      %c1_384 = arith.constant 1 : index
      %c2_385 = arith.constant 2 : index
      %c0_386 = arith.constant 0 : index
      %782 = vector.load %arg3[%c1_384, %c2_385, %c0_386] : memref<3x3x256xf32, #tpu.memory_space<vmem>>, vector<1x1x256xf32>
      %783 = vector.shape_cast %782 : vector<1x1x256xf32> to vector<256xf32>
      %784 = vector.shape_cast %783 : vector<256xf32> to vector<1x256xf32>
      %785 = vector.broadcast %781 : vector<8x1xf32> to vector<8x256xf32>
      %786 = vector.broadcast %784 : vector<1x256xf32> to vector<8x256xf32>
      %787 = arith.mulf %785, %786 : vector<8x256xf32>
      %788 = arith.addf %780, %787 : vector<8x256xf32>
      %789 = vector.extract_strided_slice %772 {offsets = [0, 0], sizes = [8, 1], strides = [1, 1]} : vector<10x1xf32> to vector<8x1xf32>
      %c2_387 = arith.constant 2 : index
      %c2_388 = arith.constant 2 : index
      %c0_389 = arith.constant 0 : index
      %790 = vector.load %arg3[%c2_387, %c2_388, %c0_389] : memref<3x3x256xf32, #tpu.memory_space<vmem>>, vector<1x1x256xf32>
      %791 = vector.shape_cast %790 : vector<1x1x256xf32> to vector<256xf32>
      %792 = vector.shape_cast %791 : vector<256xf32> to vector<1x256xf32>
      %793 = vector.broadcast %789 : vector<8x1xf32> to vector<8x256xf32>
      %794 = vector.broadcast %792 : vector<1x256xf32> to vector<8x256xf32>
      %795 = arith.mulf %793, %794 : vector<8x256xf32>
      %796 = arith.addf %788, %795 : vector<8x256xf32>
      %cst_390 = arith.constant 4.000000e-01 : f32
      %797 = vector.broadcast %cst_390 : f32 to vector<8x256xf32>
      %798 = arith.mulf %797, %796 : vector<8x256xf32>
      %799 = arith.maximumf %796, %798 : vector<8x256xf32>
      %c1_391 = arith.constant 1 : index
      %c2048_392 = arith.constant 2048 : index
      %800 = vector.load %arg7[%c1_391, %c2048_392] : memref<10x2560xf32, #tpu.memory_space<vmem>>, vector<8x256xf32>
      tpu.vector_store %arg7[%c1_391, %c2048_392], %799 {strides = array<i32>} : memref<10x2560xf32, #tpu.memory_space<vmem>>, vector<8x256xf32>,
    } else {
    }
    %true_64 = arith.constant true
    %102 = arith.xori %99, %true_64 : i1
    %103 = arith.extui %102 : i1 to i32
    %c0_i32_65 = arith.constant 0 : i32
    %104 = arith.cmpi ne, %103, %c0_i32_65 : i32
    scf.if %104 {
      %cst_352 = arith.constant 0.000000e+00 : f32
      %716 = vector.broadcast %cst_352 : f32 to vector<8x256xf32>
      %c1_353 = arith.constant 1 : index
      %c2048_354 = arith.constant 2048 : index
      %717 = vector.load %arg7[%c1_353, %c2048_354] : memref<10x2560xf32, #tpu.memory_space<vmem>>, vector<8x256xf32>
      tpu.vector_store %arg7[%c1_353, %c2048_354], %716 {strides = array<i32>} : memref<10x2560xf32, #tpu.memory_space<vmem>>, vector<8x256xf32>,
    } else {
    }
    %c8_i32_66 = arith.constant 8 : i32
    %105 = arith.muli %arg1, %c8_i32_66 : i32
    %c1_i32_67 = arith.constant 1 : i32
    %106 = arith.subi %105, %c1_i32_67 : i32
    %c9_i32 = arith.constant 9 : i32
    %107 = arith.addi %106, %c9_i32 : i32
    %c0_i32_68 = arith.constant 0 : i32
    %108 = arith.cmpi sge, %107, %c0_i32_68 : i32
    %c8_i32_69 = arith.constant 8 : i32
    %109 = arith.cmpi slt, %107, %c8_i32_69 : i32
    %110 = arith.andi %108, %109 : i1
    %111 = arith.extui %110 : i1 to i32
    %c0_i32_70 = arith.constant 0 : i32
    %112 = arith.cmpi ne, %111, %c0_i32_70 : i32
    scf.if %112 {
      %cst_352 = arith.constant 0.000000e+00 : f32
      %716 = vector.broadcast %cst_352 : f32 to vector<8x256xf32>
      %717 = vector.broadcast %0 : f32 to vector<8x256xf32>
      %718 = arith.addf %716, %717 : vector<8x256xf32>
      %c0_353 = arith.constant 0 : index
      %c0_354 = arith.constant 0 : index
      %c0_355 = arith.constant 0 : index
      %c9_356 = arith.constant 9 : index
      %719 = vector.load %arg5[%c0_353, %c0_354, %c0_355, %c9_356] : memref<1x1x10x12xf32, #tpu.memory_space<vmem>>, vector<1x1x10x1xf32>
      %720 = vector.shape_cast %719 : vector<1x1x10x1xf32> to vector<10x1xf32>
      %721 = vector.extract_strided_slice %720 {offsets = [2, 0], sizes = [8, 1], strides = [1, 1]} : vector<10x1xf32> to vector<8x1xf32>
      %c0_357 = arith.constant 0 : index
      %c0_358 = arith.constant 0 : index
      %c0_359 = arith.constant 0 : index
      %722 = vector.load %arg3[%c0_357, %c0_358, %c0_359] : memref<3x3x256xf32, #tpu.memory_space<vmem>>, vector<1x1x256xf32>
      %723 = vector.shape_cast %722 : vector<1x1x256xf32> to vector<256xf32>
      %724 = vector.shape_cast %723 : vector<256xf32> to vector<1x256xf32>
      %725 = vector.broadcast %721 : vector<8x1xf32> to vector<8x256xf32>
      %726 = vector.broadcast %724 : vector<1x256xf32> to vector<8x256xf32>
      %727 = arith.mulf %725, %726 : vector<8x256xf32>
      %728 = arith.addf %718, %727 : vector<8x256xf32>
      %729 = vector.extract_strided_slice %720 {offsets = [1, 0], sizes = [8, 1], strides = [1, 1]} : vector<10x1xf32> to vector<8x1xf32>
      %c1_360 = arith.constant 1 : index
      %c0_361 = arith.constant 0 : index
      %c0_362 = arith.constant 0 : index
      %730 = vector.load %arg3[%c1_360, %c0_361, %c0_362] : memref<3x3x256xf32, #tpu.memory_space<vmem>>, vector<1x1x256xf32>
      %731 = vector.shape_cast %730 : vector<1x1x256xf32> to vector<256xf32>
      %732 = vector.shape_cast %731 : vector<256xf32> to vector<1x256xf32>
      %733 = vector.broadcast %729 : vector<8x1xf32> to vector<8x256xf32>
      %734 = vector.broadcast %732 : vector<1x256xf32> to vector<8x256xf32>
      %735 = arith.mulf %733, %734 : vector<8x256xf32>
      %736 = arith.addf %728, %735 : vector<8x256xf32>
      %737 = vector.extract_strided_slice %720 {offsets = [0, 0], sizes = [8, 1], strides = [1, 1]} : vector<10x1xf32> to vector<8x1xf32>
      %c2_363 = arith.constant 2 : index
      %c0_364 = arith.constant 0 : index
      %c0_365 = arith.constant 0 : index
      %738 = vector.load %arg3[%c2_363, %c0_364, %c0_365] : memref<3x3x256xf32, #tpu.memory_space<vmem>>, vector<1x1x256xf32>
      %739 = vector.shape_cast %738 : vector<1x1x256xf32> to vector<256xf32>
      %740 = vector.shape_cast %739 : vector<256xf32> to vector<1x256xf32>
      %741 = vector.broadcast %737 : vector<8x1xf32> to vector<8x256xf32>
      %742 = vector.broadcast %740 : vector<1x256xf32> to vector<8x256xf32>
      %743 = arith.mulf %741, %742 : vector<8x256xf32>
      %744 = arith.addf %736, %743 : vector<8x256xf32>
      %c0_366 = arith.constant 0 : index
      %c0_367 = arith.constant 0 : index
      %c0_368 = arith.constant 0 : index
      %c10 = arith.constant 10 : index
      %745 = vector.load %arg5[%c0_366, %c0_367, %c0_368, %c10] : memref<1x1x10x12xf32, #tpu.memory_space<vmem>>, vector<1x1x10x1xf32>
      %746 = vector.shape_cast %745 : vector<1x1x10x1xf32> to vector<10x1xf32>
      %747 = vector.extract_strided_slice %746 {offsets = [2, 0], sizes = [8, 1], strides = [1, 1]} : vector<10x1xf32> to vector<8x1xf32>
      %c0_369 = arith.constant 0 : index
      %c1_370 = arith.constant 1 : index
      %c0_371 = arith.constant 0 : index
      %748 = vector.load %arg3[%c0_369, %c1_370, %c0_371] : memref<3x3x256xf32, #tpu.memory_space<vmem>>, vector<1x1x256xf32>
      %749 = vector.shape_cast %748 : vector<1x1x256xf32> to vector<256xf32>
      %750 = vector.shape_cast %749 : vector<256xf32> to vector<1x256xf32>
      %751 = vector.broadcast %747 : vector<8x1xf32> to vector<8x256xf32>
      %752 = vector.broadcast %750 : vector<1x256xf32> to vector<8x256xf32>
      %753 = arith.mulf %751, %752 : vector<8x256xf32>
      %754 = arith.addf %744, %753 : vector<8x256xf32>
      %755 = vector.extract_strided_slice %746 {offsets = [1, 0], sizes = [8, 1], strides = [1, 1]} : vector<10x1xf32> to vector<8x1xf32>
      %c1_372 = arith.constant 1 : index
      %c1_373 = arith.constant 1 : index
      %c0_374 = arith.constant 0 : index
      %756 = vector.load %arg3[%c1_372, %c1_373, %c0_374] : memref<3x3x256xf32, #tpu.memory_space<vmem>>, vector<1x1x256xf32>
      %757 = vector.shape_cast %756 : vector<1x1x256xf32> to vector<256xf32>
      %758 = vector.shape_cast %757 : vector<256xf32> to vector<1x256xf32>
      %759 = vector.broadcast %755 : vector<8x1xf32> to vector<8x256xf32>
      %760 = vector.broadcast %758 : vector<1x256xf32> to vector<8x256xf32>
      %761 = arith.mulf %759, %760 : vector<8x256xf32>
      %762 = arith.addf %754, %761 : vector<8x256xf32>
      %763 = vector.extract_strided_slice %746 {offsets = [0, 0], sizes = [8, 1], strides = [1, 1]} : vector<10x1xf32> to vector<8x1xf32>
      %c2_375 = arith.constant 2 : index
      %c1_376 = arith.constant 1 : index
      %c0_377 = arith.constant 0 : index
      %764 = vector.load %arg3[%c2_375, %c1_376, %c0_377] : memref<3x3x256xf32, #tpu.memory_space<vmem>>, vector<1x1x256xf32>
      %765 = vector.shape_cast %764 : vector<1x1x256xf32> to vector<256xf32>
      %766 = vector.shape_cast %765 : vector<256xf32> to vector<1x256xf32>
      %767 = vector.broadcast %763 : vector<8x1xf32> to vector<8x256xf32>
      %768 = vector.broadcast %766 : vector<1x256xf32> to vector<8x256xf32>
      %769 = arith.mulf %767, %768 : vector<8x256xf32>
      %770 = arith.addf %762, %769 : vector<8x256xf32>
      %c0_378 = arith.constant 0 : index
      %c0_379 = arith.constant 0 : index
      %c0_380 = arith.constant 0 : index
      %c11 = arith.constant 11 : index
      %771 = vector.load %arg5[%c0_378, %c0_379, %c0_380, %c11] : memref<1x1x10x12xf32, #tpu.memory_space<vmem>>, vector<1x1x10x1xf32>
      %772 = vector.shape_cast %771 : vector<1x1x10x1xf32> to vector<10x1xf32>
      %773 = vector.extract_strided_slice %772 {offsets = [2, 0], sizes = [8, 1], strides = [1, 1]} : vector<10x1xf32> to vector<8x1xf32>
      %c0_381 = arith.constant 0 : index
      %c2_382 = arith.constant 2 : index
      %c0_383 = arith.constant 0 : index
      %774 = vector.load %arg3[%c0_381, %c2_382, %c0_383] : memref<3x3x256xf32, #tpu.memory_space<vmem>>, vector<1x1x256xf32>
      %775 = vector.shape_cast %774 : vector<1x1x256xf32> to vector<256xf32>
      %776 = vector.shape_cast %775 : vector<256xf32> to vector<1x256xf32>
      %777 = vector.broadcast %773 : vector<8x1xf32> to vector<8x256xf32>
      %778 = vector.broadcast %776 : vector<1x256xf32> to vector<8x256xf32>
      %779 = arith.mulf %777, %778 : vector<8x256xf32>
      %780 = arith.addf %770, %779 : vector<8x256xf32>
      %781 = vector.extract_strided_slice %772 {offsets = [1, 0], sizes = [8, 1], strides = [1, 1]} : vector<10x1xf32> to vector<8x1xf32>
      %c1_384 = arith.constant 1 : index
      %c2_385 = arith.constant 2 : index
      %c0_386 = arith.constant 0 : index
      %782 = vector.load %arg3[%c1_384, %c2_385, %c0_386] : memref<3x3x256xf32, #tpu.memory_space<vmem>>, vector<1x1x256xf32>
      %783 = vector.shape_cast %782 : vector<1x1x256xf32> to vector<256xf32>
      %784 = vector.shape_cast %783 : vector<256xf32> to vector<1x256xf32>
      %785 = vector.broadcast %781 : vector<8x1xf32> to vector<8x256xf32>
      %786 = vector.broadcast %784 : vector<1x256xf32> to vector<8x256xf32>
      %787 = arith.mulf %785, %786 : vector<8x256xf32>
      %788 = arith.addf %780, %787 : vector<8x256xf32>
      %789 = vector.extract_strided_slice %772 {offsets = [0, 0], sizes = [8, 1], strides = [1, 1]} : vector<10x1xf32> to vector<8x1xf32>
      %c2_387 = arith.constant 2 : index
      %c2_388 = arith.constant 2 : index
      %c0_389 = arith.constant 0 : index
      %790 = vector.load %arg3[%c2_387, %c2_388, %c0_389] : memref<3x3x256xf32, #tpu.memory_space<vmem>>, vector<1x1x256xf32>
      %791 = vector.shape_cast %790 : vector<1x1x256xf32> to vector<256xf32>
      %792 = vector.shape_cast %791 : vector<256xf32> to vector<1x256xf32>
      %793 = vector.broadcast %789 : vector<8x1xf32> to vector<8x256xf32>
      %794 = vector.broadcast %792 : vector<1x256xf32> to vector<8x256xf32>
      %795 = arith.mulf %793, %794 : vector<8x256xf32>
      %796 = arith.addf %788, %795 : vector<8x256xf32>
      %cst_390 = arith.constant 4.000000e-01 : f32
      %797 = vector.broadcast %cst_390 : f32 to vector<8x256xf32>
      %798 = arith.mulf %797, %796 : vector<8x256xf32>
      %799 = arith.maximumf %796, %798 : vector<8x256xf32>
      %c1_391 = arith.constant 1 : index
      %c2304 = arith.constant 2304 : index
      %800 = vector.load %arg7[%c1_391, %c2304] : memref<10x2560xf32, #tpu.memory_space<vmem>>, vector<8x256xf32>
      tpu.vector_store %arg7[%c1_391, %c2304], %799 {strides = array<i32>} : memref<10x2560xf32, #tpu.memory_space<vmem>>, vector<8x256xf32>,
    } else {
    }
    %true_71 = arith.constant true
    %113 = arith.xori %110, %true_71 : i1
    %114 = arith.extui %113 : i1 to i32
    %c0_i32_72 = arith.constant 0 : i32
    %115 = arith.cmpi ne, %114, %c0_i32_72 : i32
    scf.if %115 {
      %cst_352 = arith.constant 0.000000e+00 : f32
      %716 = vector.broadcast %cst_352 : f32 to vector<8x256xf32>
      %c1_353 = arith.constant 1 : index
      %c2304 = arith.constant 2304 : index
      %717 = vector.load %arg7[%c1_353, %c2304] : memref<10x2560xf32, #tpu.memory_space<vmem>>, vector<8x256xf32>
      tpu.vector_store %arg7[%c1_353, %c2304], %716 {strides = array<i32>} : memref<10x2560xf32, #tpu.memory_space<vmem>>, vector<8x256xf32>,
    } else {
    }
    %cst_73 = arith.constant 0.000000e+00 : f32
    %116 = vector.broadcast %cst_73 : f32 to vector<8x256xf32>
    %117 = vector.broadcast %1 : f32 to vector<8x256xf32>
    %118 = arith.addf %116, %117 : vector<8x256xf32>
    %c0_74 = arith.constant 0 : index
    %c240 = arith.constant 240 : index
    %119 = vector.load %arg7[%c0_74, %c240] : memref<10x2560xf32, #tpu.memory_space<vmem>>, vector<10x256xf32>
    %120 = vector.extract_strided_slice %119 {offsets = [2, 0], sizes = [8, 256], strides = [1, 1]} : vector<10x256xf32> to vector<8x256xf32>
    %c0_75 = arith.constant 0 : index
    %c0_76 = arith.constant 0 : index
    %c0_77 = arith.constant 0 : index
    %121 = vector.load %arg4[%c0_75, %c0_76, %c0_77] : memref<3x3x256xf32, #tpu.memory_space<vmem>>, vector<1x1x256xf32>
    %122 = vector.shape_cast %121 : vector<1x1x256xf32> to vector<256xf32>
    %123 = vector.shape_cast %122 : vector<256xf32> to vector<1x256xf32>
    %124 = vector.broadcast %123 : vector<1x256xf32> to vector<8x256xf32>
    %125 = arith.mulf %120, %124 : vector<8x256xf32>
    %126 = arith.addf %118, %125 : vector<8x256xf32>
    %127 = vector.extract_strided_slice %119 {offsets = [1, 0], sizes = [8, 256], strides = [1, 1]} : vector<10x256xf32> to vector<8x256xf32>
    %c1_78 = arith.constant 1 : index
    %c0_79 = arith.constant 0 : index
    %c0_80 = arith.constant 0 : index
    %128 = vector.load %arg4[%c1_78, %c0_79, %c0_80] : memref<3x3x256xf32, #tpu.memory_space<vmem>>, vector<1x1x256xf32>
    %129 = vector.shape_cast %128 : vector<1x1x256xf32> to vector<256xf32>
    %130 = vector.shape_cast %129 : vector<256xf32> to vector<1x256xf32>
    %131 = vector.broadcast %130 : vector<1x256xf32> to vector<8x256xf32>
    %132 = arith.mulf %127, %131 : vector<8x256xf32>
    %133 = arith.addf %126, %132 : vector<8x256xf32>
    %134 = vector.extract_strided_slice %119 {offsets = [0, 0], sizes = [8, 256], strides = [1, 1]} : vector<10x256xf32> to vector<8x256xf32>
    %c2 = arith.constant 2 : index
    %c0_81 = arith.constant 0 : index
    %c0_82 = arith.constant 0 : index
    %135 = vector.load %arg4[%c2, %c0_81, %c0_82] : memref<3x3x256xf32, #tpu.memory_space<vmem>>, vector<1x1x256xf32>
    %136 = vector.shape_cast %135 : vector<1x1x256xf32> to vector<256xf32>
    %137 = vector.shape_cast %136 : vector<256xf32> to vector<1x256xf32>
    %138 = vector.broadcast %137 : vector<1x256xf32> to vector<8x256xf32>
    %139 = arith.mulf %134, %138 : vector<8x256xf32>
    %140 = arith.addf %133, %139 : vector<8x256xf32>
    %c0_83 = arith.constant 0 : index
    %c256 = arith.constant 256 : index
    %141 = vector.load %arg7[%c0_83, %c256] : memref<10x2560xf32, #tpu.memory_space<vmem>>, vector<10x256xf32>
    %142 = vector.extract_strided_slice %141 {offsets = [2, 0], sizes = [8, 256], strides = [1, 1]} : vector<10x256xf32> to vector<8x256xf32>
    %c0_84 = arith.constant 0 : index
    %c1_85 = arith.constant 1 : index
    %c0_86 = arith.constant 0 : index
    %143 = vector.load %arg4[%c0_84, %c1_85, %c0_86] : memref<3x3x256xf32, #tpu.memory_space<vmem>>, vector<1x1x256xf32>
    %144 = vector.shape_cast %143 : vector<1x1x256xf32> to vector<256xf32>
    %145 = vector.shape_cast %144 : vector<256xf32> to vector<1x256xf32>
    %146 = vector.broadcast %145 : vector<1x256xf32> to vector<8x256xf32>
    %147 = arith.mulf %142, %146 : vector<8x256xf32>
    %148 = arith.addf %140, %147 : vector<8x256xf32>
    %149 = vector.extract_strided_slice %141 {offsets = [1, 0], sizes = [8, 256], strides = [1, 1]} : vector<10x256xf32> to vector<8x256xf32>
    %c1_87 = arith.constant 1 : index
    %c1_88 = arith.constant 1 : index
    %c0_89 = arith.constant 0 : index
    %150 = vector.load %arg4[%c1_87, %c1_88, %c0_89] : memref<3x3x256xf32, #tpu.memory_space<vmem>>, vector<1x1x256xf32>
    %151 = vector.shape_cast %150 : vector<1x1x256xf32> to vector<256xf32>
    %152 = vector.shape_cast %151 : vector<256xf32> to vector<1x256xf32>
    %153 = vector.broadcast %152 : vector<1x256xf32> to vector<8x256xf32>
    %154 = arith.mulf %149, %153 : vector<8x256xf32>
    %155 = arith.addf %148, %154 : vector<8x256xf32>
    %156 = vector.extract_strided_slice %141 {offsets = [0, 0], sizes = [8, 256], strides = [1, 1]} : vector<10x256xf32> to vector<8x256xf32>
    %c2_90 = arith.constant 2 : index
    %c1_91 = arith.constant 1 : index
    %c0_92 = arith.constant 0 : index
    %157 = vector.load %arg4[%c2_90, %c1_91, %c0_92] : memref<3x3x256xf32, #tpu.memory_space<vmem>>, vector<1x1x256xf32>
    %158 = vector.shape_cast %157 : vector<1x1x256xf32> to vector<256xf32>
    %159 = vector.shape_cast %158 : vector<256xf32> to vector<1x256xf32>
    %160 = vector.broadcast %159 : vector<1x256xf32> to vector<8x256xf32>
    %161 = arith.mulf %156, %160 : vector<8x256xf32>
    %162 = arith.addf %155, %161 : vector<8x256xf32>
    %c0_93 = arith.constant 0 : index
    %c272 = arith.constant 272 : index
    %163 = vector.load %arg7[%c0_93, %c272] : memref<10x2560xf32, #tpu.memory_space<vmem>>, vector<10x256xf32>
    %164 = vector.extract_strided_slice %163 {offsets = [2, 0], sizes = [8, 256], strides = [1, 1]} : vector<10x256xf32> to vector<8x256xf32>
    %c0_94 = arith.constant 0 : index
    %c2_95 = arith.constant 2 : index
    %c0_96 = arith.constant 0 : index
    %165 = vector.load %arg4[%c0_94, %c2_95, %c0_96] : memref<3x3x256xf32, #tpu.memory_space<vmem>>, vector<1x1x256xf32>
    %166 = vector.shape_cast %165 : vector<1x1x256xf32> to vector<256xf32>
    %167 = vector.shape_cast %166 : vector<256xf32> to vector<1x256xf32>
    %168 = vector.broadcast %167 : vector<1x256xf32> to vector<8x256xf32>
    %169 = arith.mulf %164, %168 : vector<8x256xf32>
    %170 = arith.addf %162, %169 : vector<8x256xf32>
    %171 = vector.extract_strided_slice %163 {offsets = [1, 0], sizes = [8, 256], strides = [1, 1]} : vector<10x256xf32> to vector<8x256xf32>
    %c1_97 = arith.constant 1 : index
    %c2_98 = arith.constant 2 : index
    %c0_99 = arith.constant 0 : index
    %172 = vector.load %arg4[%c1_97, %c2_98, %c0_99] : memref<3x3x256xf32, #tpu.memory_space<vmem>>, vector<1x1x256xf32>
    %173 = vector.shape_cast %172 : vector<1x1x256xf32> to vector<256xf32>
    %174 = vector.shape_cast %173 : vector<256xf32> to vector<1x256xf32>
    %175 = vector.broadcast %174 : vector<1x256xf32> to vector<8x256xf32>
    %176 = arith.mulf %171, %175 : vector<8x256xf32>
    %177 = arith.addf %170, %176 : vector<8x256xf32>
    %178 = vector.extract_strided_slice %163 {offsets = [0, 0], sizes = [8, 256], strides = [1, 1]} : vector<10x256xf32> to vector<8x256xf32>
    %c2_100 = arith.constant 2 : index
    %c2_101 = arith.constant 2 : index
    %c0_102 = arith.constant 0 : index
    %179 = vector.load %arg4[%c2_100, %c2_101, %c0_102] : memref<3x3x256xf32, #tpu.memory_space<vmem>>, vector<1x1x256xf32>
    %180 = vector.shape_cast %179 : vector<1x1x256xf32> to vector<256xf32>
    %181 = vector.shape_cast %180 : vector<256xf32> to vector<1x256xf32>
    %182 = vector.broadcast %181 : vector<1x256xf32> to vector<8x256xf32>
    %183 = arith.mulf %178, %182 : vector<8x256xf32>
    %184 = arith.addf %177, %183 : vector<8x256xf32>
    %cst_103 = arith.constant 4.000000e-01 : f32
    %185 = vector.broadcast %cst_103 : f32 to vector<8x256xf32>
    %186 = arith.mulf %185, %184 : vector<8x256xf32>
    %187 = arith.maximumf %184, %186 : vector<8x256xf32>
    %c0_104 = arith.constant 0 : index
    %c0_105 = arith.constant 0 : index
    %c0_106 = arith.constant 0 : index
    %188 = vector.load %arg6[%c0_104, %c0_105, %c0_106] : memref<1x8x2048xf32, #tpu.memory_space<vmem>>, vector<1x8x256xf32>
    %189 = vector.shape_cast %188 : vector<1x8x256xf32> to vector<8x256xf32>
    %190 = vector.shape_cast %187 : vector<8x256xf32> to vector<1x8x256xf32>
    tpu.vector_store %arg6[%c0_104, %c0_105, %c0_106], %190 {strides = array<i32>} : memref<1x8x2048xf32, #tpu.memory_space<vmem>>, vector<1x8x256xf32>,
    %cst_107 = arith.constant 0.000000e+00 : f32
    %191 = vector.broadcast %cst_107 : f32 to vector<8x256xf32>
    %192 = vector.broadcast %1 : f32 to vector<8x256xf32>
    %193 = arith.addf %191, %192 : vector<8x256xf32>
    %c0_108 = arith.constant 0 : index
    %c496 = arith.constant 496 : index
    %194 = vector.load %arg7[%c0_108, %c496] : memref<10x2560xf32, #tpu.memory_space<vmem>>, vector<10x256xf32>
    %195 = vector.extract_strided_slice %194 {offsets = [2, 0], sizes = [8, 256], strides = [1, 1]} : vector<10x256xf32> to vector<8x256xf32>
    %c0_109 = arith.constant 0 : index
    %c0_110 = arith.constant 0 : index
    %c0_111 = arith.constant 0 : index
    %196 = vector.load %arg4[%c0_109, %c0_110, %c0_111] : memref<3x3x256xf32, #tpu.memory_space<vmem>>, vector<1x1x256xf32>
    %197 = vector.shape_cast %196 : vector<1x1x256xf32> to vector<256xf32>
    %198 = vector.shape_cast %197 : vector<256xf32> to vector<1x256xf32>
    %199 = vector.broadcast %198 : vector<1x256xf32> to vector<8x256xf32>
    %200 = arith.mulf %195, %199 : vector<8x256xf32>
    %201 = arith.addf %193, %200 : vector<8x256xf32>
    %202 = vector.extract_strided_slice %194 {offsets = [1, 0], sizes = [8, 256], strides = [1, 1]} : vector<10x256xf32> to vector<8x256xf32>
    %c1_112 = arith.constant 1 : index
    %c0_113 = arith.constant 0 : index
    %c0_114 = arith.constant 0 : index
    %203 = vector.load %arg4[%c1_112, %c0_113, %c0_114] : memref<3x3x256xf32, #tpu.memory_space<vmem>>, vector<1x1x256xf32>
    %204 = vector.shape_cast %203 : vector<1x1x256xf32> to vector<256xf32>
    %205 = vector.shape_cast %204 : vector<256xf32> to vector<1x256xf32>
    %206 = vector.broadcast %205 : vector<1x256xf32> to vector<8x256xf32>
    %207 = arith.mulf %202, %206 : vector<8x256xf32>
    %208 = arith.addf %201, %207 : vector<8x256xf32>
    %209 = vector.extract_strided_slice %194 {offsets = [0, 0], sizes = [8, 256], strides = [1, 1]} : vector<10x256xf32> to vector<8x256xf32>
    %c2_115 = arith.constant 2 : index
    %c0_116 = arith.constant 0 : index
    %c0_117 = arith.constant 0 : index
    %210 = vector.load %arg4[%c2_115, %c0_116, %c0_117] : memref<3x3x256xf32, #tpu.memory_space<vmem>>, vector<1x1x256xf32>
    %211 = vector.shape_cast %210 : vector<1x1x256xf32> to vector<256xf32>
    %212 = vector.shape_cast %211 : vector<256xf32> to vector<1x256xf32>
    %213 = vector.broadcast %212 : vector<1x256xf32> to vector<8x256xf32>
    %214 = arith.mulf %209, %213 : vector<8x256xf32>
    %215 = arith.addf %208, %214 : vector<8x256xf32>
    %c0_118 = arith.constant 0 : index
    %c512 = arith.constant 512 : index
    %216 = vector.load %arg7[%c0_118, %c512] : memref<10x2560xf32, #tpu.memory_space<vmem>>, vector<10x256xf32>
    %217 = vector.extract_strided_slice %216 {offsets = [2, 0], sizes = [8, 256], strides = [1, 1]} : vector<10x256xf32> to vector<8x256xf32>
    %c0_119 = arith.constant 0 : index
    %c1_120 = arith.constant 1 : index
    %c0_121 = arith.constant 0 : index
    %218 = vector.load %arg4[%c0_119, %c1_120, %c0_121] : memref<3x3x256xf32, #tpu.memory_space<vmem>>, vector<1x1x256xf32>
    %219 = vector.shape_cast %218 : vector<1x1x256xf32> to vector<256xf32>
    %220 = vector.shape_cast %219 : vector<256xf32> to vector<1x256xf32>
    %221 = vector.broadcast %220 : vector<1x256xf32> to vector<8x256xf32>
    %222 = arith.mulf %217, %221 : vector<8x256xf32>
    %223 = arith.addf %215, %222 : vector<8x256xf32>
    %224 = vector.extract_strided_slice %216 {offsets = [1, 0], sizes = [8, 256], strides = [1, 1]} : vector<10x256xf32> to vector<8x256xf32>
    %c1_122 = arith.constant 1 : index
    %c1_123 = arith.constant 1 : index
    %c0_124 = arith.constant 0 : index
    %225 = vector.load %arg4[%c1_122, %c1_123, %c0_124] : memref<3x3x256xf32, #tpu.memory_space<vmem>>, vector<1x1x256xf32>
    %226 = vector.shape_cast %225 : vector<1x1x256xf32> to vector<256xf32>
    %227 = vector.shape_cast %226 : vector<256xf32> to vector<1x256xf32>
    %228 = vector.broadcast %227 : vector<1x256xf32> to vector<8x256xf32>
    %229 = arith.mulf %224, %228 : vector<8x256xf32>
    %230 = arith.addf %223, %229 : vector<8x256xf32>
    %231 = vector.extract_strided_slice %216 {offsets = [0, 0], sizes = [8, 256], strides = [1, 1]} : vector<10x256xf32> to vector<8x256xf32>
    %c2_125 = arith.constant 2 : index
    %c1_126 = arith.constant 1 : index
    %c0_127 = arith.constant 0 : index
    %232 = vector.load %arg4[%c2_125, %c1_126, %c0_127] : memref<3x3x256xf32, #tpu.memory_space<vmem>>, vector<1x1x256xf32>
    %233 = vector.shape_cast %232 : vector<1x1x256xf32> to vector<256xf32>
    %234 = vector.shape_cast %233 : vector<256xf32> to vector<1x256xf32>
    %235 = vector.broadcast %234 : vector<1x256xf32> to vector<8x256xf32>
    %236 = arith.mulf %231, %235 : vector<8x256xf32>
    %237 = arith.addf %230, %236 : vector<8x256xf32>
    %c0_128 = arith.constant 0 : index
    %c528 = arith.constant 528 : index
    %238 = vector.load %arg7[%c0_128, %c528] : memref<10x2560xf32, #tpu.memory_space<vmem>>, vector<10x256xf32>
    %239 = vector.extract_strided_slice %238 {offsets = [2, 0], sizes = [8, 256], strides = [1, 1]} : vector<10x256xf32> to vector<8x256xf32>
    %c0_129 = arith.constant 0 : index
    %c2_130 = arith.constant 2 : index
    %c0_131 = arith.constant 0 : index
    %240 = vector.load %arg4[%c0_129, %c2_130, %c0_131] : memref<3x3x256xf32, #tpu.memory_space<vmem>>, vector<1x1x256xf32>
    %241 = vector.shape_cast %240 : vector<1x1x256xf32> to vector<256xf32>
    %242 = vector.shape_cast %241 : vector<256xf32> to vector<1x256xf32>
    %243 = vector.broadcast %242 : vector<1x256xf32> to vector<8x256xf32>
    %244 = arith.mulf %239, %243 : vector<8x256xf32>
    %245 = arith.addf %237, %244 : vector<8x256xf32>
    %246 = vector.extract_strided_slice %238 {offsets = [1, 0], sizes = [8, 256], strides = [1, 1]} : vector<10x256xf32> to vector<8x256xf32>
    %c1_132 = arith.constant 1 : index
    %c2_133 = arith.constant 2 : index
    %c0_134 = arith.constant 0 : index
    %247 = vector.load %arg4[%c1_132, %c2_133, %c0_134] : memref<3x3x256xf32, #tpu.memory_space<vmem>>, vector<1x1x256xf32>
    %248 = vector.shape_cast %247 : vector<1x1x256xf32> to vector<256xf32>
    %249 = vector.shape_cast %248 : vector<256xf32> to vector<1x256xf32>
    %250 = vector.broadcast %249 : vector<1x256xf32> to vector<8x256xf32>
    %251 = arith.mulf %246, %250 : vector<8x256xf32>
    %252 = arith.addf %245, %251 : vector<8x256xf32>
    %253 = vector.extract_strided_slice %238 {offsets = [0, 0], sizes = [8, 256], strides = [1, 1]} : vector<10x256xf32> to vector<8x256xf32>
    %c2_135 = arith.constant 2 : index
    %c2_136 = arith.constant 2 : index
    %c0_137 = arith.constant 0 : index
    %254 = vector.load %arg4[%c2_135, %c2_136, %c0_137] : memref<3x3x256xf32, #tpu.memory_space<vmem>>, vector<1x1x256xf32>
    %255 = vector.shape_cast %254 : vector<1x1x256xf32> to vector<256xf32>
    %256 = vector.shape_cast %255 : vector<256xf32> to vector<1x256xf32>
    %257 = vector.broadcast %256 : vector<1x256xf32> to vector<8x256xf32>
    %258 = arith.mulf %253, %257 : vector<8x256xf32>
    %259 = arith.addf %252, %258 : vector<8x256xf32>
    %cst_138 = arith.constant 4.000000e-01 : f32
    %260 = vector.broadcast %cst_138 : f32 to vector<8x256xf32>
    %261 = arith.mulf %260, %259 : vector<8x256xf32>
    %262 = arith.maximumf %259, %261 : vector<8x256xf32>
    %c0_139 = arith.constant 0 : index
    %c0_140 = arith.constant 0 : index
    %c256_141 = arith.constant 256 : index
    %263 = vector.load %arg6[%c0_139, %c0_140, %c256_141] : memref<1x8x2048xf32, #tpu.memory_space<vmem>>, vector<1x8x256xf32>
    %264 = vector.shape_cast %263 : vector<1x8x256xf32> to vector<8x256xf32>
    %265 = vector.shape_cast %262 : vector<8x256xf32> to vector<1x8x256xf32>
    tpu.vector_store %arg6[%c0_139, %c0_140, %c256_141], %265 {strides = array<i32>} : memref<1x8x2048xf32, #tpu.memory_space<vmem>>, vector<1x8x256xf32>,
    %cst_142 = arith.constant 0.000000e+00 : f32
    %266 = vector.broadcast %cst_142 : f32 to vector<8x256xf32>
    %267 = vector.broadcast %1 : f32 to vector<8x256xf32>
    %268 = arith.addf %266, %267 : vector<8x256xf32>
    %c0_143 = arith.constant 0 : index
    %c752 = arith.constant 752 : index
    %269 = vector.load %arg7[%c0_143, %c752] : memref<10x2560xf32, #tpu.memory_space<vmem>>, vector<10x256xf32>
    %270 = vector.extract_strided_slice %269 {offsets = [2, 0], sizes = [8, 256], strides = [1, 1]} : vector<10x256xf32> to vector<8x256xf32>
    %c0_144 = arith.constant 0 : index
    %c0_145 = arith.constant 0 : index
    %c0_146 = arith.constant 0 : index
    %271 = vector.load %arg4[%c0_144, %c0_145, %c0_146] : memref<3x3x256xf32, #tpu.memory_space<vmem>>, vector<1x1x256xf32>
    %272 = vector.shape_cast %271 : vector<1x1x256xf32> to vector<256xf32>
    %273 = vector.shape_cast %272 : vector<256xf32> to vector<1x256xf32>
    %274 = vector.broadcast %273 : vector<1x256xf32> to vector<8x256xf32>
    %275 = arith.mulf %270, %274 : vector<8x256xf32>
    %276 = arith.addf %268, %275 : vector<8x256xf32>
    %277 = vector.extract_strided_slice %269 {offsets = [1, 0], sizes = [8, 256], strides = [1, 1]} : vector<10x256xf32> to vector<8x256xf32>
    %c1_147 = arith.constant 1 : index
    %c0_148 = arith.constant 0 : index
    %c0_149 = arith.constant 0 : index
    %278 = vector.load %arg4[%c1_147, %c0_148, %c0_149] : memref<3x3x256xf32, #tpu.memory_space<vmem>>, vector<1x1x256xf32>
    %279 = vector.shape_cast %278 : vector<1x1x256xf32> to vector<256xf32>
    %280 = vector.shape_cast %279 : vector<256xf32> to vector<1x256xf32>
    %281 = vector.broadcast %280 : vector<1x256xf32> to vector<8x256xf32>
    %282 = arith.mulf %277, %281 : vector<8x256xf32>
    %283 = arith.addf %276, %282 : vector<8x256xf32>
    %284 = vector.extract_strided_slice %269 {offsets = [0, 0], sizes = [8, 256], strides = [1, 1]} : vector<10x256xf32> to vector<8x256xf32>
    %c2_150 = arith.constant 2 : index
    %c0_151 = arith.constant 0 : index
    %c0_152 = arith.constant 0 : index
    %285 = vector.load %arg4[%c2_150, %c0_151, %c0_152] : memref<3x3x256xf32, #tpu.memory_space<vmem>>, vector<1x1x256xf32>
    %286 = vector.shape_cast %285 : vector<1x1x256xf32> to vector<256xf32>
    %287 = vector.shape_cast %286 : vector<256xf32> to vector<1x256xf32>
    %288 = vector.broadcast %287 : vector<1x256xf32> to vector<8x256xf32>
    %289 = arith.mulf %284, %288 : vector<8x256xf32>
    %290 = arith.addf %283, %289 : vector<8x256xf32>
    %c0_153 = arith.constant 0 : index
    %c768 = arith.constant 768 : index
    %291 = vector.load %arg7[%c0_153, %c768] : memref<10x2560xf32, #tpu.memory_space<vmem>>, vector<10x256xf32>
    %292 = vector.extract_strided_slice %291 {offsets = [2, 0], sizes = [8, 256], strides = [1, 1]} : vector<10x256xf32> to vector<8x256xf32>
    %c0_154 = arith.constant 0 : index
    %c1_155 = arith.constant 1 : index
    %c0_156 = arith.constant 0 : index
    %293 = vector.load %arg4[%c0_154, %c1_155, %c0_156] : memref<3x3x256xf32, #tpu.memory_space<vmem>>, vector<1x1x256xf32>
    %294 = vector.shape_cast %293 : vector<1x1x256xf32> to vector<256xf32>
    %295 = vector.shape_cast %294 : vector<256xf32> to vector<1x256xf32>
    %296 = vector.broadcast %295 : vector<1x256xf32> to vector<8x256xf32>
    %297 = arith.mulf %292, %296 : vector<8x256xf32>
    %298 = arith.addf %290, %297 : vector<8x256xf32>
    %299 = vector.extract_strided_slice %291 {offsets = [1, 0], sizes = [8, 256], strides = [1, 1]} : vector<10x256xf32> to vector<8x256xf32>
    %c1_157 = arith.constant 1 : index
    %c1_158 = arith.constant 1 : index
    %c0_159 = arith.constant 0 : index
    %300 = vector.load %arg4[%c1_157, %c1_158, %c0_159] : memref<3x3x256xf32, #tpu.memory_space<vmem>>, vector<1x1x256xf32>
    %301 = vector.shape_cast %300 : vector<1x1x256xf32> to vector<256xf32>
    %302 = vector.shape_cast %301 : vector<256xf32> to vector<1x256xf32>
    %303 = vector.broadcast %302 : vector<1x256xf32> to vector<8x256xf32>
    %304 = arith.mulf %299, %303 : vector<8x256xf32>
    %305 = arith.addf %298, %304 : vector<8x256xf32>
    %306 = vector.extract_strided_slice %291 {offsets = [0, 0], sizes = [8, 256], strides = [1, 1]} : vector<10x256xf32> to vector<8x256xf32>
    %c2_160 = arith.constant 2 : index
    %c1_161 = arith.constant 1 : index
    %c0_162 = arith.constant 0 : index
    %307 = vector.load %arg4[%c2_160, %c1_161, %c0_162] : memref<3x3x256xf32, #tpu.memory_space<vmem>>, vector<1x1x256xf32>
    %308 = vector.shape_cast %307 : vector<1x1x256xf32> to vector<256xf32>
    %309 = vector.shape_cast %308 : vector<256xf32> to vector<1x256xf32>
    %310 = vector.broadcast %309 : vector<1x256xf32> to vector<8x256xf32>
    %311 = arith.mulf %306, %310 : vector<8x256xf32>
    %312 = arith.addf %305, %311 : vector<8x256xf32>
    %c0_163 = arith.constant 0 : index
    %c784 = arith.constant 784 : index
    %313 = vector.load %arg7[%c0_163, %c784] : memref<10x2560xf32, #tpu.memory_space<vmem>>, vector<10x256xf32>
    %314 = vector.extract_strided_slice %313 {offsets = [2, 0], sizes = [8, 256], strides = [1, 1]} : vector<10x256xf32> to vector<8x256xf32>
    %c0_164 = arith.constant 0 : index
    %c2_165 = arith.constant 2 : index
    %c0_166 = arith.constant 0 : index
    %315 = vector.load %arg4[%c0_164, %c2_165, %c0_166] : memref<3x3x256xf32, #tpu.memory_space<vmem>>, vector<1x1x256xf32>
    %316 = vector.shape_cast %315 : vector<1x1x256xf32> to vector<256xf32>
    %317 = vector.shape_cast %316 : vector<256xf32> to vector<1x256xf32>
    %318 = vector.broadcast %317 : vector<1x256xf32> to vector<8x256xf32>
    %319 = arith.mulf %314, %318 : vector<8x256xf32>
    %320 = arith.addf %312, %319 : vector<8x256xf32>
    %321 = vector.extract_strided_slice %313 {offsets = [1, 0], sizes = [8, 256], strides = [1, 1]} : vector<10x256xf32> to vector<8x256xf32>
    %c1_167 = arith.constant 1 : index
    %c2_168 = arith.constant 2 : index
    %c0_169 = arith.constant 0 : index
    %322 = vector.load %arg4[%c1_167, %c2_168, %c0_169] : memref<3x3x256xf32, #tpu.memory_space<vmem>>, vector<1x1x256xf32>
    %323 = vector.shape_cast %322 : vector<1x1x256xf32> to vector<256xf32>
    %324 = vector.shape_cast %323 : vector<256xf32> to vector<1x256xf32>
    %325 = vector.broadcast %324 : vector<1x256xf32> to vector<8x256xf32>
    %326 = arith.mulf %321, %325 : vector<8x256xf32>
    %327 = arith.addf %320, %326 : vector<8x256xf32>
    %328 = vector.extract_strided_slice %313 {offsets = [0, 0], sizes = [8, 256], strides = [1, 1]} : vector<10x256xf32> to vector<8x256xf32>
    %c2_170 = arith.constant 2 : index
    %c2_171 = arith.constant 2 : index
    %c0_172 = arith.constant 0 : index
    %329 = vector.load %arg4[%c2_170, %c2_171, %c0_172] : memref<3x3x256xf32, #tpu.memory_space<vmem>>, vector<1x1x256xf32>
    %330 = vector.shape_cast %329 : vector<1x1x256xf32> to vector<256xf32>
    %331 = vector.shape_cast %330 : vector<256xf32> to vector<1x256xf32>
    %332 = vector.broadcast %331 : vector<1x256xf32> to vector<8x256xf32>
    %333 = arith.mulf %328, %332 : vector<8x256xf32>
    %334 = arith.addf %327, %333 : vector<8x256xf32>
    %cst_173 = arith.constant 4.000000e-01 : f32
    %335 = vector.broadcast %cst_173 : f32 to vector<8x256xf32>
    %336 = arith.mulf %335, %334 : vector<8x256xf32>
    %337 = arith.maximumf %334, %336 : vector<8x256xf32>
    %c0_174 = arith.constant 0 : index
    %c0_175 = arith.constant 0 : index
    %c512_176 = arith.constant 512 : index
    %338 = vector.load %arg6[%c0_174, %c0_175, %c512_176] : memref<1x8x2048xf32, #tpu.memory_space<vmem>>, vector<1x8x256xf32>
    %339 = vector.shape_cast %338 : vector<1x8x256xf32> to vector<8x256xf32>
    %340 = vector.shape_cast %337 : vector<8x256xf32> to vector<1x8x256xf32>
    tpu.vector_store %arg6[%c0_174, %c0_175, %c512_176], %340 {strides = array<i32>} : memref<1x8x2048xf32, #tpu.memory_space<vmem>>, vector<1x8x256xf32>,
    %cst_177 = arith.constant 0.000000e+00 : f32
    %341 = vector.broadcast %cst_177 : f32 to vector<8x256xf32>
    %342 = vector.broadcast %1 : f32 to vector<8x256xf32>
    %343 = arith.addf %341, %342 : vector<8x256xf32>
    %c0_178 = arith.constant 0 : index
    %c1008 = arith.constant 1008 : index
    %344 = vector.load %arg7[%c0_178, %c1008] : memref<10x2560xf32, #tpu.memory_space<vmem>>, vector<10x256xf32>
    %345 = vector.extract_strided_slice %344 {offsets = [2, 0], sizes = [8, 256], strides = [1, 1]} : vector<10x256xf32> to vector<8x256xf32>
    %c0_179 = arith.constant 0 : index
    %c0_180 = arith.constant 0 : index
    %c0_181 = arith.constant 0 : index
    %346 = vector.load %arg4[%c0_179, %c0_180, %c0_181] : memref<3x3x256xf32, #tpu.memory_space<vmem>>, vector<1x1x256xf32>
    %347 = vector.shape_cast %346 : vector<1x1x256xf32> to vector<256xf32>
    %348 = vector.shape_cast %347 : vector<256xf32> to vector<1x256xf32>
    %349 = vector.broadcast %348 : vector<1x256xf32> to vector<8x256xf32>
    %350 = arith.mulf %345, %349 : vector<8x256xf32>
    %351 = arith.addf %343, %350 : vector<8x256xf32>
    %352 = vector.extract_strided_slice %344 {offsets = [1, 0], sizes = [8, 256], strides = [1, 1]} : vector<10x256xf32> to vector<8x256xf32>
    %c1_182 = arith.constant 1 : index
    %c0_183 = arith.constant 0 : index
    %c0_184 = arith.constant 0 : index
    %353 = vector.load %arg4[%c1_182, %c0_183, %c0_184] : memref<3x3x256xf32, #tpu.memory_space<vmem>>, vector<1x1x256xf32>
    %354 = vector.shape_cast %353 : vector<1x1x256xf32> to vector<256xf32>
    %355 = vector.shape_cast %354 : vector<256xf32> to vector<1x256xf32>
    %356 = vector.broadcast %355 : vector<1x256xf32> to vector<8x256xf32>
    %357 = arith.mulf %352, %356 : vector<8x256xf32>
    %358 = arith.addf %351, %357 : vector<8x256xf32>
    %359 = vector.extract_strided_slice %344 {offsets = [0, 0], sizes = [8, 256], strides = [1, 1]} : vector<10x256xf32> to vector<8x256xf32>
    %c2_185 = arith.constant 2 : index
    %c0_186 = arith.constant 0 : index
    %c0_187 = arith.constant 0 : index
    %360 = vector.load %arg4[%c2_185, %c0_186, %c0_187] : memref<3x3x256xf32, #tpu.memory_space<vmem>>, vector<1x1x256xf32>
    %361 = vector.shape_cast %360 : vector<1x1x256xf32> to vector<256xf32>
    %362 = vector.shape_cast %361 : vector<256xf32> to vector<1x256xf32>
    %363 = vector.broadcast %362 : vector<1x256xf32> to vector<8x256xf32>
    %364 = arith.mulf %359, %363 : vector<8x256xf32>
    %365 = arith.addf %358, %364 : vector<8x256xf32>
    %c0_188 = arith.constant 0 : index
    %c1024 = arith.constant 1024 : index
    %366 = vector.load %arg7[%c0_188, %c1024] : memref<10x2560xf32, #tpu.memory_space<vmem>>, vector<10x256xf32>
    %367 = vector.extract_strided_slice %366 {offsets = [2, 0], sizes = [8, 256], strides = [1, 1]} : vector<10x256xf32> to vector<8x256xf32>
    %c0_189 = arith.constant 0 : index
    %c1_190 = arith.constant 1 : index
    %c0_191 = arith.constant 0 : index
    %368 = vector.load %arg4[%c0_189, %c1_190, %c0_191] : memref<3x3x256xf32, #tpu.memory_space<vmem>>, vector<1x1x256xf32>
    %369 = vector.shape_cast %368 : vector<1x1x256xf32> to vector<256xf32>
    %370 = vector.shape_cast %369 : vector<256xf32> to vector<1x256xf32>
    %371 = vector.broadcast %370 : vector<1x256xf32> to vector<8x256xf32>
    %372 = arith.mulf %367, %371 : vector<8x256xf32>
    %373 = arith.addf %365, %372 : vector<8x256xf32>
    %374 = vector.extract_strided_slice %366 {offsets = [1, 0], sizes = [8, 256], strides = [1, 1]} : vector<10x256xf32> to vector<8x256xf32>
    %c1_192 = arith.constant 1 : index
    %c1_193 = arith.constant 1 : index
    %c0_194 = arith.constant 0 : index
    %375 = vector.load %arg4[%c1_192, %c1_193, %c0_194] : memref<3x3x256xf32, #tpu.memory_space<vmem>>, vector<1x1x256xf32>
    %376 = vector.shape_cast %375 : vector<1x1x256xf32> to vector<256xf32>
    %377 = vector.shape_cast %376 : vector<256xf32> to vector<1x256xf32>
    %378 = vector.broadcast %377 : vector<1x256xf32> to vector<8x256xf32>
    %379 = arith.mulf %374, %378 : vector<8x256xf32>
    %380 = arith.addf %373, %379 : vector<8x256xf32>
    %381 = vector.extract_strided_slice %366 {offsets = [0, 0], sizes = [8, 256], strides = [1, 1]} : vector<10x256xf32> to vector<8x256xf32>
    %c2_195 = arith.constant 2 : index
    %c1_196 = arith.constant 1 : index
    %c0_197 = arith.constant 0 : index
    %382 = vector.load %arg4[%c2_195, %c1_196, %c0_197] : memref<3x3x256xf32, #tpu.memory_space<vmem>>, vector<1x1x256xf32>
    %383 = vector.shape_cast %382 : vector<1x1x256xf32> to vector<256xf32>
    %384 = vector.shape_cast %383 : vector<256xf32> to vector<1x256xf32>
    %385 = vector.broadcast %384 : vector<1x256xf32> to vector<8x256xf32>
    %386 = arith.mulf %381, %385 : vector<8x256xf32>
    %387 = arith.addf %380, %386 : vector<8x256xf32>
    %c0_198 = arith.constant 0 : index
    %c1040 = arith.constant 1040 : index
    %388 = vector.load %arg7[%c0_198, %c1040] : memref<10x2560xf32, #tpu.memory_space<vmem>>, vector<10x256xf32>
    %389 = vector.extract_strided_slice %388 {offsets = [2, 0], sizes = [8, 256], strides = [1, 1]} : vector<10x256xf32> to vector<8x256xf32>
    %c0_199 = arith.constant 0 : index
    %c2_200 = arith.constant 2 : index
    %c0_201 = arith.constant 0 : index
    %390 = vector.load %arg4[%c0_199, %c2_200, %c0_201] : memref<3x3x256xf32, #tpu.memory_space<vmem>>, vector<1x1x256xf32>
    %391 = vector.shape_cast %390 : vector<1x1x256xf32> to vector<256xf32>
    %392 = vector.shape_cast %391 : vector<256xf32> to vector<1x256xf32>
    %393 = vector.broadcast %392 : vector<1x256xf32> to vector<8x256xf32>
    %394 = arith.mulf %389, %393 : vector<8x256xf32>
    %395 = arith.addf %387, %394 : vector<8x256xf32>
    %396 = vector.extract_strided_slice %388 {offsets = [1, 0], sizes = [8, 256], strides = [1, 1]} : vector<10x256xf32> to vector<8x256xf32>
    %c1_202 = arith.constant 1 : index
    %c2_203 = arith.constant 2 : index
    %c0_204 = arith.constant 0 : index
    %397 = vector.load %arg4[%c1_202, %c2_203, %c0_204] : memref<3x3x256xf32, #tpu.memory_space<vmem>>, vector<1x1x256xf32>
    %398 = vector.shape_cast %397 : vector<1x1x256xf32> to vector<256xf32>
    %399 = vector.shape_cast %398 : vector<256xf32> to vector<1x256xf32>
    %400 = vector.broadcast %399 : vector<1x256xf32> to vector<8x256xf32>
    %401 = arith.mulf %396, %400 : vector<8x256xf32>
    %402 = arith.addf %395, %401 : vector<8x256xf32>
    %403 = vector.extract_strided_slice %388 {offsets = [0, 0], sizes = [8, 256], strides = [1, 1]} : vector<10x256xf32> to vector<8x256xf32>
    %c2_205 = arith.constant 2 : index
    %c2_206 = arith.constant 2 : index
    %c0_207 = arith.constant 0 : index
    %404 = vector.load %arg4[%c2_205, %c2_206, %c0_207] : memref<3x3x256xf32, #tpu.memory_space<vmem>>, vector<1x1x256xf32>
    %405 = vector.shape_cast %404 : vector<1x1x256xf32> to vector<256xf32>
    %406 = vector.shape_cast %405 : vector<256xf32> to vector<1x256xf32>
    %407 = vector.broadcast %406 : vector<1x256xf32> to vector<8x256xf32>
    %408 = arith.mulf %403, %407 : vector<8x256xf32>
    %409 = arith.addf %402, %408 : vector<8x256xf32>
    %cst_208 = arith.constant 4.000000e-01 : f32
    %410 = vector.broadcast %cst_208 : f32 to vector<8x256xf32>
    %411 = arith.mulf %410, %409 : vector<8x256xf32>
    %412 = arith.maximumf %409, %411 : vector<8x256xf32>
    %c0_209 = arith.constant 0 : index
    %c0_210 = arith.constant 0 : index
    %c768_211 = arith.constant 768 : index
    %413 = vector.load %arg6[%c0_209, %c0_210, %c768_211] : memref<1x8x2048xf32, #tpu.memory_space<vmem>>, vector<1x8x256xf32>
    %414 = vector.shape_cast %413 : vector<1x8x256xf32> to vector<8x256xf32>
    %415 = vector.shape_cast %412 : vector<8x256xf32> to vector<1x8x256xf32>
    tpu.vector_store %arg6[%c0_209, %c0_210, %c768_211], %415 {strides = array<i32>} : memref<1x8x2048xf32, #tpu.memory_space<vmem>>, vector<1x8x256xf32>,
    %cst_212 = arith.constant 0.000000e+00 : f32
    %416 = vector.broadcast %cst_212 : f32 to vector<8x256xf32>
    %417 = vector.broadcast %1 : f32 to vector<8x256xf32>
    %418 = arith.addf %416, %417 : vector<8x256xf32>
    %c0_213 = arith.constant 0 : index
    %c1264 = arith.constant 1264 : index
    %419 = vector.load %arg7[%c0_213, %c1264] : memref<10x2560xf32, #tpu.memory_space<vmem>>, vector<10x256xf32>
    %420 = vector.extract_strided_slice %419 {offsets = [2, 0], sizes = [8, 256], strides = [1, 1]} : vector<10x256xf32> to vector<8x256xf32>
    %c0_214 = arith.constant 0 : index
    %c0_215 = arith.constant 0 : index
    %c0_216 = arith.constant 0 : index
    %421 = vector.load %arg4[%c0_214, %c0_215, %c0_216] : memref<3x3x256xf32, #tpu.memory_space<vmem>>, vector<1x1x256xf32>
    %422 = vector.shape_cast %421 : vector<1x1x256xf32> to vector<256xf32>
    %423 = vector.shape_cast %422 : vector<256xf32> to vector<1x256xf32>
    %424 = vector.broadcast %423 : vector<1x256xf32> to vector<8x256xf32>
    %425 = arith.mulf %420, %424 : vector<8x256xf32>
    %426 = arith.addf %418, %425 : vector<8x256xf32>
    %427 = vector.extract_strided_slice %419 {offsets = [1, 0], sizes = [8, 256], strides = [1, 1]} : vector<10x256xf32> to vector<8x256xf32>
    %c1_217 = arith.constant 1 : index
    %c0_218 = arith.constant 0 : index
    %c0_219 = arith.constant 0 : index
    %428 = vector.load %arg4[%c1_217, %c0_218, %c0_219] : memref<3x3x256xf32, #tpu.memory_space<vmem>>, vector<1x1x256xf32>
    %429 = vector.shape_cast %428 : vector<1x1x256xf32> to vector<256xf32>
    %430 = vector.shape_cast %429 : vector<256xf32> to vector<1x256xf32>
    %431 = vector.broadcast %430 : vector<1x256xf32> to vector<8x256xf32>
    %432 = arith.mulf %427, %431 : vector<8x256xf32>
    %433 = arith.addf %426, %432 : vector<8x256xf32>
    %434 = vector.extract_strided_slice %419 {offsets = [0, 0], sizes = [8, 256], strides = [1, 1]} : vector<10x256xf32> to vector<8x256xf32>
    %c2_220 = arith.constant 2 : index
    %c0_221 = arith.constant 0 : index
    %c0_222 = arith.constant 0 : index
    %435 = vector.load %arg4[%c2_220, %c0_221, %c0_222] : memref<3x3x256xf32, #tpu.memory_space<vmem>>, vector<1x1x256xf32>
    %436 = vector.shape_cast %435 : vector<1x1x256xf32> to vector<256xf32>
    %437 = vector.shape_cast %436 : vector<256xf32> to vector<1x256xf32>
    %438 = vector.broadcast %437 : vector<1x256xf32> to vector<8x256xf32>
    %439 = arith.mulf %434, %438 : vector<8x256xf32>
    %440 = arith.addf %433, %439 : vector<8x256xf32>
    %c0_223 = arith.constant 0 : index
    %c1280 = arith.constant 1280 : index
    %441 = vector.load %arg7[%c0_223, %c1280] : memref<10x2560xf32, #tpu.memory_space<vmem>>, vector<10x256xf32>
    %442 = vector.extract_strided_slice %441 {offsets = [2, 0], sizes = [8, 256], strides = [1, 1]} : vector<10x256xf32> to vector<8x256xf32>
    %c0_224 = arith.constant 0 : index
    %c1_225 = arith.constant 1 : index
    %c0_226 = arith.constant 0 : index
    %443 = vector.load %arg4[%c0_224, %c1_225, %c0_226] : memref<3x3x256xf32, #tpu.memory_space<vmem>>, vector<1x1x256xf32>
    %444 = vector.shape_cast %443 : vector<1x1x256xf32> to vector<256xf32>
    %445 = vector.shape_cast %444 : vector<256xf32> to vector<1x256xf32>
    %446 = vector.broadcast %445 : vector<1x256xf32> to vector<8x256xf32>
    %447 = arith.mulf %442, %446 : vector<8x256xf32>
    %448 = arith.addf %440, %447 : vector<8x256xf32>
    %449 = vector.extract_strided_slice %441 {offsets = [1, 0], sizes = [8, 256], strides = [1, 1]} : vector<10x256xf32> to vector<8x256xf32>
    %c1_227 = arith.constant 1 : index
    %c1_228 = arith.constant 1 : index
    %c0_229 = arith.constant 0 : index
    %450 = vector.load %arg4[%c1_227, %c1_228, %c0_229] : memref<3x3x256xf32, #tpu.memory_space<vmem>>, vector<1x1x256xf32>
    %451 = vector.shape_cast %450 : vector<1x1x256xf32> to vector<256xf32>
    %452 = vector.shape_cast %451 : vector<256xf32> to vector<1x256xf32>
    %453 = vector.broadcast %452 : vector<1x256xf32> to vector<8x256xf32>
    %454 = arith.mulf %449, %453 : vector<8x256xf32>
    %455 = arith.addf %448, %454 : vector<8x256xf32>
    %456 = vector.extract_strided_slice %441 {offsets = [0, 0], sizes = [8, 256], strides = [1, 1]} : vector<10x256xf32> to vector<8x256xf32>
    %c2_230 = arith.constant 2 : index
    %c1_231 = arith.constant 1 : index
    %c0_232 = arith.constant 0 : index
    %457 = vector.load %arg4[%c2_230, %c1_231, %c0_232] : memref<3x3x256xf32, #tpu.memory_space<vmem>>, vector<1x1x256xf32>
    %458 = vector.shape_cast %457 : vector<1x1x256xf32> to vector<256xf32>
    %459 = vector.shape_cast %458 : vector<256xf32> to vector<1x256xf32>
    %460 = vector.broadcast %459 : vector<1x256xf32> to vector<8x256xf32>
    %461 = arith.mulf %456, %460 : vector<8x256xf32>
    %462 = arith.addf %455, %461 : vector<8x256xf32>
    %c0_233 = arith.constant 0 : index
    %c1296 = arith.constant 1296 : index
    %463 = vector.load %arg7[%c0_233, %c1296] : memref<10x2560xf32, #tpu.memory_space<vmem>>, vector<10x256xf32>
    %464 = vector.extract_strided_slice %463 {offsets = [2, 0], sizes = [8, 256], strides = [1, 1]} : vector<10x256xf32> to vector<8x256xf32>
    %c0_234 = arith.constant 0 : index
    %c2_235 = arith.constant 2 : index
    %c0_236 = arith.constant 0 : index
    %465 = vector.load %arg4[%c0_234, %c2_235, %c0_236] : memref<3x3x256xf32, #tpu.memory_space<vmem>>, vector<1x1x256xf32>
    %466 = vector.shape_cast %465 : vector<1x1x256xf32> to vector<256xf32>
    %467 = vector.shape_cast %466 : vector<256xf32> to vector<1x256xf32>
    %468 = vector.broadcast %467 : vector<1x256xf32> to vector<8x256xf32>
    %469 = arith.mulf %464, %468 : vector<8x256xf32>
    %470 = arith.addf %462, %469 : vector<8x256xf32>
    %471 = vector.extract_strided_slice %463 {offsets = [1, 0], sizes = [8, 256], strides = [1, 1]} : vector<10x256xf32> to vector<8x256xf32>
    %c1_237 = arith.constant 1 : index
    %c2_238 = arith.constant 2 : index
    %c0_239 = arith.constant 0 : index
    %472 = vector.load %arg4[%c1_237, %c2_238, %c0_239] : memref<3x3x256xf32, #tpu.memory_space<vmem>>, vector<1x1x256xf32>
    %473 = vector.shape_cast %472 : vector<1x1x256xf32> to vector<256xf32>
    %474 = vector.shape_cast %473 : vector<256xf32> to vector<1x256xf32>
    %475 = vector.broadcast %474 : vector<1x256xf32> to vector<8x256xf32>
    %476 = arith.mulf %471, %475 : vector<8x256xf32>
    %477 = arith.addf %470, %476 : vector<8x256xf32>
    %478 = vector.extract_strided_slice %463 {offsets = [0, 0], sizes = [8, 256], strides = [1, 1]} : vector<10x256xf32> to vector<8x256xf32>
    %c2_240 = arith.constant 2 : index
    %c2_241 = arith.constant 2 : index
    %c0_242 = arith.constant 0 : index
    %479 = vector.load %arg4[%c2_240, %c2_241, %c0_242] : memref<3x3x256xf32, #tpu.memory_space<vmem>>, vector<1x1x256xf32>
    %480 = vector.shape_cast %479 : vector<1x1x256xf32> to vector<256xf32>
    %481 = vector.shape_cast %480 : vector<256xf32> to vector<1x256xf32>
    %482 = vector.broadcast %481 : vector<1x256xf32> to vector<8x256xf32>
    %483 = arith.mulf %478, %482 : vector<8x256xf32>
    %484 = arith.addf %477, %483 : vector<8x256xf32>
    %cst_243 = arith.constant 4.000000e-01 : f32
    %485 = vector.broadcast %cst_243 : f32 to vector<8x256xf32>
    %486 = arith.mulf %485, %484 : vector<8x256xf32>
    %487 = arith.maximumf %484, %486 : vector<8x256xf32>
    %c0_244 = arith.constant 0 : index
    %c0_245 = arith.constant 0 : index
    %c1024_246 = arith.constant 1024 : index
    %488 = vector.load %arg6[%c0_244, %c0_245, %c1024_246] : memref<1x8x2048xf32, #tpu.memory_space<vmem>>, vector<1x8x256xf32>
    %489 = vector.shape_cast %488 : vector<1x8x256xf32> to vector<8x256xf32>
    %490 = vector.shape_cast %487 : vector<8x256xf32> to vector<1x8x256xf32>
    tpu.vector_store %arg6[%c0_244, %c0_245, %c1024_246], %490 {strides = array<i32>} : memref<1x8x2048xf32, #tpu.memory_space<vmem>>, vector<1x8x256xf32>,
    %cst_247 = arith.constant 0.000000e+00 : f32
    %491 = vector.broadcast %cst_247 : f32 to vector<8x256xf32>
    %492 = vector.broadcast %1 : f32 to vector<8x256xf32>
    %493 = arith.addf %491, %492 : vector<8x256xf32>
    %c0_248 = arith.constant 0 : index
    %c1520 = arith.constant 1520 : index
    %494 = vector.load %arg7[%c0_248, %c1520] : memref<10x2560xf32, #tpu.memory_space<vmem>>, vector<10x256xf32>
    %495 = vector.extract_strided_slice %494 {offsets = [2, 0], sizes = [8, 256], strides = [1, 1]} : vector<10x256xf32> to vector<8x256xf32>
    %c0_249 = arith.constant 0 : index
    %c0_250 = arith.constant 0 : index
    %c0_251 = arith.constant 0 : index
    %496 = vector.load %arg4[%c0_249, %c0_250, %c0_251] : memref<3x3x256xf32, #tpu.memory_space<vmem>>, vector<1x1x256xf32>
    %497 = vector.shape_cast %496 : vector<1x1x256xf32> to vector<256xf32>
    %498 = vector.shape_cast %497 : vector<256xf32> to vector<1x256xf32>
    %499 = vector.broadcast %498 : vector<1x256xf32> to vector<8x256xf32>
    %500 = arith.mulf %495, %499 : vector<8x256xf32>
    %501 = arith.addf %493, %500 : vector<8x256xf32>
    %502 = vector.extract_strided_slice %494 {offsets = [1, 0], sizes = [8, 256], strides = [1, 1]} : vector<10x256xf32> to vector<8x256xf32>
    %c1_252 = arith.constant 1 : index
    %c0_253 = arith.constant 0 : index
    %c0_254 = arith.constant 0 : index
    %503 = vector.load %arg4[%c1_252, %c0_253, %c0_254] : memref<3x3x256xf32, #tpu.memory_space<vmem>>, vector<1x1x256xf32>
    %504 = vector.shape_cast %503 : vector<1x1x256xf32> to vector<256xf32>
    %505 = vector.shape_cast %504 : vector<256xf32> to vector<1x256xf32>
    %506 = vector.broadcast %505 : vector<1x256xf32> to vector<8x256xf32>
    %507 = arith.mulf %502, %506 : vector<8x256xf32>
    %508 = arith.addf %501, %507 : vector<8x256xf32>
    %509 = vector.extract_strided_slice %494 {offsets = [0, 0], sizes = [8, 256], strides = [1, 1]} : vector<10x256xf32> to vector<8x256xf32>
    %c2_255 = arith.constant 2 : index
    %c0_256 = arith.constant 0 : index
    %c0_257 = arith.constant 0 : index
    %510 = vector.load %arg4[%c2_255, %c0_256, %c0_257] : memref<3x3x256xf32, #tpu.memory_space<vmem>>, vector<1x1x256xf32>
    %511 = vector.shape_cast %510 : vector<1x1x256xf32> to vector<256xf32>
    %512 = vector.shape_cast %511 : vector<256xf32> to vector<1x256xf32>
    %513 = vector.broadcast %512 : vector<1x256xf32> to vector<8x256xf32>
    %514 = arith.mulf %509, %513 : vector<8x256xf32>
    %515 = arith.addf %508, %514 : vector<8x256xf32>
    %c0_258 = arith.constant 0 : index
    %c1536 = arith.constant 1536 : index
    %516 = vector.load %arg7[%c0_258, %c1536] : memref<10x2560xf32, #tpu.memory_space<vmem>>, vector<10x256xf32>
    %517 = vector.extract_strided_slice %516 {offsets = [2, 0], sizes = [8, 256], strides = [1, 1]} : vector<10x256xf32> to vector<8x256xf32>
    %c0_259 = arith.constant 0 : index
    %c1_260 = arith.constant 1 : index
    %c0_261 = arith.constant 0 : index
    %518 = vector.load %arg4[%c0_259, %c1_260, %c0_261] : memref<3x3x256xf32, #tpu.memory_space<vmem>>, vector<1x1x256xf32>
    %519 = vector.shape_cast %518 : vector<1x1x256xf32> to vector<256xf32>
    %520 = vector.shape_cast %519 : vector<256xf32> to vector<1x256xf32>
    %521 = vector.broadcast %520 : vector<1x256xf32> to vector<8x256xf32>
    %522 = arith.mulf %517, %521 : vector<8x256xf32>
    %523 = arith.addf %515, %522 : vector<8x256xf32>
    %524 = vector.extract_strided_slice %516 {offsets = [1, 0], sizes = [8, 256], strides = [1, 1]} : vector<10x256xf32> to vector<8x256xf32>
    %c1_262 = arith.constant 1 : index
    %c1_263 = arith.constant 1 : index
    %c0_264 = arith.constant 0 : index
    %525 = vector.load %arg4[%c1_262, %c1_263, %c0_264] : memref<3x3x256xf32, #tpu.memory_space<vmem>>, vector<1x1x256xf32>
    %526 = vector.shape_cast %525 : vector<1x1x256xf32> to vector<256xf32>
    %527 = vector.shape_cast %526 : vector<256xf32> to vector<1x256xf32>
    %528 = vector.broadcast %527 : vector<1x256xf32> to vector<8x256xf32>
    %529 = arith.mulf %524, %528 : vector<8x256xf32>
    %530 = arith.addf %523, %529 : vector<8x256xf32>
    %531 = vector.extract_strided_slice %516 {offsets = [0, 0], sizes = [8, 256], strides = [1, 1]} : vector<10x256xf32> to vector<8x256xf32>
    %c2_265 = arith.constant 2 : index
    %c1_266 = arith.constant 1 : index
    %c0_267 = arith.constant 0 : index
    %532 = vector.load %arg4[%c2_265, %c1_266, %c0_267] : memref<3x3x256xf32, #tpu.memory_space<vmem>>, vector<1x1x256xf32>
    %533 = vector.shape_cast %532 : vector<1x1x256xf32> to vector<256xf32>
    %534 = vector.shape_cast %533 : vector<256xf32> to vector<1x256xf32>
    %535 = vector.broadcast %534 : vector<1x256xf32> to vector<8x256xf32>
    %536 = arith.mulf %531, %535 : vector<8x256xf32>
    %537 = arith.addf %530, %536 : vector<8x256xf32>
    %c0_268 = arith.constant 0 : index
    %c1552 = arith.constant 1552 : index
    %538 = vector.load %arg7[%c0_268, %c1552] : memref<10x2560xf32, #tpu.memory_space<vmem>>, vector<10x256xf32>
    %539 = vector.extract_strided_slice %538 {offsets = [2, 0], sizes = [8, 256], strides = [1, 1]} : vector<10x256xf32> to vector<8x256xf32>
    %c0_269 = arith.constant 0 : index
    %c2_270 = arith.constant 2 : index
    %c0_271 = arith.constant 0 : index
    %540 = vector.load %arg4[%c0_269, %c2_270, %c0_271] : memref<3x3x256xf32, #tpu.memory_space<vmem>>, vector<1x1x256xf32>
    %541 = vector.shape_cast %540 : vector<1x1x256xf32> to vector<256xf32>
    %542 = vector.shape_cast %541 : vector<256xf32> to vector<1x256xf32>
    %543 = vector.broadcast %542 : vector<1x256xf32> to vector<8x256xf32>
    %544 = arith.mulf %539, %543 : vector<8x256xf32>
    %545 = arith.addf %537, %544 : vector<8x256xf32>
    %546 = vector.extract_strided_slice %538 {offsets = [1, 0], sizes = [8, 256], strides = [1, 1]} : vector<10x256xf32> to vector<8x256xf32>
    %c1_272 = arith.constant 1 : index
    %c2_273 = arith.constant 2 : index
    %c0_274 = arith.constant 0 : index
    %547 = vector.load %arg4[%c1_272, %c2_273, %c0_274] : memref<3x3x256xf32, #tpu.memory_space<vmem>>, vector<1x1x256xf32>
    %548 = vector.shape_cast %547 : vector<1x1x256xf32> to vector<256xf32>
    %549 = vector.shape_cast %548 : vector<256xf32> to vector<1x256xf32>
    %550 = vector.broadcast %549 : vector<1x256xf32> to vector<8x256xf32>
    %551 = arith.mulf %546, %550 : vector<8x256xf32>
    %552 = arith.addf %545, %551 : vector<8x256xf32>
    %553 = vector.extract_strided_slice %538 {offsets = [0, 0], sizes = [8, 256], strides = [1, 1]} : vector<10x256xf32> to vector<8x256xf32>
    %c2_275 = arith.constant 2 : index
    %c2_276 = arith.constant 2 : index
    %c0_277 = arith.constant 0 : index
    %554 = vector.load %arg4[%c2_275, %c2_276, %c0_277] : memref<3x3x256xf32, #tpu.memory_space<vmem>>, vector<1x1x256xf32>
    %555 = vector.shape_cast %554 : vector<1x1x256xf32> to vector<256xf32>
    %556 = vector.shape_cast %555 : vector<256xf32> to vector<1x256xf32>
    %557 = vector.broadcast %556 : vector<1x256xf32> to vector<8x256xf32>
    %558 = arith.mulf %553, %557 : vector<8x256xf32>
    %559 = arith.addf %552, %558 : vector<8x256xf32>
    %cst_278 = arith.constant 4.000000e-01 : f32
    %560 = vector.broadcast %cst_278 : f32 to vector<8x256xf32>
    %561 = arith.mulf %560, %559 : vector<8x256xf32>
    %562 = arith.maximumf %559, %561 : vector<8x256xf32>
    %c0_279 = arith.constant 0 : index
    %c0_280 = arith.constant 0 : index
    %c1280_281 = arith.constant 1280 : index
    %563 = vector.load %arg6[%c0_279, %c0_280, %c1280_281] : memref<1x8x2048xf32, #tpu.memory_space<vmem>>, vector<1x8x256xf32>
    %564 = vector.shape_cast %563 : vector<1x8x256xf32> to vector<8x256xf32>
    %565 = vector.shape_cast %562 : vector<8x256xf32> to vector<1x8x256xf32>
    tpu.vector_store %arg6[%c0_279, %c0_280, %c1280_281], %565 {strides = array<i32>} : memref<1x8x2048xf32, #tpu.memory_space<vmem>>, vector<1x8x256xf32>,
    %cst_282 = arith.constant 0.000000e+00 : f32
    %566 = vector.broadcast %cst_282 : f32 to vector<8x256xf32>
    %567 = vector.broadcast %1 : f32 to vector<8x256xf32>
    %568 = arith.addf %566, %567 : vector<8x256xf32>
    %c0_283 = arith.constant 0 : index
    %c1776 = arith.constant 1776 : index
    %569 = vector.load %arg7[%c0_283, %c1776] : memref<10x2560xf32, #tpu.memory_space<vmem>>, vector<10x256xf32>
    %570 = vector.extract_strided_slice %569 {offsets = [2, 0], sizes = [8, 256], strides = [1, 1]} : vector<10x256xf32> to vector<8x256xf32>
    %c0_284 = arith.constant 0 : index
    %c0_285 = arith.constant 0 : index
    %c0_286 = arith.constant 0 : index
    %571 = vector.load %arg4[%c0_284, %c0_285, %c0_286] : memref<3x3x256xf32, #tpu.memory_space<vmem>>, vector<1x1x256xf32>
    %572 = vector.shape_cast %571 : vector<1x1x256xf32> to vector<256xf32>
    %573 = vector.shape_cast %572 : vector<256xf32> to vector<1x256xf32>
    %574 = vector.broadcast %573 : vector<1x256xf32> to vector<8x256xf32>
    %575 = arith.mulf %570, %574 : vector<8x256xf32>
    %576 = arith.addf %568, %575 : vector<8x256xf32>
    %577 = vector.extract_strided_slice %569 {offsets = [1, 0], sizes = [8, 256], strides = [1, 1]} : vector<10x256xf32> to vector<8x256xf32>
    %c1_287 = arith.constant 1 : index
    %c0_288 = arith.constant 0 : index
    %c0_289 = arith.constant 0 : index
    %578 = vector.load %arg4[%c1_287, %c0_288, %c0_289] : memref<3x3x256xf32, #tpu.memory_space<vmem>>, vector<1x1x256xf32>
    %579 = vector.shape_cast %578 : vector<1x1x256xf32> to vector<256xf32>
    %580 = vector.shape_cast %579 : vector<256xf32> to vector<1x256xf32>
    %581 = vector.broadcast %580 : vector<1x256xf32> to vector<8x256xf32>
    %582 = arith.mulf %577, %581 : vector<8x256xf32>
    %583 = arith.addf %576, %582 : vector<8x256xf32>
    %584 = vector.extract_strided_slice %569 {offsets = [0, 0], sizes = [8, 256], strides = [1, 1]} : vector<10x256xf32> to vector<8x256xf32>
    %c2_290 = arith.constant 2 : index
    %c0_291 = arith.constant 0 : index
    %c0_292 = arith.constant 0 : index
    %585 = vector.load %arg4[%c2_290, %c0_291, %c0_292] : memref<3x3x256xf32, #tpu.memory_space<vmem>>, vector<1x1x256xf32>
    %586 = vector.shape_cast %585 : vector<1x1x256xf32> to vector<256xf32>
    %587 = vector.shape_cast %586 : vector<256xf32> to vector<1x256xf32>
    %588 = vector.broadcast %587 : vector<1x256xf32> to vector<8x256xf32>
    %589 = arith.mulf %584, %588 : vector<8x256xf32>
    %590 = arith.addf %583, %589 : vector<8x256xf32>
    %c0_293 = arith.constant 0 : index
    %c1792 = arith.constant 1792 : index
    %591 = vector.load %arg7[%c0_293, %c1792] : memref<10x2560xf32, #tpu.memory_space<vmem>>, vector<10x256xf32>
    %592 = vector.extract_strided_slice %591 {offsets = [2, 0], sizes = [8, 256], strides = [1, 1]} : vector<10x256xf32> to vector<8x256xf32>
    %c0_294 = arith.constant 0 : index
    %c1_295 = arith.constant 1 : index
    %c0_296 = arith.constant 0 : index
    %593 = vector.load %arg4[%c0_294, %c1_295, %c0_296] : memref<3x3x256xf32, #tpu.memory_space<vmem>>, vector<1x1x256xf32>
    %594 = vector.shape_cast %593 : vector<1x1x256xf32> to vector<256xf32>
    %595 = vector.shape_cast %594 : vector<256xf32> to vector<1x256xf32>
    %596 = vector.broadcast %595 : vector<1x256xf32> to vector<8x256xf32>
    %597 = arith.mulf %592, %596 : vector<8x256xf32>
    %598 = arith.addf %590, %597 : vector<8x256xf32>
    %599 = vector.extract_strided_slice %591 {offsets = [1, 0], sizes = [8, 256], strides = [1, 1]} : vector<10x256xf32> to vector<8x256xf32>
    %c1_297 = arith.constant 1 : index
    %c1_298 = arith.constant 1 : index
    %c0_299 = arith.constant 0 : index
    %600 = vector.load %arg4[%c1_297, %c1_298, %c0_299] : memref<3x3x256xf32, #tpu.memory_space<vmem>>, vector<1x1x256xf32>
    %601 = vector.shape_cast %600 : vector<1x1x256xf32> to vector<256xf32>
    %602 = vector.shape_cast %601 : vector<256xf32> to vector<1x256xf32>
    %603 = vector.broadcast %602 : vector<1x256xf32> to vector<8x256xf32>
    %604 = arith.mulf %599, %603 : vector<8x256xf32>
    %605 = arith.addf %598, %604 : vector<8x256xf32>
    %606 = vector.extract_strided_slice %591 {offsets = [0, 0], sizes = [8, 256], strides = [1, 1]} : vector<10x256xf32> to vector<8x256xf32>
    %c2_300 = arith.constant 2 : index
    %c1_301 = arith.constant 1 : index
    %c0_302 = arith.constant 0 : index
    %607 = vector.load %arg4[%c2_300, %c1_301, %c0_302] : memref<3x3x256xf32, #tpu.memory_space<vmem>>, vector<1x1x256xf32>
    %608 = vector.shape_cast %607 : vector<1x1x256xf32> to vector<256xf32>
    %609 = vector.shape_cast %608 : vector<256xf32> to vector<1x256xf32>
    %610 = vector.broadcast %609 : vector<1x256xf32> to vector<8x256xf32>
    %611 = arith.mulf %606, %610 : vector<8x256xf32>
    %612 = arith.addf %605, %611 : vector<8x256xf32>
    %c0_303 = arith.constant 0 : index
    %c1808 = arith.constant 1808 : index
    %613 = vector.load %arg7[%c0_303, %c1808] : memref<10x2560xf32, #tpu.memory_space<vmem>>, vector<10x256xf32>
    %614 = vector.extract_strided_slice %613 {offsets = [2, 0], sizes = [8, 256], strides = [1, 1]} : vector<10x256xf32> to vector<8x256xf32>
    %c0_304 = arith.constant 0 : index
    %c2_305 = arith.constant 2 : index
    %c0_306 = arith.constant 0 : index
    %615 = vector.load %arg4[%c0_304, %c2_305, %c0_306] : memref<3x3x256xf32, #tpu.memory_space<vmem>>, vector<1x1x256xf32>
    %616 = vector.shape_cast %615 : vector<1x1x256xf32> to vector<256xf32>
    %617 = vector.shape_cast %616 : vector<256xf32> to vector<1x256xf32>
    %618 = vector.broadcast %617 : vector<1x256xf32> to vector<8x256xf32>
    %619 = arith.mulf %614, %618 : vector<8x256xf32>
    %620 = arith.addf %612, %619 : vector<8x256xf32>
    %621 = vector.extract_strided_slice %613 {offsets = [1, 0], sizes = [8, 256], strides = [1, 1]} : vector<10x256xf32> to vector<8x256xf32>
    %c1_307 = arith.constant 1 : index
    %c2_308 = arith.constant 2 : index
    %c0_309 = arith.constant 0 : index
    %622 = vector.load %arg4[%c1_307, %c2_308, %c0_309] : memref<3x3x256xf32, #tpu.memory_space<vmem>>, vector<1x1x256xf32>
    %623 = vector.shape_cast %622 : vector<1x1x256xf32> to vector<256xf32>
    %624 = vector.shape_cast %623 : vector<256xf32> to vector<1x256xf32>
    %625 = vector.broadcast %624 : vector<1x256xf32> to vector<8x256xf32>
    %626 = arith.mulf %621, %625 : vector<8x256xf32>
    %627 = arith.addf %620, %626 : vector<8x256xf32>
    %628 = vector.extract_strided_slice %613 {offsets = [0, 0], sizes = [8, 256], strides = [1, 1]} : vector<10x256xf32> to vector<8x256xf32>
    %c2_310 = arith.constant 2 : index
    %c2_311 = arith.constant 2 : index
    %c0_312 = arith.constant 0 : index
    %629 = vector.load %arg4[%c2_310, %c2_311, %c0_312] : memref<3x3x256xf32, #tpu.memory_space<vmem>>, vector<1x1x256xf32>
    %630 = vector.shape_cast %629 : vector<1x1x256xf32> to vector<256xf32>
    %631 = vector.shape_cast %630 : vector<256xf32> to vector<1x256xf32>
    %632 = vector.broadcast %631 : vector<1x256xf32> to vector<8x256xf32>
    %633 = arith.mulf %628, %632 : vector<8x256xf32>
    %634 = arith.addf %627, %633 : vector<8x256xf32>
    %cst_313 = arith.constant 4.000000e-01 : f32
    %635 = vector.broadcast %cst_313 : f32 to vector<8x256xf32>
    %636 = arith.mulf %635, %634 : vector<8x256xf32>
    %637 = arith.maximumf %634, %636 : vector<8x256xf32>
    %c0_314 = arith.constant 0 : index
    %c0_315 = arith.constant 0 : index
    %c1536_316 = arith.constant 1536 : index
    %638 = vector.load %arg6[%c0_314, %c0_315, %c1536_316] : memref<1x8x2048xf32, #tpu.memory_space<vmem>>, vector<1x8x256xf32>
    %639 = vector.shape_cast %638 : vector<1x8x256xf32> to vector<8x256xf32>
    %640 = vector.shape_cast %637 : vector<8x256xf32> to vector<1x8x256xf32>
    tpu.vector_store %arg6[%c0_314, %c0_315, %c1536_316], %640 {strides = array<i32>} : memref<1x8x2048xf32, #tpu.memory_space<vmem>>, vector<1x8x256xf32>,
    %cst_317 = arith.constant 0.000000e+00 : f32
    %641 = vector.broadcast %cst_317 : f32 to vector<8x256xf32>
    %642 = vector.broadcast %1 : f32 to vector<8x256xf32>
    %643 = arith.addf %641, %642 : vector<8x256xf32>
    %c0_318 = arith.constant 0 : index
    %c2032 = arith.constant 2032 : index
    %644 = vector.load %arg7[%c0_318, %c2032] : memref<10x2560xf32, #tpu.memory_space<vmem>>, vector<10x256xf32>
    %645 = vector.extract_strided_slice %644 {offsets = [2, 0], sizes = [8, 256], strides = [1, 1]} : vector<10x256xf32> to vector<8x256xf32>
    %c0_319 = arith.constant 0 : index
    %c0_320 = arith.constant 0 : index
    %c0_321 = arith.constant 0 : index
    %646 = vector.load %arg4[%c0_319, %c0_320, %c0_321] : memref<3x3x256xf32, #tpu.memory_space<vmem>>, vector<1x1x256xf32>
    %647 = vector.shape_cast %646 : vector<1x1x256xf32> to vector<256xf32>
    %648 = vector.shape_cast %647 : vector<256xf32> to vector<1x256xf32>
    %649 = vector.broadcast %648 : vector<1x256xf32> to vector<8x256xf32>
    %650 = arith.mulf %645, %649 : vector<8x256xf32>
    %651 = arith.addf %643, %650 : vector<8x256xf32>
    %652 = vector.extract_strided_slice %644 {offsets = [1, 0], sizes = [8, 256], strides = [1, 1]} : vector<10x256xf32> to vector<8x256xf32>
    %c1_322 = arith.constant 1 : index
    %c0_323 = arith.constant 0 : index
    %c0_324 = arith.constant 0 : index
    %653 = vector.load %arg4[%c1_322, %c0_323, %c0_324] : memref<3x3x256xf32, #tpu.memory_space<vmem>>, vector<1x1x256xf32>
    %654 = vector.shape_cast %653 : vector<1x1x256xf32> to vector<256xf32>
    %655 = vector.shape_cast %654 : vector<256xf32> to vector<1x256xf32>
    %656 = vector.broadcast %655 : vector<1x256xf32> to vector<8x256xf32>
    %657 = arith.mulf %652, %656 : vector<8x256xf32>
    %658 = arith.addf %651, %657 : vector<8x256xf32>
    %659 = vector.extract_strided_slice %644 {offsets = [0, 0], sizes = [8, 256], strides = [1, 1]} : vector<10x256xf32> to vector<8x256xf32>
    %c2_325 = arith.constant 2 : index
    %c0_326 = arith.constant 0 : index
    %c0_327 = arith.constant 0 : index
    %660 = vector.load %arg4[%c2_325, %c0_326, %c0_327] : memref<3x3x256xf32, #tpu.memory_space<vmem>>, vector<1x1x256xf32>
    %661 = vector.shape_cast %660 : vector<1x1x256xf32> to vector<256xf32>
    %662 = vector.shape_cast %661 : vector<256xf32> to vector<1x256xf32>
    %663 = vector.broadcast %662 : vector<1x256xf32> to vector<8x256xf32>
    %664 = arith.mulf %659, %663 : vector<8x256xf32>
    %665 = arith.addf %658, %664 : vector<8x256xf32>
    %c0_328 = arith.constant 0 : index
    %c2048 = arith.constant 2048 : index
    %666 = vector.load %arg7[%c0_328, %c2048] : memref<10x2560xf32, #tpu.memory_space<vmem>>, vector<10x256xf32>
    %667 = vector.extract_strided_slice %666 {offsets = [2, 0], sizes = [8, 256], strides = [1, 1]} : vector<10x256xf32> to vector<8x256xf32>
    %c0_329 = arith.constant 0 : index
    %c1_330 = arith.constant 1 : index
    %c0_331 = arith.constant 0 : index
    %668 = vector.load %arg4[%c0_329, %c1_330, %c0_331] : memref<3x3x256xf32, #tpu.memory_space<vmem>>, vector<1x1x256xf32>
    %669 = vector.shape_cast %668 : vector<1x1x256xf32> to vector<256xf32>
    %670 = vector.shape_cast %669 : vector<256xf32> to vector<1x256xf32>
    %671 = vector.broadcast %670 : vector<1x256xf32> to vector<8x256xf32>
    %672 = arith.mulf %667, %671 : vector<8x256xf32>
    %673 = arith.addf %665, %672 : vector<8x256xf32>
    %674 = vector.extract_strided_slice %666 {offsets = [1, 0], sizes = [8, 256], strides = [1, 1]} : vector<10x256xf32> to vector<8x256xf32>
    %c1_332 = arith.constant 1 : index
    %c1_333 = arith.constant 1 : index
    %c0_334 = arith.constant 0 : index
    %675 = vector.load %arg4[%c1_332, %c1_333, %c0_334] : memref<3x3x256xf32, #tpu.memory_space<vmem>>, vector<1x1x256xf32>
    %676 = vector.shape_cast %675 : vector<1x1x256xf32> to vector<256xf32>
    %677 = vector.shape_cast %676 : vector<256xf32> to vector<1x256xf32>
    %678 = vector.broadcast %677 : vector<1x256xf32> to vector<8x256xf32>
    %679 = arith.mulf %674, %678 : vector<8x256xf32>
    %680 = arith.addf %673, %679 : vector<8x256xf32>
    %681 = vector.extract_strided_slice %666 {offsets = [0, 0], sizes = [8, 256], strides = [1, 1]} : vector<10x256xf32> to vector<8x256xf32>
    %c2_335 = arith.constant 2 : index
    %c1_336 = arith.constant 1 : index
    %c0_337 = arith.constant 0 : index
    %682 = vector.load %arg4[%c2_335, %c1_336, %c0_337] : memref<3x3x256xf32, #tpu.memory_space<vmem>>, vector<1x1x256xf32>
    %683 = vector.shape_cast %682 : vector<1x1x256xf32> to vector<256xf32>
    %684 = vector.shape_cast %683 : vector<256xf32> to vector<1x256xf32>
    %685 = vector.broadcast %684 : vector<1x256xf32> to vector<8x256xf32>
    %686 = arith.mulf %681, %685 : vector<8x256xf32>
    %687 = arith.addf %680, %686 : vector<8x256xf32>
    %c0_338 = arith.constant 0 : index
    %c2064 = arith.constant 2064 : index
    %688 = vector.load %arg7[%c0_338, %c2064] : memref<10x2560xf32, #tpu.memory_space<vmem>>, vector<10x256xf32>
    %689 = vector.extract_strided_slice %688 {offsets = [2, 0], sizes = [8, 256], strides = [1, 1]} : vector<10x256xf32> to vector<8x256xf32>
    %c0_339 = arith.constant 0 : index
    %c2_340 = arith.constant 2 : index
    %c0_341 = arith.constant 0 : index
    %690 = vector.load %arg4[%c0_339, %c2_340, %c0_341] : memref<3x3x256xf32, #tpu.memory_space<vmem>>, vector<1x1x256xf32>
    %691 = vector.shape_cast %690 : vector<1x1x256xf32> to vector<256xf32>
    %692 = vector.shape_cast %691 : vector<256xf32> to vector<1x256xf32>
    %693 = vector.broadcast %692 : vector<1x256xf32> to vector<8x256xf32>
    %694 = arith.mulf %689, %693 : vector<8x256xf32>
    %695 = arith.addf %687, %694 : vector<8x256xf32>
    %696 = vector.extract_strided_slice %688 {offsets = [1, 0], sizes = [8, 256], strides = [1, 1]} : vector<10x256xf32> to vector<8x256xf32>
    %c1_342 = arith.constant 1 : index
    %c2_343 = arith.constant 2 : index
    %c0_344 = arith.constant 0 : index
    %697 = vector.load %arg4[%c1_342, %c2_343, %c0_344] : memref<3x3x256xf32, #tpu.memory_space<vmem>>, vector<1x1x256xf32>
    %698 = vector.shape_cast %697 : vector<1x1x256xf32> to vector<256xf32>
    %699 = vector.shape_cast %698 : vector<256xf32> to vector<1x256xf32>
    %700 = vector.broadcast %699 : vector<1x256xf32> to vector<8x256xf32>
    %701 = arith.mulf %696, %700 : vector<8x256xf32>
    %702 = arith.addf %695, %701 : vector<8x256xf32>
    %703 = vector.extract_strided_slice %688 {offsets = [0, 0], sizes = [8, 256], strides = [1, 1]} : vector<10x256xf32> to vector<8x256xf32>
    %c2_345 = arith.constant 2 : index
    %c2_346 = arith.constant 2 : index
    %c0_347 = arith.constant 0 : index
    %704 = vector.load %arg4[%c2_345, %c2_346, %c0_347] : memref<3x3x256xf32, #tpu.memory_space<vmem>>, vector<1x1x256xf32>
    %705 = vector.shape_cast %704 : vector<1x1x256xf32> to vector<256xf32>
    %706 = vector.shape_cast %705 : vector<256xf32> to vector<1x256xf32>
    %707 = vector.broadcast %706 : vector<1x256xf32> to vector<8x256xf32>
    %708 = arith.mulf %703, %707 : vector<8x256xf32>
    %709 = arith.addf %702, %708 : vector<8x256xf32>
    %cst_348 = arith.constant 4.000000e-01 : f32
    %710 = vector.broadcast %cst_348 : f32 to vector<8x256xf32>
    %711 = arith.mulf %710, %709 : vector<8x256xf32>
    %712 = arith.maximumf %709, %711 : vector<8x256xf32>
    %c0_349 = arith.constant 0 : index
    %c0_350 = arith.constant 0 : index
    %c1792_351 = arith.constant 1792 : index
    %713 = vector.load %arg6[%c0_349, %c0_350, %c1792_351] : memref<1x8x2048xf32, #tpu.memory_space<vmem>>, vector<1x8x256xf32>
    %714 = vector.shape_cast %713 : vector<1x8x256xf32> to vector<8x256xf32>
    %715 = vector.shape_cast %712 : vector<8x256xf32> to vector<1x8x256xf32>
    tpu.vector_store %arg6[%c0_349, %c0_350, %c1792_351], %715 {strides = array<i32>} : memref<1x8x2048xf32, #tpu.memory_space<vmem>>, vector<1x8x256xf32>,
    return
  }
  func.func @transform_0(%arg0: i32, %arg1: i32) -> i32 {
    %c0_i32 = arith.constant 0 : i32
    %c0_i32_0 = arith.constant 0 : i32
    return %c0_i32 : i32
  }
  func.func @transform_1(%arg0: i32, %arg1: i32) -> (i32, i32, i32) {
    %c0_i32 = arith.constant 0 : i32
    %c0_i32_0 = arith.constant 0 : i32
    %c0_i32_1 = arith.constant 0 : i32
    %c0_i32_2 = arith.constant 0 : i32
    return %c0_i32, %c0_i32_0, %c0_i32_1 : i32, i32, i32
  }
  func.func @transform_2(%arg0: i32, %arg1: i32) -> (i32, i32, i32) {
    %c0_i32 = arith.constant 0 : i32
    %c0_i32_0 = arith.constant 0 : i32
    %c0_i32_1 = arith.constant 0 : i32
    %c0_i32_2 = arith.constant 0 : i32
    return %c0_i32, %c0_i32_0, %c0_i32_1 : i32, i32, i32
  }
  func.func @transform_3(%arg0: i32, %arg1: i32) -> (i32, i32, i32, i32) {
    %c0_i32 = arith.constant 0 : i32
    %c0_i32_0 = arith.constant 0 : i32
    %c0_i32_1 = arith.constant 0 : i32
    return %arg0, %arg1, %c0_i32, %c0_i32_0 : i32, i32, i32, i32
  }
  func.func @transform_4(%arg0: i32, %arg1: i32) -> (i32, i32, i32) {
    %c0_i32 = arith.constant 0 : i32
    %c0_i32_0 = arith.constant 0 : i32
    return %arg0, %c0_i32, %arg1 : i32, i32, i32
  }
}

</mosaic_0001>

<bundles_post_ra>
// kernel: tile.9
= control target key start
LH: loop header
LB: loop body
LE: loop exit
PB: predicated region body
PF: predicated region fallthrough
CT: control target
= control target key end

     0   :  { %s88_s6 = smov 3  ;;  %s35_s9 = smov 3  ;;  %vm40_vm0 = vcmask 1043458   ;;  %vm45_vm1 = vcmask 1045508   ;;  %vm50_vm2 = vcmask 1047558   ;;  %vm4_vm3 = vcmask 1047556   ;;  %s900_s0 = inlined_call_operand.vmem [shape: f32[3,3,16,16], index: 0, kind: input, shape index: {}]   ;;  %s901_s1 = inlined_call_operand.vmem [shape: f32[3,3,256], index: 1, kind: output, shape index: {}]  }
   0x1   :  { %v518_v0 = vld [vmem:[%s900_s0 + $0x4f] ss:$16 sm:%s88_s6]   ;;  %s38_s10 = smov 12  ;;  %s585_s11 = smov 112   ;;  %v510_v1 = vld [vmem:[%s900_s0 + $0x7] ss:$16 sm:%s35_s9]  }
   0x2   :  { %90 = vrot.lane.b32.xlu1 %v518_v0, %s585_s11  ;;  %s43_s14 = smov 48  ;;  %s48_s15 = smov 192  ;;  %v511_v2 = vld [vmem:[%s900_s0 + $0x57] ss:$-24 sm:%s38_s10]   ;;  %vm6_vm4 = vcmask 130048   ;;  %vm54_vm5 = vcmask 1048448  }
   0x3   :  { %v512_v3 = vld [vmem:[%s900_s0 - $0x21] ss:$16 sm:%s43_s14]   ;;  %s96_s20 = smov 3  ;;  %s99_s21 = smov 12  ;;  %v41_v4 = vsel %vm40_vm0, %v511_v2, %v510_v1  ;;  %v513_v5 = vld [vmem:[%s900_s0 - $0x29] ss:$16 sm:%s48_s15]  }
   0x4   :  { %v519_v6 = vld [vmem:[%s900_s0 + $0x6] ss:$16 sm:%s96_s20]   ;;  %s104_s26 = smov 48  ;;  %s109_s27 = smov 192  ;;  %v46_v7 = vsel %vm45_vm1, %v512_v3, %v41_v4  ;;  %vm115_vm6 = vcmask 917248   ;;  %vm176_vm7 = vcmask 786048  }
   0x5   :  { %v520_v8 = vld [vmem:[%s900_s0 + $0x56] ss:$-24 sm:%s99_s21]   ;;  %s61_s3 = smov 3  ;;  %v51_v10 = vsel %vm50_vm2, %v513_v5, %v46_v7  ;;  %s64_s8 = smov 12  ;;  %vm237_vm8 = vcmask 654848   ;;  %vm298_vm9 = vcmask 523648  }
   0x6   :  { %v521_v9 = vld [vmem:[%s900_s0 - $0x22] ss:$16 sm:%s104_s26]   ;;  %v102_v11 = vsel %vm40_vm0, %v520_v8, %v519_v6  ;;  %v522_v12 = vld [vmem:[%s900_s0 - $0x2a] ss:$16 sm:%s109_s27]   ;;  %s69_s9 = smov 48  ;;  %s74_s13 = smov 192 }
   0x7   :  { %v514_v13 = vld [vmem:[%s900_s0 + $0x67] ss:$16 sm:%s61_s3]   ;;  %52 = vrot.lane.b32.xlu0 %v51_v10, %s585_s11  ;;  %v107_v14 = vsel %vm45_vm1, %v521_v9, %v102_v11  ;;  %s149_s14 = smov 3  ;;  %s122_s19 = smov 3  ;;  %vm359_vm10 = vcmask 392448   ;;  %vm420_vm11 = vcmask 261248  }
   0x8   :  { %v515_v15 = vld [vmem:[%s900_s0 + $0xb7] ss:$-24 sm:%s64_s8]   ;;  %v112_v16 = vsel %vm50_vm2, %v522_v12, %v107_v14  ;;  %s125_s20 = smov 12  ;;  %s586_s21 = smov 96   ;;  %v527_v21 = vld [vmem:[%s900_s0 + $0x4e] ss:$16 sm:%s149_s14]  }
   0x9   :  { %v67_v17 = vsel %vm40_vm0, %v515_v15, %v514_v13  ;;  %v516_v18 = vld [vmem:[%s900_s0 + $0x3f] ss:$16 sm:%s69_s9]   ;;  %113 = vrot.lane.b32.xlu1 %v112_v16, %s586_s21  ;;  %s130_s24 = smov 48  ;;  %s135_s25 = smov 192 }
   0xa   :  { %v517_v19 = vld [vmem:[%s900_s0 + $0xe7] ss:$-24 sm:%s74_s13]   ;;  %v72_v20 = vsel %vm45_vm1, %v516_v18, %v67_v17  ;;  %v523_v23 = vld [vmem:[%s900_s0 + $0x66] ss:$16 sm:%s122_s19]   ;;  %s183_s30 = smov 3  ;;  %s186_s3 = smov 12 }
   0xb   :  { %v77_v22 = vsel %vm50_vm2, %v517_v19, %v72_v20  ;;  %v524_v24 = vld [vmem:[%s900_s0 + $0xb6] ss:$-24 sm:%s125_s20]   ;;  %s191_s4 = smov 48  ;;  %v532_v29 = vld [vmem:[%s900_s0 + $0x65] ss:$16 sm:%s183_s30]   ;;  %s196_s9 = smov 192 }
   0xc   :  { %78 = vrot.lane.b32.xlu0 %v77_v22, %s585_s11  ;;  %v128_v25 = vsel %vm40_vm0, %v524_v24, %v523_v23  ;;  %v525_v26 = vld [vmem:[%s900_s0 + $0x3e] ss:$16 sm:%s130_s24]   ;;  %s157_s10 = smov 3  ;;  %s160_s14 = smov 12 }
   0xd   :  { %v133_v27 = vsel %vm45_vm1, %v525_v26, %v128_v25  ;;  %v526_v28 = vld [vmem:[%s900_s0 + $0xe6] ss:$-24 sm:%s135_s25]   ;;  %151 = vrot.lane.b32.xlu1 %v527_v21, %s586_s21  ;;  %s165_s15 = smov 48  ;;  %s170_s20 = smov 192 }
   0xe   :  { %v138_v30 = vsel %vm50_vm2, %v526_v28, %v133_v27  ;;  %v533_v31 = vld [vmem:[%s900_s0 + $0xb5] ss:$-24 sm:%s186_s3]   ;;  %s218_s23 = smov 3  ;;  %s221_s24 = smov 12 }
   0xf   :  { %v189_v32 = vsel %vm40_vm0, %v533_v31, %v532_v29  ;;  %v534_v33 = vld [vmem:[%s900_s0 + $0x3d] ss:$16 sm:%s191_s4]   ;;  %v528_v36 = vld [vmem:[%s900_s0 + $0x5] ss:$16 sm:%s157_s10]   ;;  %s226_s29 = smov 48  ;;  %s231_s30 = smov 192 }
  0x10   :  { %v535_v34 = vld [vmem:[%s900_s0 + $0xe5] ss:$-24 sm:%s196_s9]   ;;  %139 = vrot.lane.b32.xlu0 %v138_v30, %s586_s21  ;;  %v194_v35 = vsel %vm45_vm1, %v534_v33, %v189_v32  ;;  %s587_s11 = smov 80   ;;  %s210_s4 = smov 3 }
  0x11   :  { %v199_v37 = vsel %vm50_vm2, %v535_v34, %v194_v35  ;;  %v529_v38 = vld [vmem:[%s900_s0 + $0x55] ss:$-24 sm:%s160_s14]   ;;  %v537_v43 = vld [vmem:[%s900_s0 + $0x4] ss:$16 sm:%s218_s23]   ;;  %s271_s9 = smov 3  ;;  %s244_s10 = smov 3 }
  0x12   :  { %v530_v39 = vld [vmem:[%s900_s0 - $0x23] ss:$16 sm:%s165_s15]   ;;  %200 = vrot.lane.b32.xlu1 %v199_v37, %s587_s11  ;;  %v163_v40 = vsel %vm40_vm0, %v529_v38, %v528_v36  ;;  %s247_s16 = smov 12  ;;  %s252_s19 = smov 48 }
  0x13   :  { %v531_v41 = vld [vmem:[%s900_s0 - $0x2b] ss:$16 sm:%s170_s20]   ;;  %v168_v42 = vsel %vm45_vm1, %v530_v39, %v163_v40  ;;  %v538_v44 = vld [vmem:[%s900_s0 + $0x54] ss:$-24 sm:%s221_s24]   ;;  %s257_s20 = smov 192  ;;  %s305_s25 = smov 3 }
  0x14   :  { %v173_v45 = vsel %vm50_vm2, %v531_v41, %v168_v42  ;;  %v224_v46 = vsel %vm40_vm0, %v538_v44, %v537_v43  ;;  %v539_v47 = vld [vmem:[%s900_s0 - $0x24] ss:$16 sm:%s226_s29]   ;;  %v540_v48 = vld [vmem:[%s900_s0 - $0x2c] ss:$16 sm:%s231_s30]   ;;  %s588_s26 = smov 64   ;;  %s308_s29 = smov 12 }
  0x15   :  { %174 = vrot.lane.b32.xlu0 %v173_v45, %s587_s11  ;;  %v229_v49 = vsel %vm45_vm1, %v539_v47, %v224_v46  ;;  %v536_v50 = vld [vmem:[%s900_s0 + $0x4d] ss:$16 sm:%s210_s4]   ;;  %s313_s30 = smov 48  ;;  %s318_s6 = smov 192 }
  0x16   :  { %v234_v51 = vsel %vm50_vm2, %v540_v48, %v229_v49  ;;  %v545_v52 = vld [vmem:[%s900_s0 + $0x4c] ss:$16 sm:%s271_s9]   ;;  %v541_v53 = vld [vmem:[%s900_s0 + $0x64] ss:$16 sm:%s244_s10]   ;;  %s279_s8 = smov 3  ;;  %s282_s9 = smov 12 }
  0x17   :  { %235 = vrot.lane.b32.xlu1 %v234_v51, %s588_s26  ;;  %v542_v54 = vld [vmem:[%s900_s0 + $0xb4] ss:$-24 sm:%s247_s16]   ;;  %s287_s15 = smov 48  ;;  %s292_s18 = smov 192 }
  0x18   :  { %v250_v55 = vsel %vm40_vm0, %v542_v54, %v541_v53  ;;  %v543_v56 = vld [vmem:[%s900_s0 + $0x3c] ss:$16 sm:%s252_s19]   ;;  %v550_v59 = vld [vmem:[%s900_s0 + $0x63] ss:$16 sm:%s305_s25]   ;;  %s340_s19 = smov 3  ;;  %s343_s24 = smov 12 }
  0x19   :  { %v544_v57 = vld [vmem:[%s900_s0 + $0xe4] ss:$-24 sm:%s257_s20]   ;;  %212 = vrot.lane.b32.xlu0 %v536_v50, %s587_s11  ;;  %v255_v58 = vsel %vm45_vm1, %v543_v56, %v250_v55  ;;  %s348_s27 = smov 48  ;;  %s353_s28 = smov 192 }
  0x1a   :  { %v260_v60 = vsel %vm50_vm2, %v544_v57, %v255_v58  ;;  %v551_v61 = vld [vmem:[%s900_s0 + $0xb3] ss:$-24 sm:%s308_s29]   ;;  %v555_v9 = vld [vmem:[%s900_s0 + $0x2] ss:$16 sm:%s340_s19]   ;;  %s332_s4 = smov 3  ;;  %s589_s5 = smov 48  }
  0x1b   :  { %v552_v62 = vld [vmem:[%s900_s0 + $0x3b] ss:$16 sm:%s313_s30]   ;;  %273 = vrot.lane.b32.xlu1 %v545_v52, %s588_s26  ;;  %v311_v63 = vsel %vm40_vm0, %v551_v61, %v550_v59  ;;  %s393_s7 = smov 3  ;;  %s369_s14 = smov 12 }
  0x1c   :  { %v553_v0 = vld [vmem:[%s900_s0 + $0xe3] ss:$-24 sm:%s318_s6]   ;;  %v316_v1 = vsel %vm45_vm1, %v552_v62, %v311_v63  ;;  %v556_v11 = vld [vmem:[%s900_s0 + $0x52] ss:$-24 sm:%s343_s24]   ;;  %s374_s17 = smov 48  ;;  %s427_s23 = smov 3 }
  0x1d   :  { %v546_v2 = vld [vmem:[%s900_s0 + $0x3] ss:$16 sm:%s279_s8]   ;;  %261 = vrot.lane.b32.xlu0 %v260_v60, %s588_s26  ;;  %v321_v4 = vsel %vm50_vm2, %v553_v0, %v316_v1  ;;  %s366_s8 = smov 3  ;;  %v346_v12 = vsel %vm40_vm0, %v556_v11, %v555_v9  ;;  %s590_s24 = smov 32  }
  0x1e   :  { %v547_v3 = vld [vmem:[%s900_s0 + $0x53] ss:$-24 sm:%s282_s9]   ;;  %v557_v13 = vld [vmem:[%s900_s0 - $0x26] ss:$16 sm:%s348_s27]   ;;  %s430_s27 = smov 12  ;;  %s401_s6 = smov 3 }
  0x1f   :  { %v285_v5 = vsel %vm40_vm0, %v547_v3, %v546_v2  ;;  %v548_v6 = vld [vmem:[%s900_s0 - $0x25] ss:$16 sm:%s287_s15]   ;;  %v549_v8 = vld [vmem:[%s900_s0 - $0x2d] ss:$16 sm:%s292_s18]   ;;  %v351_v15 = vsel %vm45_vm1, %v557_v13, %v346_v12  ;;  %s379_s18 = smov 192  ;;  %s409_s15 = smov 48 }
  0x20   :  { %v290_v7 = vsel %vm45_vm1, %v548_v6, %v285_v5  ;;  %322 = vrot.lane.b32.xlu1 %v321_v4, %s589_s5  ;;  %v558_v14 = vld [vmem:[%s900_s0 - $0x2e] ss:$16 sm:%s353_s28]   ;;  %s435_s28 = smov 48  ;;  %v507_v26 = vld [vmem:[%s900_s0 + $0x40] ss:$8 sm:$0xf]  }
  0x21   :  { %v295_v10 = vsel %vm50_vm2, %v549_v8, %v290_v7  ;;  %v554_v16 = vld [vmem:[%s900_s0 + $0x4b] ss:$16 sm:%s332_s4]   ;;  %v356_v17 = vsel %vm50_vm2, %v558_v14, %v351_v15  ;;  %v563_v18 = vld [vmem:[%s900_s0 + $0x4a] ss:$16 sm:%s393_s7]   ;;  %s440_s4 = smov 192  ;;  %s404_s7 = smov 12 }
  0x22   :  { %296 = vrot.lane.b32.xlu0 %v295_v10, %s589_s5  ;;  %v559_v19 = vld [vmem:[%s900_s0 + $0x62] ss:$16 sm:%s366_s8]   ;;  %v508_v32 = vld [vmem:[%s900_s0 + $0x40] ss:$8 sm:$0xf0]   ;;  %s29_s26 = smov 3 }
  0x23   :  { %v560_v20 = vld [vmem:[%s900_s0 + $0xb2] ss:$-24 sm:%s369_s14]   ;;  %v568_v25 = vld [vmem:[%s900_s0 + $0x61] ss:$16 sm:%s427_s23]   ;;  %v19_v36 = vsel %vm4_vm3, %v508_v32, %v507_v26  ;;  %s591_s3 = smov 16  }
  0x24   :  { %357 = vrot.lane.b32.xlu1 %v356_v17, %s590_s24  ;;  %v372_v21 = vsel %vm40_vm0, %v560_v20, %v559_v19  ;;  %v561_v22 = vld [vmem:[%s900_s0 + $0x3a] ss:$16 sm:%s374_s17]   ;;  %22 = vst.msk [vmem:[#allocation0 + $0x11] ss:$8 sm:$0x3] %vm6_vm4, %v19_v36  }
  0x25   :  { %v562_v23 = vld [vmem:[%s900_s0 + $0xe2] ss:$-24 sm:%s379_s18]   ;;  %v377_v24 = vsel %vm45_vm1, %v561_v22, %v372_v21  ;;  %v569_v28 = vld [vmem:[%s900_s0 + $0xb1] ss:$-24 sm:%s430_s27]   ;;  %s414_s18 = smov 192 }
  0x26   :  { %334 = vrot.lane.b32.xlu0 %v554_v16, %s589_s5  ;;  %v382_v27 = vsel %vm50_vm2, %v562_v23, %v377_v24  ;;  %v570_v29 = vld [vmem:[%s900_s0 + $0x39] ss:$16 sm:%s435_s28]   ;;  %v433_v30 = vsel %vm40_vm0, %v569_v28, %v568_v25  ;;  %24 = vst.msk [vmem:[#allocation0 + $0x2] ss:$8 sm:$0xc] %vm6_vm4, %v19_v36  }
  0x27   :  { %v571_v31 = vld [vmem:[%s900_s0 + $0xe1] ss:$-24 sm:%s440_s4]   ;;  %v438_v33 = vsel %vm45_vm1, %v570_v29, %v433_v30  ;;  %25 = vst.msk [vmem:[#allocation0] ss:$8 sm:$0x30] %vm6_vm4, %v19_v36   ;;  %s454_s4 = smov 3 }
  0x28   :  { %395 = vrot.lane.b32.xlu1 %v563_v18, %s590_s24  ;;  %v564_v34 = vld [vmem:[%s900_s0 + $0x1] ss:$16 sm:%s401_s6]   ;;  %v443_v37 = vsel %vm50_vm2, %v571_v31, %v438_v33  ;;  %27 = vst.msk [vmem:[#allocation0 - $0xf] ss:$8 sm:$0xc0] %vm6_vm4, %v19_v36  }
  0x29   :  { %v565_v35 = vld [vmem:[%s900_s0 + $0x51] ss:$-24 sm:%s404_s7]   ;;  %v2_v40 = vld [vmem:[%s900_s0] ss:$8 sm:$0xf]  }
  0x2a   :  { %383 = vrot.lane.b32.xlu0 %v382_v27, %s590_s24  ;;  %v407_v38 = vsel %vm40_vm0, %v565_v35, %v564_v34  ;;  %v566_v39 = vld [vmem:[%s900_s0 - $0x27] ss:$16 sm:%s409_s15]   ;;  %v3_v44 = vld [vmem:[%s900_s0] ss:$8 sm:$0xf0]  }
  0x2b   :  { %v412_v41 = vsel %vm45_vm1, %v566_v39, %v407_v38  ;;  %v567_v42 = vld [vmem:[%s900_s0 - $0x2f] ss:$16 sm:%s414_s18]   ;;  %v509_v45 = vld [vmem:[%s900_s0 + $0x80] ss:$8 sm:%s29_s26]   ;;  %v5_v46 = vsel %vm4_vm3, %v3_v44, %v2_v40 }
  0x2c   :  { %444 = vrot.lane.b32.xlu1 %v443_v37, %s591_s3  ;;  %v417_v43 = vsel %vm50_vm2, %v567_v42, %v412_v41  ;;  %33 = vst.msk [vmem:[#allocation0 + $0x22] ss:$8 sm:$0x3] %vm6_vm4, %v509_v45   ;;  %7 = vst.msk [vmem:[#allocation0] ss:$8 sm:$0x3] %vm6_vm4, %v5_v46  }
  0x2d   :  { %9 = vst.msk [vmem:[#allocation0 - $0xf] ss:$8 sm:$0xc] %vm6_vm4, %v5_v46   ;;  %11 = vst.msk [vmem:[#allocation0 - $0x1e] ss:$8 sm:$0x30] %vm6_vm4, %v5_v46  }
  0x2e   :  { %418 = vrot.lane.b32.xlu0 %v417_v43, %s591_s3  ;;  %13 = vst.msk [vmem:[#allocation0 - $0x20] ss:$8 sm:$0xc0] %vm6_vm4, %v5_v46   ;;  %v572_v47 = vld [vmem:[%s900_s0 + $0x49] ss:$16 sm:%s454_s4]  }
  0x32   :  { %456 = vrot.lane.b32.xlu0 %v572_v47, %s591_s3 }
  0x74   :  { %v91_v48 = vpop.permute.xlu1 %90  }
  0x75   :  { %94 = vst.msk [vmem:[#allocation0 + $0x19] sm:$0x3] %vm54_vm5, %v91_v48  }
  0x79   :  { %v53_v49 = vpop.permute.xlu0 %52  }
  0x7a   :  { %55 = vst.msk [vmem:[#allocation0] sm:$0x7] %vm54_vm5, %v53_v49   ;;  %57 = vst.msk [vmem:[#allocation0 + $0x5] sm:$0x38] %vm54_vm5, %v53_v49  }
  0x7b   :  { %59 = vst.msk [vmem:[#allocation0 + $0xa] sm:$0xc0] %vm54_vm5, %v53_v49   ;;  %v114_v50 = vpop.permute.xlu1 %113  }
  0x7c   :  { %116 = vst.msk [vmem:[#allocation0] sm:$0x7] %vm115_vm6, %v114_v50   ;;  %118 = vst.msk [vmem:[#allocation0 + $0x5] sm:$0x38] %vm115_vm6, %v114_v50  }
  0x7d   :  { %120 = vst.msk [vmem:[#allocation0 + $0xa] sm:$0xc0] %vm115_vm6, %v114_v50  }
  0x7e   :  { %v79_v51 = vpop.permute.xlu0 %78  }
  0x7f   :  { %82 = vst.msk [vmem:[#allocation0 + $0x20] sm:$0x7] %vm54_vm5, %v79_v51   ;;  %84 = vst.msk [vmem:[#allocation0 + $0x25] sm:$0x38] %vm54_vm5, %v79_v51   ;;  %v152_v52 = vpop.permute.xlu1 %151  }
  0x80   :  { %86 = vst.msk [vmem:[#allocation0 - $0x12] ss:$6 sm:$0xc0] %vm54_vm5, %v79_v51  }
  0x81   :  { %155 = vst.msk [vmem:[#allocation0 + $0x19] sm:$0x3] %vm115_vm6, %v152_v52  }
  0x82   :  { %v140_v53 = vpop.permute.xlu0 %139  }
  0x83   :  { %143 = vst.msk [vmem:[#allocation0 + $0x20] sm:$0x7] %vm115_vm6, %v140_v53   ;;  %145 = vst.msk [vmem:[#allocation0 + $0x25] sm:$0x38] %vm115_vm6, %v140_v53  }
  0x84   :  { %147 = vst.msk [vmem:[#allocation0 - $0x12] ss:$6 sm:$0xc0] %vm115_vm6, %v140_v53   ;;  %v201_v54 = vpop.permute.xlu1 %200  }
  0x85   :  { %204 = vst.msk [vmem:[#allocation0 + $0x20] sm:$0x7] %vm176_vm7, %v201_v54   ;;  %206 = vst.msk [vmem:[#allocation0 + $0x25] sm:$0x38] %vm176_vm7, %v201_v54  }
  0x86   :  { %208 = vst.msk [vmem:[#allocation0 - $0x12] ss:$6 sm:$0xc0] %vm176_vm7, %v201_v54  }
  0x87   :  { %v175_v55 = vpop.permute.xlu0 %174  }
  0x88   :  { %177 = vst.msk [vmem:[#allocation0] sm:$0x7] %vm176_vm7, %v175_v55   ;;  %179 = vst.msk [vmem:[#allocation0 + $0x5] sm:$0x38] %vm176_vm7, %v175_v55  }
  0x89   :  { %181 = vst.msk [vmem:[#allocation0 + $0xa] sm:$0xc0] %vm176_vm7, %v175_v55   ;;  %v236_v56 = vpop.permute.xlu1 %235  }
  0x8a   :  { %238 = vst.msk [vmem:[#allocation0] sm:$0x7] %vm237_vm8, %v236_v56   ;;  %240 = vst.msk [vmem:[#allocation0 + $0x5] sm:$0x38] %vm237_vm8, %v236_v56  }
  0x8b   :  { %242 = vst.msk [vmem:[#allocation0 + $0xa] sm:$0xc0] %vm237_vm8, %v236_v56   ;;  %v213_v57 = vpop.permute.xlu0 %212  }
  0x8c   :  { %216 = vst.msk [vmem:[#allocation0 + $0x19] sm:$0x3] %vm176_vm7, %v213_v57  }
  0x8d   :  { %v274_v58 = vpop.permute.xlu1 %273  }
  0x8e   :  { %277 = vst.msk [vmem:[#allocation0 + $0x19] sm:$0x3] %vm237_vm8, %v274_v58  }
  0x8f   :  { %v262_v59 = vpop.permute.xlu0 %261  }
  0x90   :  { %265 = vst.msk [vmem:[#allocation0 + $0x20] sm:$0x7] %vm237_vm8, %v262_v59   ;;  %267 = vst.msk [vmem:[#allocation0 + $0x25] sm:$0x38] %vm237_vm8, %v262_v59  }
  0x91   :  { %269 = vst.msk [vmem:[#allocation0 - $0x12] ss:$6 sm:$0xc0] %vm237_vm8, %v262_v59  }
  0x92   :  { %v323_v60 = vpop.permute.xlu1 %322  }
  0x93   :  { %326 = vst.msk [vmem:[#allocation0 + $0x20] sm:$0x7] %vm298_vm9, %v323_v60   ;;  %328 = vst.msk [vmem:[#allocation0 + $0x25] sm:$0x38] %vm298_vm9, %v323_v60  }
  0x94   :  { %330 = vst.msk [vmem:[#allocation0 - $0x12] ss:$6 sm:$0xc0] %vm298_vm9, %v323_v60   ;;  %v297_v61 = vpop.permute.xlu0 %296  }
  0x95   :  { %299 = vst.msk [vmem:[#allocation0] sm:$0x7] %vm298_vm9, %v297_v61   ;;  %301 = vst.msk [vmem:[#allocation0 + $0x5] sm:$0x38] %vm298_vm9, %v297_v61  }
  0x96   :  { %303 = vst.msk [vmem:[#allocation0 + $0xa] sm:$0xc0] %vm298_vm9, %v297_v61   ;;  %v358_v62 = vpop.permute.xlu1 %357  }
  0x97   :  { %360 = vst.msk [vmem:[#allocation0] sm:$0x7] %vm359_vm10, %v358_v62   ;;  %362 = vst.msk [vmem:[#allocation0 + $0x5] sm:$0x38] %vm359_vm10, %v358_v62  }
  0x98   :  { %364 = vst.msk [vmem:[#allocation0 + $0xa] sm:$0xc0] %vm359_vm10, %v358_v62   ;;  %v335_v63 = vpop.permute.xlu0 %334  }
  0x99   :  { %338 = vst.msk [vmem:[#allocation0 + $0x19] sm:$0x3] %vm298_vm9, %v335_v63  }
  0x9a   :  { %v396_v0 = vpop.permute.xlu1 %395  }
  0x9b   :  { %399 = vst.msk [vmem:[#allocation0 + $0x19] sm:$0x3] %vm359_vm10, %v396_v0  }
  0x9c   :  { %v384_v1 = vpop.permute.xlu0 %383  }
  0x9d   :  { %387 = vst.msk [vmem:[#allocation0 + $0x20] sm:$0x7] %vm359_vm10, %v384_v1   ;;  %389 = vst.msk [vmem:[#allocation0 + $0x25] sm:$0x38] %vm359_vm10, %v384_v1  }
  0x9e   :  { %391 = vst.msk [vmem:[#allocation0 - $0x12] ss:$6 sm:$0xc0] %vm359_vm10, %v384_v1   ;;  %v445_v2 = vpop.permute.xlu1 %444  }
  0x9f   :  { %448 = vst.msk [vmem:[#allocation0 + $0x20] sm:$0x7] %vm420_vm11, %v445_v2   ;;  %450 = vst.msk [vmem:[#allocation0 + $0x25] sm:$0x38] %vm420_vm11, %v445_v2  }
  0xa0   :  { %452 = vst.msk [vmem:[#allocation0 - $0x12] ss:$6 sm:$0xc0] %vm420_vm11, %v445_v2   ;;  %v419_v3 = vpop.permute.xlu0 %418  }
  0xa1   :  { %421 = vst.msk [vmem:[#allocation0] sm:$0x7] %vm420_vm11, %v419_v3   ;;  %423 = vst.msk [vmem:[#allocation0 + $0x5] sm:$0x38] %vm420_vm11, %v419_v3  }
  0xa2   :  { %425 = vst.msk [vmem:[#allocation0 + $0xa] sm:$0xc0] %vm420_vm11, %v419_v3  }
  0xa4   :  { %v457_v4 = vpop.permute.xlu0 %456  }
  0xa5   :  { %460 = vst.msk [vmem:[#allocation0 + $0x19] sm:$0x3] %vm420_vm11, %v457_v4  }
  0xa6   :  { %v490_v5 = vld [vmem:[#allocation0 + $0x20] sm:$0xf]  ;;  %v497_v6 = vld [vmem:[#allocation0 + $0x28] sm:$0xf] }
  0xa7   :  { %576 = vst [vmem:[%s901_s1 + $0x10] sm:$0xf] %v490_v5  ;;  %577 = vst [vmem:[%s901_s1 + $0x14] sm:$0xf] %v497_v6 }
  0xa8   :  { %v465_v7 = vld [vmem:[#allocation0] sm:$0xf]  ;;  %v470_v8 = vld [vmem:[#allocation0 + $0x8] sm:$0xf] }
  0xa9   :  { %v476_v9 = vld [vmem:[#allocation0 + $0x10] sm:$0xf]  ;;  %468 = vst [vmem:[%s901_s1] sm:$0xf] %v465_v7  ;;  %573 = vst [vmem:[%s901_s1 + $0x4] sm:$0xf] %v470_v8 }
  0xaa   :  { %574 = vst [vmem:[%s901_s1 + $0x8] sm:$0xf] %v476_v9 }
  0xac   :  { %v483_v10 = vld [vmem:[#allocation0 + $0x18] sm:$0xf] }
  0xad   :  { %575 = vst [vmem:[%s901_s1 + $0xc] sm:$0xf] %v483_v10 }

// kernel: spectrogram_upsampler.1
= control target key start
LH: loop header
LB: loop body
LE: loop exit
PB: predicated region body
PF: predicated region fallthrough
CT: control target
= control target key end

     0   :  { %9 = vsyncpa [#allocation5], 0  ;;  %s11412_s0 = inlined_call_operand.vmem [shape: f32[2], index: 0, kind: input, shape index: {}]   ;;  %s11413_s1 = inlined_call_operand.vmem [shape: f32[3,3,256], index: 1, kind: input, shape index: {}]   ;;  %s11414_s2 = inlined_call_operand.vmem [shape: f32[3,3,256], index: 2, kind: input, shape index: {}]   ;;  %s11415_s3 = inlined_call_operand.vmem [shape: f32[2,1,10,12], index: 3, kind: input, shape index: {}]   ;;  %s11416_s4 = inlined_call_operand.hbm [shape: f32[2,8,2048], index: 4, kind: output, shape index: {}]  }
   0x1   :  { %10 = vsyncpa [#allocation4], 0 }
   0x2   :  { %12 = vsyncpa [#allocation4 + $0x1], 0  ;;  %s7631_s15 = smov 0   ;;  %s7633_s16 = smov 0  }
   0x3   :  { %s7635_s17 = smov 0   ;;  %s7637_s18 = smov 0  }
   0x4   :  { %s7639_s19 = smov 0   ;;  %s7641_s20 = smov 0  }
   0x5 LB: > { %s7209_s21 = sadd.s32 4294967295, %s7588_s20   ;;  %s7210_s22 = sadd.s32 4294967294, %s7588_s20   ;;  %s7588_s20 = sphi %s7641_s20, %s18_s20   ;;  %s7584_s19 = sphi %s7639_s19, %s11817_s19   ;;  %s7580_s18 = sphi %s7637_s18, %s11816_s18   ;;  %s7576_s17 = sphi %s7635_s17, %s11815_s17   ;;  %s7572_s16 = sphi %s7633_s16, %s11814_s16   ;;  %s7568_s15 = sphi %s7631_s15, %s11813_s15  }
   0x6   : > { %s30_s23 = sadd.s32 1, %s7584_s19  ;;  %s130_s24 = sadd.s32 1, %s7576_s17 }
   0x7   : > { %p32_p0 = scmp.ge.s32.totalorder %s30_s23, 2  ;;  %p140_p1 = scmp.ne.s32.totalorder %s7576_s17, %s7572_s16 }
   0x8   : > { %p141_p2 = scmp.eq.s32.totalorder %s7209_s21, 1  ;;  %p146_p3 = scmp.ne.s32.totalorder %s7572_s16, %s7568_s15 }
   0x9   : > { %s11819_s23 = smov (%p32_p0, %s30_s23), 0  ;;  %p147_p5 = scmp.eq.s32.totalorder %s7210_s22, 1 }
   0xa   : > { %p7671_p4 = por %p141_p2, %p140_p1  ;;  %s125_s26 = ssub.s32 %s7584_s19, %s11819_s23 }
   0xb   : > { %p7211_p6 = scmp.ge.s32.totalorder %s7588_s20, 1  ;;  %p128_p7 = scmp.eq.s32.totalorder %s125_s26, 0 }
   0xc   : > { %p7678_p8 = por %p147_p5, %p146_p3  ;;  %p154_p9 = scmp.lt.s32.totalorder %s7588_s20, 3 }
   0xd   : > { %s7684_s28 = scalar_select %p128_p7, %s7576_s17, %s130_s24  }
   0xe   : > { %p7686_p10 = pnand %p7211_p6, %p154_p9  ;;  %p7690_p11 = scmp.eq.s32.totalorder %s7209_s21, 0 }
   0xf   : > { %s167_s7 = sshll.u32 %s11412_s0, 4  ;;  %s168_s7 = int_to_ptr.vmem [resolvable:$true] %s167_s7 }
  0x10   : > { %p7377_p12 = pneg %p7686_p10  ;;  %s7493_s8 = scalar_lea.vmem %s168_s7, 16 }
  0x11   : > { %p7494_p0 = scmp.ne.s32.totalorder %s168_s7, %s7493_s8  ;;  %p7501_p5 = scmp.lt.s32.totalorder %s168_s7, %s168_s7 }
  0x12   : > { %p7378_p13 = pnand %p7690_p11, %p7377_p12  ;;  %p7502_p6 = scmp.lt.s32.totalorder %s7493_s8, %s7493_s8 }
  0x14   : > { %p7495_p1 = pneg %p7378_p13  ;;  %p7503_p7 = por %p7502_p6, %p7501_p5 }
  0x16   : > { %p7496_p2 = pnand %p7495_p1, %p7494_p0 }
  0x18   : > { %p7497_p3 = pneg %p7496_p2 }
  0x1a   : > { %p7504_p9 = pnand %p7503_p7, %p7497_p3 }
  0x1c   : > { %7507 = shalt.err (!%p7504_p9)
}
  0x1d   : > { %s7590_s9 = smov [#allocation3]   ;;  %198 = sbr.rel (%p7686_p10) target bundleno = 3522 (0xdc2), region = 36 }
  0x1e   : > { %7380 = dma.vmem_to_smem (!%p7378_p13), %s168_s7, 16, %s7590_s9, [#allocation5]  }
  0x22   : > { %7559 = dma.done.wait (%p7690_p11), [#allocation5], 16  }
  0x23   : > { %7561 = vsyncadd (%p7690_p11), [#allocation5], 4294967280 }
  0x24   : > { %204 = sfence }
  0x25   : > { %p229_p12 = scmp.lt.s32.totalorder %s7580_s18, 1  ;;  %v7591_v0 = vmov 2   ;;  %v7592_v1 = vmov 1   ;;  %v7593_v5 = vmov 3   ;;  %v7594_v7 = vmov 4   ;;  %s7602_s29 = smov 112  }
  0x26   : > { %7452 = vset.pattern.permute.xlu1 %v7591_v0  ;;  %7451 = vset.pattern.permute.xlu0 %v7592_v1  ;;  %v7595_v9 = vmov 5   ;;  %v7596_v11 = vmov 6   ;;  %v7597_v13 = vmov 7   ;;  %v11417_v15 = vmov 0.0   ;;  %s7603_s8 = smov 16   ;;  %s239_s9 = sld [smem:[#allocation3]] }
  0x27   : > { %s230_s10 = scalar_select %p229_p12, %s7580_s18, 1  ;;  %254 = vst [vmem:[#allocation2 + $0xa1] ss:$8 sm:$0xf] %v11417_v15  ;;  %574 = vst [vmem:[#allocation2 + $0x8] sm:$0xfe] %v11417_v15  ;;  %v11419_v17 = vlaneseq }
  0x28   : > { %241 = vst [vmem:[#allocation2] ss:$8 sm:$0xf] %v11417_v15  ;;  %242 = vst [vmem:[#allocation2] ss:$8 sm:$0xf0] %v11417_v15 }
  0x29   : > { %s7369_s11 = sshll.u32 %s230_s10, 4  ;;  %244 = vst [vmem:[#allocation2 + $0x40] ss:$8 sm:$0xf] %v11417_v15  ;;  %576 = vst [vmem:[#allocation2 + $0xa8] sm:$0x1] %v11417_v15 }
  0x2a   : > { %s7712_s14 = scalar_lea.vmem %s11415_s3, %s7369_s11  ;;  %245 = vst [vmem:[#allocation2 + $0x40] ss:$8 sm:$0xf0] %v11417_v15  ;;  %255 = vst [vmem:[#allocation2 + $0xa1] ss:$8 sm:$0xf0] %v11417_v15 }
  0x2b   : > { %v7715_v2 = vld [vmem:[%s7712_s14] sm:$0xff]  ;;  %v586_v3 = vld [vmem:[%s7712_s14 + $0x8] sm:$0x3]  ;;  %257 = vst [vmem:[#allocation2 + $0xe1] ss:$8 sm:$0xf] %v11417_v15 }
  0x2c   : > { %681 = vperm.xlu1 %7452, %v7715_v2   ;;  %590 = vperm.xlu0 %7451, %v7715_v2   ;;  %v900_v4 = vld [vmem:[%s7712_s14 + $0x8] sm:$0x3]  ;;  %258 = vst [vmem:[#allocation2 + $0xe1] ss:$8 sm:$0xf0] %v11417_v15  ;;  %v11421_v16 = vmov 9   ;;  %v7886_v53 = vstv %s239_s9 }
  0x2d   : > { %v1214_v6 = vld [vmem:[%s7712_s14 + $0x8] sm:$0x3]  ;;  %3398 = vst [vmem:[#allocation2 + $0x90] sm:$0xfe] %v11417_v15  ;;  %3400 = vst [vmem:[#allocation2 + $0x130] sm:$0x1] %v11417_v15 }
  0x2e   : > { %v1528_v8 = vld [vmem:[%s7712_s14 + $0x8] sm:$0x3]  ;;  %v11426_v18 = vmov 8   ;;  %v600_v20 = vshrl.u32 %v11419_v17, 7  ;;  %v11420_v23 = vmov 10   ;;  %vm638_vm0 = vcmask 1040384  }
  0x2f   : > { %v7730_v10 = vld [vmem:[%s7712_s14 + $0x8] sm:$0x3]  ;;  %v7775_v22 = vld [vmem:[%s11414_s2] ss:$4 sm:$0x3]  ;;  %vm868_vm1 = vcmask 1046528  }
  0x30   : > { %685 = vperm.xlu1 %7452, %v586_v3   ;;  %595 = vperm.xlu0 %7451, %v586_v3   ;;  %v7737_v12 = vld [vmem:[%s7712_s14 + $0x8] sm:$0x3]  ;;  %v7770_v21 = vsub.s32 1, %v600_v20  ;;  %v7795_v27 = vld [vmem:[%s11414_s2 + $0x10] ss:$4 sm:$0x3] }
  0x31   : > { %v7743_v14 = vld [vmem:[%s7712_s14 + $0x8] sm:$0x3]  ;;  %v7804_v29 = vld [vmem:[%s11414_s2 + $0x2] ss:$4 sm:$0x3]  ;;  %v7821_v32 = vsub.s32 0, %v600_v20 }
  0x32   : > { %v7766_v19 = vld [vmem:[%s7712_s14 + $0x8] sm:$0x3]  ;;  %v3419_v24 = vrot.slane %v7775_v22, %v7770_v21  ;;  %v3504_v28 = vrot.slane %v7795_v27, %v7770_v21  ;;  %v3668_v30 = vrot.slane %v7804_v29, %v7770_v21  ;;  %v7818_v31 = vld [vmem:[%s11413_s1 + $0x10] ss:$4 sm:$0x3]  ;;  %vm3673_vm2 = vcmask 130048  }
  0x33   : > { %v7785_v25 = vld [vmem:[%s11414_s2 + $0x8] ss:$4 sm:$0x3]  ;;  %v7230_v33 = vld [vmem:[%s11413_s1 + $0x1] ss:$4 sm:$0x3] }
  0x34   : > { %7453 = vset.pattern.permute.xlu1 %v7593_v5  ;;  %7455 = vset.pattern.permute.xlu0 %v7591_v0  ;;  %v3451_v26 = vrot.slane %v7785_v25, %v7770_v21  ;;  %v7231_v34 = vld [vmem:[%s11413_s1 + $0x9] ss:$4 sm:$0x3]  ;;  %v587_v35 = vld [vmem:[%s11413_s1] ss:$4 sm:$0x3]  ;;  %v7838_v38 = vrot.slane %v7230_v33, %v7770_v21  ;;  %v7852_v42 = vrot.slane %v7230_v33, %v7821_v32 }
  0x35   : > { %774 = vperm.xlu1 %7453, %v586_v3   ;;  %909 = vperm.xlu0 %7455, %v900_v4   ;;  %v7228_v36 = vld [vmem:[%s11413_s1 + $0x8] ss:$4 sm:$0x3]  ;;  %v7843_v39 = vld [vmem:[%s11413_s1 + $0x11] ss:$4 sm:$0x3]  ;;  %v7855_v43 = vrot.slane %v7231_v34, %v7821_v32  ;;  %v7858_v44 = vrot.slane %v7231_v34, %v7770_v21  ;;  %v7867_v47 = vrot.slane %v587_v35, %v7821_v32 }
  0x36   : > { %v7233_v40 = vld [vmem:[%s11413_s1 + $0x2] ss:$4 sm:$0x3]  ;;  %v7234_v45 = vld [vmem:[%s11413_s1 + $0xa] ss:$4 sm:$0x3]  ;;  %v7870_v48 = vrot.slane %v587_v35, %v7770_v21  ;;  %v7873_v49 = vrot.slane %v7228_v36, %v7821_v32  ;;  %v7876_v50 = vrot.slane %v7228_v36, %v7770_v21 }
  0x37   : > { %v901_v46 = vld [vmem:[%s11413_s1] ss:$4 sm:$0x3]  ;;  %v7236_v51 = vld [vmem:[%s11413_s1 + $0x8] ss:$4 sm:$0x3]  ;;  %v7893_v56 = vrot.slane %v7233_v40, %v7821_v32  ;;  %v7901_v58 = vrot.slane %v7233_v40, %v7770_v21  ;;  %v7904_v59 = vrot.slane %v7234_v45, %v7821_v32  ;;  %v7907_v60 = vrot.slane %v7234_v45, %v7770_v21 }
  0x38   : > { %v7884_v52 = vld [vmem:[%s11413_s1 + $0x12] ss:$4 sm:$0x3]  ;;  %v7898_v57 = vld [vmem:[%s11413_s1 + $0x10] ss:$4 sm:$0x3]  ;;  %v7910_v61 = vrot.slane %v901_v46, %v7821_v32  ;;  %v7923_v1 = vrot.slane %v7236_v51, %v7821_v32  ;;  %v7926_v3 = vrot.slane %v7236_v51, %v7770_v21 }
  0x39   : > { %7454 = vset.pattern.permute.xlu1 %v7591_v0  ;;  %7456 = vset.pattern.permute.xlu0 %v7593_v5  ;;  %v7238_v62 = vld [vmem:[%s11413_s1 + $0x1] ss:$4 sm:$0x3]  ;;  %v7239_v63 = vld [vmem:[%s11413_s1 + $0x9] ss:$4 sm:$0x3]  ;;  %v7920_v0 = vrot.slane %v901_v46, %v7770_v21 }
  0x3a   : > { %904 = vperm.xlu1 %7454, %v7715_v2   ;;  %770 = vperm.xlu0 %7456, %v7715_v2   ;;  %v7956_v20 = vrot.slane %v7238_v62, %v7821_v32  ;;  %v7242_v33 = vld [vmem:[%s11413_s1 + $0xa] ss:$4 sm:$0x3]  ;;  %v7986_v45 = vld [vmem:[%s11413_s1 + $0x10] ss:$4 sm:$0x3] }
  0x3b   : > { %11539 = vst [vmem:[#allocation11_spill] sm:$0xff] %v7986_v45  ;;  %v8004_v15 = vld [vmem:[%s11414_s2 + $0xa] ss:$4 sm:$0x3]  ;;  %v8016_v36 = vrot.slane %v7242_v33, %v7821_v32  ;;  %s7604_s30 = smov 96   ;;  %vm3424_vm4 = vcmask 916480  }
  0x3c   : > { %v7302_v55 = vld [vmem:[%s11414_s2 + $0x1] ss:$4 sm:$0x3]  ;;  %v8074_v54 = vld [vmem:[%s11413_s1 + $0x11] ss:$4 sm:$0x3] }
  0x3d   : > { %11544 = vst [vmem:[#allocation16_spill] sm:$0xff] %v8016_v36  ;;  %11551 = vst [vmem:[#allocation23_spill] sm:$0xff] %v8074_v54  ;;  %v8091_v41 = vld [vmem:[%s11413_s1 + $0x12] ss:$4 sm:$0x3]  ;;  %s7219_s5 = sld [smem:[#allocation3 + $0x1]] }
  0x3e   : > { %7457 = vset.pattern.permute.xlu1 %v7593_v5  ;;  %1223 = vperm.xlu0 %7456, %v1214_v6   ;;  %11556 = vst [vmem:[#allocation28_spill] sm:$0xff] %v8091_v41  ;;  %v2471_v54 = vld [vmem:[%s11413_s1] ss:$4 sm:$0x3]  ;;  %vm3702_vm5 = vcmask 785408   ;;  %vm3850_vm6 = vcmask 1045504  }
  0x3f   : > { %995 = vperm.xlu1 %7457, %v7715_v2   ;;  %v8186_v41 = vld [vmem:[%s11413_s1 + $0x11] ss:$4 sm:$0x3]  ;;  %s226_s6 = sand.u32 1, %s7572_s16  }
  0x40   : > { %11573 = vst [vmem:[#allocation45_spill] sm:$0xff] %v8186_v41  ;;  %v7284_v41 = vld [vmem:[%s11413_s1 + $0x8] ss:$4 sm:$0x3]  ;;  %s7216_s7 = sshll.u32 %s226_s6, 7 }
  0x41   : > { %s9760_s10 = scalar_lea.vmem [#allocation6], %s7216_s7 }
  0x42   : > { %7460 = vset.pattern.permute.xlu0 %v7594_v7 }
  0x43   : > { %999 = vperm.xlu1 %7457, %v900_v4   ;;  %1084 = vperm.xlu0 %7460, %v7715_v2  }
  0x47   : > { %7458 = vset.pattern.permute.xlu1 %v7594_v7  ;;  %1537 = vperm.xlu0 %7460, %v1528_v8  }
  0x48   : > { %1088 = vperm.xlu1 %7458, %v900_v4  }
  0x4b   : > { %7464 = vset.pattern.permute.xlu0 %v7595_v9 }
  0x4c   : > { %7459 = vset.pattern.permute.xlu1 %v7593_v5  ;;  %1398 = vperm.xlu0 %7464, %v7715_v2   ;;  %v1215_v5 = vld [vmem:[%s11413_s1] ss:$4 sm:$0x3] }
  0x4d   : > { %1218 = vperm.xlu1 %7459, %v7715_v2   ;;  %v7974_v34 = vrot.slane %v1215_v5, %v7821_v32  ;;  %v7977_v35 = vrot.slane %v1215_v5, %v7770_v21  ;;  %v1529_v5 = vld [vmem:[%s11413_s1] ss:$4 sm:$0x3] }
  0x4e   : > { %v8046_v4 = vrot.slane %v1529_v5, %v7770_v21 }
  0x4f   : > { %11537 = vst [vmem:[#allocation9_spill] sm:$0xff] %v7974_v34  ;;  %11538 = vst [vmem:[#allocation10_spill] sm:$0xff] %v7977_v35 }
  0x50   : > { %1851 = vperm.xlu0 %7464, %v7730_v10   ;;  %11548 = vst [vmem:[#allocation20_spill] sm:$0xff] %v8046_v4 }
  0x51   : > { %7461 = vset.pattern.permute.xlu1 %v7594_v7 }
  0x52   : > { %1309 = vperm.xlu1 %7461, %v7715_v2  }
  0x54   : > { %7468 = vset.pattern.permute.xlu0 %v7596_v11 }
  0x55   : > { %1712 = vperm.xlu0 %7468, %v7715_v2  }
  0x56   : > { %1313 = vperm.xlu1 %7461, %v1214_v6  }
  0x59   : > { %2165 = vperm.xlu0 %7468, %v7737_v12  }
  0x5a   : > { %7462 = vset.pattern.permute.xlu1 %v7595_v9 }
  0x5b   : > { %1402 = vperm.xlu1 %7462, %v1214_v6   ;;  %v7936_v6 = vld [vmem:[%s11413_s1 + $0x11] ss:$4 sm:$0x3] }
  0x5d   : > { %7472 = vset.pattern.permute.xlu0 %v7597_v13 }
  0x5e   : > { %2026 = vperm.xlu0 %7472, %v7715_v2  }
  0x5f   : > { %7463 = vset.pattern.permute.xlu1 %v7594_v7  ;;  %v7247_v7 = vld [vmem:[%s11413_s1 + $0x9] ss:$4 sm:$0x3] }
  0x60   : > { %1532 = vperm.xlu1 %7463, %v7715_v2  }
  0x62   : > { %2479 = vperm.xlu0 %7472, %v7743_v14  }
  0x64   : > { %7465 = vset.pattern.permute.xlu1 %v7595_v9 }
  0x65   : > { %1623 = vperm.xlu1 %7465, %v7715_v2  }
  0x66   : > { %7477 = vset.pattern.permute.xlu0 %v11421_v16  ;;  %v7249_v16 = vld [vmem:[%s11413_s1 + $0x2] ss:$4 sm:$0x3] }
  0x67   : > { %2654 = vperm.xlu0 %7477, %v7715_v2  }
  0x69   : > { %1627 = vperm.xlu1 %7465, %v1528_v8  }
  0x6b   : > { %7478 = vset.pattern.permute.xlu0 %v11426_v18 }
  0x6c   : > { %2340 = vperm.xlu0 %7478, %v7715_v2  }
  0x6d   : > { %7466 = vset.pattern.permute.xlu1 %v7596_v11 }
  0x6e   : > { %1716 = vperm.xlu1 %7466, %v1528_v8   ;;  %v7244_v8 = vld [vmem:[%s11413_s1 + $0x8] ss:$4 sm:$0x3] }
  0x6f   : > { %v7989_v46 = vrot.slane %v7244_v8, %v7821_v32  ;;  %v7992_v51 = vrot.slane %v7244_v8, %v7770_v21  ;;  %v8028_v8 = vrot.slane %v7242_v33, %v7770_v21  ;;  %v8043_v33 = vrot.slane %v1529_v5, %v7821_v32 }
  0x70   : > { %2793 = vperm.xlu0 %7478, %v7766_v19  }
  0x71   : > { %11540 = vst [vmem:[#allocation12_spill] sm:$0xff] %v7989_v46  ;;  %11541 = vst [vmem:[#allocation13_spill] sm:$0xff] %v7992_v51 }
  0x72   : > { %7467 = vset.pattern.permute.xlu1 %v7595_v9  ;;  %11546 = vst [vmem:[#allocation18_spill] sm:$0xff] %v8028_v8  ;;  %11547 = vst [vmem:[#allocation19_spill] sm:$0xff] %v8043_v33 }
  0x73   : > { %1846 = vperm.xlu1 %7467, %v7715_v2  }
  0x74   : > { %7482 = vset.pattern.permute.xlu0 %v11420_v23  ;;  %v7246_v23 = vld [vmem:[%s11413_s1 + $0x1] ss:$4 sm:$0x3] }
  0x75   : > { %2968 = vperm.xlu0 %7482, %v7715_v2  }
  0x77   : > { %7469 = vset.pattern.permute.xlu1 %v7596_v11 }
  0x78   : > { %1937 = vperm.xlu1 %7469, %v7715_v2  }
  0x79   : > { %3422 = vrot.lane.b32.xlu0 %v3419_v24, %s7602_s29  ;;  %v7959_v24 = vrot.slane %v7238_v62, %v7770_v21  ;;  %v7252_v62 = vld [vmem:[%s11413_s1 + $0x8] ss:$4 sm:$0x3] }
  0x7a   : > { %v8062_v5 = vrot.slane %v7252_v62, %v7770_v21 }
  0x7c   : > { %1941 = vperm.xlu1 %7469, %v7730_v10   ;;  %11550 = vst [vmem:[#allocation22_spill] sm:$0xff] %v8062_v5 }
  0x7d   : > { %3454 = vrot.lane.b32.xlu0 %v3451_v26, %s7602_s29  ;;  %v7962_v26 = vrot.slane %v7239_v63, %v7821_v32 }
  0x80   : > { %7470 = vset.pattern.permute.xlu1 %v7597_v13 }
  0x81   : > { %2030 = vperm.xlu1 %7470, %v7730_v10   ;;  %3507 = vrot.lane.b32.xlu0 %v3504_v28, %s7602_s29  ;;  %v7965_v28 = vrot.slane %v7239_v63, %v7770_v21  ;;  %v7260_v10 = vld [vmem:[%s11413_s1 + $0x8] ss:$4 sm:$0x3]  ;;  %v8059_v63 = vrot.slane %v7252_v62, %v7821_v32 }
  0x82   : > { %v8086_v9 = vrot.slane %v7260_v10, %v7770_v21 }
  0x83   : > { %11549 = vst [vmem:[#allocation21_spill] sm:$0xff] %v8059_v63 }
  0x84   : > { %11555 = vst [vmem:[#allocation27_spill] sm:$0xff] %v8086_v9  ;;  %v8107_v9 = vrot.slane %v7247_v7, %v7770_v21 }
  0x85   : > { %7471 = vset.pattern.permute.xlu1 %v7596_v11  ;;  %3671 = vrot.lane.b32.xlu0 %v3668_v30, %s7603_s8  ;;  %v7241_v30 = vld [vmem:[%s11413_s1 + $0x2] ss:$4 sm:$0x3]  ;;  %v1843_v11 = vld [vmem:[%s11413_s1] ss:$4 sm:$0x3] }
  0x86   : > { %2160 = vperm.xlu1 %7471, %v7715_v2   ;;  %v8010_v17 = vrot.slane %v7241_v30, %v7821_v32  ;;  %v8013_v40 = vrot.slane %v7241_v30, %v7770_v21  ;;  %v8077_v37 = vrot.slane %v1843_v11, %v7821_v32  ;;  %v8080_v62 = vrot.slane %v1843_v11, %v7770_v21 }
  0x87   : > { %v8083_v30 = vrot.slane %v7260_v10, %v7821_v32  ;;  %v8098_v11 = vrot.slane %v7246_v23, %v7821_v32  ;;  %v8104_v10 = vrot.slane %v7247_v7, %v7821_v32  ;;  %11560 = vst [vmem:[#allocation32_spill] sm:$0xff] %v8107_v9  ;;  %v8142_v7 = vrot.slane %v7249_v16, %v7770_v21  ;;  %v8147_v9 = vld [vmem:[%s11413_s1 + $0x12] ss:$4 sm:$0x3] }
  0x88   : > { %11542 = vst [vmem:[#allocation14_spill] sm:$0xff] %v8010_v17  ;;  %11543 = vst [vmem:[#allocation15_spill] sm:$0xff] %v8013_v40 }
  0x89   : > { %11552 = vst [vmem:[#allocation24_spill] sm:$0xff] %v8077_v37  ;;  %11553 = vst [vmem:[#allocation25_spill] sm:$0xff] %v8080_v62  ;;  %v8101_v62 = vrot.slane %v7246_v23, %v7770_v21  ;;  %v8119_v23 = vrot.slane %v7302_v55, %v7770_v21  ;;  %v8122_v37 = vrot.slane %v7302_v55, %v7821_v32 }
  0x8a   : > { %7473 = vset.pattern.permute.xlu1 %v7597_v13  ;;  %11554 = vst [vmem:[#allocation26_spill] sm:$0xff] %v8083_v30  ;;  %11557 = vst [vmem:[#allocation29_spill] sm:$0xff] %v8098_v11  ;;  %v7250_v30 = vld [vmem:[%s11413_s1 + $0xa] ss:$4 sm:$0x3] }
  0x8b   : > { %2251 = vperm.xlu1 %7473, %v7715_v2   ;;  %11558 = vst [vmem:[#allocation30_spill] sm:$0xff] %v8101_v62  ;;  %11559 = vst [vmem:[#allocation31_spill] sm:$0xff] %v8104_v10  ;;  %v2157_v10 = vld [vmem:[%s11413_s1] ss:$4 sm:$0x3]  ;;  %v8156_v55 = vrot.slane %v7250_v30, %v7770_v21 }
  0x8c   : > { %11562 = vst [vmem:[#allocation34_spill] sm:$0xff] %v8119_v23  ;;  %11563 = vst [vmem:[#allocation35_spill] sm:$0xff] %v8122_v37  ;;  %v7268_v62 = vld [vmem:[%s11413_s1 + $0x8] ss:$4 sm:$0x3]  ;;  %v8139_v37 = vrot.slane %v7249_v16, %v7821_v32  ;;  %v8153_v23 = vrot.slane %v7250_v30, %v7821_v32  ;;  %v8169_v11 = vrot.slane %v2157_v10, %v7821_v32 }
  0x8d   : > { %11565 = vst [vmem:[#allocation37_spill] sm:$0xff] %v8142_v7  ;;  %11566 = vst [vmem:[#allocation38_spill] sm:$0xff] %v8147_v9  ;;  %v7276_v16 = vld [vmem:[%s11413_s1 + $0x8] ss:$4 sm:$0x3]  ;;  %v8172_v30 = vrot.slane %v2157_v10, %v7770_v21 }
  0x8e   : > { %11564 = vst [vmem:[#allocation36_spill] sm:$0xff] %v8139_v37  ;;  %11567 = vst [vmem:[#allocation39_spill] sm:$0xff] %v8153_v23  ;;  %v7254_v37 = vld [vmem:[%s11413_s1 + $0x1] ss:$4 sm:$0x3]  ;;  %v8178_v23 = vrot.slane %v7268_v62, %v7770_v21  ;;  %v8210_v10 = vrot.slane %v7276_v16, %v7821_v32 }
  0x8f   : > { %2255 = vperm.xlu1 %7473, %v7737_v12   ;;  %11568 = vst [vmem:[#allocation40_spill] sm:$0xff] %v8156_v55  ;;  %11569 = vst [vmem:[#allocation41_spill] sm:$0xff] %v8169_v11  ;;  %v8175_v55 = vrot.slane %v7268_v62, %v7821_v32  ;;  %v7255_v7 = vld [vmem:[%s11413_s1 + $0x9] ss:$4 sm:$0x3]  ;;  %v8194_v62 = vrot.slane %v2471_v54, %v7821_v32 }
  0x90   : > { %11570 = vst [vmem:[#allocation42_spill] sm:$0xff] %v8172_v30  ;;  %11572 = vst [vmem:[#allocation44_spill] sm:$0xff] %v8178_v23  ;;  %v8197_v23 = vrot.slane %v2471_v54, %v7770_v21  ;;  %v8207_v30 = vld [vmem:[%s11413_s1 + $0x12] ss:$4 sm:$0x3]  ;;  %v8219_v54 = vrot.slane %v7254_v37, %v7770_v21  ;;  %v8228_v11 = vrot.slane %v7255_v7, %v7821_v32 }
  0x91   : > { %11571 = vst [vmem:[#allocation43_spill] sm:$0xff] %v8175_v55  ;;  %11574 = vst [vmem:[#allocation46_spill] sm:$0xff] %v8194_v62  ;;  %v8202_v55 = vld [vmem:[%s11413_s1 + $0x12] ss:$4 sm:$0x3]  ;;  %v8216_v62 = vrot.slane %v7254_v37, %v7821_v32 }
  0x92   : > { %11575 = vst [vmem:[#allocation47_spill] sm:$0xff] %v8197_v23  ;;  %11576 = vst [vmem:[#allocation48_spill] sm:$0xff] %v8202_v55  ;;  %v7257_v23 = vld [vmem:[%s11413_s1 + $0x2] ss:$4 sm:$0x3] }
  0x93   : > { %7474 = vset.pattern.permute.xlu1 %v11426_v18  ;;  %11577 = vst [vmem:[#allocation49_spill] sm:$0xff] %v8207_v30  ;;  %11578 = vst [vmem:[#allocation50_spill] sm:$0xff] %v8210_v10  ;;  %v7258_v9 = vld [vmem:[%s11413_s1 + $0xa] ss:$4 sm:$0x3] }
  0x94   : > { %2344 = vperm.xlu1 %7474, %v7737_v12   ;;  %v7953_v12 = vld [vmem:[%s11413_s1 + $0x12] ss:$4 sm:$0x3]  ;;  %11580 = vst [vmem:[#allocation52_spill] sm:$0xff] %v8216_v62  ;;  %11581 = vst [vmem:[#allocation53_spill] sm:$0xff] %v8219_v54  ;;  %v8258_v62 = vrot.slane %v7257_v23, %v7821_v32 }
  0x95   : > { %11582 = vst [vmem:[#allocation54_spill] sm:$0xff] %v8228_v11  ;;  %v2785_v10 = vld [vmem:[%s11413_s1] ss:$4 sm:$0x3]  ;;  %v8261_v11 = vrot.slane %v7257_v23, %v7770_v21 }
  0x96   : > { %v8243_v54 = vld [vmem:[%s11413_s1 + $0x10] ss:$4 sm:$0x3]  ;;  %11586 = vst [vmem:[#allocation57_spill] sm:$0xff] %v8258_v62  ;;  %v8276_v62 = vrot.slane %v2785_v10, %v7821_v32  ;;  %v8279_v23 = vrot.slane %v2785_v10, %v7770_v21 }
  0x97   : > { %11584 = vst [vmem:[#allocation56_spill] sm:$0xff] %v8243_v54  ;;  %11587 = vst [vmem:[#allocation58_spill] sm:$0xff] %v8261_v11  ;;  %v8272_v37 = vld [vmem:[%s11413_s1 + $0x12] ss:$4 sm:$0x3] }
  0x98   : > { %7475 = vset.pattern.permute.xlu1 %v7597_v13  ;;  %v8024_v13 = vld [vmem:[%s11413_s1 + $0x12] ss:$4 sm:$0x3]  ;;  %11590 = vst [vmem:[#allocation61_spill] sm:$0xff] %v8272_v37  ;;  %11591 = vst [vmem:[#allocation62_spill] sm:$0xff] %v8276_v62  ;;  %v11594_v62 = vrot.slane %v7818_v31, %v7770_v21 }
  0x99   : > { %11545 = vst [vmem:[#allocation17_spill] sm:$0xff] %v8024_v13  ;;  %2474 = vperm.xlu1 %7475, %v7715_v2   ;;  %11592 = vst [vmem:[#allocation63_spill] sm:$0xff] %v8279_v23  ;;  %v8299_v23 = vrot.slane %v7284_v41, %v7821_v32 }
  0x9b   : > { %11595 = vst [vmem:[#allocation64_spill] sm:$0xff] %v8299_v23 }
  0x9d   : > { %7476 = vset.pattern.permute.xlu1 %v11426_v18  ;;  %v8115_v18 = vld [vmem:[%s11413_s1 + $0x10] ss:$4 sm:$0x3] }
  0x9e   : > { %11561 = vst [vmem:[#allocation33_spill] sm:$0xff] %v8115_v18  ;;  %2565 = vperm.xlu1 %7476, %v7715_v2   ;;  %v8213_v18 = vrot.slane %v7276_v16, %v7770_v21  ;;  %v8231_v16 = vrot.slane %v7255_v7, %v7770_v21  ;;  %v8264_v7 = vrot.slane %v7258_v9, %v7821_v32 }
  0xa0   : > { %11579 = vst [vmem:[#allocation51_spill] sm:$0xff] %v8213_v18  ;;  %11583 = vst [vmem:[#allocation55_spill] sm:$0xff] %v8231_v16  ;;  %v11585_v16 = vmov 9   ;;  %v8267_v18 = vrot.slane %v7258_v9, %v7770_v21  ;;  %v8302_v9 = vrot.slane %v7284_v41, %v7770_v21 }
  0xa1   : > { %11588 = vst [vmem:[#allocation59_spill] sm:$0xff] %v8264_v7  ;;  %v7262_v7 = vld [vmem:[%s11413_s1 + $0x1] ss:$4 sm:$0x3] }
  0xa2   : > { %2569 = vperm.xlu1 %7476, %v7743_v14   ;;  %11589 = vst [vmem:[#allocation60_spill] sm:$0xff] %v8267_v18  ;;  %11596 = vst [vmem:[#allocation65_spill] sm:$0xff] %v8302_v9  ;;  %v8313_v5 = vrot.slane %v7262_v7, %v7821_v32  ;;  %v8316_v41 = vrot.slane %v7262_v7, %v7770_v21  ;;  %v11599_v9 = vmov 8  }
  0xa4   : > { %11597 = vst [vmem:[#allocation66_spill] sm:$0xff] %v8313_v5  ;;  %11598 = vst [vmem:[#allocation67_spill] sm:$0xff] %v8316_v41 }
  0xa6   : > { %7479 = vset.pattern.permute.xlu1 %v11585_v16 }
  0xa7   : > { %2658 = vperm.xlu1 %7479, %v7743_v14   ;;  %v682_v30 = vpop.permute.xlu1 %681  ;;  %v591_v55 = vpop.permute.xlu0 %590  ;;  %v11593_v14 = vrot.slane %v7818_v31, %v7821_v32 }
  0xa8   : > { %v8296_v10 = vmul.f32 %v11594_v62, %v591_v55  ;;  %v609_v18 = vmul.f32 %v7867_v47, %v591_v55  ;;  %v610_v54 = vmul.f32 %v7870_v48, %v591_v55  ;;  %v630_v31 = vmul.f32 %v7873_v49, %v591_v55 }
  0xa9   : > { %v8291_v11 = vmul.f32 %v11593_v14, %v591_v55  ;;  %v631_v62 = vmul.f32 %v7876_v50, %v591_v55  ;;  %v720_v23 = vmul.f32 %v7855_v43, %v682_v30  ;;  %v721_v63 = vmul.f32 %v7858_v44, %v682_v30 }
  0xaa   : > { %v613_v13 = vadd.f32 %v609_v18, %v7886_v53  ;;  %v614_v14 = vadd.f32 %v610_v54, %v7886_v53  ;;  %v671_v4 = vrot.slane %v8296_v10, 6  ;;  %v699_v18 = vmul.f32 %v7852_v42, %v682_v30 }
  0xab   : > { %7480 = vset.pattern.permute.xlu1 %v11599_v9  ;;  %v686_v45 = vpop.permute.xlu1 %685  ;;  %v596_v37 = vpop.permute.xlu0 %595  ;;  %v670_v55 = vrot.slane %v8291_v11, 6  ;;  %v639_v9 = vrot.slane %v630_v31, 7  ;;  %v640_v41 = vrot.slane %v631_v62, 7  ;;  %v700_v54 = vmul.f32 %v7838_v38, %v682_v30 }
  0xac   : > { %v722_v5 = vmul.f32 %v7855_v43, %v686_v45  ;;  %v723_v7 = vmul.f32 %v7858_v44, %v686_v45  ;;  %2788 = vperm.xlu1 %7480, %v7715_v2   ;;  %v611_v33 = vmul.f32 %v7867_v47, %v596_v37  ;;  %v612_v51 = vmul.f32 %v7870_v48, %v596_v37 }
  0xad   : > { %v632_v11 = vmul.f32 %v7873_v49, %v596_v37  ;;  %v633_v10 = vmul.f32 %v7876_v50, %v596_v37  ;;  %v649_v46 = vadd.f32 %v639_v9, %v613_v13  ;;  %v650_v43 = vadd.f32 %v640_v41, %v614_v14 }
  0xae   : > { %v615_v44 = vadd.f32 %v611_v33, %v7886_v53  ;;  %v616_v35 = vadd.f32 %v612_v51, %v7886_v53  ;;  %v728_v31 = vrot.slane %v720_v23, 7  ;;  %v729_v62 = vrot.slane %v721_v63, 7 }
  0xaf   : > { %v641_v34 = vrot.slane %v632_v11, 7  ;;  %v643_v47 = vrot.slane %v633_v10, 7  ;;  %v730_v8 = vrot.slane %v722_v5, 7  ;;  %v732_v36 = vrot.slane %v723_v7, 7 }
  0xb0   : > { %7481 = vset.pattern.permute.xlu1 %v11585_v16  ;;  %v775_v48 = vpop.permute.xlu1 %774  ;;  %v674_v40 = vadd.f32 %v670_v55, %v649_v46  ;;  %v675_v17 = vadd.f32 %v671_v4, %v650_v43  ;;  %v11600_v51 = vrot.slane %v7843_v39, %v7821_v32  ;;  %v11601_v63 = vrot.slane %v7843_v39, %v7770_v21  ;;  %v910_v46 = vpop.permute.xlu0 %909 }
  0xb1   : > { %2879 = vperm.xlu1 %7481, %v7715_v2   ;;  %v642_v49 = vsel %vm638_vm0, %v639_v9, %v641_v34  ;;  %v644_v50 = vsel %vm638_vm0, %v640_v41, %v643_v47  ;;  %v701_v14 = vmul.f32 %v7852_v42, %v686_v45  ;;  %v702_v2 = vmul.f32 %v7838_v38, %v686_v45 }
  0xb2   : > { %v755_v13 = vmul.f32 %v11600_v51, %v682_v30  ;;  %v756_v33 = vmul.f32 %v11601_v63, %v682_v30  ;;  %v703_v16 = vadd.f32 %v699_v18, %v674_v40  ;;  %v704_v37 = vadd.f32 %v700_v54, %v675_v17 }
  0xb3   : > { %v651_v5 = vadd.f32 %v642_v49, %v615_v44  ;;  %v652_v23 = vadd.f32 %v644_v50, %v616_v35  ;;  %v811_v34 = vmul.f32 %v7904_v59, %v775_v48  ;;  %v812_v41 = vmul.f32 %v7907_v60, %v775_v48 }
  0xb4   : > { %v731_v7 = vsel %vm638_vm0, %v728_v31, %v730_v8  ;;  %v733_v9 = vsel %vm638_vm0, %v729_v62, %v732_v36  ;;  %v738_v17 = vadd.f32 %v728_v31, %v703_v16  ;;  %v739_v40 = vadd.f32 %v729_v62, %v704_v37 }
  0xb5   : > { %v676_v11 = vadd.f32 %v670_v55, %v651_v5  ;;  %v677_v39 = vadd.f32 %v671_v4, %v652_v23  ;;  %2883 = vperm.xlu1 %7481, %v7766_v19   ;;  %v790_v35 = vmul.f32 %v7893_v56, %v775_v48  ;;  %v791_v42 = vmul.f32 %v7901_v58, %v775_v48  ;;  %v8355_v30 = vpop.permute.xlu1 %904  ;;  %v771_v62 = vpop.permute.xlu0 %770 }
  0xb6   : > { %v759_v38 = vrot.slane %v755_v13, 6  ;;  %v760_v45 = vrot.slane %v756_v33, 6  ;;  %v819_v10 = vrot.slane %v811_v34, 7  ;;  %v821_v8 = vrot.slane %v812_v41, 7 }
  0xb7   : > { %v705_v18 = vadd.f32 %v701_v14, %v676_v11  ;;  %v706_v54 = vadd.f32 %v702_v2, %v677_v39  ;;  %v925_v36 = vmul.f32 %v7910_v61, %v910_v46  ;;  %v926_v4 = vmul.f32 %v7920_v0, %v910_v46 }
  0xb8   : > { %v923_v44 = vmul.f32 %v7910_v61, %v8355_v30  ;;  %v924_v31 = vmul.f32 %v7920_v0, %v8355_v30  ;;  %v11602_v47 = vmov 10   ;;  %v763_v48 = vadd.f32 %v759_v38, %v738_v17 }
  0xb9   : > { %v740_v55 = vadd.f32 %v731_v7, %v705_v18  ;;  %v741_v43 = vadd.f32 %v733_v9, %v706_v54  ;;  %7483 = vset.pattern.permute.xlu1 %v11602_v47  ;;  %v764_v49 = vadd.f32 %v760_v45, %v739_v40  ;;  %v8366_v50 = vmul.f32 %v7923_v1, %v8355_v30 }
  0xba   : > { %v8370_v51 = vmul.f32 %v7926_v3, %v8355_v30  ;;  %2972 = vperm.xlu1 %7483, %v7766_v19   ;;  %v8374_v63 = vmul.f32 %v7923_v1, %v910_v46  ;;  %v8377_v0 = vmul.f32 %v7926_v3, %v910_v46  ;;  %v927_v33 = vadd.f32 %v923_v44, %v7886_v53  ;;  %v7263_v3 = vld [vmem:[%s11413_s1 + $0x9] ss:$4 sm:$0x3] }
  0xbb   : > { %v765_v13 = vadd.f32 %v759_v38, %v740_v55  ;;  %v766_v61 = vadd.f32 %v760_v45, %v741_v43  ;;  %v928_v16 = vadd.f32 %v924_v31, %v7886_v53  ;;  %v788_v37 = vmul.f32 %v7893_v56, %v771_v62 }
  0xbc   : > { %v789_v5 = vmul.f32 %v7901_v58, %v771_v62  ;;  %v953_v23 = vrot.slane %v8366_v50, 7  ;;  %v954_v19 = vrot.slane %v8370_v51, 7  ;;  %v809_v14 = vmul.f32 %v7904_v59, %v771_v62 }
  0xbd   : > { %v810_v1 = vmul.f32 %v7907_v60, %v771_v62  ;;  %v794_v46 = vadd.f32 %v790_v35, %v765_v13  ;;  %v795_v2 = vadd.f32 %v791_v42, %v766_v61  ;;  %v792_v34 = vadd.f32 %v788_v37, %v763_v48 }
  0xbe   : > { %v793_v41 = vadd.f32 %v789_v5, %v764_v49  ;;  %v11603_v56 = vrot.slane %v7775_v22, %v7821_v32  ;;  %v817_v58 = vrot.slane %v809_v14, 7  ;;  %v11604_v59 = vrot.slane %v7884_v52, %v7821_v32 }
  0xbf   : > { %v818_v7 = vrot.slane %v810_v1, 7  ;;  %v11605_v60 = vrot.slane %v7884_v52, %v7770_v21  ;;  %v929_v39 = vadd.f32 %v925_v36, %v7886_v53  ;;  %v930_v17 = vadd.f32 %v926_v4, %v7886_v53  ;;  %v8410_v36 = vpop.permute.xlu1 %995 }
  0xc0   : > { %3420 = vrot.lane.b32.xlu1 %v11603_v56, %s7602_s29  ;;  %v844_v9 = vmul.f32 %v11604_v59, %v771_v62  ;;  %v8403_v40 = vrot.slane %v7263_v3, %v7821_v32  ;;  %v8406_v22 = vrot.slane %v7263_v3, %v7770_v21  ;;  %v820_v35 = vsel %vm638_vm0, %v817_v58, %v819_v10 }
  0xc1   : > { %v845_v11 = vmul.f32 %v11605_v60, %v771_v62  ;;  %v822_v42 = vsel %vm638_vm0, %v818_v7, %v821_v8  ;;  %v827_v38 = vadd.f32 %v817_v58, %v792_v34  ;;  %v828_v45 = vadd.f32 %v818_v7, %v793_v41  ;;  %v8442_v41 = vpop.permute.xlu0 %1223 }
  0xc2   : > { %v829_v18 = vadd.f32 %v820_v35, %v794_v46  ;;  %v830_v52 = vadd.f32 %v822_v42, %v795_v2  ;;  %v848_v54 = vrot.slane %v844_v9, 6  ;;  %v11606_v4 = vrot.slane %v7785_v25, %v7821_v32 }
  0xc3   : > { %v849_v55 = vrot.slane %v845_v11, 6  ;;  %v955_v43 = vrot.slane %v8374_v63, 7  ;;  %v957_v44 = vrot.slane %v8377_v0, 7  ;;  %v963_v10 = vadd.f32 %v953_v23, %v927_v33  ;;  %v1000_v60 = vpop.permute.xlu1 %999 }
  0xc4   : > { %3452 = vrot.lane.b32.xlu1 %v11606_v4, %s7602_s29  ;;  %v964_v8 = vadd.f32 %v954_v19, %v928_v16  ;;  %v852_v31 = vadd.f32 %v848_v54, %v827_v38  ;;  %v854_v47 = vadd.f32 %v848_v54, %v829_v18  ;;  %v11607_v49 = vrot.slane %v7898_v57, %v7821_v32 }
  0xc5   : > { %v853_v62 = vadd.f32 %v849_v55, %v828_v45  ;;  %v855_v48 = vadd.f32 %v849_v55, %v830_v52  ;;  %v11608_v13 = vrot.slane %v7898_v57, %v7770_v21  ;;  %v1013_v63 = vmul.f32 %v7956_v20, %v8410_v36 }
  0xc6   : > { %v980_v25 = vmul.f32 %v11607_v49, %v8355_v30  ;;  %v1014_v0 = vmul.f32 %v7959_v24, %v8410_v36  ;;  %v856_v33 = vmul.f32 0.4, %v852_v31  ;;  %v858_v37 = vmul.f32 0.4, %v854_v47 }
  0xc7   : > { %v981_v61 = vmul.f32 %v11608_v13, %v8355_v30  ;;  %v857_v16 = vmul.f32 0.4, %v853_v62  ;;  %v1034_v5 = vmul.f32 %v7962_v26, %v8410_v36  ;;  %v11609_v14 = vrot.slane %v7795_v27, %v7821_v32 }
  0xc8   : > { %v859_v1 = vmul.f32 0.4, %v855_v48  ;;  %v984_v57 = vrot.slane %v980_v25, 6  ;;  %v1035_v3 = vmul.f32 %v7965_v28, %v8410_v36  ;;  %v860_v46 = vmax.f32 %v852_v31, %v856_v33 }
  0xc9   : > { %3505 = vrot.lane.b32.xlu1 %v11609_v14, %s7602_s29  ;;  %v985_v30 = vrot.slane %v981_v61, 6  ;;  %v861_v2 = vmax.f32 %v853_v62, %v857_v16  ;;  %v862_v34 = vmax.f32 %v854_v47, %v858_v37  ;;  %v1042_v56 = vrot.slane %v1034_v5, 7  ;;  %v1085_v62 = vpop.permute.xlu0 %1084  ;;  %v11616_v14 = vld [vmem:[#allocation14_spill] sm:$0xff] }
  0xca   : > { %v863_v58 = vmax.f32 %v855_v48, %v859_v1  ;;  %v988_v7 = vadd.f32 %v984_v57, %v963_v10  ;;  %v1043_v9 = vrot.slane %v1035_v3, 7  ;;  %v869_v11 = vrot.slane %v860_v46, 1 }
  0xcb   : > { %v989_v59 = vadd.f32 %v985_v30, %v964_v8  ;;  %v870_v27 = vrot.slane %v862_v34, 1  ;;  %v872_v35 = vrot.slane %v861_v2, 1  ;;  %v956_v42 = vsel %vm638_vm0, %v953_v23, %v955_v43 }
  0xcc   : > { %v11610_v38 = vrot.slane %v7804_v29, %v7821_v32  ;;  %v873_v45 = vrot.slane %v863_v58, 1  ;;  %v1017_v18 = vadd.f32 %v1013_v63, %v988_v7  ;;  %v958_v54 = vsel %vm638_vm0, %v954_v19, %v957_v44  ;;  %v1089_v63 = vpop.permute.xlu1 %1088  ;;  %v11618_v58 = vld [vmem:[#allocation16_spill] sm:$0xff] }
  0xcd   : > { %v1018_v52 = vadd.f32 %v1014_v0, %v989_v59  ;;  %v871_v55 = vsel %vm868_vm1, %v869_v11, %v870_v27  ;;  %881 = vst [vmem:[#allocation2 + $0xb0] sm:$0x1] %v870_v27  ;;  %v965_v4 = vadd.f32 %v956_v42, %v929_v39  ;;  %v966_v10 = vadd.f32 %v958_v54, %v930_v17  ;;  %v11619_v59 = vld [vmem:[#allocation18_spill] sm:$0xff] }
  0xce   : > { %3669 = vrot.lane.b32.xlu1 %v11610_v38, %s7603_s8  ;;  %v1015_v50 = vmul.f32 %v7956_v20, %v1000_v60  ;;  %v874_v23 = vsel %vm868_vm1, %v872_v35, %v873_v45  ;;  %879 = vst [vmem:[#allocation2 + $0x10] sm:$0xfe] %v871_v55  ;;  %882 = vst [vmem:[#allocation2 + $0xb8] sm:$0x1] %v873_v45  ;;  %v1052_v29 = vadd.f32 %v1042_v56, %v1017_v18 }
  0xcf   : > { %v1053_v43 = vadd.f32 %v1043_v9, %v1018_v52  ;;  %v1016_v8 = vmul.f32 %v7959_v24, %v1000_v60  ;;  %880 = vst [vmem:[#allocation2 + $0x18] sm:$0xfe] %v874_v23  ;;  %v990_v31 = vadd.f32 %v984_v57, %v965_v4  ;;  %v991_v51 = vadd.f32 %v985_v30, %v966_v10  ;;  %v11617_v57 = vld [vmem:[#allocation15_spill] sm:$0xff] }
  0xd0   : > { %v1036_v19 = vmul.f32 %v7962_v26, %v1000_v60  ;;  %v1037_v44 = vmul.f32 %v7965_v28, %v1000_v60  ;;  %v11611_v20 = vrot.slane %v8004_v15, %v7821_v32  ;;  %v11612_v39 = vrot.slane %v7953_v12, %v7821_v32  ;;  %v1219_v52 = vpop.permute.xlu1 %1218 }
  0xd1   : > { %v11613_v24 = vrot.slane %v7953_v12, %v7770_v21  ;;  %v11614_v26 = vrot.slane %v7936_v6, %v7821_v32  ;;  %v11615_v28 = vrot.slane %v7936_v6, %v7770_v21  ;;  %v1019_v15 = vadd.f32 %v1015_v50, %v990_v31 }
  0xd2   : > { %3730 = vrot.lane.b32.xlu1 %v11611_v20, %s7603_s8  ;;  %v1158_v17 = vmul.f32 %v11612_v39, %v1085_v62  ;;  %v1020_v25 = vadd.f32 %v1016_v8, %v991_v51  ;;  %v1044_v13 = vrot.slane %v1036_v19, 7  ;;  %v1046_v61 = vrot.slane %v1037_v44, 7  ;;  %v11620_v8 = vld [vmem:[#allocation9_spill] sm:$0xff]  ;;  %v11621_v51 = vld [vmem:[#allocation10_spill] sm:$0xff]  ;;  %v11622_v44 = vld [vmem:[#allocation12_spill] sm:$0xff] }
  0xd3   : > { %v1159_v47 = vmul.f32 %v11613_v24, %v1085_v62  ;;  %v1069_v48 = vmul.f32 %v11614_v26, %v8410_v36  ;;  %v1070_v49 = vmul.f32 %v11615_v28, %v8410_v36  ;;  %v1102_v1 = vmul.f32 %v11616_v14, %v1085_v62  ;;  %v11623_v20 = vld [vmem:[#allocation13_spill] sm:$0xff] }
  0xd4   : > { %v1162_v0 = vrot.slane %v1158_v17, 6  ;;  %v1045_v37 = vsel %vm638_vm0, %v1042_v56, %v1044_v13  ;;  %v1047_v5 = vsel %vm638_vm0, %v1043_v9, %v1046_v61  ;;  %v1103_v30 = vmul.f32 %v11617_v57, %v1085_v62  ;;  %v8489_v56 = vld [vmem:[%s11413_s1 + $0x11] ss:$4 sm:$0x3] }
  0xd5   : > { %v1163_v33 = vrot.slane %v1159_v47, 6  ;;  %v1073_v16 = vrot.slane %v1069_v48, 6  ;;  %v1074_v12 = vrot.slane %v1070_v49, 6  ;;  %v1054_v3 = vadd.f32 %v1045_v37, %v1019_v15  ;;  %v1538_v48 = vpop.permute.xlu0 %1537 }
  0xd6   : > { %v1055_v6 = vadd.f32 %v1047_v5, %v1020_v25  ;;  %v1104_v2 = vmul.f32 %v11616_v14, %v1089_v63  ;;  %v1105_v34 = vmul.f32 %v11617_v57, %v1089_v63  ;;  %v1123_v7 = vmul.f32 %v11618_v58, %v1085_v62 }
  0xd7   : > { %v1077_v36 = vadd.f32 %v1073_v16, %v1052_v29  ;;  %v1078_v46 = vadd.f32 %v1074_v12, %v1053_v43  ;;  %v1124_v60 = vmul.f32 %v11619_v59, %v1085_v62  ;;  %v1079_v9 = vadd.f32 %v1073_v16, %v1054_v3 }
  0xd8   : > { %v1080_v11 = vadd.f32 %v1074_v12, %v1055_v6  ;;  %v1125_v42 = vmul.f32 %v11618_v58, %v1089_v63  ;;  %v1126_v38 = vmul.f32 %v11619_v59, %v1089_v63  ;;  %v1131_v45 = vrot.slane %v1123_v7, 7  ;;  %v11625_v6 = vld [vmem:[#allocation20_spill] sm:$0xff] }
  0xd9   : > { %v1106_v27 = vadd.f32 %v1102_v1, %v1077_v36  ;;  %v1107_v35 = vadd.f32 %v1103_v30, %v1078_v46  ;;  %v1132_v18 = vrot.slane %v1124_v60, 7  ;;  %v1108_v54 = vadd.f32 %v1104_v2, %v1079_v9  ;;  %v11624_v30 = vld [vmem:[#allocation19_spill] sm:$0xff]  ;;  %v8523_v59 = vpop.permute.xlu0 %1398  ;;  %v8525_v60 = vpop.permute.xlu1 %1309 }
  0xda   : > { %v1109_v55 = vadd.f32 %v1105_v34, %v1080_v11  ;;  %v1133_v50 = vrot.slane %v1125_v42, 7  ;;  %v1135_v23 = vrot.slane %v1126_v38, 7  ;;  %v1237_v31 = vmul.f32 %v11620_v8, %v1219_v52 }
  0xdb   : > { %v1141_v29 = vadd.f32 %v1131_v45, %v1106_v27  ;;  %v1142_v43 = vadd.f32 %v1132_v18, %v1107_v35  ;;  %v1238_v19 = vmul.f32 %v11621_v51, %v1219_v52  ;;  %v8500_v62 = vmul.f32 %v11622_v44, %v1219_v52  ;;  %v11626_v27 = vld [vmem:[#allocation17_spill] sm:$0xff] }
  0xdc   : > { %v8503_v39 = vmul.f32 %v11623_v20, %v1219_v52  ;;  %v1134_v17 = vsel %vm638_vm0, %v1131_v45, %v1133_v50  ;;  %v1136_v24 = vsel %vm638_vm0, %v1132_v18, %v1135_v23  ;;  %v1239_v28 = vmul.f32 %v11620_v8, %v8442_v41 }
  0xdd   : > { %v1166_v47 = vadd.f32 %v1162_v0, %v1141_v29  ;;  %v1167_v26 = vadd.f32 %v1163_v33, %v1142_v43  ;;  %v1240_v49 = vmul.f32 %v11621_v51, %v8442_v41  ;;  %v1143_v15 = vadd.f32 %v1134_v17, %v1108_v54 }
  0xde   : > { %v1144_v25 = vadd.f32 %v1136_v24, %v1109_v55  ;;  %v1260_v13 = vmul.f32 %v11622_v44, %v8442_v41  ;;  %v1261_v61 = vmul.f32 %v11623_v20, %v8442_v41  ;;  %v1241_v5 = vadd.f32 %v1237_v31, %v7886_v53  ;;  %v11629_v31 = vld [vmem:[#allocation21_spill] sm:$0xff] }
  0xdf   : > { %v1170_v63 = vmul.f32 0.4, %v1166_v47  ;;  %v1171_v16 = vmul.f32 0.4, %v1167_v26  ;;  %v1168_v12 = vadd.f32 %v1162_v0, %v1143_v15  ;;  %v1242_v14 = vadd.f32 %v1238_v19, %v7886_v53  ;;  %v11630_v19 = vld [vmem:[#allocation22_spill] sm:$0xff] }
  0xe0   : > { %v1169_v37 = vadd.f32 %v1163_v33, %v1144_v25  ;;  %v1267_v1 = vrot.slane %v8500_v62, 7  ;;  %v1268_v57 = vrot.slane %v8503_v39, 7  ;;  %v1553_v3 = vmul.f32 %v11624_v30, %v1538_v48  ;;  %v11631_v62 = vld [vmem:[#allocation11_spill] sm:$0xff]  ;;  %v11634_v25 = vld [vmem:[#allocation29_spill] sm:$0xff] }
  0xe1   : > { %v1554_v36 = vmul.f32 %v11625_v6, %v1538_v48  ;;  %v1172_v46 = vmul.f32 0.4, %v1168_v12  ;;  %v1174_v34 = vmax.f32 %v1166_v47, %v1170_v63  ;;  %v1175_v41 = vmax.f32 %v1167_v26, %v1171_v16  ;;  %v1314_v63 = vpop.permute.xlu1 %1313  ;;  %v11636_v16 = vld [vmem:[#allocation31_spill] sm:$0xff] }
  0xe2   : > { %v1173_v2 = vmul.f32 0.4, %v1169_v37  ;;  %v1243_v58 = vadd.f32 %v1239_v28, %v7886_v53  ;;  %v1244_v0 = vadd.f32 %v1240_v49, %v7886_v53  ;;  %v1269_v33 = vrot.slane %v1260_v13, 7 }
  0xe3   : > { %v1271_v7 = vrot.slane %v1261_v61, 7  ;;  %v1176_v9 = vmax.f32 %v1168_v12, %v1172_v46  ;;  %v11627_v35 = vrot.slane %v11626_v27, %v7821_v32  ;;  %v11628_v38 = vrot.slane %v11626_v27, %v7770_v21  ;;  %v11635_v61 = vld [vmem:[#allocation30_spill] sm:$0xff] }
  0xe4   : > { %v1177_v11 = vmax.f32 %v1169_v37, %v1173_v2  ;;  %v1277_v18 = vadd.f32 %v1267_v1, %v1241_v5  ;;  %v1278_v54 = vadd.f32 %v1268_v57, %v1242_v14  ;;  %v8540_v55 = vadd.f32 %v1553_v3, %v7886_v53  ;;  %v11637_v37 = vld [vmem:[#allocation32_spill] sm:$0xff] }
  0xe5   : > { %v8531_v42 = vmul.f32 %v11627_v35, %v8523_v59  ;;  %v8537_v45 = vmul.f32 %v11628_v38, %v8523_v59  ;;  %v8543_v50 = vadd.f32 %v1554_v36, %v7886_v53  ;;  %v1183_v23 = vrot.slane %v1174_v34, 1 }
  0xe6   : > { %v1184_v29 = vrot.slane %v1176_v9, 1  ;;  %v1186_v43 = vrot.slane %v1175_v41, 1  ;;  %v1187_v8 = vrot.slane %v1177_v11, 1  ;;  %v8546_v51 = vmul.f32 %v11629_v31, %v1538_v48  ;;  %v3409_v41 = vld [vmem:[#allocation2 + $0xb8] sm:$0x3] }
  0xe7   : > { %v8549_v44 = vmul.f32 %v11630_v19, %v1538_v48  ;;  %v11632_v20 = vrot.slane %v11631_v62, %v7821_v32  ;;  %v11633_v17 = vrot.slane %v11631_v62, %v7770_v21  ;;  %v1476_v28 = vrot.slane %v8531_v42, 6  ;;  %v3408_v9 = vld [vmem:[#allocation2 + $0xb0] sm:$0x3]  ;;  %v1852_v62 = vpop.permute.xlu0 %1851 }
  0xe8   : > { %v1185_v47 = vsel %vm868_vm1, %v1183_v23, %v1184_v29  ;;  %v1188_v26 = vsel %vm868_vm1, %v1186_v43, %v1187_v8  ;;  %1195 = vst [vmem:[#allocation2 + $0xc0] sm:$0x1] %v1184_v29  ;;  %1196 = vst [vmem:[#allocation2 + $0xc8] sm:$0x1] %v1187_v8  ;;  %v1477_v49 = vrot.slane %v8537_v45, 6  ;;  %v1327_v13 = vmul.f32 %v11634_v25, %v8525_v60 }
  0xe9   : > { %v1294_v39 = vmul.f32 %v11632_v20, %v1219_v52  ;;  %v1295_v24 = vmul.f32 %v11633_v17, %v1219_v52  ;;  %1193 = vst [vmem:[#allocation2 + $0x20] sm:$0xfe] %v1185_v47  ;;  %1194 = vst [vmem:[#allocation2 + $0x28] sm:$0xfe] %v1188_v26  ;;  %v1328_v52 = vmul.f32 %v11635_v61, %v8525_v60  ;;  %v11641_v20 = vld [vmem:[#allocation25_spill] sm:$0xff]  ;;  %v11642_v47 = vld [vmem:[#allocation26_spill] sm:$0xff] }
  0xea   : > { %v1348_v12 = vmul.f32 %v11636_v16, %v8525_v60  ;;  %v1349_v5 = vmul.f32 %v11637_v37, %v8525_v60  ;;  %v1270_v14 = vsel %vm638_vm0, %v1267_v1, %v1269_v33  ;;  %v1272_v3 = vsel %vm638_vm0, %v1268_v57, %v1271_v7  ;;  %v11638_v33 = vld [vmem:[#allocation34_spill] sm:$0xff] }
  0xeb   : > { %v1298_v48 = vrot.slane %v1294_v39, 6  ;;  %v1299_v15 = vrot.slane %v1295_v24, 6  ;;  %v1279_v2 = vadd.f32 %v1270_v14, %v1243_v58  ;;  %v1280_v34 = vadd.f32 %v1272_v3, %v1244_v0  ;;  %v11639_v0 = vld [vmem:[#allocation35_spill] sm:$0xff]  ;;  %v1403_v14 = vpop.permute.xlu1 %1402 }
  0xec   : > { %v1356_v11 = vrot.slane %v1348_v12, 7  ;;  %v1357_v27 = vrot.slane %v1349_v5, 7  ;;  %v1329_v35 = vmul.f32 %v11634_v25, %v1314_v63  ;;  %v1330_v38 = vmul.f32 %v11635_v61, %v1314_v63 }
  0xed   : > { %v1302_v36 = vadd.f32 %v1298_v48, %v1277_v18  ;;  %v1303_v46 = vadd.f32 %v1299_v15, %v1278_v54  ;;  %v1304_v43 = vadd.f32 %v1298_v48, %v1279_v2  ;;  %v1305_v8 = vadd.f32 %v1299_v15, %v1280_v34  ;;  %v11640_v18 = vld [vmem:[#allocation24_spill] sm:$0xff]  ;;  %v11643_v48 = vld [vmem:[#allocation27_spill] sm:$0xff]  ;;  %v11648_v34 = vld [vmem:[#allocation37_spill] sm:$0xff] }
  0xee   : > { %v1350_v1 = vmul.f32 %v11636_v16, %v1314_v63  ;;  %v1351_v57 = vmul.f32 %v11637_v37, %v1314_v63  ;;  %v3547_v58 = vmul.f32 %v11638_v33, %v3409_v41  ;;  %v3546_v7 = vmul.f32 %v11639_v0, %v3408_v9  ;;  %v11644_v63 = vld [vmem:[#allocation23_spill] sm:$0xff] }
  0xef   : > { %v1331_v23 = vadd.f32 %v1327_v13, %v1302_v36  ;;  %v1332_v29 = vadd.f32 %v1328_v52, %v1303_v46  ;;  %v1867_v54 = vmul.f32 %v11640_v18, %v1852_v62  ;;  %v1868_v39 = vmul.f32 %v11641_v20, %v1852_v62  ;;  %v11647_v46 = vld [vmem:[#allocation36_spill] sm:$0xff] }
  0xf0   : > { %v1333_v17 = vadd.f32 %v1329_v35, %v1304_v43  ;;  %v1334_v24 = vadd.f32 %v1330_v38, %v1305_v8  ;;  %v8580_v26 = vmul.f32 %v11642_v47, %v1852_v62  ;;  %v8583_v15 = vmul.f32 %v11643_v48, %v1852_v62  ;;  %3558 = vrot.lane.b32.xlu0 %v3547_v58, %s7602_s29 }
  0xf1   : > { %v1358_v25 = vrot.slane %v1350_v1, 7  ;;  %v1360_v13 = vrot.slane %v1351_v57, 7  ;;  %3556 = vrot.lane.b32.xlu1 %v3546_v7, %s7602_s29  ;;  %v1366_v61 = vadd.f32 %v1356_v11, %v1331_v23  ;;  %v1367_v52 = vadd.f32 %v1357_v27, %v1332_v29 }
  0xf2   : > { %v11645_v16 = vrot.slane %v11644_v63, %v7821_v32  ;;  %v11646_v37 = vrot.slane %v11644_v63, %v7770_v21  ;;  %v1416_v2 = vmul.f32 %v11647_v46, %v8523_v59  ;;  %v1417_v41 = vmul.f32 %v11648_v34, %v8523_v59 }
  0xf3   : > { %v1359_v3 = vsel %vm638_vm0, %v1356_v11, %v1358_v25  ;;  %v1361_v36 = vsel %vm638_vm0, %v1357_v27, %v1360_v13  ;;  %v1418_v29 = vmul.f32 %v11647_v46, %v1403_v14  ;;  %v1419_v43 = vmul.f32 %v11648_v34, %v1403_v14  ;;  %v11650_v11 = vld [vmem:[#allocation40_spill] sm:$0xff]  ;;  %v8609_v13 = vpop.permute.xlu0 %1712  ;;  %v1533_v34 = vpop.permute.xlu1 %1532 }
  0xf4   : > { %v1383_v12 = vmul.f32 %v11645_v16, %v8525_v60  ;;  %v1384_v5 = vmul.f32 %v11646_v37, %v8525_v60  ;;  %v1368_v9 = vadd.f32 %v1359_v3, %v1333_v17  ;;  %v1369_v35 = vadd.f32 %v1361_v36, %v1334_v24  ;;  %v11649_v60 = vld [vmem:[#allocation39_spill] sm:$0xff] }
  0xf5   : > { %v1437_v8 = vmul.f32 %v11649_v60, %v8523_v59  ;;  %v1438_v27 = vmul.f32 %v11650_v11, %v8523_v59  ;;  %v1439_v7 = vmul.f32 %v11649_v60, %v1403_v14  ;;  %v1440_v17 = vmul.f32 %v11650_v11, %v1403_v14 }
  0xf6   : > { %v1387_v38 = vrot.slane %v1383_v12, 6  ;;  %v1388_v23 = vrot.slane %v1384_v5, 6  ;;  %v1583_v5 = vrot.slane %v8546_v51, 7  ;;  %v1585_v59 = vrot.slane %v8549_v44, 7 }
  0xf7   : > { %v1445_v24 = vrot.slane %v1437_v8, 7  ;;  %v1446_v25 = vrot.slane %v1438_v27, 7  ;;  %v8614_v3 = vadd.f32 %v1867_v54, %v7886_v53  ;;  %v8617_v36 = vadd.f32 %v1868_v39, %v7886_v53 }
  0xf8   : > { %v1391_v62 = vadd.f32 %v1387_v38, %v1366_v61  ;;  %v1392_v1 = vadd.f32 %v1388_v23, %v1367_v52  ;;  %v1393_v57 = vadd.f32 %v1387_v38, %v1368_v9  ;;  %v1394_v58 = vadd.f32 %v1388_v23, %v1369_v35 }
  0xf9   : > { %v1447_v61 = vrot.slane %v1439_v7, 7  ;;  %v1449_v52 = vrot.slane %v1440_v17, 7  ;;  %v1551_v27 = vmul.f32 %v11624_v30, %v1533_v34  ;;  %v2166_v17 = vpop.permute.xlu0 %2165 }
  0xfa   : > { %v1420_v63 = vadd.f32 %v1416_v2, %v1391_v62  ;;  %v1421_v16 = vadd.f32 %v1417_v41, %v1392_v1  ;;  %v1422_v12 = vadd.f32 %v1418_v29, %v1393_v57  ;;  %v1423_v37 = vadd.f32 %v1419_v43, %v1394_v58  ;;  %v11651_v29 = vld [vmem:[#allocation28_spill] sm:$0xff] }
  0xfb   : > { %v1448_v9 = vsel %vm638_vm0, %v1445_v24, %v1447_v61  ;;  %v1450_v35 = vsel %vm638_vm0, %v1446_v25, %v1449_v52  ;;  %v11652_v43 = vrot.slane %v11651_v29, %v7821_v32  ;;  %v11653_v8 = vrot.slane %v11651_v29, %v7770_v21 }
  0xfc   : > { %v1455_v14 = vadd.f32 %v1445_v24, %v1420_v63  ;;  %v1456_v46 = vadd.f32 %v1446_v25, %v1421_v16  ;;  %v1457_v38 = vadd.f32 %v1448_v9, %v1422_v12  ;;  %v1458_v23 = vadd.f32 %v1450_v35, %v1423_v37  ;;  %v11654_v24 = vld [vmem:[#allocation41_spill] sm:$0xff]  ;;  %v11655_v63 = vld [vmem:[#allocation42_spill] sm:$0xff]  ;;  %v11656_v9 = vld [vmem:[#allocation43_spill] sm:$0xff] }
  0xfd   : > { %v8631_v60 = vmul.f32 %v11652_v43, %v8609_v13  ;;  %v8637_v11 = vmul.f32 %v11653_v8, %v8609_v13  ;;  %v1552_v62 = vmul.f32 %v11625_v6, %v1533_v34  ;;  %v2181_v25 = vmul.f32 %v11654_v24, %v2166_v17 }
  0xfe   : > { %v1480_v54 = vadd.f32 %v1476_v28, %v1455_v14  ;;  %v1481_v39 = vadd.f32 %v1477_v49, %v1456_v46  ;;  %v1482_v1 = vadd.f32 %v1476_v28, %v1457_v38  ;;  %v1483_v57 = vadd.f32 %v1477_v49, %v1458_v23  ;;  %v11657_v38 = vld [vmem:[#allocation44_spill] sm:$0xff] }
  0xff   : > { %v2182_v16 = vmul.f32 %v11655_v63, %v2166_v17  ;;  %v1572_v12 = vmul.f32 %v11629_v31, %v1533_v34  ;;  %v1573_v37 = vmul.f32 %v11630_v19, %v1533_v34  ;;  %v1555_v42 = vadd.f32 %v1551_v27, %v7886_v53  ;;  %v8657_v31 = vpop.permute.xlu1 %1623 }
 0x100   : > { %v1484_v58 = vmul.f32 0.4, %v1480_v54  ;;  %v1485_v7 = vmul.f32 0.4, %v1481_v39  ;;  %v1486_v30 = vmul.f32 0.4, %v1482_v1  ;;  %v1556_v45 = vadd.f32 %v1552_v62, %v7886_v53 }
 0x101   : > { %v1487_v61 = vmul.f32 0.4, %v1483_v57  ;;  %v1581_v28 = vrot.slane %v1572_v12, 7  ;;  %v1582_v49 = vrot.slane %v1573_v37, 7  ;;  %v8652_v35 = vmul.f32 %v11656_v9, %v2166_v17 }
 0x102   : > { %v1488_v6 = vmax.f32 %v1480_v54, %v1484_v58  ;;  %v1489_v52 = vmax.f32 %v1481_v39, %v1485_v7  ;;  %v1490_v14 = vmax.f32 %v1482_v1, %v1486_v30  ;;  %v8655_v23 = vmul.f32 %v11657_v38, %v2166_v17  ;;  %v8667_v1 = vpop.permute.xlu0 %2026  ;;  %v11658_v7 = vld [vmem:[#allocation33_spill] sm:$0xff] }
 0x103   : > { %v1491_v46 = vmax.f32 %v1483_v57, %v1487_v61  ;;  %v8662_v39 = vadd.f32 %v2181_v25, %v7886_v53  ;;  %v8665_v29 = vadd.f32 %v2182_v16, %v7886_v53  ;;  %v1591_v57 = vadd.f32 %v1581_v28, %v1555_v42 }
 0x104   : > { %v1497_v43 = vrot.slane %v1488_v6, 1  ;;  %v1498_v8 = vrot.slane %v1490_v14, 1  ;;  %v1500_v27 = vrot.slane %v1489_v52, 1  ;;  %v1592_v58 = vadd.f32 %v1582_v49, %v1556_v45  ;;  %v11661_v52 = vld [vmem:[#allocation38_spill] sm:$0xff] }
 0x105   : > { %v1501_v62 = vrot.slane %v1491_v46, 1  ;;  %v11659_v17 = vrot.slane %v11658_v7, %v7821_v32  ;;  %v11660_v37 = vrot.slane %v11658_v7, %v7770_v21  ;;  %v11662_v42 = vrot.slane %v11661_v52, %v7821_v32 }
 0x106   : > { %v1499_v30 = vsel %vm868_vm1, %v1497_v43, %v1498_v8  ;;  %1509 = vst [vmem:[#allocation2 + $0xd0] sm:$0x1] %v1498_v8  ;;  %v11664_v8 = vld [vmem:[#allocation52_spill] sm:$0xff] }
 0x107   : > { %v1608_v12 = vmul.f32 %v11659_v17, %v1533_v34  ;;  %v1609_v25 = vmul.f32 %v11660_v37, %v1533_v34  ;;  %v1502_v16 = vsel %vm868_vm1, %v1500_v27, %v1501_v62  ;;  %1510 = vst [vmem:[#allocation2 + $0xd8] sm:$0x1] %v1501_v62  ;;  %1507 = vst [vmem:[#allocation2 + $0x30] sm:$0xfe] %v1499_v30  ;;  %v11665_v62 = vld [vmem:[#allocation53_spill] sm:$0xff]  ;;  %v11666_v17 = vld [vmem:[#allocation54_spill] sm:$0xff] }
 0x108   : > { %1508 = vst [vmem:[#allocation2 + $0x38] sm:$0xfe] %v1502_v16  ;;  %v8683_v45 = vmul.f32 %v11662_v42, %v8667_v1  ;;  %v11663_v34 = vrot.slane %v11661_v52, %v7770_v21  ;;  %v1641_v27 = vmul.f32 %v11664_v8, %v8657_v31  ;;  %v1642_v7 = vmul.f32 %v11665_v62, %v8657_v31  ;;  %v11667_v30 = vld [vmem:[#allocation55_spill] sm:$0xff]  ;;  %v1628_v42 = vpop.permute.xlu1 %1627  ;;  %v2480_v52 = vpop.permute.xlu0 %2479 }
 0x109   : > { %v1612_v46 = vrot.slane %v1608_v12, 6  ;;  %v1613_v43 = vrot.slane %v1609_v25, 6  ;;  %v1662_v37 = vmul.f32 %v11666_v17, %v8657_v31  ;;  %v1663_v16 = vmul.f32 %v11667_v30, %v8657_v31 }
 0x10a   : > { %v8689_v14 = vmul.f32 %v11663_v34, %v8667_v1  ;;  %v1584_v12 = vsel %vm638_vm0, %v1581_v28, %v1583_v5  ;;  %v1586_v25 = vsel %vm638_vm0, %v1582_v49, %v1585_v59  ;;  %v1664_v5 = vmul.f32 %v11666_v17, %v1628_v42  ;;  %v11668_v49 = vld [vmem:[#allocation46_spill] sm:$0xff] }
 0x10b   : > { %v1616_v6 = vadd.f32 %v1612_v46, %v1591_v57  ;;  %v1617_v61 = vadd.f32 %v1613_v43, %v1592_v58  ;;  %v1670_v34 = vrot.slane %v1662_v37, 7  ;;  %v1671_v10 = vrot.slane %v1663_v16, 7  ;;  %v11669_v37 = vld [vmem:[#allocation47_spill] sm:$0xff] }
 0x10c   : > { %v1593_v4 = vadd.f32 %v1584_v12, %v8540_v55  ;;  %v1594_v41 = vadd.f32 %v1586_v25, %v8543_v50  ;;  %v1643_v57 = vmul.f32 %v11664_v8, %v1628_v42  ;;  %v1644_v58 = vmul.f32 %v11665_v62, %v1628_v42  ;;  %v8723_v16 = vpop.permute.xlu0 %2654 }
 0x10d   : > { %v1645_v2 = vadd.f32 %v1641_v27, %v1616_v6  ;;  %v1646_v54 = vadd.f32 %v1642_v7, %v1617_v61  ;;  %v1665_v44 = vmul.f32 %v11667_v30, %v1628_v42  ;;  %v2495_v55 = vmul.f32 %v11668_v49, %v2480_v52  ;;  %v11670_v7 = vld [vmem:[#allocation50_spill] sm:$0xff]  ;;  %11672 = vst [vmem:[#allocation14_spill] sm:$0xff] %v8723_v16  ;;  %v11673_v42 = vld [vmem:[#allocation45_spill] sm:$0xff] }
 0x10e   : > { %v1618_v51 = vadd.f32 %v1612_v46, %v1593_v4  ;;  %v1619_v19 = vadd.f32 %v1613_v43, %v1594_v41  ;;  %v2496_v50 = vmul.f32 %v11669_v37, %v2480_v52  ;;  %v1672_v27 = vrot.slane %v1664_v5, 7  ;;  %v11671_v4 = vld [vmem:[#allocation51_spill] sm:$0xff] }
 0x10f   : > { %v1674_v8 = vrot.slane %v1665_v44, 7  ;;  %v8716_v62 = vmul.f32 %v11670_v7, %v2480_v52  ;;  %v8719_v41 = vmul.f32 %v11671_v4, %v2480_v52  ;;  %v1680_v46 = vadd.f32 %v1670_v34, %v1645_v2  ;;  %v1717_v52 = vpop.permute.xlu1 %1716 }
 0x110   : > { %v1647_v6 = vadd.f32 %v1643_v57, %v1618_v51  ;;  %v1648_v61 = vadd.f32 %v1644_v58, %v1619_v19  ;;  %v1681_v43 = vadd.f32 %v1671_v10, %v1646_v54  ;;  %v1673_v17 = vsel %vm638_vm0, %v1670_v34, %v1672_v27  ;;  %v11676_v54 = vld [vmem:[#allocation48_spill] sm:$0xff] }
 0x111   : > { %v1675_v30 = vsel %vm638_vm0, %v1671_v10, %v1674_v8  ;;  %v11674_v19 = vrot.slane %v11673_v42, %v7821_v32  ;;  %v11675_v25 = vrot.slane %v11673_v42, %v7770_v21  ;;  %v11677_v34 = vrot.slane %v11676_v54, %v7821_v32  ;;  %v11679_v8 = vld [vmem:[#allocation57_spill] sm:$0xff]  ;;  %v11681_v42 = vld [vmem:[#allocation59_spill] sm:$0xff] }
 0x112   : > { %v1682_v58 = vadd.f32 %v1673_v17, %v1647_v6  ;;  %v1683_v2 = vadd.f32 %v1675_v30, %v1648_v61  ;;  %v11678_v51 = vrot.slane %v11676_v54, %v7770_v21  ;;  %v11680_v6 = vld [vmem:[#allocation58_spill] sm:$0xff]  ;;  %v1732_v17 = vmul.f32 %v11679_v8, %v1717_v52 }
 0x113   : > { %v1697_v12 = vmul.f32 %v11674_v19, %v8657_v31  ;;  %v1698_v57 = vmul.f32 %v11675_v25, %v8657_v31  ;;  %v8737_v10 = vmul.f32 %v11677_v34, %v8723_v16  ;;  %v1730_v31 = vmul.f32 %v11679_v8, %v8609_v13  ;;  %v11682_v25 = vld [vmem:[#allocation60_spill] sm:$0xff] }
 0x114   : > { %v8743_v5 = vmul.f32 %v11678_v51, %v8723_v16  ;;  %v1731_v61 = vmul.f32 %v11680_v6, %v8609_v13  ;;  %v1733_v30 = vmul.f32 %v11680_v6, %v1717_v52  ;;  %v1751_v19 = vmul.f32 %v11681_v42, %v8609_v13  ;;  %v8757_v16 = vpop.permute.xlu0 %2340 }
 0x115   : > { %v1701_v44 = vrot.slane %v1697_v12, 6  ;;  %v1702_v27 = vrot.slane %v1698_v57, 6  ;;  %v1752_v54 = vmul.f32 %v11682_v25, %v8609_v13  ;;  %v1753_v28 = vmul.f32 %v11681_v42, %v1717_v52 }
 0x116   : > { %v1754_v59 = vmul.f32 %v11682_v25, %v1717_v52  ;;  %v1759_v33 = vrot.slane %v1751_v19, 7  ;;  %v8760_v37 = vadd.f32 %v2495_v55, %v7886_v53  ;;  %v8763_v13 = vadd.f32 %v2496_v50, %v7886_v53  ;;  %v11685_v25 = vld [vmem:[#allocation49_spill] sm:$0xff] }
 0x117   : > { %v1705_v34 = vadd.f32 %v1701_v44, %v1680_v46  ;;  %v1706_v51 = vadd.f32 %v1702_v27, %v1681_v43  ;;  %v1707_v12 = vadd.f32 %v1701_v44, %v1682_v58  ;;  %v1708_v57 = vadd.f32 %v1702_v27, %v1683_v2  ;;  %v1847_v58 = vpop.permute.xlu1 %1846 }
 0x118   : > { %v1760_v0 = vrot.slane %v1752_v54, 7  ;;  %v1761_v46 = vrot.slane %v1753_v28, 7  ;;  %v1763_v43 = vrot.slane %v1754_v59, 7  ;;  %v11683_v28 = vrot.slane %v8631_v60, 6 }
 0x119   : > { %v1734_v8 = vadd.f32 %v1730_v31, %v1705_v34  ;;  %v1735_v6 = vadd.f32 %v1731_v61, %v1706_v51  ;;  %v1736_v4 = vadd.f32 %v1732_v17, %v1707_v12  ;;  %v1737_v7 = vadd.f32 %v1733_v30, %v1708_v57 }
 0x11a   : > { %v1762_v17 = vsel %vm638_vm0, %v1759_v33, %v1761_v46  ;;  %v1764_v55 = vsel %vm638_vm0, %v1760_v0, %v1763_v43  ;;  %v11684_v42 = vrot.slane %v8637_v11, 6  ;;  %v11686_v54 = vrot.slane %v11685_v25, %v7821_v32  ;;  %v2794_v43 = vpop.permute.xlu0 %2793 }
 0x11b   : > { %v1769_v44 = vadd.f32 %v1759_v33, %v1734_v8  ;;  %v1770_v27 = vadd.f32 %v1760_v0, %v1735_v6  ;;  %v1771_v30 = vadd.f32 %v1762_v17, %v1736_v4  ;;  %v1772_v50 = vadd.f32 %v1764_v55, %v1737_v7  ;;  %v11691_v17 = vld [vmem:[#allocation63_spill] sm:$0xff] }
 0x11c   : > { %v8779_v34 = vmul.f32 %v11686_v54, %v8757_v16  ;;  %v11687_v33 = vrot.slane %v11685_v25, %v7770_v21  ;;  %v1865_v0 = vmul.f32 %v11640_v18, %v1847_v58  ;;  %v1866_v7 = vmul.f32 %v11641_v20, %v1847_v58  ;;  %v8797_v18 = vpop.permute.xlu1 %1937 }
 0x11d   : > { %v1794_v59 = vadd.f32 %v11683_v28, %v1769_v44  ;;  %v1795_v19 = vadd.f32 %v11684_v42, %v1770_v27  ;;  %v11688_v4 = vmov %v11683_v28  ;;  %v11689_v57 = vmov %v11684_v42  ;;  %v11690_v44 = vld [vmem:[#allocation62_spill] sm:$0xff] }
 0x11e   : > { %v8785_v51 = vmul.f32 %v11687_v33, %v8757_v16  ;;  %v1796_v12 = vadd.f32 %v11688_v4, %v1771_v30  ;;  %v1797_v8 = vadd.f32 %v11689_v57, %v1772_v50  ;;  %v2809_v27 = vmul.f32 %v11690_v44, %v2794_v43 }
 0x11f   : > { %v1798_v6 = vmul.f32 0.4, %v1794_v59  ;;  %v1799_v46 = vmul.f32 0.4, %v1795_v19  ;;  %v2810_v55 = vmul.f32 %v11691_v17, %v2794_v43  ;;  %v1886_v28 = vmul.f32 %v11642_v47, %v1847_v58 }
 0x120   : > { %v1887_v42 = vmul.f32 %v11643_v48, %v1847_v58  ;;  %v1800_v20 = vmul.f32 0.4, %v1796_v12  ;;  %v1801_v25 = vmul.f32 0.4, %v1797_v8  ;;  %v1869_v11 = vadd.f32 %v1865_v0, %v7886_v53  ;;  %v11695_v0 = vld [vmem:[#allocation65_spill] sm:$0xff] }
 0x121   : > { %v1802_v60 = vmax.f32 %v1794_v59, %v1798_v6  ;;  %v1803_v30 = vmax.f32 %v1795_v19, %v1799_v46  ;;  %v1870_v50 = vadd.f32 %v1866_v7, %v7886_v53  ;;  %v1895_v54 = vrot.slane %v1886_v28, 7  ;;  %v11694_v59 = vld [vmem:[#allocation64_spill] sm:$0xff] }
 0x122   : > { %v1896_v33 = vrot.slane %v1887_v42, 7  ;;  %v1804_v61 = vmax.f32 %v1796_v12, %v1800_v20  ;;  %v1805_v47 = vmax.f32 %v1797_v8, %v1801_v25  ;;  %v8804_v48 = vadd.f32 %v2809_v27, %v7886_v53  ;;  %v11696_v12 = vld [vmem:[#allocation56_spill] sm:$0xff]  ;;  %v1942_v25 = vpop.permute.xlu1 %1941 }
 0x123   : > { %v8807_v31 = vadd.f32 %v2810_v55, %v7886_v53  ;;  %v8810_v19 = vmul.f32 %v11694_v59, %v2794_v43  ;;  %v8813_v6 = vmul.f32 %v11695_v0, %v2794_v43  ;;  %v1811_v7 = vrot.slane %v1802_v60, 1 }
 0x124   : > { %11692 = vst [vmem:[#allocation15_spill] sm:$0xff] %v8804_v48  ;;  %v1812_v46 = vrot.slane %v1804_v61, 1  ;;  %v1814_v28 = vrot.slane %v1803_v30, 1  ;;  %v1815_v42 = vrot.slane %v1805_v47, 1  ;;  %v1905_v52 = vadd.f32 %v1895_v54, %v1869_v11  ;;  %v11699_v61 = vld [vmem:[#allocation66_spill] sm:$0xff]  ;;  %v11700_v30 = vld [vmem:[#allocation67_spill] sm:$0xff] }
 0x125   : > { %11693 = vst [vmem:[#allocation16_spill] sm:$0xff] %v8807_v31  ;;  %v1906_v2 = vadd.f32 %v1896_v33, %v1870_v50  ;;  %v11697_v8 = vrot.slane %v11696_v12, %v7821_v32  ;;  %v11698_v55 = vrot.slane %v11696_v12, %v7770_v21  ;;  %v1955_v60 = vmul.f32 %v11699_v61, %v8797_v18 }
 0x126   : > { %v1813_v57 = vsel %vm868_vm1, %v1811_v7, %v1812_v46  ;;  %v1816_v43 = vsel %vm868_vm1, %v1814_v28, %v1815_v42  ;;  %1823 = vst [vmem:[#allocation2 + $0xe0] sm:$0x1] %v1812_v46  ;;  %1824 = vst [vmem:[#allocation2 + $0xe8] sm:$0x1] %v1815_v42  ;;  %v1956_v11 = vmul.f32 %v11700_v30, %v8797_v18  ;;  %v11701_v28 = vrot.slane %v8580_v26, 7 }
 0x127   : > { %v1922_v27 = vmul.f32 %v11697_v8, %v1847_v58  ;;  %v1923_v20 = vmul.f32 %v11698_v55, %v1847_v58  ;;  %1821 = vst [vmem:[#allocation2 + $0x40] sm:$0xfe] %v1813_v57  ;;  %1822 = vst [vmem:[#allocation2 + $0x48] sm:$0xfe] %v1816_v43  ;;  %v1976_v58 = vmul.f32 %v8403_v40, %v8797_v18  ;;  %v11702_v42 = vrot.slane %v8583_v15, 7 }
 0x128   : > { %v1977_v7 = vmul.f32 %v8406_v22, %v8797_v18  ;;  %v1898_v46 = vsel %vm638_vm0, %v1895_v54, %v11701_v28  ;;  %v1957_v8 = vmul.f32 %v11699_v61, %v1942_v25  ;;  %v1958_v57 = vmul.f32 %v11700_v30, %v1942_v25 }
 0x129   : > { %v1926_v50 = vrot.slane %v1922_v27, 6  ;;  %v1927_v47 = vrot.slane %v1923_v20, 6  ;;  %v1900_v12 = vsel %vm638_vm0, %v1896_v33, %v11702_v42  ;;  %v1984_v20 = vrot.slane %v1976_v58, 7  ;;  %v8845_v42 = vpop.permute.xlu0 %2968 }
 0x12a   : > { %v1985_v43 = vrot.slane %v1977_v7, 7  ;;  %v1907_v4 = vadd.f32 %v1898_v46, %v8614_v3  ;;  %v1908_v31 = vadd.f32 %v1900_v12, %v8617_v36  ;;  %v1978_v26 = vmul.f32 %v8403_v40, %v1942_v25  ;;  %11703 = vst [vmem:[#allocation18_spill] sm:$0xff] %v8845_v42  ;;  %v7265_v3 = vld [vmem:[%s11413_s1 + $0x2] ss:$4 sm:$0x3] }
 0x12b   : > { %v1930_v27 = vadd.f32 %v1926_v50, %v1905_v52  ;;  %v1931_v55 = vadd.f32 %v1927_v47, %v1906_v2  ;;  %v1979_v54 = vmul.f32 %v8406_v22, %v1942_v25  ;;  %v11704_v40 = vld [vmem:[#allocation61_spill] sm:$0xff] }
 0x12c   : > { %v1932_v52 = vadd.f32 %v1926_v50, %v1907_v4  ;;  %v1933_v2 = vadd.f32 %v1927_v47, %v1908_v31  ;;  %v1986_v30 = vrot.slane %v1978_v26, 7  ;;  %v11705_v22 = vrot.slane %v11704_v40, %v7821_v32  ;;  %v2031_v50 = vpop.permute.xlu1 %2030 }
 0x12d   : > { %v1959_v28 = vadd.f32 %v1955_v60, %v1930_v27  ;;  %v1960_v61 = vadd.f32 %v1956_v11, %v1931_v55  ;;  %v1988_v58 = vrot.slane %v1979_v54, 7  ;;  %v11706_v25 = vrot.slane %v11704_v40, %v7770_v21  ;;  %v7266_v11 = vld [vmem:[%s11413_s1 + $0xa] ss:$4 sm:$0x3] }
 0x12e   : > { %v8854_v36 = vmul.f32 %v11705_v22, %v8845_v42  ;;  %v1961_v47 = vadd.f32 %v1957_v8, %v1932_v52  ;;  %v1962_v7 = vadd.f32 %v1958_v57, %v1933_v2  ;;  %v1987_v46 = vsel %vm638_vm0, %v1984_v20, %v1986_v30 }
 0x12f   : > { %v8860_v60 = vmul.f32 %v11706_v25, %v8845_v42  ;;  %v1994_v4 = vadd.f32 %v1984_v20, %v1959_v28  ;;  %v1995_v31 = vadd.f32 %v1985_v43, %v1960_v61  ;;  %v1989_v12 = vsel %vm638_vm0, %v1985_v43, %v1988_v58 }
 0x130   : > { %v11707_v27 = vrot.slane %v8489_v56, %v7821_v32  ;;  %v11708_v26 = vrot.slane %v8489_v56, %v7770_v21  ;;  %v2037_v28 = vrot.slane %v7265_v3, %v7821_v32  ;;  %v2041_v61 = vrot.slane %v7265_v3, %v7770_v21 }
 0x131   : > { %v1996_v8 = vadd.f32 %v1987_v46, %v1961_v47  ;;  %v1997_v57 = vadd.f32 %v1989_v12, %v1962_v7  ;;  %v2058_v20 = vrot.slane %v7266_v11, %v7821_v32  ;;  %v2062_v43 = vrot.slane %v7266_v11, %v7770_v21  ;;  %v2161_v46 = vpop.permute.xlu1 %2160 }
 0x132   : > { %v2011_v55 = vmul.f32 %v11707_v27, %v8797_v18  ;;  %v2012_v54 = vmul.f32 %v11708_v26, %v8797_v18  ;;  %v2044_v30 = vmul.f32 %v2037_v28, %v8667_v1  ;;  %v2045_v58 = vmul.f32 %v2041_v61, %v8667_v1 }
 0x133   : > { %v2046_v40 = vmul.f32 %v2037_v28, %v2031_v50  ;;  %v2047_v22 = vmul.f32 %v2041_v61, %v2031_v50  ;;  %v2065_v56 = vmul.f32 %v2058_v20, %v8667_v1  ;;  %v2066_v18 = vmul.f32 %v2062_v43, %v8667_v1 }
 0x134   : > { %v2015_v52 = vrot.slane %v2011_v55, 6  ;;  %v2016_v2 = vrot.slane %v2012_v54, 6  ;;  %v2067_v12 = vmul.f32 %v2058_v20, %v2031_v50  ;;  %v2068_v27 = vmul.f32 %v2062_v43, %v2031_v50  ;;  %v7269_v50 = vld [vmem:[%s11413_s1 + $0x10] ss:$4 sm:$0x3] }
 0x135   : > { %v2073_v11 = vrot.slane %v2065_v56, 7  ;;  %v2074_v55 = vrot.slane %v2066_v18, 7  ;;  %v3046_v28 = vrot.slane %v8854_v36, 6  ;;  %v2179_v48 = vmul.f32 %v11654_v24, %v2161_v46  ;;  %v9117_v36 = vld [vmem:[#allocation2 + $0xb0] sm:$0x3] }
 0x136   : > { %v2019_v25 = vadd.f32 %v2015_v52, %v1994_v4  ;;  %v2020_v3 = vadd.f32 %v2016_v2, %v1995_v31  ;;  %v2021_v47 = vadd.f32 %v2015_v52, %v1996_v8  ;;  %v2022_v7 = vadd.f32 %v2016_v2, %v1997_v57 }
 0x137   : > { %v2075_v61 = vrot.slane %v2067_v12, 7  ;;  %v2077_v42 = vrot.slane %v2068_v27, 7  ;;  %v2180_v31 = vmul.f32 %v11655_v63, %v2161_v46  ;;  %v2200_v8 = vmul.f32 %v11656_v9, %v2161_v46 }
 0x138   : > { %v2048_v26 = vadd.f32 %v2044_v30, %v2019_v25  ;;  %v2049_v54 = vadd.f32 %v2045_v58, %v2020_v3  ;;  %v2050_v33 = vadd.f32 %v2046_v40, %v2021_v47  ;;  %v2051_v15 = vadd.f32 %v2047_v22, %v2022_v7  ;;  %v8898_v40 = vpop.permute.xlu1 %2251 }
 0x139   : > { %v3047_v57 = vrot.slane %v8860_v60, 6  ;;  %v2076_v20 = vsel %vm638_vm0, %v2073_v11, %v2075_v61  ;;  %v2078_v43 = vsel %vm638_vm0, %v2074_v55, %v2077_v42  ;;  %v2183_v52 = vadd.f32 %v2179_v48, %v7886_v53  ;;  %v7270_v48 = vld [vmem:[%s11413_s1 + $0x1] ss:$4 sm:$0x3] }
 0x13a   : > { %v2083_v1 = vadd.f32 %v2073_v11, %v2048_v26  ;;  %v2084_v4 = vadd.f32 %v2074_v55, %v2049_v54  ;;  %v2085_v2 = vadd.f32 %v2076_v20, %v2050_v33  ;;  %v2086_v24 = vadd.f32 %v2078_v43, %v2051_v15 }
 0x13b   : > { %v11709_v30 = vrot.slane %v8683_v45, 6  ;;  %v11710_v63 = vrot.slane %v8689_v14, 6  ;;  %v2184_v22 = vadd.f32 %v2180_v31, %v7886_v53  ;;  %v2201_v56 = vmul.f32 %v11657_v38, %v2161_v46  ;;  %v7271_v14 = vld [vmem:[%s11413_s1 + $0x9] ss:$4 sm:$0x3] }
 0x13c   : > { %v2209_v18 = vrot.slane %v2200_v8, 7  ;;  %v2229_v25 = vrot.slane %v7269_v50, %v7821_v32  ;;  %v2233_v11 = vrot.slane %v7269_v50, %v7770_v21  ;;  %v2262_v45 = vrot.slane %v7270_v48, %v7821_v32 }
 0x13d   : > { %v2108_v58 = vadd.f32 %v11709_v30, %v2083_v1  ;;  %v2109_v9 = vadd.f32 %v11710_v63, %v2084_v4  ;;  %v11711_v15 = vmov %v11709_v30  ;;  %v11712_v42 = vmov %v11710_v63 }
 0x13e   : > { %v2110_v33 = vadd.f32 %v11711_v15, %v2085_v2  ;;  %v2111_v3 = vadd.f32 %v11712_v42, %v2086_v24  ;;  %v2210_v12 = vrot.slane %v2201_v56, 7  ;;  %v2219_v27 = vadd.f32 %v2209_v18, %v2183_v52  ;;  %v2256_v2 = vpop.permute.xlu1 %2255 }
 0x13f   : > { %v2112_v47 = vmul.f32 0.4, %v2108_v58  ;;  %v2113_v7 = vmul.f32 0.4, %v2109_v9  ;;  %v2236_v38 = vmul.f32 %v2229_v25, %v2161_v46  ;;  %v2237_v4 = vmul.f32 %v2233_v11, %v2161_v46 }
 0x140   : > { %v2114_v55 = vmul.f32 0.4, %v2110_v33  ;;  %v2115_v26 = vmul.f32 0.4, %v2111_v3  ;;  %v2220_v1 = vadd.f32 %v2210_v12, %v2184_v22  ;;  %v2266_v30 = vrot.slane %v7270_v48, %v7770_v21 }
 0x141   : > { %v2116_v54 = vmax.f32 %v2108_v58, %v2112_v47  ;;  %v2117_v61 = vmax.f32 %v2109_v9, %v2113_v7  ;;  %v2240_v31 = vrot.slane %v2236_v38, 6  ;;  %v2241_v50 = vrot.slane %v2237_v4, 6 }
 0x142   : > { %v2118_v8 = vmax.f32 %v2110_v33, %v2114_v55  ;;  %v2119_v20 = vmax.f32 %v2111_v3, %v2115_v26  ;;  %v2269_v58 = vmul.f32 %v2262_v45, %v8898_v40  ;;  %v2283_v9 = vrot.slane %v7271_v14, %v7821_v32  ;;  %v2345_v4 = vpop.permute.xlu1 %2344 }
 0x143   : > { %v2125_v43 = vrot.slane %v2116_v54, 1  ;;  %v2128_v52 = vrot.slane %v2117_v61, 1  ;;  %v2244_v24 = vadd.f32 %v2240_v31, %v2219_v27  ;;  %v2287_v22 = vrot.slane %v7271_v14, %v7770_v21  ;;  %v7272_v27 = vld [vmem:[%s11413_s1 + $0x11] ss:$4 sm:$0x3] }
 0x144   : > { %v2126_v63 = vrot.slane %v2118_v8, 1  ;;  %v2129_v46 = vrot.slane %v2119_v20, 1  ;;  %v2245_v56 = vadd.f32 %v2241_v50, %v2220_v1  ;;  %v2270_v25 = vmul.f32 %v2266_v30, %v8898_v40 }
 0x145   : > { %v2273_v15 = vadd.f32 %v2269_v58, %v2244_v24  ;;  %v11713_v33 = vrot.slane %v8652_v35, 7  ;;  %v2290_v47 = vmul.f32 %v2283_v9, %v8898_v40  ;;  %v2291_v7 = vmul.f32 %v2287_v22, %v8898_v40 }
 0x146   : > { %v2127_v3 = vsel %vm868_vm1, %v2125_v43, %v2126_v63  ;;  %v2130_v48 = vsel %vm868_vm1, %v2128_v52, %v2129_v46  ;;  %2137 = vst [vmem:[#allocation2 + $0xf0] sm:$0x1] %v2126_v63  ;;  %2138 = vst [vmem:[#allocation2 + $0xf8] sm:$0x1] %v2129_v46  ;;  %v2274_v11 = vadd.f32 %v2270_v25, %v2245_v56  ;;  %v11714_v35 = vrot.slane %v8655_v23, 7 }
 0x147   : > { %v2212_v42 = vsel %vm638_vm0, %v2209_v18, %v11713_v33  ;;  %2135 = vst [vmem:[#allocation2 + $0x50] sm:$0xfe] %v2127_v3  ;;  %2136 = vst [vmem:[#allocation2 + $0x58] sm:$0xfe] %v2130_v48  ;;  %v2271_v55 = vmul.f32 %v2262_v45, %v2256_v2  ;;  %v2298_v26 = vrot.slane %v2290_v47, 7  ;;  %v2299_v54 = vrot.slane %v2291_v7, 7  ;;  %v2475_v48 = vpop.permute.xlu1 %2474 }
 0x148   : > { %v2214_v18 = vsel %vm638_vm0, %v2210_v12, %v11714_v35  ;;  %v2221_v38 = vadd.f32 %v2212_v42, %v8662_v39  ;;  %v2272_v1 = vmul.f32 %v2266_v30, %v2256_v2  ;;  %v2292_v8 = vmul.f32 %v2283_v9, %v2256_v2  ;;  %v7273_v23 = vld [vmem:[%s11413_s1 + $0x2] ss:$4 sm:$0x3] }
 0x149   : > { %v2222_v61 = vadd.f32 %v2214_v18, %v8665_v29  ;;  %v2293_v20 = vmul.f32 %v2287_v22, %v2256_v2  ;;  %v2318_v43 = vrot.slane %v7272_v27, %v7821_v32  ;;  %v2308_v52 = vadd.f32 %v2298_v26, %v2273_v15  ;;  %v7274_v29 = vld [vmem:[%s11413_s1 + $0xa] ss:$4 sm:$0x3] }
 0x14a   : > { %v2246_v14 = vadd.f32 %v2240_v31, %v2221_v38  ;;  %v2309_v12 = vadd.f32 %v2299_v54, %v2274_v11  ;;  %v2322_v39 = vrot.slane %v7272_v27, %v7770_v21  ;;  %v2300_v30 = vrot.slane %v2292_v8, 7 }
 0x14b   : > { %v2247_v24 = vadd.f32 %v2241_v50, %v2222_v61  ;;  %v2302_v31 = vrot.slane %v2293_v20, 7  ;;  %v2325_v2 = vmul.f32 %v2318_v43, %v8898_v40  ;;  %v2351_v46 = vrot.slane %v7273_v23, %v7821_v32 }
 0x14c   : > { %v2275_v45 = vadd.f32 %v2271_v55, %v2246_v14  ;;  %v2326_v63 = vmul.f32 %v2322_v39, %v8898_v40  ;;  %v2355_v9 = vrot.slane %v7273_v23, %v7770_v21  ;;  %v2301_v50 = vsel %vm638_vm0, %v2298_v26, %v2300_v30 }
 0x14d   : > { %v2276_v58 = vadd.f32 %v2272_v1, %v2247_v24  ;;  %v2303_v22 = vsel %vm638_vm0, %v2299_v54, %v2302_v31  ;;  %v2329_v56 = vrot.slane %v2325_v2, 6  ;;  %v2372_v25 = vrot.slane %v7274_v29, %v7821_v32  ;;  %v11717_v31 = vld [vmem:[#allocation51_spill] sm:$0xff] }
 0x14e   : > { %v2310_v15 = vadd.f32 %v2301_v50, %v2275_v45  ;;  %v2330_v42 = vrot.slane %v2326_v63, 6  ;;  %v2376_v3 = vrot.slane %v7274_v29, %v7770_v21  ;;  %v2358_v40 = vmul.f32 %v2351_v46, %v8757_v16  ;;  %v11716_v45 = vld [vmem:[#allocation50_spill] sm:$0xff] }
 0x14f   : > { %v2311_v33 = vadd.f32 %v2303_v22, %v2276_v58  ;;  %v2333_v47 = vadd.f32 %v2329_v56, %v2308_v52  ;;  %v2359_v7 = vmul.f32 %v2355_v9, %v8757_v16  ;;  %v2360_v27 = vmul.f32 %v2351_v46, %v2345_v4  ;;  %v8959_v58 = vpop.permute.xlu1 %2565 }
 0x150   : > { %v2334_v11 = vadd.f32 %v2330_v42, %v2309_v12  ;;  %v2335_v35 = vadd.f32 %v2329_v56, %v2310_v15  ;;  %v2361_v38 = vmul.f32 %v2355_v9, %v2345_v4  ;;  %v2379_v26 = vmul.f32 %v2372_v25, %v8757_v16  ;;  %v11715_v12 = vld [vmem:[#allocation47_spill] sm:$0xff] }
 0x151   : > { %v2336_v18 = vadd.f32 %v2330_v42, %v2311_v33  ;;  %v2362_v55 = vadd.f32 %v2358_v40, %v2333_v47  ;;  %v2380_v54 = vmul.f32 %v2376_v3, %v8757_v16  ;;  %v2381_v61 = vmul.f32 %v2372_v25, %v2345_v4  ;;  %v7277_v9 = vld [vmem:[%s11413_s1 + $0x10] ss:$4 sm:$0x3]  ;;  %v7278_v40 = vld [vmem:[%s11413_s1 + $0x1] ss:$4 sm:$0x3] }
 0x152   : > { %v2363_v1 = vadd.f32 %v2359_v7, %v2334_v11  ;;  %v2364_v14 = vadd.f32 %v2360_v27, %v2335_v35  ;;  %v2382_v20 = vmul.f32 %v2376_v3, %v2345_v4  ;;  %v2387_v43 = vrot.slane %v2379_v26, 7 }
 0x153   : > { %v2365_v8 = vadd.f32 %v2361_v38, %v2336_v18  ;;  %v2388_v23 = vrot.slane %v2380_v54, 7  ;;  %v2389_v52 = vrot.slane %v2381_v61, 7  ;;  %v2493_v24 = vmul.f32 %v11668_v49, %v2475_v48 }
 0x154   : > { %v2391_v39 = vrot.slane %v2382_v20, 7  ;;  %v2494_v29 = vmul.f32 %v11715_v12, %v2475_v48  ;;  %v2514_v30 = vmul.f32 %v11716_v45, %v2475_v48  ;;  %v2515_v2 = vmul.f32 %v11717_v31, %v2475_v48 }
 0x155   : > { %v2390_v16 = vsel %vm638_vm0, %v2387_v43, %v2389_v52  ;;  %v2397_v63 = vadd.f32 %v2387_v43, %v2362_v55  ;;  %v2398_v46 = vadd.f32 %v2388_v23, %v2363_v1  ;;  %v2497_v4 = vadd.f32 %v2493_v24, %v7886_v53  ;;  %v2570_v43 = vpop.permute.xlu1 %2569 }
 0x156   : > { %v2392_v49 = vsel %vm638_vm0, %v2388_v23, %v2391_v39  ;;  %v2399_v50 = vadd.f32 %v2390_v16, %v2364_v14  ;;  %v2498_v22 = vadd.f32 %v2494_v29, %v7886_v53  ;;  %v2523_v56 = vrot.slane %v2514_v30, 7  ;;  %v7279_v39 = vld [vmem:[%s11413_s1 + $0x9] ss:$4 sm:$0x3] }
 0x157   : > { %v2400_v25 = vadd.f32 %v2392_v49, %v2365_v8  ;;  %v11718_v15 = vrot.slane %v8779_v34, 6  ;;  %v11719_v42 = vrot.slane %v8785_v51, 6  ;;  %v2524_v47 = vrot.slane %v2515_v2, 7 }
 0x158   : > { %v2533_v11 = vadd.f32 %v2523_v56, %v2497_v4  ;;  %v2543_v35 = vrot.slane %v7277_v9, %v7821_v32  ;;  %v2547_v18 = vrot.slane %v7277_v9, %v7770_v21  ;;  %v2576_v20 = vrot.slane %v7278_v40, %v7821_v32 }
 0x159   : > { %v2422_v33 = vadd.f32 %v11718_v15, %v2397_v63  ;;  %v2423_v3 = vadd.f32 %v11719_v42, %v2398_v46  ;;  %v11720_v7 = vmov %v11718_v15  ;;  %v11721_v38 = vmov %v11719_v42 }
 0x15a   : > { %v2424_v27 = vadd.f32 %v11720_v7, %v2399_v50  ;;  %v2425_v55 = vadd.f32 %v11721_v38, %v2400_v25  ;;  %v2534_v61 = vadd.f32 %v2524_v47, %v2498_v22  ;;  %v2550_v14 = vmul.f32 %v2543_v35, %v2475_v48  ;;  %v2659_v7 = vpop.permute.xlu1 %2658 }
 0x15b   : > { %v2426_v26 = vmul.f32 0.4, %v2422_v33  ;;  %v2427_v54 = vmul.f32 0.4, %v2423_v3  ;;  %v2551_v8 = vmul.f32 %v2547_v18, %v2475_v48  ;;  %v2580_v24 = vrot.slane %v7278_v40, %v7770_v21 }
 0x15c   : > { %v2428_v1 = vmul.f32 0.4, %v2424_v27  ;;  %v2429_v23 = vmul.f32 0.4, %v2425_v55  ;;  %v2554_v12 = vrot.slane %v2550_v14, 6  ;;  %v2583_v45 = vmul.f32 %v2576_v20, %v8959_v58 }
 0x15d   : > { %v2430_v34 = vmax.f32 %v2422_v33, %v2426_v26  ;;  %v2431_v52 = vmax.f32 %v2423_v3, %v2427_v54  ;;  %v2555_v29 = vrot.slane %v2551_v8, 6  ;;  %v2584_v2 = vmul.f32 %v2580_v24, %v8959_v58 }
 0x15e   : > { %v2432_v51 = vmax.f32 %v2424_v27, %v2428_v1  ;;  %v2433_v30 = vmax.f32 %v2425_v55, %v2429_v23  ;;  %v2558_v63 = vadd.f32 %v2554_v12, %v2533_v11  ;;  %v2597_v4 = vrot.slane %v7279_v39, %v7821_v32  ;;  %v7281_v1 = vld [vmem:[%s11413_s1 + $0x2] ss:$4 sm:$0x3] }
 0x15f   : > { %v2439_v31 = vrot.slane %v2430_v34, 1  ;;  %v2442_v48 = vrot.slane %v2431_v52, 1  ;;  %v2559_v46 = vadd.f32 %v2555_v29, %v2534_v61  ;;  %v2601_v49 = vrot.slane %v7279_v39, %v7770_v21 }
 0x160   : > { %v2440_v16 = vrot.slane %v2432_v51, 1  ;;  %v2443_v9 = vrot.slane %v2433_v30, 1  ;;  %v11722_v50 = vrot.slane %v8716_v62, 7  ;;  %v11723_v25 = vrot.slane %v8719_v41, 7 }
 0x161   : > { %v2587_v42 = vadd.f32 %v2583_v45, %v2558_v63  ;;  %v2588_v3 = vadd.f32 %v2584_v2, %v2559_v46  ;;  %v2604_v40 = vmul.f32 %v2597_v4, %v8959_v58  ;;  %v2605_v62 = vmul.f32 %v2601_v49, %v8959_v58 }
 0x162   : > { %v2526_v22 = vsel %vm638_vm0, %v2523_v56, %v11722_v50  ;;  %v2528_v15 = vsel %vm638_vm0, %v2524_v47, %v11723_v25  ;;  %v2441_v33 = vsel %vm868_vm1, %v2439_v31, %v2440_v16  ;;  %2451 = vst [vmem:[#allocation2 + $0x100] sm:$0x1] %v2440_v16  ;;  %v2444_v27 = vsel %vm868_vm1, %v2442_v48, %v2443_v9  ;;  %v7280_v47 = vld [vmem:[%s11413_s1 + $0x11] ss:$4 sm:$0x3] }
 0x163   : > { %2449 = vst [vmem:[#allocation2 + $0x60] sm:$0xfe] %v2441_v33  ;;  %2452 = vst [vmem:[#allocation2 + $0x108] sm:$0x1] %v2443_v9  ;;  %v2535_v56 = vadd.f32 %v2526_v22, %v8760_v37  ;;  %v2536_v41 = vadd.f32 %v2528_v15, %v8763_v13  ;;  %v2612_v11 = vrot.slane %v2604_v40, 7  ;;  %v2585_v35 = vmul.f32 %v2576_v20, %v2570_v43 }
 0x164   : > { %2450 = vst [vmem:[#allocation2 + $0x68] sm:$0xfe] %v2444_v27  ;;  %v2586_v18 = vmul.f32 %v2580_v24, %v2570_v43  ;;  %v2606_v38 = vmul.f32 %v2597_v4, %v2570_v43  ;;  %v2613_v55 = vrot.slane %v2605_v62, 7  ;;  %v2607_v61 = vmul.f32 %v2601_v49, %v2570_v43  ;;  %v7282_v20 = vld [vmem:[%s11413_s1 + $0xa] ss:$4 sm:$0x3] }
 0x165   : > { %v2560_v26 = vadd.f32 %v2554_v12, %v2535_v56  ;;  %v2561_v54 = vadd.f32 %v2555_v29, %v2536_v41  ;;  %v2622_v37 = vadd.f32 %v2612_v11, %v2587_v42  ;;  %v2632_v13 = vrot.slane %v7280_v47, %v7821_v32  ;;  %v2789_v29 = vpop.permute.xlu1 %2788  ;;  %v11724_v4 = vld [vmem:[#allocation14_spill] sm:$0xff] }
 0x166   : > { %v2614_v14 = vrot.slane %v2606_v38, 7  ;;  %v2636_v8 = vrot.slane %v7280_v47, %v7770_v21  ;;  %v2623_v23 = vadd.f32 %v2613_v55, %v2588_v3  ;;  %v2616_v24 = vrot.slane %v2607_v61, 7 }
 0x167   : > { %v2589_v34 = vadd.f32 %v2585_v35, %v2560_v26  ;;  %v2590_v52 = vadd.f32 %v2586_v18, %v2561_v54  ;;  %v2639_v39 = vmul.f32 %v2632_v13, %v8959_v58  ;;  %v2665_v12 = vrot.slane %v7281_v1, %v7821_v32 }
 0x168   : > { %v2615_v43 = vsel %vm638_vm0, %v2612_v11, %v2614_v14  ;;  %v2640_v51 = vmul.f32 %v2636_v8, %v8959_v58  ;;  %v2617_v45 = vsel %vm638_vm0, %v2613_v55, %v2616_v24  ;;  %v2669_v31 = vrot.slane %v7281_v1, %v7770_v21  ;;  %v7285_v8 = vld [vmem:[%s11413_s1 + $0x10] ss:$4 sm:$0x3] }
 0x169   : > { %v2624_v30 = vadd.f32 %v2615_v43, %v2589_v34  ;;  %v2686_v48 = vrot.slane %v7282_v20, %v7821_v32  ;;  %v2625_v2 = vadd.f32 %v2617_v45, %v2590_v52  ;;  %v2643_v16 = vrot.slane %v2639_v39, 6  ;;  %v9025_v11 = vpop.permute.xlu1 %2879 }
 0x16a   : > { %v2644_v63 = vrot.slane %v2640_v51, 6  ;;  %v2690_v46 = vrot.slane %v7282_v20, %v7770_v21  ;;  %v2672_v9 = vmul.f32 %v2665_v12, %v11724_v4  ;;  %v2673_v49 = vmul.f32 %v2669_v31, %v11724_v4 }
 0x16b   : > { %v2674_v58 = vmul.f32 %v2665_v12, %v2659_v7  ;;  %v2675_v50 = vmul.f32 %v2669_v31, %v2659_v7  ;;  %v2647_v22 = vadd.f32 %v2643_v16, %v2622_v37  ;;  %v2649_v15 = vadd.f32 %v2643_v16, %v2624_v30 }
 0x16c   : > { %v2648_v25 = vadd.f32 %v2644_v63, %v2623_v23  ;;  %v2650_v33 = vadd.f32 %v2644_v63, %v2625_v2  ;;  %v2693_v42 = vmul.f32 %v2686_v48, %v11724_v4  ;;  %v2694_v3 = vmul.f32 %v2690_v46, %v11724_v4 }
 0x16d   : > { %v2695_v40 = vmul.f32 %v2686_v48, %v2659_v7  ;;  %v2696_v27 = vmul.f32 %v2690_v46, %v2659_v7  ;;  %v2676_v62 = vadd.f32 %v2672_v9, %v2647_v22  ;;  %v2678_v41 = vadd.f32 %v2674_v58, %v2649_v15  ;;  %v2884_v48 = vpop.permute.xlu1 %2883 }
 0x16e   : > { %v2677_v56 = vadd.f32 %v2673_v49, %v2648_v25  ;;  %v2679_v47 = vadd.f32 %v2675_v50, %v2650_v33  ;;  %v2701_v35 = vrot.slane %v2693_v42, 7  ;;  %v2702_v18 = vrot.slane %v2694_v3, 7  ;;  %v7287_v3 = vld [vmem:[%s11413_s1 + $0x9] ss:$4 sm:$0x3] }
 0x16f   : > { %v2703_v38 = vrot.slane %v2695_v40, 7  ;;  %v2705_v55 = vrot.slane %v2696_v27, 7  ;;  %v2807_v26 = vmul.f32 %v11690_v44, %v2789_v29  ;;  %v2808_v54 = vmul.f32 %v11691_v17, %v2789_v29 }
 0x170   : > { %v2828_v61 = vmul.f32 %v11694_v59, %v2789_v29  ;;  %v2829_v1 = vmul.f32 %v11695_v0, %v2789_v29  ;;  %v2711_v14 = vadd.f32 %v2701_v35, %v2676_v62  ;;  %v2712_v13 = vadd.f32 %v2702_v18, %v2677_v56 }
 0x171   : > { %v2704_v7 = vsel %vm638_vm0, %v2701_v35, %v2703_v38  ;;  %v2706_v37 = vsel %vm638_vm0, %v2702_v18, %v2705_v55  ;;  %v2811_v44 = vadd.f32 %v2807_v26, %v7886_v53  ;;  %v2812_v17 = vadd.f32 %v2808_v54, %v7886_v53  ;;  %v7286_v53 = vld [vmem:[%s11413_s1 + $0x1] ss:$4 sm:$0x3]  ;;  %v2973_v18 = vpop.permute.xlu1 %2972 }
 0x172   : > { %v2713_v20 = vadd.f32 %v2704_v7, %v2678_v41  ;;  %v2714_v23 = vadd.f32 %v2706_v37, %v2679_v47  ;;  %v11725_v59 = vrot.slane %v8737_v10, 6  ;;  %v11726_v0 = vrot.slane %v8743_v5, 6 }
 0x173   : > { %v2837_v24 = vrot.slane %v2828_v61, 7  ;;  %v2838_v43 = vrot.slane %v2829_v1, 7  ;;  %v2857_v30 = vrot.slane %v7285_v8, %v7821_v32  ;;  %v2861_v31 = vrot.slane %v7285_v8, %v7770_v21 }
 0x174   : > { %v2736_v34 = vadd.f32 %v11725_v59, %v2711_v14  ;;  %v2737_v52 = vadd.f32 %v11726_v0, %v2712_v13  ;;  %v11727_v39 = vmov %v11725_v59  ;;  %v11728_v12 = vmov %v11726_v0 }
 0x175   : > { %v2738_v51 = vadd.f32 %v11727_v39, %v2713_v20  ;;  %v2739_v45 = vadd.f32 %v11728_v12, %v2714_v23  ;;  %v2847_v63 = vadd.f32 %v2837_v24, %v2811_v44  ;;  %v2848_v46 = vadd.f32 %v2838_v43, %v2812_v17  ;;  %v11731_v20 = vld [vmem:[#allocation15_spill] sm:$0xff]  ;;  %v11732_v44 = vld [vmem:[#allocation16_spill] sm:$0xff] }
 0x176   : > { %v2740_v2 = vmul.f32 0.4, %v2736_v34  ;;  %v2741_v16 = vmul.f32 0.4, %v2737_v52  ;;  %v2864_v10 = vmul.f32 %v2857_v30, %v2789_v29  ;;  %v2865_v49 = vmul.f32 %v2861_v31, %v2789_v29 }
 0x177   : > { %v2742_v4 = vmul.f32 0.4, %v2738_v51  ;;  %v2743_v9 = vmul.f32 0.4, %v2739_v45  ;;  %v2890_v50 = vrot.slane %v7286_v53, %v7821_v32  ;;  %v2894_v22 = vrot.slane %v7286_v53, %v7770_v21 }
 0x178   : > { %v2744_v58 = vmax.f32 %v2736_v34, %v2740_v2  ;;  %v2745_v5 = vmax.f32 %v2737_v52, %v2741_v16  ;;  %v2868_v33 = vrot.slane %v2864_v10, 6  ;;  %v2869_v42 = vrot.slane %v2865_v49, 6  ;;  %v7288_v17 = vld [vmem:[%s11413_s1 + $0x11] ss:$4 sm:$0x3]  ;;  %v9080_v2 = vpop.permute.xlu1 %3420 }
 0x179   : > { %v2746_v25 = vmax.f32 %v2738_v51, %v2742_v4  ;;  %v2747_v15 = vmax.f32 %v2739_v45, %v2743_v9  ;;  %v2897_v62 = vmul.f32 %v2890_v50, %v9025_v11  ;;  %v2898_v29 = vmul.f32 %v2894_v22, %v9025_v11  ;;  %v7289_v53 = vld [vmem:[%s11413_s1 + $0x2] ss:$4 sm:$0x3]  ;;  %v7290_v4 = vld [vmem:[%s11413_s1 + $0xa] ss:$4 sm:$0x3] }
 0x17a   : > { %v2753_v40 = vrot.slane %v2744_v58, 1  ;;  %v2756_v27 = vrot.slane %v2745_v5, 1  ;;  %v2872_v47 = vadd.f32 %v2868_v33, %v2847_v63  ;;  %v2873_v35 = vadd.f32 %v2869_v42, %v2848_v46 }
 0x17b   : > { %v2754_v56 = vrot.slane %v2746_v25, 1  ;;  %v2757_v41 = vrot.slane %v2747_v15, 1  ;;  %v2911_v38 = vrot.slane %v7287_v3, %v7821_v32  ;;  %v2915_v55 = vrot.slane %v7287_v3, %v7770_v21  ;;  %v9091_v15 = vpop.permute.xlu0 %3422 }
 0x17c   : > { %v11729_v26 = vrot.slane %v8810_v19, 7  ;;  %v11730_v61 = vrot.slane %v8813_v6, 7  ;;  %v2901_v14 = vadd.f32 %v2897_v62, %v2872_v47  ;;  %v2902_v13 = vadd.f32 %v2898_v29, %v2873_v35 }
 0x17d   : > { %v2755_v7 = vsel %vm868_vm1, %v2753_v40, %v2754_v56  ;;  %v2758_v37 = vsel %vm868_vm1, %v2756_v27, %v2757_v41  ;;  %2765 = vst [vmem:[#allocation2 + $0x110] sm:$0x1] %v2754_v56  ;;  %2766 = vst [vmem:[#allocation2 + $0x118] sm:$0x1] %v2757_v41  ;;  %v2918_v8 = vmul.f32 %v2911_v38, %v9025_v11  ;;  %v11733_v27 = vld [vmem:[#allocation18_spill] sm:$0xff] }
 0x17e   : > { %v2840_v54 = vsel %vm638_vm0, %v2837_v24, %v11729_v26  ;;  %v2842_v1 = vsel %vm638_vm0, %v2838_v43, %v11730_v61  ;;  %2763 = vst [vmem:[#allocation2 + $0x70] sm:$0xfe] %v2755_v7  ;;  %2764 = vst [vmem:[#allocation2 + $0x78] sm:$0xfe] %v2758_v37  ;;  %v2919_v19 = vmul.f32 %v2915_v55, %v9025_v11 }
 0x17f   : > { %v2849_v23 = vadd.f32 %v2840_v54, %v11731_v20  ;;  %v2850_v6 = vadd.f32 %v2842_v1, %v11732_v44  ;;  %v2899_v59 = vmul.f32 %v2890_v50, %v2884_v48  ;;  %v2900_v34 = vmul.f32 %v2894_v22, %v2884_v48  ;;  %v9101_v44 = vpop.permute.xlu0 %3454 }
 0x180   : > { %v2920_v0 = vmul.f32 %v2911_v38, %v2884_v48  ;;  %v2921_v52 = vmul.f32 %v2915_v55, %v2884_v48  ;;  %v2926_v24 = vrot.slane %v2918_v8, 7  ;;  %v2927_v43 = vrot.slane %v2919_v19, 7  ;;  %v9097_v55 = vpop.permute.xlu1 %3452 }
 0x181   : > { %v2874_v39 = vadd.f32 %v2868_v33, %v2849_v23  ;;  %v2875_v51 = vadd.f32 %v2869_v42, %v2850_v6  ;;  %v2946_v30 = vrot.slane %v7288_v17, %v7821_v32  ;;  %v2950_v31 = vrot.slane %v7288_v17, %v7770_v21 }
 0x182   : > { %v2928_v12 = vrot.slane %v2920_v0, 7  ;;  %v2930_v45 = vrot.slane %v2921_v52, 7  ;;  %v2936_v16 = vadd.f32 %v2926_v24, %v2901_v14  ;;  %v2937_v63 = vadd.f32 %v2927_v43, %v2902_v13 }
 0x183   : > { %v2903_v46 = vadd.f32 %v2899_v59, %v2874_v39  ;;  %v2904_v48 = vadd.f32 %v2900_v34, %v2875_v51  ;;  %v2953_v49 = vmul.f32 %v2946_v30, %v9025_v11  ;;  %v2954_v58 = vmul.f32 %v2950_v31, %v9025_v11  ;;  %v9115_v30 = vpop.permute.xlu0 %3507 }
 0x184   : > { %v2929_v9 = vsel %vm638_vm0, %v2926_v24, %v2928_v12  ;;  %v2931_v10 = vsel %vm638_vm0, %v2927_v43, %v2930_v45  ;;  %v2979_v22 = vrot.slane %v7289_v53, %v7821_v32  ;;  %v2983_v25 = vrot.slane %v7289_v53, %v7770_v21  ;;  %v9105_v24 = vpop.permute.xlu1 %3505 }
 0x185   : > { %v2938_v5 = vadd.f32 %v2929_v9, %v2903_v46  ;;  %v2939_v50 = vadd.f32 %v2931_v10, %v2904_v48  ;;  %v2957_v33 = vrot.slane %v2953_v49, 6  ;;  %v2958_v42 = vrot.slane %v2954_v58, 6 }
 0x186   : > { %v3000_v3 = vrot.slane %v7290_v4, %v7821_v32  ;;  %v3004_v40 = vrot.slane %v7290_v4, %v7770_v21  ;;  %v2986_v62 = vmul.f32 %v2979_v22, %v11733_v27  ;;  %v2987_v29 = vmul.f32 %v2983_v25, %v11733_v27 }
 0x187   : > { %v2988_v56 = vmul.f32 %v2979_v22, %v2973_v18  ;;  %v2989_v11 = vmul.f32 %v2983_v25, %v2973_v18  ;;  %v2961_v41 = vadd.f32 %v2957_v33, %v2936_v16  ;;  %v2962_v47 = vadd.f32 %v2958_v42, %v2937_v63  ;;  %v9124_v22 = vld [vmem:[#allocation2 + $0xb8] sm:$0x3] }
 0x188   : > { %v2963_v35 = vadd.f32 %v2957_v33, %v2938_v5  ;;  %v2964_v38 = vadd.f32 %v2958_v42, %v2939_v50  ;;  %v3007_v26 = vmul.f32 %v3000_v3, %v11733_v27  ;;  %v3008_v54 = vmul.f32 %v3004_v40, %v11733_v27  ;;  %v3670_v4 = vpop.permute.xlu1 %3669  ;;  %v9127_v33 = vld [vmem:[#allocation2 + $0xc0] sm:$0x3]  ;;  %v9129_v42 = vld [vmem:[#allocation2 + $0x10] sm:$0xff]  ;;  %v7303_v27 = vld [vmem:[%s11414_s2 + $0x9] ss:$4 sm:$0x3] }
 0x189   : > { %v3009_v61 = vmul.f32 %v3000_v3, %v2973_v18  ;;  %v3010_v1 = vmul.f32 %v3004_v40, %v2973_v18  ;;  %v2990_v7 = vadd.f32 %v2986_v62, %v2961_v41  ;;  %v2991_v37 = vadd.f32 %v2987_v29, %v2962_v47  ;;  %v9132_v40 = vld [vmem:[#allocation2 + $0x18] sm:$0xff]  ;;  %v11734_v62 = vld [vmem:[#allocation35_spill] sm:$0xff] }
 0x18a   : > { %v2992_v14 = vadd.f32 %v2988_v56, %v2963_v35  ;;  %v2993_v13 = vadd.f32 %v2989_v11, %v2964_v38  ;;  %v3015_v8 = vrot.slane %v3007_v26, 7  ;;  %v3016_v19 = vrot.slane %v3008_v54, 7  ;;  %v11735_v56 = vld [vmem:[#allocation34_spill] sm:$0xff]  ;;  %v7304_v47 = vld [vmem:[%s11414_s2 + $0x11] ss:$4 sm:$0x3] }
 0x18b   : > { %v3017_v20 = vrot.slane %v3009_v61, 7  ;;  %v3019_v23 = vrot.slane %v3010_v1, 7  ;;  %v3681_v60 = vmul.f32 %v9117_v36, %v3670_v4  ;;  %v3544_v29 = vmul.f32 %v11734_v62, %v9129_v42  ;;  %v9156_v1 = vld [vmem:[#allocation2 + $0x20] sm:$0xff] }
 0x18c   : > { %v3025_v59 = vadd.f32 %v3015_v8, %v2990_v7  ;;  %v3026_v34 = vadd.f32 %v3016_v19, %v2991_v37  ;;  %v3545_v11 = vmul.f32 %v11735_v56, %v9132_v40  ;;  %v3584_v41 = vrot.slane %v7303_v27, %v7770_v21  ;;  %v7307_v56 = vld [vmem:[%s11414_s2 + $0x12] ss:$4 sm:$0x3] }
 0x18d   : > { %v3018_v6 = vsel %vm638_vm0, %v3015_v8, %v3017_v20  ;;  %v3020_v17 = vsel %vm638_vm0, %v3016_v19, %v3019_v23  ;;  %3696 = vrot.lane.b32.xlu0 %v3681_v60, %s7604_s30  ;;  %v3678_v35 = vmul.f32 %v3670_v4, %v9129_v42  ;;  %v3580_v38 = vrot.slane %v7303_v27, %v7821_v32 }
 0x18e   : > { %v3027_v0 = vadd.f32 %v3018_v6, %v2992_v14  ;;  %v3028_v52 = vadd.f32 %v3020_v17, %v2993_v13  ;;  %v3050_v18 = vadd.f32 %v3046_v28, %v3025_v59  ;;  %v3051_v43 = vadd.f32 %v3047_v57, %v3026_v34 }
 0x18f   : > { %v3588_v54 = vmul.f32 %v3584_v41, %v9132_v40  ;;  %v3633_v61 = vrot.slane %v7304_v47, %v7770_v21  ;;  %v3587_v37 = vmul.f32 %v3580_v38, %v9129_v42  ;;  %v3629_v14 = vrot.slane %v7304_v47, %v7821_v32 }
 0x190   : > { %v3052_v39 = vadd.f32 %v3046_v28, %v3027_v0  ;;  %v3053_v51 = vadd.f32 %v3047_v57, %v3028_v52  ;;  %v3054_v12 = vmul.f32 0.4, %v3050_v18  ;;  %v3055_v45 = vmul.f32 0.4, %v3051_v43  ;;  %v3672_v28 = vpop.permute.xlu0 %3671  ;;  %v3731_v0 = vpop.permute.xlu1 %3730 }
 0x191   : > { %v3674_v50 = vsel %vm3673_vm2, %v3670_v4, %v3672_v28  ;;  %v3683_v3 = vmul.f32 %v3672_v28, %v9127_v33  ;;  %v3680_v7 = vmul.f32 %v3672_v28, %v9156_v1  ;;  %v3596_v13 = vrot.slane %v3588_v54, 7 }
 0x192   : > { %v3056_v31 = vmul.f32 0.4, %v3052_v39  ;;  %v3057_v53 = vmul.f32 0.4, %v3053_v51  ;;  %v3058_v16 = vmax.f32 %v3050_v18, %v3054_v12  ;;  %v3059_v63 = vmax.f32 %v3051_v43, %v3055_v45 }
 0x193   : > { %v3682_v25 = vmul.f32 %v9124_v22, %v3674_v50  ;;  %3700 = vrot.lane.b32.xlu0 %v3683_v3, %s7604_s30  ;;  %v3679_v26 = vmul.f32 %v3674_v50, %v9132_v40  ;;  %v3637_v8 = vmul.f32 %v3633_v61, %v9132_v40  ;;  %v3590_v19 = vmul.f32 %v9124_v22, %v3584_v41  ;;  %v7486_v43 = vld [vmem:[%s11414_s2 + $0xa] ss:$4 sm:$0x3] }
 0x194   : > { %v3060_v46 = vmax.f32 %v3052_v39, %v3056_v31  ;;  %v3061_v48 = vmax.f32 %v3053_v51, %v3057_v53  ;;  %v3067_v9 = vrot.slane %v3058_v16, 1  ;;  %v3070_v49 = vrot.slane %v3059_v63, 1  ;;  %v9184_v16 = vpop.permute.xlu0 %3558 }
 0x195   : > { %3698 = vrot.lane.b32.xlu1 %v3682_v25, %s7604_s30  ;;  %v3595_v20 = vrot.slane %v3587_v37, 7  ;;  %v3636_v23 = vmul.f32 %v3629_v14, %v9129_v42  ;;  %v3641_v6 = vrot.slane %v3637_v8, 6  ;;  %v3589_v17 = vmul.f32 %v9117_v36, %v3580_v38 }
 0x196   : > { %v3068_v10 = vrot.slane %v3060_v46, 1  ;;  %v3071_v58 = vrot.slane %v3061_v48, 1  ;;  %v3599_v59 = vrot.slane %v3590_v19, 7  ;;  %v3729_v39 = vrot.slane %v7486_v43, %v7770_v21 }
 0x197   : > { %3554 = vrot.lane.b32.xlu0 %v3545_v11, %s7602_s29  ;;  %v3640_v34 = vrot.slane %v3636_v23, 6  ;;  %v3597_v52 = vrot.slane %v3589_v17, 7  ;;  %v3738_v51 = vmul.f32 %v3731_v0, %v9129_v42  ;;  %v11736_v31 = vlaneseq }
 0x198   : > { %v3069_v57 = vsel %vm868_vm1, %v3067_v9, %v3068_v10  ;;  %v3072_v5 = vsel %vm868_vm1, %v3070_v49, %v3071_v58  ;;  %3079 = vst [vmem:[#allocation2 + $0x120] sm:$0x1] %v3068_v10  ;;  %3080 = vst [vmem:[#allocation2 + $0x128] sm:$0x1] %v3071_v58  ;;  %v3600_v18 = vsel %vm638_vm0, %v3596_v13, %v3599_v59  ;;  %v11737_v53 = vmov 0.0  }
 0x199   : > { %3077 = vst [vmem:[#allocation2 + $0x80] sm:$0xfe] %v3069_v57  ;;  %3078 = vst [vmem:[#allocation2 + $0x88] sm:$0xfe] %v3072_v5  ;;  %3552 = vrot.lane.b32.xlu1 %v3544_v29, %s7602_s29  ;;  %v3598_v12 = vsel %vm638_vm0, %v3595_v20, %v3597_v52  ;;  %v3750_v45 = vrot.slane %v3738_v51, 7  ;;  %vm248_vm3 = vcmp.lt.s32.totalorder %v11736_v31, 512  ;;  %v3741_v60 = vmul.f32 %v9117_v36, %v3731_v0 }
 0x19a   : > { %251 = vst.msk [vmem:[#allocation2 + $0x80] ss:$8 sm:$0xf] %vm248_vm3, %v11737_v53  ;;  %260 = vst.msk [vmem:[#allocation2 + $0x121] ss:$8 sm:$0xf] %vm248_vm3, %v11737_v53  ;;  %v3793_v47 = vrot.slane %v7307_v56, %v7821_v32  ;;  %v3797_v38 = vrot.slane %v7307_v56, %v7770_v21 }
 0x19b   : > { %3692 = vrot.lane.b32.xlu0 %v3679_v26, %s7604_s30  ;;  %v3753_v29 = vrot.slane %v3741_v60, 7  ;;  %v9221_v26 = vpop.permute.xlu1 %3556  ;;  %v7308_v60 = vld [vmem:[%s11414_s2 + $0x8] ss:$4 sm:$0x3] }
 0x19c   : > { %v9284_v56 = vld [vmem:[#allocation2 + $0x28] sm:$0xff] }
 0x19d   : > { %3690 = vrot.lane.b32.xlu1 %v3678_v35, %s7604_s30  ;;  %v3754_v41 = vsel %vm638_vm0, %v3750_v45, %v3753_v29  ;;  %v7311_v29 = vld [vmem:[%s11414_s2 + $0x9] ss:$4 sm:$0x3] }
 0x19f   : > { %3603 = vrot.lane.b32.xlu0 %v3596_v13, %s7602_s29 }
 0x1a1   : > { %3694 = vrot.lane.b32.xlu1 %v3680_v7, %s7604_s30 }
 0x1a3   : > { %3644 = vrot.lane.b32.xlu0 %v3641_v6, %s7602_s29 }
 0x1a5   : > { %3601 = vrot.lane.b32.xlu1 %v3595_v20, %s7602_s29 }
 0x1a7   : > { %3607 = vrot.lane.b32.xlu0 %v3600_v18, %s7602_s29 }
 0x1a9   : > { %3642 = vrot.lane.b32.xlu1 %v3640_v34, %s7602_s29 }
 0x1ab   : > { %3732 = vrot.lane.b32.xlu0 %v3729_v39, %s7603_s8 }
 0x1ad   : > { %3605 = vrot.lane.b32.xlu1 %v3598_v12, %s7602_s29  ;;  %v3878_v12 = vld [vmem:[%s11414_s2] ss:$4 sm:$0x3] }
 0x1ae   : > { %v3883_v53 = vrot.slane %v3878_v12, %v7821_v32 }
 0x1b1   : > { %3759 = vrot.lane.b32.xlu1 %v3750_v45, %s7604_s30 }
 0x1ff   : > { %v9186_v63 = vpop.permute.xlu0 %3696 }
 0x205   : > { %v9188_v46 = vpop.permute.xlu0 %3700 }
 0x207   : > { %v9223_v54 = vpop.permute.xlu1 %3698 }
 0x209   : > { %v9190_v48 = vpop.permute.xlu0 %3554 }
 0x20b   : > { %v9225_v61 = vpop.permute.xlu1 %3552 }
 0x20d   : > { %v9192_v4 = vpop.permute.xlu0 %3692 }
 0x20f   : > { %v9227_v7 = vpop.permute.xlu1 %3690 }
 0x211   : > { %v9194_v9 = vpop.permute.xlu0 %3603 }
 0x213   : > { %v9229_v37 = vpop.permute.xlu1 %3694 }
 0x215   : > { %v9196_v10 = vpop.permute.xlu0 %3644 }
 0x217   : > { %v9231_v14 = vpop.permute.xlu1 %3601 }
 0x219   : > { %v9198_v49 = vpop.permute.xlu0 %3607 }
 0x21b   : > { %v9233_v13 = vpop.permute.xlu1 %3642 }
 0x21d   : > { %v3733_v58 = vpop.permute.xlu0 %3732 }
 0x21e   : > { %v3740_v28 = vmul.f32 %v3733_v58, %v9156_v1  ;;  %v3734_v57 = vsel %vm3673_vm2, %v3731_v0, %v3733_v58  ;;  %v3743_v62 = vmul.f32 %v3733_v58, %v9127_v33  ;;  %v3887_v58 = vrot.slane %v3878_v12, %v7770_v21 }
 0x21f   : > { %v3739_v5 = vmul.f32 %v3734_v57, %v9132_v40  ;;  %v3742_v50 = vmul.f32 %v9124_v22, %v3734_v57  ;;  %v9235_v8 = vpop.permute.xlu1 %3605  ;;  %v3917_v57 = vrot.slane %v7308_v60, %v7770_v21 }
 0x220   : > { %v3752_v25 = vrot.slane %v3740_v28, 7  ;;  %v3757_v35 = vrot.slane %v3743_v62, 7  ;;  %v3913_v28 = vrot.slane %v7308_v60, %v7821_v32 }
 0x221   : > { %v3751_v3 = vrot.slane %v3739_v5, 7  ;;  %v3755_v27 = vrot.slane %v3742_v50, 7  ;;  %v7309_v5 = vld [vmem:[%s11414_s2 + $0x10] ss:$4 sm:$0x3] }
 0x222   : > { %3763 = vrot.lane.b32.xlu1 %v3752_v25, %s7604_s30  ;;  %v3758_v33 = vsel %vm638_vm0, %v3752_v25, %v3757_v35  ;;  %v7310_v50 = vld [vmem:[%s11414_s2 + $0x1] ss:$4 sm:$0x3]  ;;  %v3964_v25 = vrot.slane %v7309_v5, %v7821_v32 }
 0x223   : > { %3761 = vrot.lane.b32.xlu0 %v3751_v3, %s7604_s30  ;;  %v3756_v11 = vsel %vm638_vm0, %v3751_v3, %v3755_v27  ;;  %v9237_v19 = vpop.permute.xlu1 %3759  ;;  %v3968_v3 = vrot.slane %v7309_v5, %v7770_v21  ;;  %v4000_v27 = vrot.slane %v7310_v50, %v7821_v32  ;;  %v4004_v62 = vrot.slane %v7310_v50, %v7770_v21  ;;  %v9290_v35 = vld [vmem:[#allocation2 + $0xc0] sm:$0x3] }
 0x224   : > { %11738 = vst [vmem:[#allocation9_spill] sm:$0xff] %v9290_v35 }
 0x226   : > { %3767 = vrot.lane.b32.xlu1 %v3756_v11, %s7604_s30  ;;  %v4007_v11 = vmul.f32 %v4000_v27, %v9156_v1 }
 0x227   : > { %3765 = vrot.lane.b32.xlu0 %v3754_v41, %s7604_s30  ;;  %v4042_v41 = vrot.slane %v7311_v29, %v7821_v32 }
 0x22a   : > { %3798 = vrot.lane.b32.xlu1 %v3793_v47, %s7603_s8  ;;  %v4008_v47 = vmul.f32 %v4004_v62, %v9284_v56 }
 0x22b   : > { %3769 = vrot.lane.b32.xlu0 %v3758_v33, %s7604_s30  ;;  %v4046_v33 = vrot.slane %v7311_v29, %v7770_v21 }
 0x22f   : > { %3800 = vrot.lane.b32.xlu0 %v3797_v38, %s7603_s8  ;;  %v9294_v38 = vld [vmem:[#allocation2 + $0xc8] sm:$0x3] }
 0x230   : > { %11739 = vst [vmem:[#allocation10_spill] sm:$0xff] %v9294_v38 }
 0x294   : > { %v9239_v20 = vpop.permute.xlu1 %3763 }
 0x295   : > { %v9241_v23 = vpop.permute.xlu0 %3761 }
 0x298   : > { %v9243_v6 = vpop.permute.xlu1 %3767 }
 0x299   : > { %v9245_v17 = vpop.permute.xlu0 %3765 }
 0x29c   : > { %v3799_v59 = vpop.permute.xlu1 %3798 }
 0x29d   : > { %v3806_v34 = vmul.f32 %v3799_v59, %v9129_v42  ;;  %v9248_v0 = vpop.permute.xlu0 %3769 }
 0x29f   : > { %v3812_v52 = vrot.slane %v3806_v34, 6  ;;  %v4049_v34 = vmul.f32 %v4042_v41, %v9156_v1 }
 0x2a1   : > { %v3801_v18 = vpop.permute.xlu0 %3800  ;;  %3815 = vrot.lane.b32.xlu1 %v3812_v52, %s7604_s30  ;;  %v4010_v52 = vmul.f32 %v4004_v62, %v9294_v38  ;;  %v4057_v12 = vrot.slane %v4049_v34, 7 }
 0x2a2   : > { %v3802_v43 = vsel %vm3673_vm2, %v3799_v59, %v3801_v18  ;;  %v3808_v39 = vmul.f32 %v3801_v18, %v9156_v1  ;;  %v4009_v59 = vmul.f32 %v4000_v27, %v9290_v35  ;;  %v4050_v18 = vmul.f32 %v4046_v33, %v9284_v56 }
 0x2a3   : > { %v3807_v51 = vmul.f32 %v3802_v43, %v9132_v40  ;;  %v4051_v43 = vmul.f32 %v4042_v41, %v9290_v35 }
 0x2a4   : > { %v3814_v45 = vrot.slane %v3808_v39, 6  ;;  %v7312_v39 = vld [vmem:[%s11414_s2 + $0x11] ss:$4 sm:$0x3] }
 0x2a5   : > { %v3813_v31 = vrot.slane %v3807_v51, 6  ;;  %v4052_v51 = vmul.f32 %v4046_v33, %v9294_v38 }
 0x2a6   : > { %3819 = vrot.lane.b32.xlu1 %v3814_v45, %s7604_s30  ;;  %v4090_v45 = vrot.slane %v7312_v39, %v7821_v32 }
 0x2a7   : > { %3817 = vrot.lane.b32.xlu0 %v3813_v31, %s7604_s30  ;;  %v4058_v31 = vrot.slane %v4050_v18, 7  ;;  %v4061_v60 = vrot.slane %v4052_v51, 7 }
 0x2a9   : > { %v4062_v50 = vsel %vm638_vm0, %v4058_v31, %v4061_v60 }
 0x2aa   : > { %3888 = vrot.lane.b32.xlu1 %v3883_v53, %s7602_s29  ;;  %v4059_v53 = vrot.slane %v4051_v43, 7 }
 0x2ab   : > { %3890 = vrot.lane.b32.xlu0 %v3887_v58, %s7602_s29  ;;  %v4094_v58 = vrot.slane %v7312_v39, %v7770_v21 }
 0x2ad   : > { %v4098_v5 = vmul.f32 %v4094_v58, %v9284_v56 }
 0x2ae   : > { %3918 = vrot.lane.b32.xlu1 %v3913_v28, %s7602_s29  ;;  %v4097_v28 = vmul.f32 %v4090_v45, %v9156_v1 }
 0x2af   : > { %3920 = vrot.lane.b32.xlu0 %v3917_v57, %s7602_s29  ;;  %v4060_v57 = vsel %vm638_vm0, %v4057_v12, %v4059_v53  ;;  %v4102_v27 = vrot.slane %v4098_v5, 6 }
 0x2b2   : > { %3969 = vrot.lane.b32.xlu1 %v3964_v25, %s7602_s29  ;;  %v7313_v25 = vld [vmem:[%s11414_s2 + $0x2] ss:$4 sm:$0x3] }
 0x2b3   : > { %3971 = vrot.lane.b32.xlu0 %v3968_v3, %s7602_s29  ;;  %v4101_v3 = vrot.slane %v4097_v28, 6  ;;  %v4124_v62 = vrot.slane %v7313_v25, %v7821_v32  ;;  %v4128_v29 = vrot.slane %v7313_v25, %v7770_v21 }
 0x2b6   : > { %4015 = vrot.lane.b32.xlu1 %v4007_v11, %s7602_s29 }
 0x2b7   : > { %4017 = vrot.lane.b32.xlu0 %v4008_v47, %s7602_s29 }
 0x2ba   : > { %4019 = vrot.lane.b32.xlu1 %v4009_v59, %s7602_s29 }
 0x2bb   : > { %4021 = vrot.lane.b32.xlu0 %v4010_v52, %s7602_s29 }
 0x2be   : > { %4063 = vrot.lane.b32.xlu1 %v4057_v12, %s7602_s29 }
 0x2bf   : > { %4065 = vrot.lane.b32.xlu0 %v4058_v31, %s7602_s29 }
 0x2c2   : > { %4067 = vrot.lane.b32.xlu1 %v4060_v57, %s7602_s29 }
 0x2c3   : > { %4069 = vrot.lane.b32.xlu0 %v4062_v50, %s7602_s29 }
 0x2c6   : > { %4103 = vrot.lane.b32.xlu1 %v4101_v3, %s7602_s29 }
 0x2c7   : > { %4105 = vrot.lane.b32.xlu0 %v4102_v27, %s7602_s29 }
 0x2ca   : > { %4129 = vrot.lane.b32.xlu1 %v4124_v62, %s7603_s8  ;;  %v9369_v62 = vld [vmem:[#allocation2 + $0x30] sm:$0xff] }
 0x2cb   : > { %4131 = vrot.lane.b32.xlu0 %v4128_v29, %s7603_s8 }
 0x313   : > { %v9327_v11 = vpop.permute.xlu1 %3815 }
 0x318   : > { %v9329_v41 = vpop.permute.xlu1 %3819 }
 0x319   : > { %v9331_v47 = vpop.permute.xlu0 %3817 }
 0x31c   : > { %v9333_v33 = vpop.permute.xlu1 %3888 }
 0x31d   : > { %v9335_v59 = vpop.permute.xlu0 %3890 }
 0x31e   : > { %11740 = vst [vmem:[#allocation12_spill] sm:$0xff] %v9335_v59 }
 0x320   : > { %v9337_v34 = vpop.permute.xlu1 %3918 }
 0x321   : > { %v9339_v52 = vpop.permute.xlu0 %3920 }
 0x324   : > { %v9341_v18 = vpop.permute.xlu1 %3969 }
 0x325   : > { %11741 = vst [vmem:[#allocation13_spill] sm:$0xff] %v9341_v18  ;;  %v9343_v43 = vpop.permute.xlu0 %3971 }
 0x326   : > { %11742 = vst [vmem:[#allocation19_spill] sm:$0xff] %v9343_v43 }
 0x328   : > { %v9345_v39 = vpop.permute.xlu1 %4015 }
 0x329   : > { %11743 = vst [vmem:[#allocation20_spill] sm:$0xff] %v9345_v39  ;;  %v9347_v51 = vpop.permute.xlu0 %4017 }
 0x32a   : > { %11744 = vst [vmem:[#allocation17_spill] sm:$0xff] %v9347_v51 }
 0x32c   : > { %v9349_v12 = vpop.permute.xlu1 %4019 }
 0x32d   : > { %11745 = vst [vmem:[#allocation21_spill] sm:$0xff] %v9349_v12  ;;  %v9351_v45 = vpop.permute.xlu0 %4021 }
 0x32e   : > { %11746 = vst [vmem:[#allocation22_spill] sm:$0xff] %v9351_v45 }
 0x330   : > { %v9353_v31 = vpop.permute.xlu1 %4063 }
 0x331   : > { %11747 = vst [vmem:[#allocation11_spill] sm:$0xff] %v9353_v31  ;;  %v9355_v53 = vpop.permute.xlu0 %4065 }
 0x332   : > { %11748 = vst [vmem:[#allocation29_spill] sm:$0xff] %v9355_v53 }
 0x334   : > { %v9357_v58 = vpop.permute.xlu1 %4067 }
 0x335   : > { %11749 = vst [vmem:[#allocation30_spill] sm:$0xff] %v9357_v58  ;;  %v9359_v60 = vpop.permute.xlu0 %4069 }
 0x336   : > { %11750 = vst [vmem:[#allocation31_spill] sm:$0xff] %v9359_v60 }
 0x338   : > { %v9361_v28 = vpop.permute.xlu1 %4103 }
 0x339   : > { %11751 = vst [vmem:[#allocation32_spill] sm:$0xff] %v9361_v28  ;;  %v9363_v57 = vpop.permute.xlu0 %4105  ;;  %v7314_v28 = vld [vmem:[%s11414_s2 + $0xa] ss:$4 sm:$0x3] }
 0x33a   : > { %11752 = vst [vmem:[#allocation24_spill] sm:$0xff] %v9363_v57  ;;  %v4182_v58 = vrot.slane %v7314_v28, %v7821_v32 }
 0x33c   : > { %v4130_v5 = vpop.permute.xlu1 %4129 }
 0x33d   : > { %v4137_v50 = vmul.f32 %v4130_v5, %v9156_v1  ;;  %v4132_v25 = vpop.permute.xlu0 %4131  ;;  %v4140_v57 = vmul.f32 %v4130_v5, %v9290_v35 }
 0x33e   : > { %v4133_v3 = vsel %vm3673_vm2, %v4130_v5, %v4132_v25  ;;  %v4139_v29 = vmul.f32 %v4132_v25, %v9369_v62 }
 0x33f   : > { %4149 = vrot.lane.b32.xlu1 %v4137_v50, %s7604_s30  ;;  %v4138_v27 = vmul.f32 %v4133_v3, %v9284_v56  ;;  %v4141_v60 = vmul.f32 %v4133_v3, %v9294_v38  ;;  %v4118_v50 = vld [vmem:[#allocation2 + $0xd0] sm:$0x3] }
 0x340   : > { %v4142_v53 = vmul.f32 %v4132_v25, %v4118_v50 }
 0x341   : > { %4151 = vrot.lane.b32.xlu0 %v4138_v27, %s7604_s30  ;;  %v4186_v27 = vrot.slane %v7314_v28, %v7770_v21 }
 0x343   : > { %4153 = vrot.lane.b32.xlu1 %v4139_v29, %s7604_s30 }
 0x345   : > { %4155 = vrot.lane.b32.xlu0 %v4140_v57, %s7604_s30 }
 0x347   : > { %4157 = vrot.lane.b32.xlu1 %v4141_v60, %s7604_s30 }
 0x349   : > { %4159 = vrot.lane.b32.xlu0 %v4142_v53, %s7604_s30 }
 0x34b   : > { %4187 = vrot.lane.b32.xlu1 %v4182_v58, %s7603_s8 }
 0x34d   : > { %4189 = vrot.lane.b32.xlu0 %v4186_v27, %s7603_s8 }
 0x3b1   : > { %v9386_v5 = vpop.permute.xlu1 %4149 }
 0x3b2   : > { %11753 = vst [vmem:[#allocation25_spill] sm:$0xff] %v9386_v5 }
 0x3b3   : > { %v9388_v29 = vpop.permute.xlu0 %4151 }
 0x3b4   : > { %11754 = vst [vmem:[#allocation26_spill] sm:$0xff] %v9388_v29 }
 0x3b5   : > { %v9390_v3 = vpop.permute.xlu1 %4153 }
 0x3b6   : > { %11755 = vst [vmem:[#allocation27_spill] sm:$0xff] %v9390_v3 }
 0x3b7   : > { %v9392_v57 = vpop.permute.xlu0 %4155 }
 0x3b8   : > { %11756 = vst [vmem:[#allocation23_spill] sm:$0xff] %v9392_v57 }
 0x3b9   : > { %v9394_v60 = vpop.permute.xlu1 %4157 }
 0x3ba   : > { %11757 = vst [vmem:[#allocation36_spill] sm:$0xff] %v9394_v60 }
 0x3bb   : > { %v9396_v25 = vpop.permute.xlu0 %4159 }
 0x3bc   : > { %11758 = vst [vmem:[#allocation37_spill] sm:$0xff] %v9396_v25 }
 0x3bd   : > { %v4188_v31 = vpop.permute.xlu1 %4187 }
 0x3be   : > { %v4195_v53 = vmul.f32 %v4188_v31, %v9156_v1  ;;  %v4198_v27 = vmul.f32 %v4188_v31, %v9290_v35 }
 0x3bf   : > { %v4190_v28 = vpop.permute.xlu0 %4189 }
 0x3c0   : > { %v4207_v45 = vrot.slane %v4195_v53, 7  ;;  %v4197_v58 = vmul.f32 %v4190_v28, %v9369_v62  ;;  %v4191_v5 = vsel %vm3673_vm2, %v4188_v31, %v4190_v28  ;;  %v4210_v25 = vrot.slane %v4198_v27, 7  ;;  %v7315_v53 = vld [vmem:[%s11414_s2 + $0x12] ss:$4 sm:$0x3] }
 0x3c1   : > { %v4196_v3 = vmul.f32 %v4191_v5, %v9284_v56  ;;  %v4199_v29 = vmul.f32 %v4191_v5, %v9294_v38  ;;  %v4200_v51 = vmul.f32 %v4190_v28, %v4118_v50  ;;  %v4249_v50 = vrot.slane %v7315_v53, %v7821_v32 }
 0x3c2   : > { %4216 = vrot.lane.b32.xlu1 %v4207_v45, %s7604_s30  ;;  %v4209_v60 = vrot.slane %v4197_v58, 7  ;;  %v4211_v39 = vsel %vm638_vm0, %v4207_v45, %v4210_v25  ;;  %v3425_v58 = vsel %vm3424_vm4, %v9080_v2, %v9091_v15  ;;  %v9446_v38 = vstv %s7219_s5  ;;  %s7058_s5 = scalar_lea.sflag [#allocation4], %s226_s6 }
 0x3c3   : > { %v4208_v57 = vrot.slane %v4196_v3, 7  ;;  %v4212_v12 = vrot.slane %v4199_v29, 7  ;;  %v4214_v31 = vrot.slane %v4200_v51, 7  ;;  %v4253_v29 = vrot.slane %v7315_v53, %v7770_v21  ;;  %v3404_v51 = vld [vmem:[#allocation2 + $0x8] sm:$0xff] }
 0x3c4   : > { %v3462_v3 = vmul.f32 %v9101_v44, %v9132_v40 }
 0x3c5   : > { %4218 = vrot.lane.b32.xlu0 %v4208_v57, %s7604_s30  ;;  %v4213_v43 = vsel %vm638_vm0, %v4208_v57, %v4212_v12  ;;  %v4215_v5 = vsel %vm638_vm0, %v4209_v60, %v4214_v31  ;;  %v3407_v12 = vld [vmem:[#allocation2 + $0xa8] sm:$0x3]  ;;  %v3465_v57 = vmul.f32 %v9124_v22, %v9101_v44 }
 0x3c6   : > { %4220 = vrot.lane.b32.xlu1 %v4209_v60, %s7604_s30  ;;  %v3463_v45 = vmul.f32 %v9097_v55, %v3407_v12  ;;  %v3475_v31 = vrot.slane %v3462_v3, 7  ;;  %v3429_v3 = vmul.f32 %v9080_v2, %v3404_v51 }
 0x3c8   : > { %v3476_v53 = vrot.slane %v3463_v45, 7  ;;  %v3513_v45 = vmul.f32 %v9105_v24, %v3404_v51 }
 0x3c9   : > { %4222 = vrot.lane.b32.xlu0 %v4211_v39, %s7604_s30  ;;  %v3460_v39 = vmul.f32 %v9097_v55, %v3404_v51 }
 0x3ca   : > { %4224 = vrot.lane.b32.xlu1 %v4213_v43, %s7604_s30  ;;  %v3456_v43 = vsel %vm3424_vm4, %v9097_v55, %v9101_v44  ;;  %v3480_v55 = vrot.slane %v3465_v57, 7 }
 0x3cb   : > { %v3461_v60 = vmul.f32 %v3456_v43, %v9129_v42  ;;  %v3464_v25 = vmul.f32 %v9117_v36, %v3456_v43  ;;  %v3473_v27 = vrot.slane %v3460_v39, 7  ;;  %v3509_v43 = vsel %vm3424_vm4, %v9105_v24, %v9115_v30 }
 0x3cc   : > { %v3433_v39 = vmul.f32 %v9117_v36, %v3425_v58  ;;  %v3430_v24 = vmul.f32 %v3425_v58, %v9129_v42 }
 0x3cd   : > { %4226 = vrot.lane.b32.xlu0 %v4215_v5, %s7604_s30  ;;  %v3434_v5 = vmul.f32 %v9124_v22, %v9091_v15  ;;  %v3474_v44 = vrot.slane %v3461_v60, 7  ;;  %v3515_v22 = vmul.f32 %v9115_v30, %v9132_v40  ;;  %v3477_v57 = vsel %vm638_vm0, %v3473_v27, %v3476_v53 }
 0x3ce   : > { %4254 = vrot.lane.b32.xlu1 %v4249_v50, %s7603_s8  ;;  %v3432_v50 = vmul.f32 %v9080_v2, %v3407_v12  ;;  %v3431_v12 = vmul.f32 %v9091_v15, %v9132_v40  ;;  %v3439_v2 = vadd.f32 %v3433_v39, %v9446_v38  ;;  %v3519_v30 = vrot.slane %v3513_v45, 6 }
 0x3cf   : > { %v3440_v36 = vadd.f32 %v3434_v5, %v9446_v38  ;;  %v3521_v53 = vrot.slane %v3515_v22, 6  ;;  %v3561_v39 = vsel %vm3424_vm4, %v9221_v26, %v9184_v16 }
 0x3d0   : > { %v3438_v60 = vadd.f32 %v3432_v50, %v9446_v38  ;;  %v3437_v51 = vadd.f32 %v3431_v12, %v9446_v38  ;;  %v3435_v50 = vadd.f32 %v3429_v3, %v9446_v38 }
 0x3d1   : > { %4256 = vrot.lane.b32.xlu0 %v4253_v29, %s7603_s8  ;;  %v3478_v29 = vrot.slane %v3464_v25, 7  ;;  %v3514_v25 = vmul.f32 %v3509_v43, %v9129_v42  ;;  %v3436_v42 = vadd.f32 %v3430_v24, %v9446_v38  ;;  %v3609_v24 = vsel %vm3424_vm4, %v9231_v14, %v9194_v9 }
 0x3d2   : > { %v3491_v40 = vadd.f32 %v3477_v57, %v3438_v60  ;;  %v3488_v58 = vadd.f32 %v3473_v27, %v3435_v50  ;;  %v3560_v27 = vsel %vm3424_vm4, %v9225_v61, %v9190_v48 }
 0x3d3   : > { %v3520_v43 = vrot.slane %v3514_v25, 6  ;;  %v3489_v3 = vadd.f32 %v3474_v44, %v3436_v42 }
 0x3d4   : > { %v3525_v22 = vadd.f32 %v3519_v30, %v3488_v58 }
 0x3d5   : > { %v3526_v25 = vadd.f32 %v3520_v43, %v3489_v3 }
 0x3d6   : > { %v3568_v60 = vadd.f32 %v9225_v61, %v3525_v22 }
 0x434   : > { %v9431_v28 = vpop.permute.xlu1 %4216 }
 0x435   : > { %11759 = vst [vmem:[#allocation39_spill] sm:$0xff] %v9431_v28 }
 0x437   : > { %v9442_v28 = vpop.permute.xlu0 %4218 }
 0x438   : > { %11760 = vst [vmem:[#allocation40_spill] sm:$0xff] %v9442_v28  ;;  %v9444_v18 = vpop.permute.xlu1 %4220  ;;  %v3479_v28 = vsel %vm638_vm0, %v3474_v44, %v3478_v29  ;;  %v3490_v29 = vadd.f32 %v3475_v31, %v3437_v51  ;;  %v3610_v44 = vsel %vm3424_vm4, %v9235_v8, %v9198_v49 }
 0x439   : > { %11761 = vst [vmem:[#allocation28_spill] sm:$0xff] %v9444_v18  ;;  %v3481_v18 = vsel %vm638_vm0, %v3475_v31, %v3480_v55  ;;  %v3492_v5 = vadd.f32 %v3479_v28, %v3439_v2 }
 0x43a   : > { %v3493_v55 = vadd.f32 %v3481_v18, %v3440_v36  ;;  %v3527_v18 = vadd.f32 %v3521_v53, %v3490_v29 }
 0x43b   : > { %v9462_v15 = vpop.permute.xlu0 %4222  ;;  %v3529_v57 = vadd.f32 %v3520_v43, %v3492_v5 }
 0x43c   : > { %11762 = vst [vmem:[#allocation41_spill] sm:$0xff] %v9462_v15  ;;  %v9464_v35 = vpop.permute.xlu1 %4224  ;;  %v3530_v12 = vadd.f32 %v3521_v53, %v3493_v55  ;;  %v3570_v36 = vadd.f32 %v9190_v48, %v3527_v18  ;;  %v4333_v53 = vld [vmem:[%s11414_s2] ss:$4 sm:$0x3]  ;;  %v3704_v18 = vsel %vm3702_vm5, %v9192_v4, %v9229_v37  ;;  %v3772_v37 = vsel %vm3702_vm5, %v9241_v23, %v9239_v20 }
 0x43d   : > { %11763 = vst [vmem:[#allocation42_spill] sm:$0xff] %v9464_v35  ;;  %v3528_v35 = vadd.f32 %v3519_v30, %v3491_v40  ;;  %v3572_v48 = vadd.f32 %v3561_v39, %v3529_v57  ;;  %v3569_v40 = vadd.f32 %v3560_v27, %v3526_v25 }
 0x43e   : > { %v3573_v61 = vadd.f32 %v9184_v16, %v3530_v12  ;;  %v3619_v50 = vadd.f32 %v9194_v9, %v3570_v36  ;;  %v4338_v9 = vrot.slane %v4333_v53, %v7821_v32  ;;  %v3705_v12 = vsel %vm3702_vm5, %v9186_v63, %v9223_v54 }
 0x43f   : > { %v9470_v59 = vpop.permute.xlu0 %4226  ;;  %v3571_v28 = vadd.f32 %v9221_v26, %v3528_v35  ;;  %v3618_v43 = vadd.f32 %v3609_v24, %v3569_v40  ;;  %v3621_v5 = vadd.f32 %v3610_v44, %v3572_v48 }
 0x440   : > { %v4255_v15 = vpop.permute.xlu1 %4254  ;;  %v3622_v16 = vadd.f32 %v9198_v49, %v3573_v61  ;;  %v7316_v49 = vld [vmem:[%s11414_s2 + $0x8] ss:$4 sm:$0x3] }
 0x441   : > { %v4262_v45 = vmul.f32 %v4255_v15, %v9156_v1  ;;  %v3620_v26 = vadd.f32 %v9235_v8, %v3571_v28  ;;  %v3617_v8 = vadd.f32 %v9231_v14, %v3568_v60  ;;  %v3652_v14 = vadd.f32 %v9196_v10, %v3619_v50 }
 0x442   : > { %v3655_v22 = vadd.f32 %v9196_v10, %v3622_v16  ;;  %v4368_v27 = vrot.slane %v7316_v49, %v7821_v32 }
 0x443   : > { %v4268_v31 = vrot.slane %v4262_v45, 6  ;;  %v4257_v2 = vpop.permute.xlu0 %4256  ;;  %v3650_v58 = vadd.f32 %v9233_v13, %v3617_v8  ;;  %v3653_v29 = vadd.f32 %v9233_v13, %v3620_v26  ;;  %v4342_v45 = vrot.slane %v4333_v53, %v7770_v21  ;;  %v9569_v53 = vld [vmem:[%s11414_s2 + $0x9] ss:$4 sm:$0x3] }
 0x444   : > { %v4258_v35 = vsel %vm3673_vm2, %v4255_v15, %v4257_v2  ;;  %v4264_v30 = vmul.f32 %v4257_v2, %v9369_v62  ;;  %v3646_v15 = vsel %vm3424_vm4, %v9233_v13, %v9196_v10  ;;  %v3703_v13 = vsel %vm3702_vm5, %v9227_v7, %v9192_v4  ;;  %v7317_v4 = vld [vmem:[%s11414_s2 + $0x10] ss:$4 sm:$0x3] }
 0x445   : > { %4271 = vrot.lane.b32.xlu1 %v4268_v31, %s7604_s30  ;;  %v4263_v51 = vmul.f32 %v4258_v35, %v9284_v56  ;;  %v3651_v39 = vadd.f32 %v3646_v15, %v3618_v43  ;;  %v3654_v3 = vadd.f32 %v3646_v15, %v3621_v5  ;;  %v3713_v57 = vadd.f32 %v9227_v7, %v3650_v58  ;;  %v9572_v15 = vld [vmem:[#allocation2 + $0x38] sm:$0xff]  ;;  %v9581_v58 = vld [vmem:[#allocation2 + $0xd0] sm:$0x3] }
 0x446   : > { %v4270_v55 = vrot.slane %v4264_v30, 6  ;;  %v3716_v28 = vadd.f32 %v9186_v63, %v3653_v29  ;;  %v3706_v31 = vsel %vm3702_vm5, %v9223_v54, %v9188_v46  ;;  %v3715_v25 = vadd.f32 %v3704_v18, %v3652_v14 }
 0x447   : > { %v4269_v42 = vrot.slane %v4263_v51, 6  ;;  %v3714_v60 = vadd.f32 %v3703_v13, %v3651_v39  ;;  %v4372_v10 = vrot.slane %v7316_v49, %v7770_v21  ;;  %v3781_v63 = vadd.f32 %v9237_v19, %v3713_v57 }
 0x448   : > { %v3771_v7 = vsel %vm3702_vm5, %v9237_v19, %v9241_v23  ;;  %v3773_v46 = vsel %vm3702_vm5, %v9245_v17, %v9243_v6  ;;  %v3784_v54 = vadd.f32 %v9245_v17, %v3716_v28  ;;  %v3717_v36 = vadd.f32 %v3705_v12, %v3654_v3  ;;  %v7318_v19 = vld [vmem:[%s11414_s2 + $0x1] ss:$4 sm:$0x3] }
 0x449   : > { %4275 = vrot.lane.b32.xlu1 %v4270_v55, %s7604_s30  ;;  %4273 = vrot.lane.b32.xlu0 %v4269_v42, %s7604_s30  ;;  %v3718_v24 = vadd.f32 %v3706_v31, %v3655_v22  ;;  %v3774_v2 = vsel %vm3702_vm5, %v9243_v6, %v9248_v0  ;;  %v3826_v44 = vadd.f32 %v9327_v11, %v3781_v63 }
 0x44a   : > { %v3829_v26 = vadd.f32 %v9327_v11, %v3784_v54  ;;  %v3821_v17 = vsel %vm3702_vm5, %v9327_v11, %v9331_v47  ;;  %v4419_v20 = vrot.slane %v7317_v4, %v7821_v32  ;;  %v3782_v23 = vadd.f32 %v3771_v7, %v3714_v60  ;;  %v3872_v54 = vld [vmem:[#allocation2 + $0x18] sm:$0xff] }
 0x44b   : > { %v3785_v35 = vadd.f32 %v3773_v46, %v3717_v36  ;;  %v3822_v6 = vsel %vm3702_vm5, %v9331_v47, %v9329_v41  ;;  %v4423_v0 = vrot.slane %v7317_v4, %v7770_v21  ;;  %v3783_v30 = vadd.f32 %v3772_v37, %v3715_v25  ;;  %v3875_v37 = vld [vmem:[#allocation2 + $0xb8] sm:$0x3] }
 0x44c   : > { %v3786_v61 = vadd.f32 %v3774_v2, %v3718_v24  ;;  %v4455_v48 = vrot.slane %v7318_v19, %v7821_v32  ;;  %v3827_v40 = vadd.f32 %v3821_v17, %v3782_v23  ;;  %v4459_v51 = vrot.slane %v7318_v19, %v7770_v21 }
 0x44d   : > { %4343 = vrot.lane.b32.xlu1 %v4338_v9, %s7602_s29  ;;  %4345 = vrot.lane.b32.xlu0 %v4342_v45, %s7602_s29  ;;  %v3830_v11 = vadd.f32 %v3821_v17, %v3785_v35  ;;  %v3832_v50 = vmul.f32 0.4, %v3826_v44  ;;  %v3835_v8 = vmul.f32 0.4, %v3829_v26  ;;  %v3828_v41 = vadd.f32 %v3822_v6, %v3783_v30  ;;  %v9584_v45 = vld [vmem:[#allocation2 + $0xd8] sm:$0x3] }
 0x44e   : > { %v3831_v47 = vadd.f32 %v3822_v6, %v3786_v61  ;;  %v4462_v55 = vmul.f32 %v4455_v48, %v9369_v62  ;;  %v9578_v43 = vrot.slane %v9569_v53, %v7821_v32  ;;  %v3833_v16 = vmul.f32 0.4, %v3827_v40  ;;  %v11766_v61 = vld [vmem:[#allocation10_spill] sm:$0xff] }
 0x44f   : > { %v3836_v5 = vmul.f32 0.4, %v3830_v11  ;;  %v4463_v42 = vmul.f32 %v4459_v51, %v9572_v15  ;;  %v3838_v29 = vmax.f32 %v3826_v44, %v3832_v50  ;;  %v3841_v9 = vmax.f32 %v3829_v26, %v3835_v8  ;;  %v11764_v26 = vld [vmem:[#allocation12_spill] sm:$0xff] }
 0x450   : > { %v3834_v14 = vmul.f32 0.4, %v3828_v41  ;;  %v3837_v39 = vmul.f32 0.4, %v3831_v47  ;;  %v4464_v49 = vmul.f32 %v4455_v48, %v9581_v58  ;;  %v9590_v12 = vmul.f32 %v9578_v43, %v9369_v62  ;;  %v11767_v48 = vld [vmem:[#allocation13_spill] sm:$0xff] }
 0x451   : > { %4373 = vrot.lane.b32.xlu1 %v4368_v27, %s7602_s29  ;;  %4375 = vrot.lane.b32.xlu0 %v4372_v10, %s7602_s29  ;;  %v3839_v13 = vmax.f32 %v3827_v40, %v3833_v16  ;;  %v3842_v22 = vmax.f32 %v3830_v11, %v3836_v5  ;;  %v4465_v3 = vmul.f32 %v4459_v51, %v9584_v45  ;;  %v3851_v28 = vrot.slane %v3838_v29, 2  ;;  %v11768_v11 = vld [vmem:[#allocation19_spill] sm:$0xff] }
 0x452   : > { %v3840_v18 = vmax.f32 %v3828_v41, %v3834_v14  ;;  %v3843_v57 = vmax.f32 %v3831_v47, %v3837_v39  ;;  %v3852_v27 = vrot.slane %v3841_v9, 2  ;;  %v4512_v31 = vrot.slane %v9590_v12, 7 }
 0x453   : > { %v3854_v60 = vrot.slane %v3839_v13, 2  ;;  %v3855_v25 = vrot.slane %v3842_v22, 2  ;;  %v3926_v36 = vmul.f32 %v9337_v34, %v3872_v54  ;;  %v3929_v24 = vmul.f32 %v9337_v34, %v3875_v37 }
 0x454   : > { %v3857_v10 = vrot.slane %v3840_v18, 2  ;;  %v3858_v4 = vrot.slane %v3843_v57, 2  ;;  %v3853_v63 = vsel %vm3850_vm6, %v3851_v28, %v3852_v27  ;;  %v3922_v2 = vsel %vm3424_vm4, %v9337_v34, %v9339_v52 }
 0x455   : > { %4424 = vrot.lane.b32.xlu1 %v4419_v20, %s7602_s29  ;;  %4426 = vrot.lane.b32.xlu0 %v4423_v0, %s7602_s29  ;;  %v3856_v7 = vsel %vm3850_vm6, %v3854_v60, %v3855_v25  ;;  %v3896_v19 = vmul.f32 %v9333_v33, %v3872_v54  ;;  %v3899_v44 = vmul.f32 %v9333_v33, %v3875_v37  ;;  %v3938_v20 = vrot.slane %v3926_v36, 7  ;;  %v11765_v0 = vld [vmem:[#allocation9_spill] sm:$0xff] }
 0x456   : > { %v3859_v46 = vsel %vm3850_vm6, %v3857_v10, %v3858_v4  ;;  %v3892_v17 = vsel %vm3424_vm4, %v9333_v33, %v11764_v26  ;;  %v3941_v23 = vrot.slane %v3929_v24, 7  ;;  %v3927_v35 = vmul.f32 %v3922_v2, %v9156_v1  ;;  %v11770_v24 = vld [vmem:[#allocation21_spill] sm:$0xff] }
 0x457   : > { %v3928_v6 = vmul.f32 %v9339_v52, %v9284_v56  ;;  %v3930_v30 = vmul.f32 %v3922_v2, %v11765_v0  ;;  %v3931_v34 = vmul.f32 %v9339_v52, %v11766_v61  ;;  %v3977_v40 = vmul.f32 %v11767_v48, %v3872_v54  ;;  %v11769_v54 = vld [vmem:[#allocation20_spill] sm:$0xff] }
 0x458   : > { %v3973_v51 = vsel %vm3424_vm4, %v11767_v48, %v11768_v11  ;;  %v3902_v33 = vadd.f32 %v3896_v19, %v9446_v38  ;;  %v3905_v50 = vadd.f32 %v3899_v44, %v9446_v38  ;;  %v3897_v8 = vmul.f32 %v3892_v17, %v9156_v1  ;;  %v11771_v19 = vld [vmem:[#allocation17_spill] sm:$0xff] }
 0x459   : > { %4470 = vrot.lane.b32.xlu1 %v4462_v55, %s7602_s29  ;;  %4472 = vrot.lane.b32.xlu0 %v4463_v42, %s7602_s29  ;;  %v3898_v41 = vmul.f32 %v11764_v26, %v9284_v56  ;;  %v3939_v47 = vrot.slane %v3927_v35, 7  ;;  %v3940_v55 = vrot.slane %v3928_v6, 7  ;;  %v3979_v52 = vmul.f32 %v11768_v11, %v9284_v56  ;;  %v11774_v35 = vld [vmem:[#allocation30_spill] sm:$0xff]  ;;  %v11776_v11 = vld [vmem:[#allocation31_spill] sm:$0xff] }
 0x45a   : > { %v3942_v16 = vsel %vm638_vm0, %v3938_v20, %v3941_v23  ;;  %v3943_v5 = vrot.slane %v3930_v30, 7  ;;  %v3945_v42 = vrot.slane %v3931_v34, 7  ;;  %v3983_v29 = vrot.slane %v3977_v40, 6  ;;  %v11775_v34 = vld [vmem:[#allocation29_spill] sm:$0xff] }
 0x45b   : > { %v3978_v9 = vmul.f32 %v3973_v51, %v9156_v1  ;;  %v3900_v14 = vmul.f32 %v3892_v17, %v11765_v0  ;;  %v3901_v39 = vmul.f32 %v11764_v26, %v11766_v61  ;;  %v3956_v13 = vadd.f32 %v3942_v16, %v3905_v50  ;;  %v11772_v26 = vld [vmem:[#allocation22_spill] sm:$0xff] }
 0x45c   : > { %v3903_v22 = vadd.f32 %v3897_v8, %v9446_v38  ;;  %v3985_v18 = vrot.slane %v3979_v52, 6  ;;  %v3944_v28 = vsel %vm638_vm0, %v3939_v47, %v3943_v5  ;;  %v3946_v27 = vsel %vm638_vm0, %v3940_v55, %v3945_v42  ;;  %v11779_v42 = vld [vmem:[#allocation25_spill] sm:$0xff] }
 0x45d   : > { %4474 = vrot.lane.b32.xlu1 %v4464_v49, %s7602_s29  ;;  %4476 = vrot.lane.b32.xlu0 %v4465_v3, %s7602_s29  ;;  %v3953_v49 = vadd.f32 %v3938_v20, %v3902_v33  ;;  %v3904_v3 = vadd.f32 %v3898_v41, %v9446_v38  ;;  %v3984_v56 = vrot.slane %v3978_v9, 6  ;;  %v3906_v1 = vadd.f32 %v3900_v14, %v9446_v38  ;;  %v11773_v20 = vld [vmem:[#allocation11_spill] sm:$0xff]  ;;  %v11777_v33 = vld [vmem:[#allocation32_spill] sm:$0xff] }
 0x45e   : > { %v3907_v60 = vadd.f32 %v3901_v39, %v9446_v38  ;;  %v3954_v10 = vadd.f32 %v3939_v47, %v3903_v22  ;;  %v3992_v4 = vadd.f32 %v3983_v29, %v3956_v13  ;;  %v4023_v44 = vsel %vm3424_vm4, %v11769_v54, %v11771_v19  ;;  %v11780_v9 = vld [vmem:[#allocation23_spill] sm:$0xff]  ;;  %v11781_v13 = vld [vmem:[#allocation26_spill] sm:$0xff] }
 0x45f   : > { %v3989_v57 = vadd.f32 %v3983_v29, %v3953_v49  ;;  %v3955_v25 = vadd.f32 %v3940_v55, %v3904_v3  ;;  %v4024_v17 = vsel %vm3424_vm4, %v11770_v24, %v11772_v26  ;;  %v4071_v48 = vsel %vm3424_vm4, %v11773_v20, %v11775_v34  ;;  %v11778_v55 = vld [vmem:[#allocation24_spill] sm:$0xff]  ;;  %v11782_v3 = vld [vmem:[#allocation27_spill] sm:$0xff] }
 0x460   : > { %v3990_v36 = vadd.f32 %v3984_v56, %v3954_v10  ;;  %v4034_v2 = vadd.f32 %v11770_v24, %v3992_v4  ;;  %v4072_v51 = vsel %vm3424_vm4, %v11774_v35, %v11776_v11  ;;  %v4107_v52 = vsel %vm3424_vm4, %v11777_v33, %v11778_v55  ;;  %v11785_v10 = vld [vmem:[#allocation36_spill] sm:$0xff] }
 0x461   : > { %4518 = vrot.lane.b32.xlu1 %v4512_v31, %s7602_s29  ;;  %3860 = vrot.lane.b32.xlu0 %v3853_v63, %s7603_s8  ;;  %v3991_v63 = vadd.f32 %v3985_v18, %v3955_v25  ;;  %v4031_v37 = vadd.f32 %v11769_v54, %v3989_v57  ;;  %v4161_v22 = vsel %vm3702_vm5, %v11779_v42, %v11781_v13 }
 0x462   : > { %v4082_v6 = vadd.f32 %v11774_v35, %v4034_v2  ;;  %v4032_v40 = vadd.f32 %v4023_v44, %v3990_v36  ;;  %v4163_v4 = vsel %vm3702_vm5, %v11780_v9, %v11785_v10 }
 0x463   : > { %v4079_v23 = vadd.f32 %v11773_v20, %v4031_v37  ;;  %v4033_v0 = vadd.f32 %v11771_v19, %v3991_v63  ;;  %v11787_v19 = vld [vmem:[#allocation40_spill] sm:$0xff]  ;;  %v11789_v20 = vld [vmem:[#allocation42_spill] sm:$0xff] }
 0x464   : > { %v4114_v8 = vadd.f32 %v11777_v33, %v4082_v6  ;;  %v4080_v16 = vadd.f32 %v4071_v48, %v4032_v40  ;;  %v4231_v35 = vsel %vm3702_vm5, %v11789_v20, %v9470_v59 }
 0x465   : > { %3862 = vrot.lane.b32.xlu1 %v3856_v7, %s7603_s8  ;;  %3864 = vrot.lane.b32.xlu0 %v3859_v46, %s7603_s8  ;;  %v3957_v7 = vadd.f32 %v3944_v28, %v3906_v1  ;;  %v3958_v46 = vadd.f32 %v3946_v27, %v3907_v60  ;;  %v4111_v50 = vadd.f32 %v11777_v33, %v4079_v23  ;;  %v11783_v28 = vld [vmem:[#allocation39_spill] sm:$0xff]  ;;  %v11784_v1 = vld [vmem:[#allocation41_spill] sm:$0xff] }
 0x466   : > { %v4081_v5 = vadd.f32 %v11775_v34, %v4033_v0  ;;  %v4174_v14 = vadd.f32 %v11780_v9, %v4114_v8  ;;  %v4228_v44 = vsel %vm3702_vm5, %v11783_v28, %v11787_v19  ;;  %v4230_v23 = vsel %vm3702_vm5, %v11784_v1, %v11789_v20 }
 0x467   : > { %v3993_v30 = vadd.f32 %v3984_v56, %v3957_v7  ;;  %v3994_v61 = vadd.f32 %v3985_v18, %v3958_v46  ;;  %v4171_v29 = vadd.f32 %v11779_v42, %v4111_v50  ;;  %v4162_v18 = vsel %vm3702_vm5, %v11781_v13, %v11782_v3  ;;  %v11786_v7 = vld [vmem:[#allocation37_spill] sm:$0xff] }
 0x468   : > { %v4112_v56 = vadd.f32 %v4107_v52, %v4080_v16  ;;  %v4113_v57 = vadd.f32 %v11778_v55, %v4081_v5  ;;  %v4241_v60 = vadd.f32 %v11784_v1, %v4174_v14  ;;  %v4164_v46 = vsel %vm3702_vm5, %v11785_v10, %v11786_v7 }
 0x469   : > { %v4035_v41 = vadd.f32 %v4024_v17, %v3993_v30  ;;  %v4036_v47 = vadd.f32 %v11772_v26, %v3994_v61  ;;  %v4238_v27 = vadd.f32 %v11783_v28, %v4171_v29  ;;  %v11788_v26 = vld [vmem:[#allocation28_spill] sm:$0xff]  ;;  %v4501_v1 = vrot.slane %v9569_v53, %v7770_v21 }
 0x46a   : > { %v4172_v37 = vadd.f32 %v4161_v22, %v4112_v56  ;;  %v4173_v36 = vadd.f32 %v4162_v18, %v4113_v57  ;;  %v4229_v17 = vsel %vm3702_vm5, %v11787_v19, %v11788_v26 }
 0x46b   : > { %v4083_v39 = vadd.f32 %v4072_v51, %v4035_v41  ;;  %v4084_v49 = vadd.f32 %v11776_v11, %v4036_v47 }
 0x46c   : > { %v4239_v48 = vadd.f32 %v4228_v44, %v4172_v37  ;;  %v4240_v40 = vadd.f32 %v4229_v17, %v4173_v36 }
 0x46d   : > { %v4115_v25 = vadd.f32 %v4107_v52, %v4083_v39  ;;  %v4116_v63 = vadd.f32 %v11778_v55, %v4084_v49 }
 0x46f   : > { %v4175_v6 = vadd.f32 %v4163_v4, %v4115_v25  ;;  %v4176_v0 = vadd.f32 %v4164_v46, %v4116_v63  ;;  %v4506_v4 = vmul.f32 %v9578_v43, %v9581_v58  ;;  %v7320_v63 = vld [vmem:[%s11414_s2 + $0x11] ss:$4 sm:$0x3]  ;;  %v4505_v43 = vmul.f32 %v4501_v1, %v9572_v15 }
 0x470   : > { %v4545_v53 = vrot.slane %v7320_v63, %v7821_v32 }
 0x471   : > { %v4242_v11 = vadd.f32 %v4230_v23, %v4175_v6  ;;  %v4243_v51 = vadd.f32 %v4231_v35, %v4176_v0  ;;  %v4513_v17 = vrot.slane %v4505_v43, 7  ;;  %v4549_v23 = vrot.slane %v7320_v63, %v7770_v21  ;;  %v7321_v0 = vld [vmem:[%s11414_s2 + $0x2] ss:$4 sm:$0x3]  ;;  %v4573_v63 = vld [vmem:[#allocation2 + $0xe0] sm:$0x3] }
 0x472   : > { %v4552_v26 = vmul.f32 %v4545_v53, %v9369_v62 }
 0x473   : > { %v4553_v12 = vmul.f32 %v4549_v23, %v9572_v15 }
 0x4b7   : > { %v4272_v54 = vpop.permute.xlu1 %4271 }
 0x4b8   : > { %v4282_v24 = vadd.f32 %v4272_v54, %v4238_v27  ;;  %v4285_v2 = vadd.f32 %v4272_v54, %v4241_v60 }
 0x4ba   : > { %v4288_v30 = vmul.f32 0.4, %v4282_v24  ;;  %v4291_v61 = vmul.f32 0.4, %v4285_v2 }
 0x4bb   : > { %v4276_v34 = vpop.permute.xlu1 %4275  ;;  %v4274_v33 = vpop.permute.xlu0 %4273 }
 0x4bc   : > { %v4294_v50 = vmax.f32 %v4282_v24, %v4288_v30  ;;  %v4297_v8 = vmax.f32 %v4285_v2, %v4291_v61  ;;  %v4277_v41 = vsel %vm3702_vm5, %v4272_v54, %v4274_v33  ;;  %v4278_v47 = vsel %vm3702_vm5, %v4274_v33, %v4276_v34 }
 0x4bd   : > { %v4283_v55 = vadd.f32 %v4277_v41, %v4239_v48  ;;  %v4284_v52 = vadd.f32 %v4278_v47, %v4240_v40  ;;  %v4286_v16 = vadd.f32 %v4277_v41, %v4242_v11  ;;  %v4287_v59 = vadd.f32 %v4278_v47, %v4243_v51 }
 0x4be   : > { %v4306_v49 = vrot.slane %v4294_v50, 2  ;;  %v4307_v18 = vrot.slane %v4297_v8, 2  ;;  %v4514_v24 = vrot.slane %v4506_v4, 7  ;;  %v4507_v2 = vmul.f32 %v4501_v1, %v9584_v45 }
 0x4bf   : > { %v9700_v5 = vpop.permute.xlu1 %4343  ;;  %v4289_v42 = vmul.f32 0.4, %v4283_v55  ;;  %v4290_v29 = vmul.f32 0.4, %v4284_v52  ;;  %v4292_v9 = vmul.f32 0.4, %v4286_v16  ;;  %v9702_v14 = vpop.permute.xlu0 %4345  ;;  %v4579_v34 = vrot.slane %v7321_v0, %v7821_v32 }
 0x4c0   : > { %v4293_v39 = vmul.f32 0.4, %v4287_v59  ;;  %v4308_v7 = vsel %vm3850_vm6, %v4306_v49, %v4307_v18  ;;  %v4515_v20 = vsel %vm638_vm0, %v4512_v31, %v4514_v24  ;;  %v4516_v35 = vrot.slane %v4507_v2, 7 }
 0x4c1   : > { %v4295_v13 = vmax.f32 %v4283_v55, %v4289_v42  ;;  %v4296_v22 = vmax.f32 %v4284_v52, %v4290_v29  ;;  %v4298_v3 = vmax.f32 %v4286_v16, %v4292_v9  ;;  %4315 = vrot.lane.b32.xlu0 %v4308_v7, %s7603_s8  ;;  %v4556_v30 = vrot.slane %v4552_v26, 6 }
 0x4c2   : > { %v4299_v56 = vmax.f32 %v4287_v59, %v4293_v39  ;;  %v4517_v31 = vsel %vm638_vm0, %v4513_v17, %v4516_v35  ;;  %v4557_v11 = vrot.slane %v4553_v12, 6  ;;  %v4583_v51 = vrot.slane %v7321_v0, %v7770_v21 }
 0x4c3   : > { %v9704_v57 = vpop.permute.xlu1 %4373  ;;  %v4312_v28 = vrot.slane %v4296_v22, 2  ;;  %v9706_v27 = vpop.permute.xlu0 %4375  ;;  %v4309_v60 = vrot.slane %v4295_v13, 2  ;;  %v4310_v25 = vrot.slane %v4298_v3, 2  ;;  %v9782_v3 = vld [vmem:[#allocation2 + $0x40] sm:$0xff] }
 0x4c4   : > { %v4313_v10 = vrot.slane %v4299_v56, 2 }
 0x4c5   : > { %v4311_v36 = vsel %vm3850_vm6, %v4309_v60, %v4310_v25  ;;  %v7322_v60 = vld [vmem:[%s11414_s2 + $0xa] ss:$4 sm:$0x3] }
 0x4c6   : > { %v4314_v54 = vsel %vm3850_vm6, %v4312_v28, %v4313_v10  ;;  %4317 = vrot.lane.b32.xlu1 %v4311_v36, %s7603_s8  ;;  %v4637_v4 = vrot.slane %v7322_v60, %v7821_v32 }
 0x4c7   : > { %v9717_v46 = vpop.permute.xlu1 %4424  ;;  %v9720_v37 = vpop.permute.xlu0 %4426  ;;  %4319 = vrot.lane.b32.xlu0 %v4314_v54, %s7603_s8  ;;  %v4641_v54 = vrot.slane %v7322_v60, %v7770_v21 }
 0x4ca   : > { %4522 = vrot.lane.b32.xlu1 %v4515_v20, %s7602_s29 }
 0x4cb   : > { %v9728_v19 = vpop.permute.xlu1 %4470  ;;  %v9730_v44 = vpop.permute.xlu0 %4472  ;;  %4520 = vrot.lane.b32.xlu0 %v4513_v17, %s7602_s29 }
 0x4ce   : > { %4558 = vrot.lane.b32.xlu1 %v4556_v30, %s7602_s29 }
 0x4cf   : > { %v9739_v6 = vpop.permute.xlu1 %4474  ;;  %v9744_v61 = vpop.permute.xlu0 %4476  ;;  %4524 = vrot.lane.b32.xlu0 %v4517_v31, %s7602_s29 }
 0x4d2   : > { %4584 = vrot.lane.b32.xlu1 %v4579_v34, %s7603_s8 }
 0x4d3   : > { %v9752_v48 = vpop.permute.xlu1 %4518  ;;  %v3861_v40 = vpop.permute.xlu0 %3860  ;;  %4560 = vrot.lane.b32.xlu0 %v4557_v11, %s7602_s29 }
 0x4d7   : > { %v3863_v33 = vpop.permute.xlu1 %3862  ;;  %v3865_v8 = vpop.permute.xlu0 %3864  ;;  %4586 = vrot.lane.b32.xlu0 %v4583_v51, %s7603_s8 }
 0x4d8   : > { %v3866_v50 = vsel %vm3673_vm2, %v3861_v40, %v3863_v33  ;;  %v3867_v41 = vsel %vm3673_vm2, %v3863_v33, %v3865_v8  ;;  %v7323_v8 = vld [vmem:[%s11414_s2 + $0x12] ss:$4 sm:$0x3] }
 0x4d9   : > { %3870 = vst [vmem:[%s9760_s10] sm:$0xff] %v3866_v50  ;;  %3871 = vst [vmem:[%s9760_s10 + $0x8] sm:$0xff] %v3867_v41 }
 0x533   : > { %v4316_v47 = vpop.permute.xlu0 %4315 }
 0x538   : > { %v4318_v55 = vpop.permute.xlu1 %4317 }
 0x539   : > { %v4321_v52 = vsel %vm3673_vm2, %v4316_v47, %v4318_v55  ;;  %v4320_v16 = vpop.permute.xlu0 %4319 }
 0x53a   : > { %4325 = vst [vmem:[%s9760_s10 + $0x10] sm:$0xff] %v4321_v52  ;;  %v4322_v59 = vsel %vm3673_vm2, %v4318_v55, %v4320_v16  ;;  %v4704_v52 = vrot.slane %v7323_v8, %v7821_v32 }
 0x53b   : > { %4326 = vst [vmem:[%s9760_s10 + $0x18] sm:$0xff] %v4322_v59  ;;  %v4708_v59 = vrot.slane %v7323_v8, %v7770_v21 }
 0x53c   : > { %v9770_v42 = vpop.permute.xlu1 %4522 }
 0x53d   : > { %v9772_v29 = vpop.permute.xlu0 %4520 }
 0x540   : > { %v9774_v9 = vpop.permute.xlu1 %4558 }
 0x541   : > { %v9776_v39 = vpop.permute.xlu0 %4524 }
 0x544   : > { %v4585_v49 = vpop.permute.xlu1 %4584 }
 0x545   : > { %v4592_v13 = vmul.f32 %v4585_v49, %v9369_v62  ;;  %v9779_v22 = vpop.permute.xlu0 %4560  ;;  %v4595_v10 = vmul.f32 %v4585_v49, %v9581_v58 }
 0x547   : > { %4604 = vrot.lane.b32.xlu1 %v4592_v13, %s7604_s30 }
 0x549   : > { %v4587_v18 = vpop.permute.xlu0 %4586 }
 0x54a   : > { %v4588_v56 = vsel %vm3673_vm2, %v4585_v49, %v4587_v18  ;;  %v4594_v28 = vmul.f32 %v4587_v18, %v9782_v3  ;;  %v4597_v7 = vmul.f32 %v4587_v18, %v4573_v63 }
 0x54b   : > { %v4593_v1 = vmul.f32 %v4588_v56, %v9572_v15  ;;  %v4596_v25 = vmul.f32 %v4588_v56, %v9584_v45 }
 0x54c   : > { %4608 = vrot.lane.b32.xlu1 %v4594_v28, %s7604_s30 }
 0x54d   : > { %4606 = vrot.lane.b32.xlu0 %v4593_v1, %s7604_s30 }
 0x550   : > { %4612 = vrot.lane.b32.xlu1 %v4596_v25, %s7604_s30 }
 0x551   : > { %4610 = vrot.lane.b32.xlu0 %v4595_v10, %s7604_s30 }
 0x554   : > { %4642 = vrot.lane.b32.xlu1 %v4637_v4, %s7603_s8 }
 0x555   : > { %4614 = vrot.lane.b32.xlu0 %v4597_v7, %s7604_s30 }
 0x559   : > { %4644 = vrot.lane.b32.xlu0 %v4641_v54, %s7603_s8 }
 0x5b9   : > { %v9801_v53 = vpop.permute.xlu1 %4604 }
 0x5be   : > { %v9803_v36 = vpop.permute.xlu1 %4608 }
 0x5bf   : > { %v9805_v43 = vpop.permute.xlu0 %4606 }
 0x5c2   : > { %v9807_v24 = vpop.permute.xlu1 %4612 }
 0x5c3   : > { %v9809_v2 = vpop.permute.xlu0 %4610 }
 0x5c6   : > { %v4643_v26 = vpop.permute.xlu1 %4642 }
 0x5c7   : > { %v4650_v17 = vmul.f32 %v4643_v26, %v9369_v62  ;;  %v9812_v20 = vpop.permute.xlu0 %4614  ;;  %v4653_v0 = vmul.f32 %v4643_v26, %v9581_v58 }
 0x5c9   : > { %v4662_v23 = vrot.slane %v4650_v17, 7  ;;  %v4665_v33 = vrot.slane %v4653_v0, 7 }
 0x5cb   : > { %4671 = vrot.lane.b32.xlu1 %v4662_v23, %s7604_s30  ;;  %v4645_v35 = vpop.permute.xlu0 %4644  ;;  %v4666_v55 = vsel %vm638_vm0, %v4662_v23, %v4665_v33  ;;  %v4330_v23 = vld [vmem:[#allocation2 + $0xc8] sm:$0x3]  ;;  %v4383_v33 = vmul.f32 %v9706_v27, %v9572_v15 }
 0x5cc   : > { %v4646_v30 = vsel %vm3673_vm2, %v4643_v26, %v4645_v35  ;;  %v4652_v12 = vmul.f32 %v4645_v35, %v9782_v3  ;;  %v4655_v50 = vmul.f32 %v4645_v35, %v4573_v63  ;;  %v7487_v35 = vld [vmem:[#allocation2 + $0x28] sm:$0xff] }
 0x5cd   : > { %v4651_v31 = vmul.f32 %v4646_v30, %v9572_v15  ;;  %v4654_v34 = vmul.f32 %v4646_v30, %v9584_v45  ;;  %v4381_v0 = vmul.f32 %v7487_v35, %v9704_v57  ;;  %v4384_v30 = vmul.f32 %v9704_v57, %v4330_v23 }
 0x5ce   : > { %v4664_v40 = vrot.slane %v4652_v12, 7  ;;  %v4669_v47 = vrot.slane %v4655_v50, 7  ;;  %v4377_v12 = vsel %vm3424_vm4, %v9704_v57, %v9706_v27  ;;  %v4386_v50 = vmul.f32 %v9706_v27, %v9584_v45 }
 0x5cf   : > { %v4663_v11 = vrot.slane %v4651_v31, 7  ;;  %v4667_v51 = vrot.slane %v4654_v34, 7  ;;  %v4351_v31 = vmul.f32 %v7487_v35, %v9700_v5  ;;  %v4354_v34 = vmul.f32 %v9700_v5, %v4330_v23 }
 0x5d0   : > { %4675 = vrot.lane.b32.xlu1 %v4664_v40, %s7604_s30  ;;  %v4670_v16 = vsel %vm638_vm0, %v4664_v40, %v4669_v47  ;;  %v4393_v40 = vrot.slane %v4381_v0, 7  ;;  %v4432_v8 = vmul.f32 %v7487_v35, %v9717_v46  ;;  %v4382_v57 = vmul.f32 %v4377_v12, %v9369_v62 }
 0x5d1   : > { %4673 = vrot.lane.b32.xlu0 %v4663_v11, %s7604_s30  ;;  %v4668_v41 = vsel %vm638_vm0, %v4663_v11, %v4667_v51  ;;  %v4396_v11 = vrot.slane %v4384_v30, 7  ;;  %v4347_v51 = vsel %vm3424_vm4, %v9700_v5, %v9702_v14  ;;  %v4353_v47 = vmul.f32 %v9702_v14, %v9572_v15 }
 0x5d2   : > { %v4357_v5 = vadd.f32 %v4351_v31, %v9446_v38 }
 0x5d3   : > { %v4397_v27 = vsel %vm638_vm0, %v4393_v40, %v4396_v11  ;;  %v4359_v35 = vadd.f32 %v4353_v47, %v9446_v38  ;;  %v4478_v47 = vsel %vm3424_vm4, %v9728_v19, %v9730_v44 }
 0x5d4   : > { %4679 = vrot.lane.b32.xlu1 %v4668_v41, %s7604_s30  ;;  %v4385_v41 = vmul.f32 %v4377_v12, %v9581_v58 }
 0x5d5   : > { %4677 = vrot.lane.b32.xlu0 %v4666_v55, %s7604_s30  ;;  %v4428_v55 = vsel %vm3424_vm4, %v9717_v46, %v9720_v37  ;;  %v4434_v46 = vmul.f32 %v9720_v37, %v9572_v15 }
 0x5d7   : > { %v4440_v12 = vrot.slane %v4434_v46, 6 }
 0x5d8   : > { %4709 = vrot.lane.b32.xlu1 %v4704_v52, %s7603_s8  ;;  %v4360_v52 = vadd.f32 %v4354_v34, %v9446_v38 }
 0x5d9   : > { %4681 = vrot.lane.b32.xlu0 %v4670_v16, %s7604_s30  ;;  %v7488_v16 = vld [vmem:[#allocation2 + $0x30] sm:$0xff] }
 0x5dd   : > { %4711 = vrot.lane.b32.xlu0 %v4708_v59, %s7603_s8  ;;  %v4352_v59 = vmul.f32 %v7488_v16, %v4347_v51 }
 0x5df   : > { %v4358_v23 = vadd.f32 %v4352_v59, %v9446_v38 }
 0x63d   : > { %v9835_v49 = vpop.permute.xlu1 %4671 }
 0x642   : > { %v9837_v13 = vpop.permute.xlu1 %4675 }
 0x643   : > { %v9839_v18 = vpop.permute.xlu0 %4673 }
 0x646   : > { %v9841_v56 = vpop.permute.xlu1 %4679 }
 0x647   : > { %v9843_v28 = vpop.permute.xlu0 %4677 }
 0x64a   : > { %v4710_v1 = vpop.permute.xlu1 %4709 }
 0x64b   : > { %v4717_v60 = vmul.f32 %v4710_v1, %v9369_v62  ;;  %v9846_v25 = vpop.permute.xlu0 %4681  ;;  %v4356_v62 = vmul.f32 %v9702_v14, %v9584_v45 }
 0x64d   : > { %v4723_v10 = vrot.slane %v4717_v60, 6  ;;  %v4400_v60 = vrot.slane %v4386_v50, 7  ;;  %v4362_v14 = vadd.f32 %v4356_v62, %v9446_v38 }
 0x64f   : > { %v4712_v4 = vpop.permute.xlu0 %4711  ;;  %4726 = vrot.lane.b32.xlu1 %v4723_v10, %s7604_s30  ;;  %v4438_v10 = vrot.slane %v4432_v8, 6 }
 0x650   : > { %v4713_v63 = vsel %vm3673_vm2, %v4710_v1, %v4712_v4  ;;  %v4719_v7 = vmul.f32 %v4712_v4, %v9782_v3  ;;  %v4395_v1 = vrot.slane %v4383_v33, 7  ;;  %v4394_v4 = vrot.slane %v4382_v57, 7 }
 0x651   : > { %v4718_v54 = vmul.f32 %v4713_v63, %v9572_v15  ;;  %v4398_v63 = vrot.slane %v4385_v41, 7 }
 0x652   : > { %v4725_v26 = vrot.slane %v4719_v7, 6  ;;  %v4433_v7 = vmul.f32 %v7488_v16, %v4428_v55  ;;  %v4401_v45 = vsel %vm638_vm0, %v4395_v1, %v4400_v60  ;;  %v4409_v37 = vadd.f32 %v4394_v4, %v4358_v23 }
 0x653   : > { %v4724_v17 = vrot.slane %v4718_v54, 6  ;;  %v4355_v54 = vmul.f32 %v4347_v51, %v9581_v58  ;;  %v4399_v31 = vsel %vm638_vm0, %v4394_v4, %v4398_v63  ;;  %v4410_v58 = vadd.f32 %v4395_v1, %v4359_v35 }
 0x654   : > { %4730 = vrot.lane.b32.xlu1 %v4725_v26, %s7604_s30  ;;  %v4408_v26 = vadd.f32 %v4393_v40, %v4357_v5  ;;  %v4439_v30 = vrot.slane %v4433_v7, 6  ;;  %v4413_v40 = vadd.f32 %v4401_v45, %v4362_v14  ;;  %v4479_v5 = vsel %vm3424_vm4, %v9739_v6, %v9744_v61 }
 0x655   : > { %4728 = vrot.lane.b32.xlu0 %v4724_v17, %s7604_s30  ;;  %v4411_v17 = vadd.f32 %v4397_v27, %v4360_v52  ;;  %v4361_v34 = vadd.f32 %v4355_v54, %v9446_v38  ;;  %v4446_v8 = vadd.f32 %v4440_v12, %v4410_v58  ;;  %v4526_v16 = vsel %vm3424_vm4, %v9752_v48, %v9772_v29 }
 0x656   : > { %v4444_v0 = vadd.f32 %v4438_v10, %v4408_v26  ;;  %v4445_v50 = vadd.f32 %v4439_v30, %v4409_v37  ;;  %v4449_v55 = vadd.f32 %v4440_v12, %v4413_v40  ;;  %v4616_v26 = vsel %vm3702_vm5, %v9801_v53, %v9805_v43 }
 0x657   : > { %v4447_v15 = vadd.f32 %v4438_v10, %v4411_v17  ;;  %v4412_v33 = vadd.f32 %v4399_v31, %v4361_v34  ;;  %v4488_v1 = vadd.f32 %v9730_v44, %v4446_v8  ;;  %v4562_v44 = vsel %vm3424_vm4, %v9774_v9, %v9779_v22 }
 0x658   : > { %v4486_v11 = vadd.f32 %v9728_v19, %v4444_v0  ;;  %v4487_v62 = vadd.f32 %v4478_v47, %v4445_v50  ;;  %v4491_v60 = vadd.f32 %v9744_v61, %v4449_v55  ;;  %v4527_v19 = vsel %vm3424_vm4, %v9770_v42, %v9776_v39 }
 0x659   : > { %v4489_v51 = vadd.f32 %v9739_v6, %v4447_v15  ;;  %v4448_v52 = vadd.f32 %v4439_v30, %v4412_v33  ;;  %v4619_v23 = vsel %vm3702_vm5, %v9807_v24, %v9812_v20 }
 0x65a   : > { %v4534_v57 = vadd.f32 %v9752_v48, %v4486_v11  ;;  %v4535_v63 = vadd.f32 %v4526_v16, %v4487_v62  ;;  %v4536_v48 = vadd.f32 %v9772_v29, %v4488_v1  ;;  %v4539_v7 = vadd.f32 %v9776_v39, %v4491_v60 }
 0x65b   : > { %v4537_v41 = vadd.f32 %v9770_v42, %v4489_v51  ;;  %v4490_v10 = vadd.f32 %v4479_v5, %v4448_v52  ;;  %v4617_v29 = vsel %vm3702_vm5, %v9805_v43, %v9803_v36  ;;  %v4685_v36 = vsel %vm3702_vm5, %v9843_v28, %v9841_v56 }
 0x65c   : > { %v4566_v59 = vadd.f32 %v9774_v9, %v4534_v57  ;;  %v4568_v42 = vadd.f32 %v9779_v22, %v4536_v48  ;;  %v4571_v39 = vadd.f32 %v9779_v22, %v4539_v7  ;;  %v4567_v45 = vadd.f32 %v4562_v44, %v4535_v63  ;;  %v7324_v7 = vld [vmem:[%s11414_s2 + $0x8] ss:$4 sm:$0x3] }
 0x65d   : > { %v4569_v27 = vadd.f32 %v9774_v9, %v4537_v41  ;;  %v4538_v46 = vadd.f32 %v4527_v19, %v4490_v10  ;;  %v4618_v9 = vsel %vm3702_vm5, %v9809_v2, %v9807_v24  ;;  %v4684_v22 = vsel %vm3702_vm5, %v9839_v18, %v9837_v13  ;;  %v4788_v19 = vld [vmem:[%s11414_s2] ss:$4 sm:$0x3] }
 0x65e   : > { %v4626_v6 = vadd.f32 %v9801_v53, %v4566_v59  ;;  %v4683_v53 = vsel %vm3702_vm5, %v9835_v49, %v9839_v18  ;;  %v4686_v43 = vsel %vm3702_vm5, %v9841_v56, %v9846_v25  ;;  %v4627_v20 = vadd.f32 %v4616_v26, %v4567_v45  ;;  %v9987_v45 = vld [vmem:[#allocation2 + $0xe0] sm:$0x3] }
 0x65f   : > { %v4629_v4 = vadd.f32 %v9809_v2, %v4569_v27  ;;  %v4570_v14 = vadd.f32 %v4562_v44, %v4538_v46  ;;  %v4628_v30 = vadd.f32 %v4617_v29, %v4568_v42  ;;  %v4631_v31 = vadd.f32 %v4619_v23, %v4571_v39 }
 0x660   : > { %v4693_v61 = vadd.f32 %v9835_v49, %v4626_v6  ;;  %v4694_v37 = vadd.f32 %v4683_v53, %v4627_v20  ;;  %v4793_v63 = vrot.slane %v4788_v19, %v7821_v32  ;;  %v4797_v48 = vrot.slane %v4788_v19, %v7770_v21  ;;  %v9991_v53 = vld [vmem:[#allocation2 + $0xe8] sm:$0x3]  ;;  %v7328_v20 = vld [vmem:[%s11414_s2 + $0x11] ss:$4 sm:$0x3] }
 0x661   : > { %v4696_v54 = vadd.f32 %v9843_v28, %v4629_v4  ;;  %v4630_v12 = vadd.f32 %v4618_v9, %v4570_v14  ;;  %v4695_v58 = vadd.f32 %v4684_v22, %v4628_v30  ;;  %v4698_v18 = vadd.f32 %v4686_v43, %v4631_v31  ;;  %v9981_v9 = vld [vmem:[#allocation2 + $0x48] sm:$0xff] }
 0x662   : > { %v4823_v46 = vrot.slane %v7324_v7, %v7821_v32  ;;  %v4827_v44 = vrot.slane %v7324_v7, %v7770_v21  ;;  %v5000_v31 = vrot.slane %v7328_v20, %v7821_v32 }
 0x663   : > { %v4697_v13 = vadd.f32 %v4685_v36, %v4630_v12 }
 0x6c1   : > { %v4727_v17 = vpop.permute.xlu1 %4726 }
 0x6c2   : > { %v4737_v35 = vadd.f32 %v4727_v17, %v4693_v61  ;;  %v4740_v0 = vadd.f32 %v4727_v17, %v4696_v54  ;;  %v7325_v61 = vld [vmem:[%s11414_s2 + $0x10] ss:$4 sm:$0x3]  ;;  %v7326_v54 = vld [vmem:[%s11414_s2 + $0x1] ss:$4 sm:$0x3] }
 0x6c3   : > { %v4874_v42 = vrot.slane %v7325_v61, %v7821_v32  ;;  %v4878_v26 = vrot.slane %v7325_v61, %v7770_v21  ;;  %v4910_v29 = vrot.slane %v7326_v54, %v7821_v32  ;;  %v4914_v39 = vrot.slane %v7326_v54, %v7770_v21 }
 0x6c4   : > { %v4743_v24 = vmul.f32 0.4, %v4737_v35  ;;  %v4746_v2 = vmul.f32 0.4, %v4740_v0 }
 0x6c5   : > { %v4917_v23 = vmul.f32 %v4910_v29, %v9782_v3  ;;  %v4919_v22 = vmul.f32 %v4910_v29, %v9987_v45  ;;  %v4920_v43 = vmul.f32 %v4914_v39, %v9991_v53 }
 0x6c6   : > { %v4749_v34 = vmax.f32 %v4737_v35, %v4743_v24  ;;  %v4752_v49 = vmax.f32 %v4740_v0, %v4746_v2  ;;  %v4731_v15 = vpop.permute.xlu1 %4730  ;;  %v4918_v0 = vmul.f32 %v4914_v39, %v9981_v9  ;;  %v7330_v39 = vld [vmem:[%s11414_s2 + $0xa] ss:$4 sm:$0x3] }
 0x6c7   : > { %v4729_v40 = vpop.permute.xlu0 %4728 }
 0x6c8   : > { %v4732_v28 = vsel %vm3702_vm5, %v4727_v17, %v4729_v40  ;;  %v4733_v11 = vsel %vm3702_vm5, %v4729_v40, %v4731_v15  ;;  %v4761_v51 = vrot.slane %v4749_v34, 2  ;;  %v4762_v56 = vrot.slane %v4752_v49, 2  ;;  %v7327_v17 = vld [vmem:[%s11414_s2 + $0x9] ss:$4 sm:$0x3] }
 0x6c9   : > { %v4738_v25 = vadd.f32 %v4732_v28, %v4694_v37  ;;  %v4739_v33 = vadd.f32 %v4733_v11, %v4695_v58  ;;  %v4741_v50 = vadd.f32 %v4732_v28, %v4697_v13  ;;  %v4742_v8 = vadd.f32 %v4733_v11, %v4698_v18  ;;  %v7329_v28 = vld [vmem:[%s11414_s2 + $0x2] ss:$4 sm:$0x3] }
 0x6ca   : > { %v4763_v57 = vsel %vm3850_vm6, %v4761_v51, %v4762_v56  ;;  %v4952_v35 = vrot.slane %v7327_v17, %v7821_v32  ;;  %v4956_v14 = vrot.slane %v7327_v17, %v7770_v21  ;;  %v5004_v15 = vrot.slane %v7328_v20, %v7770_v21 }
 0x6cb   : > { %v4744_v41 = vmul.f32 0.4, %v4738_v25  ;;  %v4745_v47 = vmul.f32 0.4, %v4739_v33  ;;  %v4747_v55 = vmul.f32 0.4, %v4741_v50  ;;  %4770 = vrot.lane.b32.xlu0 %v4763_v57, %s7603_s8  ;;  %v5007_v58 = vmul.f32 %v5000_v31, %v9782_v3 }
 0x6cc   : > { %v4748_v5 = vmul.f32 0.4, %v4742_v8  ;;  %v4959_v36 = vmul.f32 %v4952_v35, %v9782_v3  ;;  %v4960_v24 = vmul.f32 %v4956_v14, %v9981_v9  ;;  %v4961_v2 = vmul.f32 %v4952_v35, %v9987_v45 }
 0x6cd   : > { %v4750_v52 = vmax.f32 %v4738_v25, %v4744_v41  ;;  %v4751_v16 = vmax.f32 %v4739_v33, %v4745_v47  ;;  %v4753_v59 = vmax.f32 %v4741_v50, %v4747_v55  ;;  %v4962_v30 = vmul.f32 %v4956_v14, %v9991_v53 }
 0x6ce   : > { %v4754_v27 = vmax.f32 %v4742_v8, %v4748_v5  ;;  %v4967_v12 = vrot.slane %v4959_v36, 7  ;;  %v4968_v34 = vrot.slane %v4960_v24, 7  ;;  %v4969_v49 = vrot.slane %v4961_v2, 7 }
 0x6cf   : > { %v4764_v62 = vrot.slane %v4750_v52, 2  ;;  %v4765_v1 = vrot.slane %v4753_v59, 2  ;;  %v4767_v60 = vrot.slane %v4751_v16, 2  ;;  %v4971_v37 = vrot.slane %v4962_v30, 7 }
 0x6d0   : > { %v4768_v10 = vrot.slane %v4754_v27, 2  ;;  %v4970_v13 = vsel %vm638_vm0, %v4967_v12, %v4969_v49  ;;  %v5008_v18 = vmul.f32 %v5004_v15, %v9981_v9  ;;  %v5011_v11 = vrot.slane %v5007_v58, 6 }
 0x6d1   : > { %v4766_v6 = vsel %vm3850_vm6, %v4764_v62, %v4765_v1  ;;  %v4972_v40 = vsel %vm638_vm0, %v4968_v34, %v4971_v37  ;;  %v5034_v56 = vrot.slane %v7329_v28, %v7821_v32  ;;  %v5038_v25 = vrot.slane %v7329_v28, %v7770_v21 }
 0x6d2   : > { %v4769_v4 = vsel %vm3850_vm6, %v4767_v60, %v4768_v10  ;;  %4772 = vrot.lane.b32.xlu1 %v4766_v6, %s7603_s8  ;;  %v5012_v51 = vrot.slane %v5008_v18, 6  ;;  %v5096_v14 = vrot.slane %v7330_v39, %v7770_v21 }
 0x6d3   : > { %4774 = vrot.lane.b32.xlu0 %v4769_v4, %s7603_s8 }
 0x6d6   : > { %4798 = vrot.lane.b32.xlu1 %v4793_v63, %s7602_s29 }
 0x6d7   : > { %4800 = vrot.lane.b32.xlu0 %v4797_v48, %s7602_s29 }
 0x6da   : > { %4828 = vrot.lane.b32.xlu1 %v4823_v46, %s7602_s29 }
 0x6db   : > { %4830 = vrot.lane.b32.xlu0 %v4827_v44, %s7602_s29 }
 0x6de   : > { %4879 = vrot.lane.b32.xlu1 %v4874_v42, %s7602_s29  ;;  %v10064_v42 = vld [vmem:[#allocation2 + $0x50] sm:$0xff] }
 0x6df   : > { %4881 = vrot.lane.b32.xlu0 %v4878_v26, %s7602_s29 }
 0x6e2   : > { %4925 = vrot.lane.b32.xlu1 %v4917_v23, %s7602_s29  ;;  %v5028_v23 = vld [vmem:[#allocation2 + $0xf0] sm:$0x3] }
 0x6e3   : > { %4927 = vrot.lane.b32.xlu0 %v4918_v0, %s7602_s29  ;;  %v5092_v0 = vrot.slane %v7330_v39, %v7821_v32 }
 0x6e6   : > { %4929 = vrot.lane.b32.xlu1 %v4919_v22, %s7602_s29 }
 0x6e7   : > { %4931 = vrot.lane.b32.xlu0 %v4920_v43, %s7602_s29 }
 0x6ea   : > { %4973 = vrot.lane.b32.xlu1 %v4967_v12, %s7602_s29 }
 0x6eb   : > { %4975 = vrot.lane.b32.xlu0 %v4968_v34, %s7602_s29 }
 0x6ee   : > { %4977 = vrot.lane.b32.xlu1 %v4970_v13, %s7602_s29 }
 0x6ef   : > { %4979 = vrot.lane.b32.xlu0 %v4972_v40, %s7602_s29 }
 0x6f2   : > { %5013 = vrot.lane.b32.xlu1 %v5011_v11, %s7602_s29 }
 0x6f3   : > { %5015 = vrot.lane.b32.xlu0 %v5012_v51, %s7602_s29 }
 0x6f6   : > { %5039 = vrot.lane.b32.xlu1 %v5034_v56, %s7603_s8  ;;  %v7331_v56 = vld [vmem:[%s11414_s2 + $0x12] ss:$4 sm:$0x3] }
 0x6f7   : > { %5041 = vrot.lane.b32.xlu0 %v5038_v25, %s7603_s8 }
 0x73d   : > { %v4771_v33 = vpop.permute.xlu0 %4770 }
 0x744   : > { %v4773_v50 = vpop.permute.xlu1 %4772 }
 0x745   : > { %v4776_v8 = vsel %vm3673_vm2, %v4771_v33, %v4773_v50  ;;  %v4775_v57 = vpop.permute.xlu0 %4774 }
 0x746   : > { %4780 = vst [vmem:[%s9760_s10 + $0x20] sm:$0xff] %v4776_v8  ;;  %v4777_v41 = vsel %vm3673_vm2, %v4773_v50, %v4775_v57  ;;  %v5159_v8 = vrot.slane %v7331_v56, %v7821_v32 }
 0x747   : > { %4781 = vst [vmem:[%s9760_s10 + $0x28] sm:$0xff] %v4777_v41  ;;  %v5163_v41 = vrot.slane %v7331_v56, %v7770_v21 }
 0x748   : > { %v10028_v47 = vpop.permute.xlu1 %4798 }
 0x749   : > { %v10030_v55 = vpop.permute.xlu0 %4800 }
 0x74c   : > { %v10032_v5 = vpop.permute.xlu1 %4828 }
 0x74d   : > { %v10034_v52 = vpop.permute.xlu0 %4830 }
 0x750   : > { %v10036_v16 = vpop.permute.xlu1 %4879 }
 0x751   : > { %v10038_v59 = vpop.permute.xlu0 %4881 }
 0x754   : > { %v10040_v27 = vpop.permute.xlu1 %4925 }
 0x755   : > { %v10042_v62 = vpop.permute.xlu0 %4927 }
 0x758   : > { %v10044_v1 = vpop.permute.xlu1 %4929 }
 0x759   : > { %v10046_v60 = vpop.permute.xlu0 %4931 }
 0x75c   : > { %v10048_v19 = vpop.permute.xlu1 %4973 }
 0x75d   : > { %v10050_v10 = vpop.permute.xlu0 %4975 }
 0x760   : > { %v10052_v6 = vpop.permute.xlu1 %4977 }
 0x761   : > { %v10054_v4 = vpop.permute.xlu0 %4979 }
 0x764   : > { %v10056_v63 = vpop.permute.xlu1 %5013 }
 0x765   : > { %v10058_v48 = vpop.permute.xlu0 %5015 }
 0x768   : > { %v5040_v7 = vpop.permute.xlu1 %5039 }
 0x769   : > { %v5047_v46 = vmul.f32 %v5040_v7, %v9782_v3  ;;  %v5042_v44 = vpop.permute.xlu0 %5041  ;;  %v5050_v29 = vmul.f32 %v5040_v7, %v9987_v45 }
 0x76a   : > { %v5043_v61 = vsel %vm3673_vm2, %v5040_v7, %v5042_v44  ;;  %v5049_v26 = vmul.f32 %v5042_v44, %v10064_v42  ;;  %v5052_v35 = vmul.f32 %v5042_v44, %v5028_v23 }
 0x76b   : > { %v5048_v54 = vmul.f32 %v5043_v61, %v9981_v9  ;;  %5059 = vrot.lane.b32.xlu1 %v5047_v46, %s7604_s30  ;;  %v5051_v17 = vmul.f32 %v5043_v61, %v9991_v53 }
 0x76d   : > { %5061 = vrot.lane.b32.xlu0 %v5048_v54, %s7604_s30 }
 0x76f   : > { %5063 = vrot.lane.b32.xlu1 %v5049_v26, %s7604_s30 }
 0x771   : > { %5065 = vrot.lane.b32.xlu0 %v5050_v29, %s7604_s30 }
 0x773   : > { %5067 = vrot.lane.b32.xlu1 %v5051_v17, %s7604_s30 }
 0x775   : > { %5069 = vrot.lane.b32.xlu0 %v5052_v35, %s7604_s30 }
 0x777   : > { %5097 = vrot.lane.b32.xlu1 %v5092_v0, %s7603_s8 }
 0x779   : > { %5099 = vrot.lane.b32.xlu0 %v5096_v14, %s7603_s8 }
 0x7dd   : > { %v10081_v22 = vpop.permute.xlu1 %5059 }
 0x7df   : > { %v10083_v36 = vpop.permute.xlu0 %5061 }
 0x7e1   : > { %v10085_v43 = vpop.permute.xlu1 %5063 }
 0x7e3   : > { %v10087_v24 = vpop.permute.xlu0 %5065 }
 0x7e5   : > { %v10089_v2 = vpop.permute.xlu1 %5067 }
 0x7e7   : > { %v10091_v20 = vpop.permute.xlu0 %5069 }
 0x7e9   : > { %v5098_v30 = vpop.permute.xlu1 %5097 }
 0x7ea   : > { %v5105_v12 = vmul.f32 %v5098_v30, %v9782_v3  ;;  %v5108_v34 = vmul.f32 %v5098_v30, %v9987_v45 }
 0x7eb   : > { %v5100_v31 = vpop.permute.xlu0 %5099 }
 0x7ec   : > { %v5117_v49 = vrot.slane %v5105_v12, 7  ;;  %v5101_v15 = vsel %vm3673_vm2, %v5098_v30, %v5100_v31  ;;  %v5107_v37 = vmul.f32 %v5100_v31, %v10064_v42  ;;  %v5120_v40 = vrot.slane %v5108_v34, 7  ;;  %v7489_v34 = vld [vmem:[#allocation2 + $0x38] sm:$0xff] }
 0x7ed   : > { %v5106_v58 = vmul.f32 %v5101_v15, %v9981_v9  ;;  %v5109_v13 = vmul.f32 %v5101_v15, %v9991_v53  ;;  %v5110_v28 = vmul.f32 %v5100_v31, %v5028_v23  ;;  %v4785_v31 = vld [vmem:[#allocation2 + $0xd8] sm:$0x3]  ;;  %v4806_v56 = vmul.f32 %v7489_v34, %v10028_v47 }
 0x7ee   : > { %5126 = vrot.lane.b32.xlu1 %v5117_v49, %s7604_s30  ;;  %v5119_v11 = vrot.slane %v5107_v37, 7  ;;  %v5121_v33 = vsel %vm638_vm0, %v5117_v49, %v5120_v40  ;;  %v4836_v49 = vmul.f32 %v7489_v34, %v10032_v5  ;;  %v4839_v15 = vmul.f32 %v10032_v5, %v4785_v31 }
 0x7ef   : > { %v5118_v18 = vrot.slane %v5106_v58, 7  ;;  %v5122_v51 = vrot.slane %v5109_v13, 7  ;;  %v5124_v25 = vrot.slane %v5110_v28, 7  ;;  %v4832_v37 = vsel %vm3424_vm4, %v10032_v5, %v10034_v52 }
 0x7f0   : > { %v4837_v58 = vmul.f32 %v4832_v37, %v9782_v3  ;;  %v4838_v13 = vmul.f32 %v10034_v52, %v9981_v9  ;;  %v4802_v40 = vsel %vm3424_vm4, %v10028_v47, %v10030_v55  ;;  %v4848_v28 = vrot.slane %v4836_v49, 7 }
 0x7f1   : > { %5128 = vrot.lane.b32.xlu0 %v5118_v18, %s7604_s30  ;;  %v5123_v50 = vsel %vm638_vm0, %v5118_v18, %v5122_v51  ;;  %v5125_v57 = vsel %vm638_vm0, %v5119_v11, %v5124_v25  ;;  %v4841_v18 = vmul.f32 %v10034_v52, %v9991_v53  ;;  %v4840_v51 = vmul.f32 %v4832_v37, %v9987_v45 }
 0x7f2   : > { %5130 = vrot.lane.b32.xlu1 %v5119_v11, %s7604_s30  ;;  %v4851_v11 = vrot.slane %v4839_v15, 7  ;;  %v4809_v5 = vmul.f32 %v10028_v47, %v4785_v31  ;;  %v4887_v25 = vmul.f32 %v7489_v34, %v10036_v16  ;;  %v4808_v52 = vmul.f32 %v10030_v55, %v9981_v9 }
 0x7f5   : > { %5132 = vrot.lane.b32.xlu0 %v5121_v33, %s7604_s30  ;;  %v4883_v33 = vsel %vm3424_vm4, %v10036_v16, %v10038_v59  ;;  %v4812_v16 = vadd.f32 %v4806_v56, %v9446_v38 }
 0x7f6   : > { %5134 = vrot.lane.b32.xlu1 %v5123_v50, %s7604_s30  ;;  %v4811_v50 = vmul.f32 %v10030_v55, %v9991_v53  ;;  %v4888_v47 = vmul.f32 %v4883_v33, %v9782_v3  ;;  %v4893_v53 = vrot.slane %v4887_v25, 6  ;;  %v4814_v55 = vadd.f32 %v4808_v52, %v9446_v38 }
 0x7f7   : > { %v4934_v33 = vsel %vm3424_vm4, %v10044_v1, %v10046_v60 }
 0x7f9   : > { %5136 = vrot.lane.b32.xlu0 %v5125_v57, %s7604_s30  ;;  %v4849_v57 = vrot.slane %v4837_v58, 7 }
 0x7fa   : > { %5164 = vrot.lane.b32.xlu1 %v5159_v8, %s7603_s8  ;;  %v4807_v8 = vmul.f32 %v4802_v40, %v9782_v3 }
 0x7fc   : > { %v4813_v31 = vadd.f32 %v4807_v8, %v9446_v38  ;;  %v4981_v8 = vsel %vm3424_vm4, %v10048_v19, %v10050_v10 }
 0x7fd   : > { %5166 = vrot.lane.b32.xlu0 %v5163_v41, %s7603_s8  ;;  %v4850_v41 = vrot.slane %v4838_v13, 7 }
 0x7fe   : > { %v4864_v58 = vadd.f32 %v4849_v57, %v4813_v31 }
 0x860   : > { %v10115_v7 = vpop.permute.xlu1 %5126 }
 0x863   : > { %v10117_v46 = vpop.permute.xlu0 %5128 }
 0x864   : > { %v10119_v44 = vpop.permute.xlu1 %5130 }
 0x867   : > { %v10121_v61 = vpop.permute.xlu0 %5132 }
 0x868   : > { %v10123_v54 = vpop.permute.xlu1 %5134 }
 0x86b   : > { %v10125_v26 = vpop.permute.xlu0 %5136 }
 0x86c   : > { %v5165_v29 = vpop.permute.xlu1 %5164 }
 0x86d   : > { %v5172_v39 = vmul.f32 %v5165_v29, %v9782_v3 }
 0x86f   : > { %v5178_v17 = vrot.slane %v5172_v39, 6  ;;  %v5167_v23 = vpop.permute.xlu0 %5166  ;;  %v4853_v39 = vrot.slane %v4840_v51, 7 }
 0x870   : > { %v5168_v35 = vsel %vm3673_vm2, %v5165_v29, %v5167_v23  ;;  %v5174_v0 = vmul.f32 %v5167_v23, %v10064_v42  ;;  %v4855_v29 = vrot.slane %v4841_v18, 7  ;;  %v4852_v23 = vsel %vm638_vm0, %v4848_v28, %v4851_v11 }
 0x871   : > { %v5173_v14 = vmul.f32 %v5168_v35, %v9981_v9  ;;  %5181 = vrot.lane.b32.xlu1 %v5178_v17, %s7604_s30  ;;  %v4889_v17 = vmul.f32 %v10038_v59, %v9981_v9  ;;  %v4815_v35 = vadd.f32 %v4809_v5, %v9446_v38  ;;  %v4894_v59 = vrot.slane %v4888_v47, 6 }
 0x872   : > { %v5180_v12 = vrot.slane %v5174_v0, 6  ;;  %v4810_v0 = vmul.f32 %v4802_v40, %v9987_v45  ;;  %v4856_v3 = vsel %vm638_vm0, %v4850_v41, %v4855_v29  ;;  %v4854_v49 = vsel %vm638_vm0, %v4849_v57, %v4853_v39 }
 0x873   : > { %v5179_v30 = vrot.slane %v5173_v14, 6  ;;  %v4817_v14 = vadd.f32 %v4811_v50, %v9446_v38  ;;  %v4895_v34 = vrot.slane %v4889_v17, 6  ;;  %v4865_v45 = vadd.f32 %v4850_v41, %v4814_v55 }
 0x874   : > { %v4816_v15 = vadd.f32 %v4810_v0, %v9446_v38  ;;  %v4900_v11 = vadd.f32 %v4894_v59, %v4864_v58  ;;  %v4933_v5 = vsel %vm3424_vm4, %v10040_v27, %v10042_v62  ;;  %v5074_v55 = vsel %vm3702_vm5, %v10089_v2, %v10091_v20 }
 0x875   : > { %5183 = vrot.lane.b32.xlu0 %v5179_v30, %s7604_s30  ;;  %5185 = vrot.lane.b32.xlu1 %v5180_v12, %s7604_s30  ;;  %v4863_v30 = vadd.f32 %v4848_v28, %v4812_v16  ;;  %v4866_v12 = vadd.f32 %v4852_v23, %v4815_v35  ;;  %v4868_v13 = vadd.f32 %v4856_v3, %v4817_v14 }
 0x876   : > { %v4867_v40 = vadd.f32 %v4854_v49, %v4816_v15  ;;  %v4901_v51 = vadd.f32 %v4895_v34, %v4865_v45  ;;  %v4942_v41 = vadd.f32 %v4933_v5, %v4900_v11 }
 0x877   : > { %v4899_v37 = vadd.f32 %v4893_v53, %v4863_v30  ;;  %v4902_v18 = vadd.f32 %v4893_v53, %v4866_v12  ;;  %v4904_v25 = vadd.f32 %v4895_v34, %v4868_v13 }
 0x878   : > { %v4903_v52 = vadd.f32 %v4894_v59, %v4867_v40  ;;  %v4943_v29 = vadd.f32 %v10042_v62, %v4901_v51  ;;  %v4990_v23 = vadd.f32 %v4981_v8, %v4942_v41  ;;  %v5017_v62 = vsel %vm3424_vm4, %v10056_v63, %v10058_v48 }
 0x879   : > { %v4941_v28 = vadd.f32 %v10040_v27, %v4899_v37  ;;  %v4944_v56 = vadd.f32 %v10044_v1, %v4902_v18  ;;  %v4946_v39 = vadd.f32 %v10046_v60, %v4904_v25  ;;  %v4982_v27 = vsel %vm3424_vm4, %v10052_v6, %v10054_v4 }
 0x87a   : > { %v4945_v47 = vadd.f32 %v4934_v33, %v4903_v52  ;;  %v4991_v16 = vadd.f32 %v10050_v10, %v4943_v29  ;;  %v5072_v10 = vsel %vm3702_vm5, %v10083_v36, %v10085_v43  ;;  %v5022_v30 = vadd.f32 %v5017_v62, %v4990_v23 }
 0x87b   : > { %v4989_v50 = vadd.f32 %v10048_v19, %v4941_v28  ;;  %v4992_v57 = vadd.f32 %v10052_v6, %v4944_v56  ;;  %v4994_v19 = vadd.f32 %v10054_v4, %v4946_v39  ;;  %v5071_v6 = vsel %vm3702_vm5, %v10081_v22, %v10083_v36 }
 0x87c   : > { %v4993_v35 = vadd.f32 %v4982_v27, %v4945_v47  ;;  %v5023_v53 = vadd.f32 %v10058_v48, %v4991_v16  ;;  %v5138_v36 = vsel %vm3702_vm5, %v10115_v7, %v10117_v46  ;;  %v5082_v31 = vadd.f32 %v5071_v6, %v5022_v30  ;;  %v10263_v30 = vld [vmem:[#allocation2 + $0x58] sm:$0xff] }
 0x87d   : > { %v5021_v1 = vadd.f32 %v10056_v63, %v4989_v50  ;;  %v5024_v17 = vadd.f32 %v10056_v63, %v4992_v57  ;;  %v5026_v4 = vadd.f32 %v10058_v48, %v4994_v19  ;;  %v5073_v63 = vsel %vm3702_vm5, %v10087_v24, %v10089_v2 }
 0x87e   : > { %v5025_v12 = vadd.f32 %v5017_v62, %v4993_v35  ;;  %v5139_v48 = vsel %vm3702_vm5, %v10117_v46, %v10119_v44  ;;  %v5141_v2 = vsel %vm3702_vm5, %v10123_v54, %v10125_v26  ;;  %v5083_v59 = vadd.f32 %v5072_v10, %v5023_v53  ;;  %v7333_v53 = vld [vmem:[%s11414_s2 + $0x10] ss:$4 sm:$0x3]  ;;  %v7334_v10 = vld [vmem:[%s11414_s2 + $0x1] ss:$4 sm:$0x3] }
 0x87f   : > { %v5081_v60 = vadd.f32 %v10081_v22, %v5021_v1  ;;  %v5084_v0 = vadd.f32 %v10087_v24, %v5024_v17  ;;  %v5140_v24 = vsel %vm3702_vm5, %v10121_v61, %v10123_v54  ;;  %v5086_v49 = vadd.f32 %v5074_v55, %v5026_v4  ;;  %v5243_v17 = vld [vmem:[%s11414_s2] ss:$4 sm:$0x3] }
 0x880   : > { %v5085_v34 = vadd.f32 %v5073_v63, %v5025_v12  ;;  %v5149_v37 = vadd.f32 %v5138_v36, %v5082_v31  ;;  %v5150_v58 = vadd.f32 %v5139_v48, %v5083_v59  ;;  %v5248_v35 = vrot.slane %v5243_v17, %v7821_v32 }
 0x881   : > { %v5148_v14 = vadd.f32 %v10115_v7, %v5081_v60  ;;  %v5151_v22 = vadd.f32 %v10121_v61, %v5084_v0  ;;  %v5153_v44 = vadd.f32 %v5141_v2, %v5086_v49  ;;  %v5252_v62 = vrot.slane %v5243_v17, %v7770_v21  ;;  %v7332_v60 = vld [vmem:[%s11414_s2 + $0x8] ss:$4 sm:$0x3]  ;;  %v10273_v2 = vld [vmem:[#allocation2 + $0xf8] sm:$0x3] }
 0x882   : > { %v5152_v46 = vadd.f32 %v5140_v24, %v5085_v34  ;;  %v5278_v0 = vrot.slane %v7332_v60, %v7821_v32  ;;  %v5282_v6 = vrot.slane %v7332_v60, %v7770_v21  ;;  %v5329_v4 = vrot.slane %v7333_v53, %v7821_v32  ;;  %v7336_v49 = vld [vmem:[%s11414_s2 + $0x11] ss:$4 sm:$0x3] }
 0x883   : > { %v5333_v63 = vrot.slane %v7333_v53, %v7770_v21  ;;  %v5365_v55 = vrot.slane %v7334_v10, %v7821_v32 }
 0x885   : > { %v5372_v12 = vmul.f32 %v5365_v55, %v10064_v42 }
 0x8e3   : > { %v5182_v43 = vpop.permute.xlu1 %5181 }
 0x8e4   : > { %v5192_v20 = vadd.f32 %v5182_v43, %v5148_v14  ;;  %v5195_v3 = vadd.f32 %v5182_v43, %v5151_v22  ;;  %v5369_v14 = vrot.slane %v7334_v10, %v7770_v21  ;;  %v7335_v22 = vld [vmem:[%s11414_s2 + $0x9] ss:$4 sm:$0x3] }
 0x8e5   : > { %v5407_v36 = vrot.slane %v7335_v22, %v7821_v32  ;;  %v5411_v24 = vrot.slane %v7335_v22, %v7770_v21  ;;  %v7338_v22 = vld [vmem:[%s11414_s2 + $0xa] ss:$4 sm:$0x3] }
 0x8e6   : > { %v5198_v7 = vmul.f32 0.4, %v5192_v20  ;;  %v5201_v15 = vmul.f32 0.4, %v5195_v3  ;;  %v5373_v48 = vmul.f32 %v5369_v14, %v10263_v30  ;;  %v5375_v31 = vmul.f32 %v5369_v14, %v10273_v2 }
 0x8e7   : > { %v5184_v45 = vpop.permute.xlu0 %5183  ;;  %v5186_v13 = vpop.permute.xlu1 %5185  ;;  %v5415_v59 = vmul.f32 %v5411_v24, %v10263_v30 }
 0x8e8   : > { %v5204_v18 = vmax.f32 %v5192_v20, %v5198_v7  ;;  %v5207_v61 = vmax.f32 %v5195_v3, %v5201_v15  ;;  %v5187_v40 = vsel %vm3702_vm5, %v5182_v43, %v5184_v45  ;;  %v5188_v54 = vsel %vm3702_vm5, %v5184_v45, %v5186_v13  ;;  %v10269_v43 = vld [vmem:[#allocation2 + $0xf0] sm:$0x3] }
 0x8e9   : > { %v5193_v26 = vadd.f32 %v5187_v40, %v5149_v37  ;;  %v5196_v11 = vadd.f32 %v5187_v40, %v5152_v46  ;;  %v5194_v51 = vadd.f32 %v5188_v54, %v5150_v58  ;;  %v5197_v28 = vadd.f32 %v5188_v54, %v5153_v44  ;;  %v7337_v54 = vld [vmem:[%s11414_s2 + $0x2] ss:$4 sm:$0x3] }
 0x8ea   : > { %v5216_v56 = vrot.slane %v5204_v18, 2  ;;  %v5217_v5 = vrot.slane %v5207_v61, 2  ;;  %v5374_v20 = vmul.f32 %v5365_v55, %v10269_v43  ;;  %v5414_v3 = vmul.f32 %v5407_v36, %v10064_v42 }
 0x8eb   : > { %v5199_v25 = vmul.f32 0.4, %v5193_v26  ;;  %v5202_v33 = vmul.f32 0.4, %v5196_v11  ;;  %v5200_v52 = vmul.f32 0.4, %v5194_v51  ;;  %v5416_v34 = vmul.f32 %v5407_v36, %v10269_v43 }
 0x8ec   : > { %v5203_v50 = vmul.f32 0.4, %v5197_v28  ;;  %v5218_v8 = vsel %vm3850_vm6, %v5216_v56, %v5217_v5  ;;  %v5417_v7 = vmul.f32 %v5411_v24, %v10273_v2  ;;  %v5422_v15 = vrot.slane %v5414_v3, 7  ;;  %v5483_v36 = vld [vmem:[#allocation2 + $0x100] sm:$0x3] }
 0x8ed   : > { %v5205_v57 = vmax.f32 %v5193_v26, %v5199_v25  ;;  %v5208_v41 = vmax.f32 %v5196_v11, %v5202_v33  ;;  %v5206_v29 = vmax.f32 %v5194_v51, %v5200_v52  ;;  %5225 = vrot.lane.b32.xlu0 %v5218_v8, %s7603_s8  ;;  %v5455_v37 = vrot.slane %v7336_v49, %v7821_v32 }
 0x8ee   : > { %v5209_v39 = vmax.f32 %v5197_v28, %v5203_v50  ;;  %v5423_v58 = vrot.slane %v5415_v59, 7  ;;  %v5424_v46 = vrot.slane %v5416_v34, 7  ;;  %v5459_v44 = vrot.slane %v7336_v49, %v7770_v21 }
 0x8ef   : > { %v5219_v27 = vrot.slane %v5205_v57, 2  ;;  %v5220_v47 = vrot.slane %v5208_v41, 2  ;;  %v5222_v1 = vrot.slane %v5206_v29, 2  ;;  %v5426_v45 = vrot.slane %v5417_v7, 7 }
 0x8f0   : > { %v5223_v23 = vrot.slane %v5209_v39, 2  ;;  %v5462_v13 = vmul.f32 %v5455_v37, %v10064_v42  ;;  %v5425_v18 = vsel %vm638_vm0, %v5422_v15, %v5424_v46  ;;  %v5463_v61 = vmul.f32 %v5459_v44, %v10263_v30 }
 0x8f1   : > { %v5221_v16 = vsel %vm3850_vm6, %v5219_v27, %v5220_v47  ;;  %v5427_v40 = vsel %vm638_vm0, %v5423_v58, %v5426_v45  ;;  %v5489_v51 = vrot.slane %v7337_v54, %v7821_v32  ;;  %v5493_v28 = vrot.slane %v7337_v54, %v7770_v21 }
 0x8f2   : > { %5227 = vrot.lane.b32.xlu1 %v5221_v16, %s7603_s8  ;;  %v5224_v19 = vsel %vm3850_vm6, %v5222_v1, %v5223_v23  ;;  %v5466_v26 = vrot.slane %v5462_v13, 6  ;;  %v5467_v11 = vrot.slane %v5463_v61, 6  ;;  %v5547_v24 = vrot.slane %v7338_v22, %v7821_v32 }
 0x8f3   : > { %5229 = vrot.lane.b32.xlu0 %v5224_v19, %s7603_s8 }
 0x8f6   : > { %5253 = vrot.lane.b32.xlu1 %v5248_v35, %s7602_s29 }
 0x8f7   : > { %5255 = vrot.lane.b32.xlu0 %v5252_v62, %s7602_s29 }
 0x8fa   : > { %5283 = vrot.lane.b32.xlu1 %v5278_v0, %s7602_s29 }
 0x8fb   : > { %5285 = vrot.lane.b32.xlu0 %v5282_v6, %s7602_s29 }
 0x8fe   : > { %5334 = vrot.lane.b32.xlu1 %v5329_v4, %s7602_s29 }
 0x8ff   : > { %5336 = vrot.lane.b32.xlu0 %v5333_v63, %s7602_s29  ;;  %v10346_v63 = vld [vmem:[#allocation2 + $0x60] sm:$0xff] }
 0x902   : > { %5380 = vrot.lane.b32.xlu1 %v5372_v12, %s7602_s29 }
 0x903   : > { %5382 = vrot.lane.b32.xlu0 %v5373_v48, %s7602_s29 }
 0x906   : > { %5384 = vrot.lane.b32.xlu1 %v5374_v20, %s7602_s29  ;;  %v5551_v20 = vrot.slane %v7338_v22, %v7770_v21 }
 0x907   : > { %5386 = vrot.lane.b32.xlu0 %v5375_v31, %s7602_s29 }
 0x90a   : > { %5428 = vrot.lane.b32.xlu1 %v5422_v15, %s7602_s29 }
 0x90b   : > { %5430 = vrot.lane.b32.xlu0 %v5423_v58, %s7602_s29 }
 0x90e   : > { %5432 = vrot.lane.b32.xlu1 %v5425_v18, %s7602_s29 }
 0x90f   : > { %5434 = vrot.lane.b32.xlu0 %v5427_v40, %s7602_s29 }
 0x912   : > { %5468 = vrot.lane.b32.xlu1 %v5466_v26, %s7602_s29 }
 0x913   : > { %5470 = vrot.lane.b32.xlu0 %v5467_v11, %s7602_s29 }
 0x916   : > { %5494 = vrot.lane.b32.xlu1 %v5489_v51, %s7603_s8 }
 0x917   : > { %5496 = vrot.lane.b32.xlu0 %v5493_v28, %s7603_s8  ;;  %v7339_v28 = vld [vmem:[%s11414_s2 + $0x12] ss:$4 sm:$0x3] }
 0x95f   : > { %v5226_v56 = vpop.permute.xlu0 %5225 }
 0x964   : > { %v5228_v5 = vpop.permute.xlu1 %5227 }
 0x965   : > { %v5231_v25 = vsel %vm3673_vm2, %v5226_v56, %v5228_v5  ;;  %v5230_v33 = vpop.permute.xlu0 %5229 }
 0x966   : > { %5235 = vst [vmem:[%s9760_s10 + $0x30] sm:$0xff] %v5231_v25  ;;  %v5232_v52 = vsel %vm3673_vm2, %v5228_v5, %v5230_v33  ;;  %v5614_v33 = vrot.slane %v7339_v28, %v7821_v32 }
 0x967   : > { %5236 = vst [vmem:[%s9760_s10 + $0x38] sm:$0xff] %v5232_v52 }
 0x968   : > { %v10310_v50 = vpop.permute.xlu1 %5253 }
 0x969   : > { %v10312_v8 = vpop.permute.xlu0 %5255 }
 0x96c   : > { %v10314_v57 = vpop.permute.xlu1 %5283 }
 0x96d   : > { %v10316_v41 = vpop.permute.xlu0 %5285 }
 0x970   : > { %v10318_v29 = vpop.permute.xlu1 %5334 }
 0x971   : > { %v10320_v39 = vpop.permute.xlu0 %5336 }
 0x974   : > { %v10322_v27 = vpop.permute.xlu1 %5380 }
 0x975   : > { %v10324_v47 = vpop.permute.xlu0 %5382 }
 0x978   : > { %v10326_v1 = vpop.permute.xlu1 %5384 }
 0x979   : > { %v10328_v17 = vpop.permute.xlu0 %5386 }
 0x97c   : > { %v10330_v23 = vpop.permute.xlu1 %5428 }
 0x97d   : > { %v10332_v16 = vpop.permute.xlu0 %5430 }
 0x980   : > { %v10334_v19 = vpop.permute.xlu1 %5432 }
 0x981   : > { %v10336_v35 = vpop.permute.xlu0 %5434 }
 0x984   : > { %v10338_v62 = vpop.permute.xlu1 %5468 }
 0x985   : > { %v10340_v60 = vpop.permute.xlu0 %5470 }
 0x988   : > { %v5495_v0 = vpop.permute.xlu1 %5494 }
 0x989   : > { %v5502_v6 = vmul.f32 %v5495_v0, %v10064_v42  ;;  %v5497_v53 = vpop.permute.xlu0 %5496  ;;  %v5505_v14 = vmul.f32 %v5495_v0, %v10269_v43 }
 0x98a   : > { %v5498_v10 = vsel %vm3673_vm2, %v5495_v0, %v5497_v53  ;;  %v5504_v55 = vmul.f32 %v5497_v53, %v10346_v63  ;;  %v5507_v48 = vmul.f32 %v5497_v53, %v5483_v36  ;;  %v5618_v0 = vrot.slane %v7339_v28, %v7770_v21 }
 0x98b   : > { %v5503_v4 = vmul.f32 %v5498_v10, %v10263_v30  ;;  %5514 = vrot.lane.b32.xlu1 %v5502_v6, %s7604_s30  ;;  %v5506_v12 = vmul.f32 %v5498_v10, %v10273_v2  ;;  %v5261_v28 = vmul.f32 %v10310_v50, %v9981_v9 }
 0x98d   : > { %5516 = vrot.lane.b32.xlu0 %v5503_v4, %s7604_s30 }
 0x98f   : > { %5518 = vrot.lane.b32.xlu1 %v5504_v55, %s7604_s30 }
 0x991   : > { %5520 = vrot.lane.b32.xlu0 %v5505_v14, %s7604_s30 }
 0x993   : > { %5522 = vrot.lane.b32.xlu1 %v5506_v12, %s7604_s30 }
 0x995   : > { %5524 = vrot.lane.b32.xlu0 %v5507_v48, %s7604_s30 }
 0x997   : > { %5552 = vrot.lane.b32.xlu1 %v5547_v24, %s7603_s8 }
 0x999   : > { %5554 = vrot.lane.b32.xlu0 %v5551_v20, %s7603_s8 }
 0x9fd   : > { %v10363_v3 = vpop.permute.xlu1 %5514 }
 0x9ff   : > { %v10365_v31 = vpop.permute.xlu0 %5516 }
 0xa01   : > { %v10367_v59 = vpop.permute.xlu1 %5518 }
 0xa03   : > { %v10369_v34 = vpop.permute.xlu0 %5520 }
 0xa05   : > { %v10371_v49 = vpop.permute.xlu1 %5522 }
 0xa07   : > { %v10373_v7 = vpop.permute.xlu0 %5524 }
 0xa09   : > { %v5553_v15 = vpop.permute.xlu1 %5552 }
 0xa0a   : > { %v5560_v37 = vmul.f32 %v5553_v15, %v10064_v42  ;;  %v5563_v46 = vmul.f32 %v5553_v15, %v10269_v43 }
 0xa0b   : > { %v5555_v58 = vpop.permute.xlu0 %5554 }
 0xa0c   : > { %v5572_v44 = vrot.slane %v5560_v37, 7  ;;  %v5556_v45 = vsel %vm3673_vm2, %v5553_v15, %v5555_v58  ;;  %v5562_v13 = vmul.f32 %v5555_v58, %v10346_v63  ;;  %v5575_v54 = vrot.slane %v5563_v46, 7  ;;  %v5240_v46 = vld [vmem:[#allocation2 + $0xe8] sm:$0x3] }
 0xa0d   : > { %v5561_v18 = vmul.f32 %v5556_v45, %v10263_v30  ;;  %v5564_v61 = vmul.f32 %v5556_v45, %v10273_v2  ;;  %v5565_v26 = vmul.f32 %v5555_v58, %v5483_v36  ;;  %v5294_v45 = vmul.f32 %v10314_v57, %v5240_v46 }
 0xa0e   : > { %5581 = vrot.lane.b32.xlu1 %v5572_v44, %s7604_s30  ;;  %v5574_v11 = vrot.slane %v5562_v13, 7  ;;  %v5576_v5 = vsel %vm638_vm0, %v5572_v44, %v5575_v54  ;;  %v5291_v44 = vmul.f32 %v10314_v57, %v9981_v9  ;;  %v5287_v13 = vsel %vm3424_vm4, %v10314_v57, %v10316_v41 }
 0xa0f   : > { %v5573_v40 = vrot.slane %v5561_v18, 7  ;;  %v5577_v51 = vrot.slane %v5564_v61, 7  ;;  %v5579_v56 = vrot.slane %v5565_v26, 7  ;;  %v5292_v18 = vmul.f32 %v5287_v13, %v10064_v42 }
 0xa10   : > { %v5293_v61 = vmul.f32 %v10316_v41, %v10263_v30  ;;  %v5257_v54 = vsel %vm3424_vm4, %v10310_v50, %v10312_v8  ;;  %v5303_v26 = vrot.slane %v5291_v44, 7  ;;  %v5264_v57 = vmul.f32 %v10310_v50, %v5240_v46 }
 0xa11   : > { %5583 = vrot.lane.b32.xlu0 %v5573_v40, %s7604_s30  ;;  %v5578_v25 = vsel %vm638_vm0, %v5573_v40, %v5577_v51  ;;  %v5580_v52 = vsel %vm638_vm0, %v5574_v11, %v5579_v56  ;;  %v5296_v40 = vmul.f32 %v10316_v41, %v10273_v2  ;;  %v5295_v51 = vmul.f32 %v5287_v13, %v10269_v43 }
 0xa12   : > { %5585 = vrot.lane.b32.xlu1 %v5574_v11, %s7604_s30  ;;  %v5306_v11 = vrot.slane %v5294_v45, 7  ;;  %v5342_v56 = vmul.f32 %v10318_v29, %v9981_v9  ;;  %v5338_v41 = vsel %vm3424_vm4, %v10318_v29, %v10320_v39  ;;  %v5344_v9 = vmul.f32 %v10320_v39, %v10263_v30 }
 0xa13   : > { %v5343_v50 = vmul.f32 %v5338_v41, %v10064_v42  ;;  %v5267_v29 = vadd.f32 %v5261_v28, %v9446_v38  ;;  %v5388_v28 = vsel %vm3424_vm4, %v10322_v27, %v10324_v47 }
 0xa14   : > { %v5350_v39 = vrot.slane %v5344_v9, 6 }
 0xa15   : > { %5587 = vrot.lane.b32.xlu0 %v5576_v5, %s7604_s30  ;;  %v5263_v5 = vmul.f32 %v10312_v8, %v10263_v30 }
 0xa16   : > { %5589 = vrot.lane.b32.xlu1 %v5578_v25, %s7604_s30  ;;  %v5266_v25 = vmul.f32 %v10312_v8, %v10273_v2  ;;  %v5348_v2 = vrot.slane %v5342_v56, 6  ;;  %v5389_v56 = vsel %vm3424_vm4, %v10326_v1, %v10328_v17 }
 0xa17   : > { %v5269_v8 = vadd.f32 %v5263_v5, %v9446_v38 }
 0xa19   : > { %5591 = vrot.lane.b32.xlu0 %v5580_v52, %s7604_s30  ;;  %v5304_v52 = vrot.slane %v5292_v18, 7 }
 0xa1a   : > { %5619 = vrot.lane.b32.xlu1 %v5614_v33, %s7603_s8  ;;  %v5262_v33 = vmul.f32 %v5257_v54, %v10064_v42 }
 0xa1d   : > { %5621 = vrot.lane.b32.xlu0 %v5618_v0, %s7603_s8  ;;  %v5305_v0 = vrot.slane %v5293_v61, 7 }
 0xa80   : > { %v10397_v6 = vpop.permute.xlu1 %5581 }
 0xa83   : > { %v10399_v53 = vpop.permute.xlu0 %5583 }
 0xa84   : > { %v10401_v10 = vpop.permute.xlu1 %5585 }
 0xa87   : > { %v10403_v4 = vpop.permute.xlu0 %5587 }
 0xa88   : > { %v10405_v55 = vpop.permute.xlu1 %5589 }
 0xa8b   : > { %v10407_v14 = vpop.permute.xlu0 %5591 }
 0xa8c   : > { %v5620_v22 = vpop.permute.xlu1 %5619 }
 0xa8d   : > { %v5627_v12 = vmul.f32 %v5620_v22, %v10064_v42 }
 0xa8f   : > { %v5633_v36 = vrot.slane %v5627_v12, 6  ;;  %v5622_v48 = vpop.permute.xlu0 %5621  ;;  %v5308_v12 = vrot.slane %v5295_v51, 7 }
 0xa90   : > { %v5623_v24 = vsel %vm3673_vm2, %v5620_v22, %v5622_v48  ;;  %v5629_v20 = vmul.f32 %v5622_v48, %v10346_v63  ;;  %v5310_v22 = vrot.slane %v5296_v40, 7  ;;  %v5270_v48 = vadd.f32 %v5264_v57, %v9446_v38 }
 0xa91   : > { %v5628_v15 = vmul.f32 %v5623_v24, %v10263_v30  ;;  %5636 = vrot.lane.b32.xlu1 %v5633_v36, %s7604_s30  ;;  %v5307_v36 = vsel %vm638_vm0, %v5303_v26, %v5306_v11  ;;  %v5265_v24 = vmul.f32 %v5257_v54, %v10269_v43  ;;  %v5349_v30 = vrot.slane %v5343_v50, 6 }
 0xa92   : > { %v5635_v37 = vrot.slane %v5629_v20, 6  ;;  %v5272_v20 = vadd.f32 %v5266_v25, %v9446_v38  ;;  %v5311_v42 = vsel %vm638_vm0, %v5305_v0, %v5310_v22  ;;  %v5309_v46 = vsel %vm638_vm0, %v5304_v52, %v5308_v12 }
 0xa93   : > { %v5634_v58 = vrot.slane %v5628_v15, 6  ;;  %v5318_v15 = vadd.f32 %v5303_v26, %v5267_v29  ;;  %v5271_v44 = vadd.f32 %v5265_v24, %v9446_v38  ;;  %v5320_v43 = vadd.f32 %v5305_v0, %v5269_v8 }
 0xa94   : > { %v5323_v18 = vadd.f32 %v5311_v42, %v5272_v20  ;;  %v5436_v25 = vsel %vm3424_vm4, %v10330_v23, %v10332_v16 }
 0xa95   : > { %5640 = vrot.lane.b32.xlu1 %v5635_v37, %s7604_s30  ;;  %5638 = vrot.lane.b32.xlu0 %v5634_v58, %s7604_s30  ;;  %v5321_v37 = vadd.f32 %v5307_v36, %v5270_v48  ;;  %v5268_v58 = vadd.f32 %v5262_v33, %v9446_v38  ;;  %v5354_v45 = vadd.f32 %v5348_v2, %v5318_v15 }
 0xa96   : > { %v5322_v40 = vadd.f32 %v5309_v46, %v5271_v44  ;;  %v5356_v11 = vadd.f32 %v5350_v39, %v5320_v43  ;;  %v5359_v57 = vadd.f32 %v5350_v39, %v5323_v18 }
 0xa97   : > { %v5319_v13 = vadd.f32 %v5304_v52, %v5268_v58  ;;  %v5357_v61 = vadd.f32 %v5348_v2, %v5321_v37  ;;  %v5396_v26 = vadd.f32 %v10322_v27, %v5354_v45  ;;  %v5437_v27 = vsel %vm3424_vm4, %v10334_v19, %v10336_v35 }
 0xa98   : > { %v5358_v41 = vadd.f32 %v5349_v30, %v5322_v40  ;;  %v5398_v0 = vadd.f32 %v10324_v47, %v5356_v11  ;;  %v5401_v22 = vadd.f32 %v10328_v17, %v5359_v57  ;;  %v5472_v47 = vsel %vm3424_vm4, %v10338_v62, %v10340_v60 }
 0xa99   : > { %v5355_v54 = vadd.f32 %v5349_v30, %v5319_v13  ;;  %v5399_v51 = vadd.f32 %v10326_v1, %v5357_v61  ;;  %v5444_v5 = vadd.f32 %v10330_v23, %v5396_v26  ;;  %v5529_v2 = vsel %vm3702_vm5, %v10371_v49, %v10373_v7 }
 0xa9a   : > { %v5400_v12 = vadd.f32 %v5389_v56, %v5358_v41  ;;  %v5446_v36 = vadd.f32 %v10332_v16, %v5398_v0  ;;  %v5449_v23 = vadd.f32 %v10336_v35, %v5401_v22  ;;  %v5527_v16 = vsel %vm3702_vm5, %v10365_v31, %v10367_v59 }
 0xa9b   : > { %v5447_v33 = vadd.f32 %v10334_v19, %v5399_v51  ;;  %v5397_v52 = vadd.f32 %v5388_v28, %v5355_v54  ;;  %v5476_v1 = vadd.f32 %v10338_v62, %v5444_v5  ;;  %v5526_v19 = vsel %vm3702_vm5, %v10363_v3, %v10365_v31 }
 0xa9c   : > { %v5448_v29 = vadd.f32 %v5437_v27, %v5400_v12  ;;  %v5478_v24 = vadd.f32 %v10340_v60, %v5446_v36  ;;  %v5481_v35 = vadd.f32 %v10340_v60, %v5449_v23  ;;  %v5593_v31 = vsel %vm3702_vm5, %v10397_v6, %v10399_v53 }
 0xa9d   : > { %v5479_v50 = vadd.f32 %v10338_v62, %v5447_v33  ;;  %v5445_v9 = vadd.f32 %v5436_v25, %v5397_v52  ;;  %v5536_v17 = vadd.f32 %v10363_v3, %v5476_v1  ;;  %v5528_v62 = vsel %vm3702_vm5, %v10369_v34, %v10371_v49  ;;  %v5698_v1 = vld [vmem:[%s11414_s2] ss:$4 sm:$0x3] }
 0xa9e   : > { %v5480_v15 = vadd.f32 %v5472_v47, %v5448_v29  ;;  %v5594_v60 = vsel %vm3702_vm5, %v10399_v53, %v10401_v10  ;;  %v5596_v49 = vsel %vm3702_vm5, %v10405_v55, %v10407_v14  ;;  %v5538_v58 = vadd.f32 %v5527_v16, %v5478_v24  ;;  %v7342_v24 = vld [vmem:[%s11414_s2 + $0x1] ss:$4 sm:$0x3] }
 0xa9f   : > { %v5539_v48 = vadd.f32 %v10369_v34, %v5479_v50  ;;  %v5603_v8 = vadd.f32 %v10397_v6, %v5536_v17  ;;  %v5477_v20 = vadd.f32 %v5472_v47, %v5445_v9  ;;  %v5595_v34 = vsel %vm3702_vm5, %v10403_v4, %v10405_v55  ;;  %v7340_v47 = vld [vmem:[%s11414_s2 + $0x8] ss:$4 sm:$0x3] }
 0xaa0   : > { %v5540_v30 = vadd.f32 %v5528_v62, %v5480_v15  ;;  %v5541_v39 = vadd.f32 %v5529_v2, %v5481_v35  ;;  %v5605_v45 = vadd.f32 %v5594_v60, %v5538_v58  ;;  %v5703_v23 = vrot.slane %v5698_v1, %v7821_v32  ;;  %v10554_v60 = vld [vmem:[#allocation2 + $0x100] sm:$0x3] }
 0xaa1   : > { %v5606_v3 = vadd.f32 %v10403_v4, %v5539_v48  ;;  %v5537_v42 = vadd.f32 %v5526_v19, %v5477_v20  ;;  %v5707_v29 = vrot.slane %v5698_v1, %v7770_v21  ;;  %v5733_v17 = vrot.slane %v7340_v47, %v7821_v32  ;;  %v7341_v19 = vld [vmem:[%s11414_s2 + $0x10] ss:$4 sm:$0x3] }
 0xaa2   : > { %v5607_v53 = vadd.f32 %v5595_v34, %v5540_v30  ;;  %v5608_v10 = vadd.f32 %v5596_v49, %v5541_v39  ;;  %v5737_v48 = vrot.slane %v7340_v47, %v7770_v21  ;;  %v5784_v16 = vrot.slane %v7341_v19, %v7821_v32  ;;  %v10558_v34 = vld [vmem:[#allocation2 + $0x108] sm:$0x3]  ;;  %v7344_v30 = vld [vmem:[%s11414_s2 + $0x11] ss:$4 sm:$0x3] }
 0xaa3   : > { %v5604_v44 = vadd.f32 %v5593_v31, %v5537_v42  ;;  %v5788_v35 = vrot.slane %v7341_v19, %v7770_v21  ;;  %v5820_v62 = vrot.slane %v7342_v24, %v7821_v32  ;;  %v5824_v2 = vrot.slane %v7342_v24, %v7770_v21 }
 0xaa5   : > { %v5827_v20 = vmul.f32 %v5820_v62, %v10346_v63  ;;  %v5829_v49 = vmul.f32 %v5820_v62, %v10554_v60  ;;  %v7346_v62 = vld [vmem:[%s11414_s2 + $0xa] ss:$4 sm:$0x3] }
 0xb03   : > { %v5637_v59 = vpop.permute.xlu1 %5636 }
 0xb04   : > { %v5647_v7 = vadd.f32 %v5637_v59, %v5603_v8  ;;  %v5650_v37 = vadd.f32 %v5637_v59, %v5606_v3  ;;  %v7343_v8 = vld [vmem:[%s11414_s2 + $0x9] ss:$4 sm:$0x3] }
 0xb05   : > { %v10548_v3 = vld [vmem:[#allocation2 + $0x68] sm:$0xff]  ;;  %v5862_v15 = vrot.slane %v7343_v8, %v7821_v32 }
 0xb06   : > { %v5653_v6 = vmul.f32 0.4, %v5647_v7  ;;  %v5656_v46 = vmul.f32 0.4, %v5650_v37  ;;  %v5828_v31 = vmul.f32 %v5824_v2, %v10548_v3 }
 0xb07   : > { %v5641_v13 = vpop.permute.xlu1 %5640  ;;  %v5639_v43 = vpop.permute.xlu0 %5638  ;;  %v5871_v58 = vmul.f32 %v5862_v15, %v10554_v60 }
 0xb08   : > { %v5659_v18 = vmax.f32 %v5647_v7, %v5653_v6  ;;  %v5662_v4 = vmax.f32 %v5650_v37, %v5656_v46  ;;  %v5642_v61 = vsel %vm3702_vm5, %v5637_v59, %v5639_v43  ;;  %v5643_v55 = vsel %vm3702_vm5, %v5639_v43, %v5641_v13 }
 0xb09   : > { %v5648_v14 = vadd.f32 %v5642_v61, %v5604_v44  ;;  %v5649_v40 = vadd.f32 %v5643_v55, %v5605_v45  ;;  %v5651_v54 = vadd.f32 %v5642_v61, %v5607_v53  ;;  %v5652_v11 = vadd.f32 %v5643_v55, %v5608_v10  ;;  %v7345_v61 = vld [vmem:[%s11414_s2 + $0x2] ss:$4 sm:$0x3] }
 0xb0a   : > { %v5671_v26 = vrot.slane %v5659_v18, 2  ;;  %v5672_v51 = vrot.slane %v5662_v4, 2  ;;  %v5866_v59 = vrot.slane %v7343_v8, %v7770_v21  ;;  %v5869_v7 = vmul.f32 %v5862_v15, %v10346_v63  ;;  %v7354_v15 = vld [vmem:[%s11414_s2 + $0xa] ss:$4 sm:$0x3] }
 0xb0b   : > { %v5654_v28 = vmul.f32 0.4, %v5648_v14  ;;  %v5655_v57 = vmul.f32 0.4, %v5649_v40  ;;  %v5657_v56 = vmul.f32 0.4, %v5651_v54  ;;  %v5830_v37 = vmul.f32 %v5824_v2, %v10558_v34 }
 0xb0c   : > { %v5658_v41 = vmul.f32 0.4, %v5652_v11  ;;  %v5673_v5 = vsel %vm3850_vm6, %v5671_v26, %v5672_v51  ;;  %v5870_v42 = vmul.f32 %v5866_v59, %v10548_v3  ;;  %v5872_v39 = vmul.f32 %v5866_v59, %v10558_v34 }
 0xb0d   : > { %v5660_v25 = vmax.f32 %v5648_v14, %v5654_v28  ;;  %v5661_v33 = vmax.f32 %v5649_v40, %v5655_v57  ;;  %v5663_v52 = vmax.f32 %v5651_v54, %v5657_v56  ;;  %5680 = vrot.lane.b32.xlu0 %v5673_v5, %s7603_s8  ;;  %v5877_v6 = vrot.slane %v5869_v7, 7 }
 0xb0e   : > { %v5664_v0 = vmax.f32 %v5652_v11, %v5658_v41  ;;  %v5910_v46 = vrot.slane %v7344_v30, %v7821_v32  ;;  %v5878_v44 = vrot.slane %v5870_v42, 7  ;;  %v5879_v45 = vrot.slane %v5871_v58, 7  ;;  %v7353_v42 = vld [vmem:[%s11414_s2 + $0x2] ss:$4 sm:$0x3] }
 0xb0f   : > { %v5674_v22 = vrot.slane %v5660_v25, 2  ;;  %v5675_v27 = vrot.slane %v5663_v52, 2  ;;  %v5677_v12 = vrot.slane %v5661_v33, 2  ;;  %v5914_v53 = vrot.slane %v7344_v30, %v7770_v21 }
 0xb10   : > { %v5678_v50 = vrot.slane %v5664_v0, 2  ;;  %v5881_v10 = vrot.slane %v5872_v39, 7  ;;  %v5917_v13 = vmul.f32 %v5910_v46, %v10346_v63  ;;  %v5880_v43 = vsel %vm638_vm0, %v5877_v6, %v5879_v45  ;;  %v7361_v39 = vld [vmem:[%s11414_s2 + $0x2] ss:$4 sm:$0x3] }
 0xb11   : > { %v5676_v9 = vsel %vm3850_vm6, %v5674_v22, %v5675_v27  ;;  %v5918_v18 = vmul.f32 %v5914_v53, %v10548_v3  ;;  %v5944_v40 = vrot.slane %v7345_v61, %v7821_v32  ;;  %v5948_v54 = vrot.slane %v7345_v61, %v7770_v21 }
 0xb12   : > { %v5679_v36 = vsel %vm3850_vm6, %v5677_v12, %v5678_v50  ;;  %5682 = vrot.lane.b32.xlu1 %v5676_v9, %s7603_s8  ;;  %v5882_v4 = vsel %vm638_vm0, %v5878_v44, %v5881_v10  ;;  %v5921_v55 = vrot.slane %v5917_v13, 6  ;;  %v6457_v59 = vrot.slane %v7354_v15, %v7821_v32  ;;  %v7355_v10 = vld [vmem:[%s11414_s2 + $0x12] ss:$4 sm:$0x3] }
 0xb13   : > { %5684 = vrot.lane.b32.xlu0 %v5679_v36, %s7603_s8  ;;  %v5922_v14 = vrot.slane %v5918_v18, 6  ;;  %v6461_v7 = vrot.slane %v7354_v15, %v7770_v21  ;;  %v6399_v30 = vrot.slane %v7353_v42, %v7821_v32  ;;  %v6854_v46 = vrot.slane %v7361_v39, %v7821_v32  ;;  %v7363_v18 = vld [vmem:[%s11414_s2 + $0x12] ss:$4 sm:$0x3] }
 0xb14   : > { %v6858_v45 = vrot.slane %v7361_v39, %v7770_v21  ;;  %v6979_v61 = vrot.slane %v7363_v18, %v7821_v32  ;;  %v7348_v39 = vld [vmem:[%s11414_s2 + $0x8] ss:$4 sm:$0x3] }
 0xb16   : > { %5708 = vrot.lane.b32.xlu1 %v5703_v23, %s7602_s29 }
 0xb17   : > { %5710 = vrot.lane.b32.xlu0 %v5707_v29, %s7602_s29 }
 0xb1a   : > { %5738 = vrot.lane.b32.xlu1 %v5733_v17, %s7602_s29 }
 0xb1b   : > { %5740 = vrot.lane.b32.xlu0 %v5737_v48, %s7602_s29 }
 0xb1e   : > { %5789 = vrot.lane.b32.xlu1 %v5784_v16, %s7602_s29  ;;  %v10631_v16 = vld [vmem:[#allocation2 + $0x70] sm:$0xff] }
 0xb1f   : > { %5791 = vrot.lane.b32.xlu0 %v5788_v35, %s7602_s29 }
 0xb22   : > { %5835 = vrot.lane.b32.xlu1 %v5827_v20, %s7602_s29  ;;  %v6002_v20 = vrot.slane %v7346_v62, %v7821_v32 }
 0xb23   : > { %5837 = vrot.lane.b32.xlu0 %v5828_v31, %s7602_s29  ;;  %v6006_v31 = vrot.slane %v7346_v62, %v7770_v21 }
 0xb26   : > { %5839 = vrot.lane.b32.xlu1 %v5829_v49, %s7602_s29  ;;  %v7362_v49 = vld [vmem:[%s11414_s2 + $0xa] ss:$4 sm:$0x3] }
 0xb27   : > { %5841 = vrot.lane.b32.xlu0 %v5830_v37, %s7602_s29  ;;  %v6912_v37 = vrot.slane %v7362_v49, %v7821_v32  ;;  %v6916_v58 = vrot.slane %v7362_v49, %v7770_v21 }
 0xb2a   : > { %5883 = vrot.lane.b32.xlu1 %v5877_v6, %s7602_s29  ;;  %v6403_v6 = vrot.slane %v7353_v42, %v7770_v21 }
 0xb2b   : > { %5885 = vrot.lane.b32.xlu0 %v5878_v44, %s7602_s29  ;;  %v7347_v44 = vld [vmem:[%s11414_s2 + $0x12] ss:$4 sm:$0x3] }
 0xb2c   : > { %v6069_v53 = vrot.slane %v7347_v44, %v7821_v32  ;;  %v6073_v13 = vrot.slane %v7347_v44, %v7770_v21  ;;  %v6188_v44 = vrot.slane %v7348_v39, %v7821_v32 }
 0xb2e   : > { %5887 = vrot.lane.b32.xlu1 %v5880_v43, %s7602_s29  ;;  %v6524_v43 = vrot.slane %v7355_v10, %v7821_v32 }
 0xb2f   : > { %5889 = vrot.lane.b32.xlu0 %v5882_v4, %s7602_s29  ;;  %v6528_v4 = vrot.slane %v7355_v10, %v7770_v21 }
 0xb32   : > { %5923 = vrot.lane.b32.xlu1 %v5921_v55, %s7602_s29  ;;  %v6983_v55 = vrot.slane %v7363_v18, %v7770_v21 }
 0xb33   : > { %5925 = vrot.lane.b32.xlu0 %v5922_v14, %s7602_s29  ;;  %v5938_v14 = vld [vmem:[#allocation2 + $0x110] sm:$0x3] }
 0xb36   : > { %5949 = vrot.lane.b32.xlu1 %v5944_v40, %s7603_s8 }
 0xb37   : > { %5951 = vrot.lane.b32.xlu0 %v5948_v54, %s7603_s8 }
 0xb7f   : > { %v5681_v11 = vpop.permute.xlu0 %5680 }
 0xb84   : > { %v5683_v26 = vpop.permute.xlu1 %5682 }
 0xb85   : > { %v5686_v51 = vsel %vm3673_vm2, %v5681_v11, %v5683_v26  ;;  %v5685_v28 = vpop.permute.xlu0 %5684 }
 0xb86   : > { %5690 = vst [vmem:[%s9760_s10 + $0x40] sm:$0xff] %v5686_v51  ;;  %v5687_v57 = vsel %vm3673_vm2, %v5683_v26, %v5685_v28 }
 0xb87   : > { %5691 = vst [vmem:[%s9760_s10 + $0x48] sm:$0xff] %v5687_v57 }
 0xb88   : > { %v10595_v56 = vpop.permute.xlu1 %5708 }
 0xb89   : > { %v10597_v41 = vpop.permute.xlu0 %5710 }
 0xb8a   : > { %11790 = vst [vmem:[#allocation43_spill] sm:$0xff] %v10597_v41 }
 0xb8c   : > { %v10599_v5 = vpop.permute.xlu1 %5738 }
 0xb8d   : > { %v10601_v25 = vpop.permute.xlu0 %5740 }
 0xb90   : > { %v10603_v33 = vpop.permute.xlu1 %5789 }
 0xb91   : > { %v10605_v52 = vpop.permute.xlu0 %5791 }
 0xb94   : > { %v10607_v0 = vpop.permute.xlu1 %5835 }
 0xb95   : > { %v10609_v22 = vpop.permute.xlu0 %5837 }
 0xb96   : > { %11791 = vst [vmem:[#allocation44_spill] sm:$0xff] %v10609_v22 }
 0xb98   : > { %v10611_v27 = vpop.permute.xlu1 %5839 }
 0xb99   : > { %v10613_v12 = vpop.permute.xlu0 %5841 }
 0xb9c   : > { %v10615_v1 = vpop.permute.xlu1 %5883 }
 0xb9d   : > { %v10617_v50 = vpop.permute.xlu0 %5885 }
 0xb9e   : > { %11792 = vst [vmem:[#allocation33_spill] sm:$0xff] %v10617_v50 }
 0xba0   : > { %v10619_v9 = vpop.permute.xlu1 %5887 }
 0xba1   : > { %v10621_v36 = vpop.permute.xlu0 %5889 }
 0xba4   : > { %v10623_v23 = vpop.permute.xlu1 %5923 }
 0xba5   : > { %v10625_v29 = vpop.permute.xlu0 %5925 }
 0xba8   : > { %v5950_v47 = vpop.permute.xlu1 %5949 }
 0xba9   : > { %v5957_v17 = vmul.f32 %v5950_v47, %v10346_v63  ;;  %v5952_v48 = vpop.permute.xlu0 %5951  ;;  %v5960_v2 = vmul.f32 %v5950_v47, %v10554_v60 }
 0xbaa   : > { %v5953_v19 = vsel %vm3673_vm2, %v5950_v47, %v5952_v48  ;;  %v5959_v35 = vmul.f32 %v5952_v48, %v10631_v16  ;;  %v5962_v40 = vmul.f32 %v5952_v48, %v5938_v14 }
 0xbab   : > { %v5958_v24 = vmul.f32 %v5953_v19, %v10548_v3  ;;  %5969 = vrot.lane.b32.xlu1 %v5957_v17, %s7604_s30  ;;  %v5961_v8 = vmul.f32 %v5953_v19, %v10558_v34 }
 0xbad   : > { %5971 = vrot.lane.b32.xlu0 %v5958_v24, %s7604_s30 }
 0xbaf   : > { %5973 = vrot.lane.b32.xlu1 %v5959_v35, %s7604_s30 }
 0xbb1   : > { %5975 = vrot.lane.b32.xlu0 %v5960_v2, %s7604_s30 }
 0xbb3   : > { %5977 = vrot.lane.b32.xlu1 %v5961_v8, %s7604_s30 }
 0xbb5   : > { %6007 = vrot.lane.b32.xlu0 %v6002_v20, %s7603_s8 }
 0xbb7   : > { %6009 = vrot.lane.b32.xlu1 %v6006_v31, %s7603_s8 }
 0xbb9   : > { %6462 = vrot.lane.b32.xlu0 %v6457_v59, %s7603_s8 }
 0xbbb   : > { %6464 = vrot.lane.b32.xlu1 %v6461_v7, %s7603_s8 }
 0xbbd   : > { %6917 = vrot.lane.b32.xlu0 %v6912_v37, %s7603_s8 }
 0xbbf   : > { %6919 = vrot.lane.b32.xlu1 %v6916_v58, %s7603_s8 }
 0xbc1   : > { %6404 = vrot.lane.b32.xlu0 %v6399_v30, %s7603_s8 }
 0xbc3   : > { %6406 = vrot.lane.b32.xlu1 %v6403_v6, %s7603_s8 }
 0xbc5   : > { %6859 = vrot.lane.b32.xlu0 %v6854_v46, %s7603_s8 }
 0xbc7   : > { %6861 = vrot.lane.b32.xlu1 %v6858_v45, %s7603_s8  ;;  %v7356_v45 = vld [vmem:[%s11414_s2 + $0x8] ss:$4 sm:$0x3] }
 0xbc8   : > { %v6643_v10 = vrot.slane %v7356_v45, %v7821_v32 }
 0xbc9   : > { %6074 = vrot.lane.b32.xlu0 %v6069_v53, %s7603_s8 }
 0xbcb   : > { %6076 = vrot.lane.b32.xlu1 %v6073_v13, %s7603_s8 }
 0xbcd   : > { %6529 = vrot.lane.b32.xlu0 %v6524_v43, %s7603_s8  ;;  %v6153_v43 = vld [vmem:[%s11414_s2] ss:$4 sm:$0x3] }
 0xbcf   : > { %6531 = vrot.lane.b32.xlu1 %v6528_v4, %s7603_s8  ;;  %v6158_v4 = vrot.slane %v6153_v43, %v7821_v32 }
 0xbd1   : > { %6984 = vrot.lane.b32.xlu0 %v6979_v61, %s7603_s8  ;;  %v6192_v61 = vrot.slane %v7348_v39, %v7770_v21  ;;  %v7351_v39 = vld [vmem:[%s11414_s2 + $0x9] ss:$4 sm:$0x3] }
 0xbd3   : > { %6986 = vrot.lane.b32.xlu1 %v6983_v55, %s7603_s8  ;;  %v6608_v55 = vld [vmem:[%s11414_s2] ss:$4 sm:$0x3] }
 0xbd5   : > { %5979 = vrot.lane.b32.xlu0 %v5962_v40, %s7604_s30  ;;  %v6647_v40 = vrot.slane %v7356_v45, %v7770_v21  ;;  %v6317_v45 = vrot.slane %v7351_v39, %v7821_v32 }
 0xc1d   : > { %v10697_v54 = vpop.permute.xlu1 %5969 }
 0xc1f   : > { %v10699_v11 = vpop.permute.xlu0 %5971 }
 0xc20   : > { %11793 = vst [vmem:[#allocation38_spill] sm:$0xff] %v10699_v11 }
 0xc21   : > { %v10701_v26 = vpop.permute.xlu1 %5973 }
 0xc22   : > { %11794 = vst [vmem:[#allocation52_spill] sm:$0xff] %v10701_v26  ;;  %v10965_v26 = vld [vmem:[#allocation2 + $0x130] sm:$0x3] }
 0xc23   : > { %v10703_v51 = vpop.permute.xlu0 %5975 }
 0xc25   : > { %v10705_v28 = vpop.permute.xlu1 %5977 }
 0xc27   : > { %v6008_v57 = vpop.permute.xlu0 %6007 }
 0xc28   : > { %v6015_v47 = vmul.f32 %v6008_v57, %v10346_v63  ;;  %v6018_v48 = vmul.f32 %v6008_v57, %v10554_v60 }
 0xc29   : > { %v6010_v17 = vpop.permute.xlu1 %6009 }
 0xc2a   : > { %v6027_v19 = vrot.slane %v6015_v47, 7  ;;  %v6011_v24 = vsel %vm3673_vm2, %v6008_v57, %v6010_v17  ;;  %v6017_v35 = vmul.f32 %v6010_v17, %v10631_v16  ;;  %v6030_v31 = vrot.slane %v6018_v48, 7  ;;  %v7349_v57 = vld [vmem:[%s11414_s2 + $0x10] ss:$4 sm:$0x3] }
 0xc2b   : > { %v6016_v62 = vmul.f32 %v6011_v24, %v10548_v3  ;;  %v6019_v2 = vmul.f32 %v6011_v24, %v10558_v34  ;;  %v10713_v8 = vpop.permute.xlu0 %6462  ;;  %v6020_v59 = vmul.f32 %v6010_v17, %v5938_v14  ;;  %v6613_v14 = vrot.slane %v6608_v55, %v7821_v32  ;;  %v7357_v48 = vld [vmem:[%s11414_s2 + $0x10] ss:$4 sm:$0x3] }
 0xc2c   : > { %v6029_v20 = vrot.slane %v6017_v35, 7  ;;  %6036 = vrot.lane.b32.xlu1 %v6027_v19, %s7604_s30  ;;  %v6031_v42 = vsel %vm638_vm0, %v6027_v19, %v6030_v31  ;;  %v6239_v47 = vrot.slane %v7349_v57, %v7821_v32  ;;  %v6162_v17 = vrot.slane %v6153_v43, %v7770_v21  ;;  %v7350_v19 = vld [vmem:[%s11414_s2 + $0x1] ss:$4 sm:$0x3]  ;;  %v10804_v43 = vld [vmem:[#allocation2 + $0x118] sm:$0x3] }
 0xc2d   : > { %v6028_v15 = vrot.slane %v6016_v62, 7  ;;  %v6032_v49 = vrot.slane %v6019_v2, 7  ;;  %v6034_v37 = vrot.slane %v6020_v59, 7  ;;  %v6694_v24 = vrot.slane %v7357_v48, %v7821_v32  ;;  %v7358_v31 = vld [vmem:[%s11414_s2 + $0x1] ss:$4 sm:$0x3] }
 0xc2e   : > { %v6617_v35 = vrot.slane %v6608_v55, %v7770_v21  ;;  %v6275_v62 = vrot.slane %v7350_v19, %v7821_v32  ;;  %v6243_v2 = vrot.slane %v7349_v57, %v7770_v21  ;;  %v6698_v59 = vrot.slane %v7357_v48, %v7770_v21  ;;  %v10816_v57 = vld [vmem:[#allocation2 + $0x88] sm:$0xff] }
 0xc2f   : > { %v10716_v7 = vpop.permute.xlu0 %6917  ;;  %6038 = vrot.lane.b32.xlu0 %v6028_v15, %s7604_s30  ;;  %v6033_v30 = vsel %vm638_vm0, %v6028_v15, %v6032_v49  ;;  %v6035_v6 = vsel %vm638_vm0, %v6029_v20, %v6034_v37  ;;  %v10779_v15 = vld [vmem:[#allocation2 + $0x110] sm:$0x3]  ;;  %v6730_v37 = vrot.slane %v7358_v31, %v7821_v32  ;;  %v6734_v55 = vrot.slane %v7358_v31, %v7770_v21 }
 0xc30   : > { %6040 = vrot.lane.b32.xlu1 %v6029_v20, %s7604_s30  ;;  %v6282_v20 = vmul.f32 %v6275_v62, %v10631_v16  ;;  %v6284_v49 = vmul.f32 %v6275_v62, %v10779_v15 }
 0xc31   : > { %v6738_v48 = vmul.f32 %v6734_v55, %v10816_v57 }
 0xc33   : > { %v10721_v58 = vpop.permute.xlu0 %6404  ;;  %6042 = vrot.lane.b32.xlu0 %v6031_v42, %s7604_s30  ;;  %v10789_v42 = vld [vmem:[#allocation2 + $0x80] sm:$0xff] }
 0xc34   : > { %6044 = vrot.lane.b32.xlu1 %v6033_v30, %s7604_s30  ;;  %v6279_v30 = vrot.slane %v7350_v19, %v7770_v21 }
 0xc37   : > { %v10730_v46 = vpop.permute.xlu0 %6859  ;;  %6046 = vrot.lane.b32.xlu0 %v6035_v6, %s7604_s30  ;;  %v10795_v6 = vld [vmem:[#allocation2 + $0x78] sm:$0xff] }
 0xc3b   : > { %v10737_v53 = vpop.permute.xlu0 %6074  ;;  %6193 = vrot.lane.b32.xlu0 %v6188_v44, %s7602_s29  ;;  %v6737_v44 = vmul.f32 %v6730_v37, %v10789_v42 }
 0xc3c   : > { %v6082_v13 = vmul.f32 %v10737_v53, %v10346_v63 }
 0xc3e   : > { %v6088_v18 = vrot.slane %v6082_v13, 6  ;;  %v6283_v13 = vmul.f32 %v6279_v30, %v10795_v6 }
 0xc3f   : > { %6648 = vrot.lane.b32.xlu0 %v6643_v10, %s7602_s29  ;;  %v10801_v10 = vld [vmem:[#allocation2 + $0x120] sm:$0x3] }
 0xc40   : > { %6091 = vrot.lane.b32.xlu1 %v6088_v18, %s7604_s30  ;;  %v6739_v18 = vmul.f32 %v6730_v37, %v10801_v10 }
 0xc43   : > { %6163 = vrot.lane.b32.xlu0 %v6158_v4, %s7602_s29  ;;  %v6324_v4 = vmul.f32 %v6317_v45, %v10631_v16 }
 0xc44   : > { %6195 = vrot.lane.b32.xlu1 %v6192_v61, %s7602_s29  ;;  %v6285_v61 = vmul.f32 %v6279_v30, %v10804_v43 }
 0xc47   : > { %6618 = vrot.lane.b32.xlu0 %v6613_v14, %s7602_s29  ;;  %v6326_v14 = vmul.f32 %v6317_v45, %v10779_v15 }
 0xc48   : > { %6650 = vrot.lane.b32.xlu1 %v6647_v40, %s7602_s29  ;;  %v7359_v40 = vld [vmem:[%s11414_s2 + $0x9] ss:$4 sm:$0x3] }
 0xc49   : > { %v6334_v19 = vrot.slane %v6326_v14, 7  ;;  %v10847_v14 = vpop.permute.xlu1 %6464 }
 0xc4b   : > { %6244 = vrot.lane.b32.xlu0 %v6239_v47, %s7602_s29  ;;  %v6332_v47 = vrot.slane %v6324_v4, 7 }
 0xc4c   : > { %6165 = vrot.lane.b32.xlu1 %v6162_v17, %s7602_s29  ;;  %v6772_v17 = vrot.slane %v7359_v40, %v7821_v32 }
 0xc4e   : > { %v6779_v62 = vmul.f32 %v6772_v17, %v10789_v42 }
 0xc4f   : > { %6699 = vrot.lane.b32.xlu0 %v6694_v24, %s7602_s29  ;;  %v6321_v24 = vrot.slane %v7351_v39, %v7770_v21 }
 0xc50   : > { %6620 = vrot.lane.b32.xlu1 %v6617_v35, %s7602_s29  ;;  %v10823_v35 = vld [vmem:[#allocation2 + $0x128] sm:$0x3]  ;;  %v6787_v30 = vrot.slane %v6779_v62, 7 }
 0xc51   : > { %v6325_v31 = vmul.f32 %v6321_v24, %v10795_v6  ;;  %v6327_v37 = vmul.f32 %v6321_v24, %v10804_v43 }
 0xc53   : > { %6290 = vrot.lane.b32.xlu0 %v6282_v20, %s7602_s29  ;;  %v6740_v20 = vmul.f32 %v6734_v55, %v10823_v35  ;;  %v6336_v4 = vrot.slane %v6327_v37, 7 }
 0xc54   : > { %6246 = vrot.lane.b32.xlu1 %v6243_v2, %s7602_s29  ;;  %v6335_v2 = vsel %vm638_vm0, %v6332_v47, %v6334_v19 }
 0xc57   : > { %6294 = vrot.lane.b32.xlu0 %v6284_v49, %s7602_s29  ;;  %v7352_v49 = vld [vmem:[%s11414_s2 + $0x11] ss:$4 sm:$0x3] }
 0xc58   : > { %6701 = vrot.lane.b32.xlu1 %v6698_v59, %s7602_s29  ;;  %v6781_v59 = vmul.f32 %v6772_v17, %v10801_v10  ;;  %v6365_v39 = vrot.slane %v7352_v49, %v7821_v32 }
 0xc5a   : > { %v6789_v45 = vrot.slane %v6781_v59, 7 }
 0xc5b   : > { %6745 = vrot.lane.b32.xlu0 %v6737_v44, %s7602_s29  ;;  %v6333_v44 = vrot.slane %v6325_v31, 7 }
 0xc5c   : > { %6292 = vrot.lane.b32.xlu1 %v6283_v13, %s7602_s29  ;;  %v6776_v13 = vrot.slane %v7359_v40, %v7770_v21 }
 0xc5d   : > { %v6337_v40 = vsel %vm638_vm0, %v6333_v44, %v6336_v4 }
 0xc5e   : > { %v6780_v17 = vmul.f32 %v6776_v13, %v10816_v57 }
 0xc5f   : > { %6749 = vrot.lane.b32.xlu0 %v6739_v18, %s7602_s29  ;;  %v7360_v18 = vld [vmem:[%s11414_s2 + $0x11] ss:$4 sm:$0x3] }
 0xc60   : > { %6296 = vrot.lane.b32.xlu1 %v6285_v61, %s7602_s29  ;;  %v6372_v61 = vmul.f32 %v6365_v39, %v10631_v16  ;;  %v6820_v55 = vrot.slane %v7360_v18, %v7821_v32  ;;  %v6788_v62 = vrot.slane %v6780_v17, 7  ;;  %v6369_v32 = vrot.slane %v7352_v49, %v7770_v21 }
 0xc61   : > { %v6824_v37 = vrot.slane %v7360_v18, %v7770_v21  ;;  %v6412_v49 = vmul.f32 %v10721_v58, %v10631_v16  ;;  %v6415_v17 = vmul.f32 %v10721_v58, %v10779_v15 }
 0xc62   : > { %v6376_v19 = vrot.slane %v6372_v61, 6  ;;  %v6827_v24 = vmul.f32 %v6820_v55, %v10789_v42  ;;  %v6373_v59 = vmul.f32 %v6369_v32, %v10795_v6  ;;  %v6867_v55 = vmul.f32 %v10730_v46, %v10789_v42 }
 0xc63   : > { %6338 = vrot.lane.b32.xlu0 %v6332_v47, %s7602_s29  ;;  %v6790_v47 = vsel %vm638_vm0, %v6787_v30, %v6789_v45  ;;  %v6828_v45 = vmul.f32 %v6824_v37, %v10816_v57 }
 0xc64   : > { %6747 = vrot.lane.b32.xlu1 %v6738_v48, %s7602_s29  ;;  %v6782_v48 = vmul.f32 %v6776_v13, %v10823_v35  ;;  %v6831_v31 = vrot.slane %v6827_v24, 6  ;;  %v5742_v24 = vsel %vm3424_vm4, %v10599_v5, %v10601_v25 }
 0xc65   : > { %v6832_v18 = vrot.slane %v6828_v45, 6 }
 0xc67   : > { %6342 = vrot.lane.b32.xlu0 %v6335_v2, %s7602_s29  ;;  %v6791_v2 = vrot.slane %v6782_v48, 7 }
 0xc68   : > { %6751 = vrot.lane.b32.xlu1 %v6740_v20, %s7602_s29  ;;  %v10858_v20 = vpop.permute.xlu1 %6919 }
 0xc6b   : > { %6793 = vrot.lane.b32.xlu0 %v6787_v30, %s7602_s29  ;;  %v6792_v30 = vsel %vm638_vm0, %v6788_v62, %v6791_v2  ;;  %v5750_v2 = vmul.f32 %v5742_v24, %v10554_v60 }
 0xc6c   : > { %6340 = vrot.lane.b32.xlu1 %v6333_v44, %s7602_s29  ;;  %v6407_v39 = vpop.permute.xlu1 %6406  ;;  %v6377_v44 = vrot.slane %v6373_v59, 6 }
 0xc6d   : > { %v6414_v13 = vmul.f32 %v6407_v39, %v10789_v42  ;;  %v6408_v21 = vsel %vm3673_vm2, %v10721_v58, %v6407_v39  ;;  %v10900_v58 = vmul.f32 %v5742_v24, %v10346_v63  ;;  %v10918_v63 = vsel %vm3424_vm4, %v10595_v56, %v10597_v41  ;;  %v5695_v24 = vld [vmem:[#allocation2 + $0xf8] sm:$0x3] }
 0xc6e   : > { %v6416_v4 = vmul.f32 %v6408_v21, %v10804_v43  ;;  %v6413_v61 = vmul.f32 %v6408_v21, %v10795_v6 }
 0xc6f   : > { %6797 = vrot.lane.b32.xlu0 %v6790_v47, %s7602_s29  ;;  %v10882_v47 = vld [vmem:[#allocation2 + $0x90] sm:$0xff]  ;;  %11795 = vst [vmem:[#allocation53_spill] sm:$0xff] %v10900_v58 }
 0xc70   : > { %6344 = vrot.lane.b32.xlu1 %v6337_v40, %s7602_s29  ;;  %v6862_v40 = vpop.permute.xlu1 %6861 }
 0xc71   : > { %v6869_v48 = vmul.f32 %v6862_v40, %v10882_v47  ;;  %v6863_v32 = vsel %vm3673_vm2, %v10730_v46, %v6862_v40 }
 0xc72   : > { %v6871_v59 = vmul.f32 %v6863_v32, %v10823_v35  ;;  %v6868_v37 = vmul.f32 %v6863_v32, %v10816_v57  ;;  %v7490_v32 = vld [vmem:[#allocation2 + $0x58] sm:$0xff] }
 0xc73   : > { %6378 = vrot.lane.b32.xlu0 %v6376_v19, %s7602_s29  ;;  %v10889_v19 = vld [vmem:[#allocation2 + $0x120] sm:$0x3] }
 0xc74   : > { %6795 = vrot.lane.b32.xlu1 %v6788_v62, %s7602_s29  ;;  %v6417_v62 = vmul.f32 %v6407_v39, %v10889_v19  ;;  %v10922_v39 = vmul.f32 %v10601_v25, %v10548_v3 }
 0xc76   : > { %11796 = vst [vmem:[#allocation54_spill] sm:$0xff] %v10922_v39 }
 0xc77   : > { %6833 = vrot.lane.b32.xlu0 %v6831_v31, %s7602_s29  ;;  %v10905_v31 = vmul.f32 %v10713_v8, %v10631_v16 }
 0xc78   : > { %6799 = vrot.lane.b32.xlu1 %v6792_v30, %s7602_s29  ;;  %v10909_v30 = vpop.permute.xlu1 %6076 }
 0xc79   : > { %v11523_v21 = vrot.slane %v10905_v31, 7 }
 0xc7b   : > { %6424 = vrot.lane.b32.xlu0 %v6412_v49, %s7604_s30  ;;  %v6466_v49 = vsel %vm3673_vm2, %v10713_v8, %v10847_v14 }
 0xc7c   : > { %6380 = vrot.lane.b32.xlu1 %v6377_v44, %s7602_s29  ;;  %v5751_v44 = vmul.f32 %v10601_v25, %v10558_v34  ;;  %v6474_v25 = vmul.f32 %v6466_v49, %v10804_v43 }
 0xc7e   : > { %v6487_v11 = vrot.slane %v6474_v25, 7 }
 0xc7f   : > { %6428 = vrot.lane.b32.xlu0 %v6414_v13, %s7604_s30  ;;  %v5763_v13 = vrot.slane %v5750_v2, 7  ;;  %v5746_v2 = vmul.f32 %v7490_v32, %v10599_v5 }
 0xc80   : > { %6835 = vrot.lane.b32.xlu1 %v6832_v18, %s7602_s29  ;;  %v10931_v18 = vmul.f32 %v10847_v14, %v10789_v42  ;;  %s7370_s29 = sshll.u32 %s7580_s18, 11  ;;  %s7605_s18 = smov [#allocation6]  }
 0xc81   : > { %s11368_s26 = scalar_lea.hbm %s11416_s4, %s7370_s29  ;;  %s7512_s7 = sshll.u32 %s7605_s18, 4  ;;  %s7513_s7 = int_to_ptr.vmem [resolvable:$false] %s7512_s7 }
 0xc82   : > { %v11528_v45 = vrot.slane %v10931_v18, 7  ;;  %s7514_s11 = scalar_lea.vmem %s7513_s7, 4096 }
 0xc83   : > { %6432 = vrot.lane.b32.xlu0 %v6416_v4, %s7604_s30  ;;  %v10933_v4 = vpop.permute.xlu0 %6529 }
 0xc84   : > { %6426 = vrot.lane.b32.xlu1 %v6413_v61, %s7604_s30  ;;  %v5793_v61 = vsel %vm3424_vm4, %v10603_v33, %v10605_v52 }
 0xc87   : > { %6879 = vrot.lane.b32.xlu0 %v6867_v55, %s7604_s30  ;;  %v6471_v55 = vmul.f32 %v6466_v49, %v10795_v6  ;;  %v10951_v49 = vpop.permute.xlu1 %6531  ;;  %v10974_v22 = vpop.permute.xlu0 %6984 }
 0xc88   : > { %6430 = vrot.lane.b32.xlu1 %v6415_v17, %s7604_s30  ;;  %v6870_v17 = vmul.f32 %v10730_v46, %v10801_v10  ;;  %v10955_v46 = vld [vmem:[#allocation2 + $0x60] sm:$0xff] }
 0xc8b   : > { %6883 = vrot.lane.b32.xlu0 %v6869_v48, %s7604_s30  ;;  %v5720_v48 = vmul.f32 %v10918_v63, %v10554_v60  ;;  %v5749_v60 = vmul.f32 %v10599_v5, %v5695_v24  ;;  %v6872_v5 = vmul.f32 %v6862_v40, %v10965_v26 }
 0xc8c   : > { %6434 = vrot.lane.b32.xlu1 %v6417_v62, %s7604_s30  ;;  %v5721_v62 = vmul.f32 %v10597_v41, %v10558_v34  ;;  %v10962_v34 = vmul.f32 %v10605_v52, %v10548_v3  ;;  %v5716_v52 = vmul.f32 %v7490_v32, %v10595_v56 }
 0xc8d   : > { %v5726_v50 = vadd.f32 %v5720_v48, %v9446_v38  ;;  %v5761_v25 = vrot.slane %v5749_v60, 7  ;;  %v6475_v60 = vmul.f32 %v10847_v14, %v10889_v19 }
 0xc8e   : > { %v5805_v41 = vrot.slane %v10962_v34, 6  ;;  %v11811_v34 = vld [vmem:[#allocation38_spill] sm:$0xff] }
 0xc8f   : > { %6887 = vrot.lane.b32.xlu0 %v6871_v59, %s7604_s30 }
 0xc90   : > { %6881 = vrot.lane.b32.xlu1 %v6868_v37, %s7604_s30  ;;  %v5765_v37 = vrot.slane %v5751_v44, 7  ;;  %v11798_v44 = vrot.slane %v10900_v58, 7  ;;  %v5727_v58 = vadd.f32 %v5721_v62, %v9446_v38  ;;  %v10992_v62 = vpop.permute.xlu1 %6986 }
 0xc92   : > { %v5764_v59 = vsel %vm638_vm0, %v11798_v44, %v5763_v13  ;;  %v5758_v13 = vrot.slane %v5746_v2, 7  ;;  %v10988_v44 = vmul.f32 %v10716_v7, %v10789_v42 }
 0xc93   : > { %6491 = vrot.lane.b32.xlu0 %v11523_v21, %s7604_s30  ;;  %v10958_v21 = vmul.f32 %v10955_v46, %v5793_v61  ;;  %v6473_v61 = vmul.f32 %v10713_v8, %v10779_v15  ;;  %v5777_v48 = vadd.f32 %v5764_v59, %v5726_v50  ;;  %v6921_v50 = vsel %vm3673_vm2, %v10716_v7, %v10858_v20 }
 0xc94   : > { %6885 = vrot.lane.b32.xlu1 %v6870_v17, %s7604_s30  ;;  %v6483_v17 = vrot.slane %v6471_v55, 7  ;;  %v11799_v55 = vrot.slane %v10922_v39, 7  ;;  %v5722_v59 = vadd.f32 %v5716_v52, %v9446_v38  ;;  %v6937_v19 = vrot.slane %v10988_v44, 7 }
 0xc95   : > { %11797 = vst [vmem:[#allocation55_spill] sm:$0xff] %v10958_v21  ;;  %v11531_v8 = vrot.slane %v10958_v21, 6 }
 0xc96   : > { %v5766_v40 = vsel %vm638_vm0, %v11799_v55, %v5765_v37  ;;  %v6488_v2 = vsel %vm638_vm0, %v6483_v17, %v6487_v11  ;;  %v6485_v37 = vrot.slane %v6473_v61, 7  ;;  %v5762_v11 = vsel %vm638_vm0, %v5758_v13, %v5761_v25 }
 0xc97   : > { %6495 = vrot.lane.b32.xlu0 %v11528_v45, %s7604_s30  ;;  %v5719_v45 = vmul.f32 %v10595_v56, %v5695_v24  ;;  %v5778_v39 = vadd.f32 %v5766_v40, %v5727_v58  ;;  %v5797_v56 = vmul.f32 %v7490_v32, %v10603_v33  ;;  %v5844_v24 = vsel %vm3424_vm4, %v10611_v27, %v10613_v12 }
 0xc98   : > { %6889 = vrot.lane.b32.xlu1 %v6872_v5, %s7604_s30  ;;  %v5813_v14 = vadd.f32 %v11531_v8, %v5777_v48  ;;  %v11013_v58 = vmul.f32 %v10858_v20, %v10882_v47  ;;  %v5980_v5 = vpop.permute.xlu0 %5979  ;;  %v5892_v32 = vsel %vm3424_vm4, %v10619_v9, %v10621_v36  ;;  %v6929_v61 = vmul.f32 %v6921_v50, %v10823_v35 }
 0xc99   : > { %v5725_v33 = vadd.f32 %v5719_v45, %v9446_v38  ;;  %v5814_v55 = vadd.f32 %v5805_v41, %v5778_v39  ;;  %v6489_v25 = vrot.slane %v6475_v60, 7  ;;  %v11800_v48 = vrot.slane %v10905_v31, 7 }
 0xc9a   : > { %v5855_v40 = vadd.f32 %v5844_v24, %v5813_v14  ;;  %v5803_v44 = vrot.slane %v5797_v56, 6  ;;  %v11034_v39 = vsel %vm3424_vm4, %v10623_v23, %v10625_v29  ;;  %v6939_v60 = vrot.slane %v11013_v58, 7 }
 0xc9b   : > { %6499 = vrot.lane.b32.xlu0 %v6488_v2, %s7604_s30  ;;  %v6486_v45 = vsel %vm638_vm0, %v11800_v48, %v6485_v37  ;;  %v5773_v2 = vadd.f32 %v5758_v13, %v5722_v59  ;;  %v5776_v8 = vadd.f32 %v5762_v11, %v5725_v33  ;;  %v6942_v31 = vrot.slane %v6929_v61, 7 }
 0xc9c   : > { %6493 = vrot.lane.b32.xlu1 %v6483_v17, %s7604_s30  ;;  %v6926_v17 = vmul.f32 %v6921_v50, %v10816_v57  ;;  %v5856_v50 = vadd.f32 %v10613_v12, %v5814_v55  ;;  %v5903_v21 = vadd.f32 %v5892_v32, %v5855_v40  ;;  %v6078_v13 = vsel %vm3673_vm2, %v10737_v53, %v10909_v30 }
 0xc9d   : > { %v5983_v12 = vsel %vm3702_vm5, %v10703_v51, %v10705_v28  ;;  %v6928_v56 = vmul.f32 %v10716_v7, %v10801_v10  ;;  %v11801_v58 = vrot.slane %v10931_v18, 7  ;;  %v5809_v33 = vadd.f32 %v5803_v44, %v5773_v2 }
 0xc9e   : > { %v11021_v52 = vpop.permute.xlu1 %6036  ;;  %v6938_v14 = vrot.slane %v6926_v17, 7  ;;  %v5935_v32 = vadd.f32 %v11034_v39, %v5903_v21  ;;  %v5904_v17 = vadd.f32 %v10621_v36, %v5856_v50  ;;  %v6083_v61 = vmul.f32 %v6078_v13, %v10548_v3 }
 0xc9f   : > { %6946 = vrot.lane.b32.xlu0 %v6937_v19, %s7604_s30  ;;  %v6490_v53 = vsel %vm638_vm0, %v11801_v58, %v6489_v25  ;;  %v5812_v7 = vadd.f32 %v5803_v44, %v5776_v8  ;;  %v5984_v48 = vsel %vm3702_vm5, %v10705_v28, %v5980_v5  ;;  %v6930_v25 = vmul.f32 %v10858_v20, %v10965_v26 }
 0xca0   : > { %6497 = vrot.lane.b32.xlu1 %v6486_v45, %s7604_s30  ;;  %v5995_v40 = vadd.f32 %v5983_v12, %v5935_v32  ;;  %v6943_v18 = vsel %vm638_vm0, %v6938_v14, %v6942_v31  ;;  %v5936_v21 = vadd.f32 %v10625_v29, %v5904_v17  ;;  %v5851_v36 = vadd.f32 %v10607_v0, %v5809_v33 }
 0xca1   : > { %v6039_v24 = vpop.permute.xlu0 %6038  ;;  %v5854_v28 = vadd.f32 %v10611_v27, %v5812_v7  ;;  %v6089_v5 = vrot.slane %v6083_v61, 6  ;;  %v6537_v44 = vmul.f32 %v10933_v4, %v10631_v16  ;;  %v6084_v27 = vmul.f32 %v10909_v30, %v10631_v16 }
 0xca2   : > { %v6041_v37 = vpop.permute.xlu1 %6040  ;;  %v11042_v59 = vsel %vm3702_vm5, %v11021_v52, %v6039_v24  ;;  %v5996_v50 = vadd.f32 %v5984_v48, %v5936_v21  ;;  %v5899_v20 = vadd.f32 %v10615_v1, %v5851_v36  ;;  %v6533_v33 = vsel %vm3673_vm2, %v10933_v4, %v10951_v49 }
 0xca3   : > { %v11050_v11 = vsel %vm3702_vm5, %v6039_v24, %v6041_v37  ;;  %6950 = vrot.lane.b32.xlu0 %v6939_v60, %s7604_s30  ;;  %v6940_v24 = vrot.slane %v6928_v56, 7  ;;  %v5902_v13 = vadd.f32 %v10619_v9, %v5854_v28  ;;  %v6944_v37 = vrot.slane %v6930_v25, 7  ;;  %v6605_v25 = vld [vmem:[#allocation2 + $0x118] sm:$0x3] }
 0xca4   : > { %6501 = vrot.lane.b32.xlu1 %v6490_v53, %s7604_s30  ;;  %v5931_v58 = vadd.f32 %v10623_v23, %v5899_v20  ;;  %v6543_v9 = vrot.slane %v6537_v44, 6  ;;  %v6988_v30 = vsel %vm3673_vm2, %v10974_v22, %v10992_v62  ;;  %v6090_v48 = vrot.slane %v6084_v27, 6 }
 0xca5   : > { %v6043_v55 = vpop.permute.xlu0 %6042  ;;  %v6941_v56 = vsel %vm638_vm0, %v6937_v19, %v6940_v24  ;;  %v5934_v53 = vadd.f32 %v10623_v23, %v5902_v13  ;;  %v6150_v19 = vld [vmem:[#allocation2 + $0x108] sm:$0x3]  ;;  %v6945_v23 = vsel %vm638_vm0, %v6939_v60, %v6944_v37  ;;  %v6538_v4 = vmul.f32 %v6533_v33, %v10795_v6 }
 0xca6   : > { %v6045_v45 = vpop.permute.xlu1 %6044  ;;  %v5991_v7 = vadd.f32 %v10697_v54, %v5931_v58  ;;  %v11109_v24 = vmul.f32 %v10992_v62, %v10882_v47 }
 0xca7   : > { %v6050_v2 = vsel %vm3702_vm5, %v6043_v55, %v6045_v45  ;;  %6954 = vrot.lane.b32.xlu0 %v6943_v18, %s7604_s30  ;;  %v6993_v18 = vmul.f32 %v6988_v30, %v10816_v57  ;;  %v6544_v47 = vrot.slane %v6538_v4, 6 }
 0xca8   : > { %v11069_v8 = vadd.f32 %v6050_v2, %v5995_v40  ;;  %6948 = vrot.lane.b32.xlu1 %v6938_v14, %s7604_s30  ;;  %v6539_v14 = vmul.f32 %v10951_v49, %v10789_v42  ;;  %v5994_v40 = vadd.f32 %v10703_v51, %v5934_v53  ;;  %v6058_v51 = vadd.f32 %v11021_v52, %v5991_v7 }
 0xca9   : > { %v6047_v26 = vpop.permute.xlu0 %6046  ;;  %v7000_v20 = vrot.slane %v11109_v24, 6 }
 0xcaa   : > { %v6051_v31 = vsel %vm3702_vm5, %v6045_v45, %v6047_v26  ;;  %v6545_v49 = vrot.slane %v6539_v14, 6  ;;  %v6992_v45 = vmul.f32 %v10974_v22, %v10789_v42  ;;  %v6061_v60 = vadd.f32 %v6043_v55, %v5994_v40 }
 0xcab   : > { %v11078_v12 = vadd.f32 %v6051_v31, %v5996_v50  ;;  %6093 = vrot.lane.b32.xlu0 %v6089_v5, %s7604_s30  ;;  %v6999_v26 = vrot.slane %v6993_v18, 6 }
 0xcac   : > { %6952 = vrot.lane.b32.xlu1 %v6941_v56, %s7604_s30  ;;  %v6998_v62 = vrot.slane %v6992_v45, 6 }
 0xcad   : > { %v6194_v32 = vpop.permute.xlu0 %6193 }
 0xcae   : > { %v11096_v17 = vmul.f32 %v6194_v32, %v10548_v3  ;;  %v6204_v61 = vmul.f32 %v6194_v32, %v6150_v19 }
 0xcaf   : > { %6546 = vrot.lane.b32.xlu0 %v6543_v9, %s7604_s30 }
 0xcb0   : > { %6956 = vrot.lane.b32.xlu1 %v6945_v23, %s7604_s30  ;;  %v6213_v2 = vrot.slane %v11096_v17, 7  ;;  %v6216_v36 = vrot.slane %v6204_v61, 7 }
 0xcb1   : > { %v6649_v21 = vpop.permute.xlu0 %6648 }
 0xcb2   : > { %v11113_v28 = vpop.permute.xlu1 %6091  ;;  %v11116_v22 = vmul.f32 %v6649_v21, %v10795_v6  ;;  %v6659_v5 = vmul.f32 %v6649_v21, %v6605_v25  ;;  %v6217_v58 = vsel %vm638_vm0, %v6213_v2, %v6216_v36 }
 0xcb3   : > { %v6102_v44 = vadd.f32 %v11113_v28, %v6058_v51  ;;  %v6105_v50 = vadd.f32 %v11113_v28, %v6061_v60  ;;  %6550 = vrot.lane.b32.xlu0 %v6545_v49, %s7604_s30 }
 0xcb4   : > { %v6668_v52 = vrot.slane %v11116_v22, 7  ;;  %v6671_v55 = vrot.slane %v6659_v5, 7  ;;  %6095 = vrot.lane.b32.xlu1 %v6090_v48, %s7604_s30 }
 0xcb5   : > { %v6108_v31 = vmul.f32 0.4, %v6102_v44  ;;  %v6111_v13 = vmul.f32 0.4, %v6105_v50  ;;  %v6164_v37 = vpop.permute.xlu0 %6163 }
 0xcb6   : > { %v6196_v56 = vpop.permute.xlu1 %6195  ;;  %v6171_v27 = vmul.f32 %v6164_v37, %v10548_v3  ;;  %v6174_v14 = vmul.f32 %v6164_v37, %v6150_v19  ;;  %v6672_v53 = vsel %vm638_vm0, %v6668_v52, %v6671_v55 }
 0xcb7   : > { %v6114_v9 = vmax.f32 %v6102_v44, %v6108_v31  ;;  %v6117_v33 = vmax.f32 %v6105_v50, %v6111_v13  ;;  %v6197_v30 = vsel %vm3424_vm4, %v6194_v32, %v6196_v56  ;;  %v11129_v17 = vmul.f32 %v6196_v56, %v10795_v6  ;;  %7003 = vrot.lane.b32.xlu0 %v6999_v26, %s7604_s30 }
 0xcb8   : > { %v11133_v61 = vmul.f32 %v6197_v30, %v10631_v16  ;;  %v6205_v7 = vmul.f32 %v6197_v30, %v10779_v15  ;;  %v6206_v3 = vmul.f32 %v6196_v56, %v10804_v43  ;;  %v6177_v19 = vadd.f32 %v6171_v27, %v9446_v38  ;;  %6548 = vrot.lane.b32.xlu1 %v6544_v47, %s7604_s30 }
 0xcb9   : > { %v6126_v40 = vrot.slane %v6114_v9, 2  ;;  %v6127_v23 = vrot.slane %v6117_v33, 2  ;;  %v6215_v32 = vrot.slane %v11129_v17, 7  ;;  %v6180_v48 = vadd.f32 %v6174_v14, %v9446_v38  ;;  %v6619_v4 = vpop.permute.xlu0 %6618  ;;  %v11165_v9 = vld [vmem:[#allocation2 + $0x68] sm:$0xff] }
 0xcba   : > { %v6214_v49 = vrot.slane %v11133_v61, 7  ;;  %v6218_v45 = vrot.slane %v6205_v7, 7  ;;  %v6220_v18 = vrot.slane %v6206_v3, 7  ;;  %v6651_v24 = vpop.permute.xlu1 %6650  ;;  %v6626_v51 = vmul.f32 %v6619_v4, %v10795_v6 }
 0xcbb   : > { %v6652_v60 = vsel %vm3424_vm4, %v6649_v21, %v6651_v24  ;;  %v11145_v36 = vmul.f32 %v6651_v24, %v10816_v57  ;;  %v11148_v22 = vmul.f32 %v6651_v24, %v10823_v35  ;;  %v6629_v5 = vmul.f32 %v6619_v4, %v6605_v25 }
 0xcbc   : > { %v11151_v44 = vmul.f32 %v6652_v60, %v10789_v42  ;;  %v11154_v50 = vmul.f32 %v6652_v60, %v10801_v10  ;;  %v6632_v47 = vadd.f32 %v6626_v51, %v9446_v38  ;;  %7001 = vrot.lane.b32.xlu1 %v6998_v62, %s7604_s30  ;;  %v6128_v55 = vsel %vm3850_vm6, %v6126_v40, %v6127_v23 }
 0xcbd   : > { %v6670_v21 = vrot.slane %v11145_v36, 7  ;;  %v6675_v26 = vrot.slane %v11148_v22, 7  ;;  %v6635_v31 = vadd.f32 %v6629_v5, %v9446_v38  ;;  %6135 = vrot.lane.b32.xlu0 %v6128_v55, %s7603_s8  ;;  %v6245_v25 = vpop.permute.xlu0 %6244  ;;  %v6228_v13 = vadd.f32 %v6213_v2, %v6177_v19 }
 0xcbe   : > { %v6669_v56 = vrot.slane %v11151_v44, 7  ;;  %v6673_v27 = vrot.slane %v11154_v50, 7  ;;  %v6166_v14 = vpop.permute.xlu1 %6165  ;;  %v6252_v62 = vmul.f32 %v11165_v9, %v6245_v25  ;;  %v6231_v33 = vadd.f32 %v6217_v58, %v6180_v48 }
 0xcbf   : > { %v6167_v30 = vsel %vm3424_vm4, %v6164_v37, %v6166_v14  ;;  %v6173_v17 = vmul.f32 %v6166_v14, %v10795_v6  ;;  %v6176_v61 = vmul.f32 %v6166_v14, %v10804_v43  ;;  %v6683_v7 = vadd.f32 %v6668_v52, %v6632_v47 }
 0xcc0   : > { %v6172_v3 = vmul.f32 %v6167_v30, %v10631_v16  ;;  %v6175_v2 = vmul.f32 %v6167_v30, %v10779_v15  ;;  %v6258_v19 = vrot.slane %v6252_v62, 6  ;;  %7005 = vrot.lane.b32.xlu1 %v7000_v20, %s7604_s30  ;;  %v6221_v40 = vsel %vm638_vm0, %v6215_v32, %v6220_v18 }
 0xcc1   : > { %v6179_v23 = vadd.f32 %v6173_v17, %v9446_v38  ;;  %v6182_v58 = vadd.f32 %v6176_v61, %v9446_v38  ;;  %v6700_v48 = vpop.permute.xlu0 %6699  ;;  %v6219_v37 = vsel %vm638_vm0, %v6214_v49, %v6218_v45  ;;  %v6686_v24 = vadd.f32 %v6672_v53, %v6635_v31 }
 0xcc2   : > { %v6178_v43 = vadd.f32 %v6172_v3, %v9446_v38  ;;  %v6181_v52 = vadd.f32 %v6175_v2, %v9446_v38  ;;  %v6621_v51 = vpop.permute.xlu1 %6620  ;;  %v6707_v15 = vmul.f32 %v6700_v48, %v10795_v6  ;;  %v6264_v60 = vadd.f32 %v6258_v19, %v6228_v13 }
 0xcc3   : > { %v6622_v20 = vsel %vm3424_vm4, %v6619_v4, %v6621_v51  ;;  %v6628_v18 = vmul.f32 %v6621_v51, %v10816_v57  ;;  %v6631_v36 = vmul.f32 %v6621_v51, %v10823_v35  ;;  %v6267_v22 = vadd.f32 %v6258_v19, %v6231_v33 }
 0xcc4   : > { %v6627_v5 = vmul.f32 %v6622_v20, %v10789_v42  ;;  %v6630_v45 = vmul.f32 %v6622_v20, %v10801_v10  ;;  %v6713_v53 = vrot.slane %v6707_v15, 6  ;;  %v6230_v44 = vadd.f32 %v6215_v32, %v6179_v23 }
 0xcc5   : > { %v6634_v50 = vadd.f32 %v6628_v18, %v9446_v38  ;;  %v6637_v47 = vadd.f32 %v6631_v36, %v9446_v38  ;;  %v6291_v55 = vpop.permute.xlu0 %6290  ;;  %v6229_v31 = vadd.f32 %v6214_v49, %v6178_v43  ;;  %v6233_v13 = vadd.f32 %v6221_v40, %v6182_v58 }
 0xcc6   : > { %v6633_v4 = vadd.f32 %v6627_v5, %v9446_v38  ;;  %v6636_v14 = vadd.f32 %v6630_v45, %v9446_v38  ;;  %v6247_v62 = vpop.permute.xlu1 %6246  ;;  %v6306_v35 = vadd.f32 %v6291_v55, %v6264_v60  ;;  %v6719_v33 = vadd.f32 %v6713_v53, %v6683_v7 }
 0xcc7   : > { %v6248_v30 = vsel %vm3424_vm4, %v6245_v25, %v6247_v62  ;;  %v6254_v10 = vmul.f32 %v6247_v62, %v10795_v6  ;;  %v6232_v17 = vadd.f32 %v6219_v37, %v6181_v52  ;;  %v6722_v32 = vadd.f32 %v6713_v53, %v6686_v24 }
 0xcc8   : > { %v6253_v61 = vmul.f32 %v6248_v30, %v10631_v16  ;;  %v6685_v3 = vadd.f32 %v6670_v21, %v6634_v50  ;;  %v6684_v2 = vadd.f32 %v6669_v56, %v6633_v4  ;;  %v6676_v49 = vsel %vm638_vm0, %v6670_v21, %v6675_v26 }
 0xcc9   : > { %v6260_v19 = vrot.slane %v6254_v10, 6  ;;  %v6295_v40 = vpop.permute.xlu0 %6294  ;;  %v6688_v23 = vadd.f32 %v6676_v49, %v6637_v47  ;;  %v6674_v58 = vsel %vm638_vm0, %v6669_v56, %v6673_v27 }
 0xcca   : > { %v6259_v43 = vrot.slane %v6253_v61, 6  ;;  %v6702_v51 = vpop.permute.xlu1 %6701  ;;  %v6309_v7 = vadd.f32 %v6295_v40, %v6267_v22  ;;  %v6687_v15 = vadd.f32 %v6674_v58, %v6636_v14 }
 0xccb   : > { %v6703_v25 = vsel %vm3424_vm4, %v6700_v48, %v6702_v51  ;;  %v6709_v6 = vmul.f32 %v6702_v51, %v10816_v57  ;;  %v6266_v37 = vadd.f32 %v6260_v19, %v6230_v44  ;;  %v6269_v24 = vadd.f32 %v6260_v19, %v6233_v13 }
 0xccc   : > { %v6708_v16 = vmul.f32 %v6703_v25, %v10789_v42  ;;  %v6265_v52 = vadd.f32 %v6259_v43, %v6229_v31  ;;  %v6268_v60 = vadd.f32 %v6259_v43, %v6232_v17 }
 0xccd   : > { %v6715_v21 = vrot.slane %v6709_v6, 6  ;;  %v6746_v26 = vpop.permute.xlu0 %6745 }
 0xcce   : > { %v6714_v20 = vrot.slane %v6708_v16, 6  ;;  %v6293_v18 = vpop.permute.xlu1 %6292  ;;  %v6761_v36 = vadd.f32 %v6746_v26, %v6719_v33 }
 0xccf   : > { %v6298_v56 = vsel %vm3424_vm4, %v6291_v55, %v6293_v18  ;;  %v6308_v27 = vadd.f32 %v6293_v18, %v6266_v37  ;;  %v6721_v22 = vadd.f32 %v6715_v21, %v6685_v3  ;;  %v6724_v5 = vadd.f32 %v6715_v21, %v6688_v23 }
 0xcd0   : > { %v6307_v45 = vadd.f32 %v6298_v56, %v6265_v52  ;;  %v6720_v48 = vadd.f32 %v6714_v20, %v6684_v2  ;;  %v6723_v53 = vadd.f32 %v6714_v20, %v6687_v15 }
 0xcd1   : > { %v6750_v57 = vpop.permute.xlu0 %6749 }
 0xcd2   : > { %v6297_v44 = vpop.permute.xlu1 %6296  ;;  %v6764_v50 = vadd.f32 %v6750_v57, %v6722_v32 }
 0xcd3   : > { %v6299_v42 = vsel %vm3424_vm4, %v6295_v40, %v6297_v44  ;;  %v6311_v47 = vadd.f32 %v6297_v44, %v6269_v24 }
 0xcd4   : > { %v6310_v31 = vadd.f32 %v6299_v42, %v6268_v60 }
 0xcd5   : > { %v6339_v13 = vpop.permute.xlu0 %6338 }
 0xcd6   : > { %v6748_v4 = vpop.permute.xlu1 %6747  ;;  %v11200_v14 = vadd.f32 %v6339_v13, %v6306_v35 }
 0xcd7   : > { %v6753_v62 = vsel %vm3424_vm4, %v6746_v26, %v6748_v4  ;;  %v6763_v55 = vadd.f32 %v6748_v4, %v6721_v22 }
 0xcd8   : > { %v6762_v33 = vadd.f32 %v6753_v62, %v6720_v48 }
 0xcd9   : > { %v6343_v30 = vpop.permute.xlu0 %6342 }
 0xcda   : > { %v6752_v10 = vpop.permute.xlu1 %6751  ;;  %v11203_v17 = vadd.f32 %v6343_v30, %v6309_v7 }
 0xcdb   : > { %v6754_v61 = vsel %vm3424_vm4, %v6750_v57, %v6752_v10  ;;  %v6766_v3 = vadd.f32 %v6752_v10, %v6724_v5 }
 0xcdc   : > { %v6765_v32 = vadd.f32 %v6754_v61, %v6723_v53  ;;  %v5717_v61 = vmul.f32 %v10955_v46, %v10918_v63  ;;  %v11807_v63 = vld [vmem:[#allocation55_spill] sm:$0xff] }
 0xcdd   : > { %v6794_v2 = vpop.permute.xlu0 %6793  ;;  %v11808_v46 = vrot.slane %v11807_v63, 6 }
 0xcde   : > { %v6341_v49 = vpop.permute.xlu1 %6340  ;;  %v6809_v19 = vadd.f32 %v6794_v2, %v6761_v36 }
 0xcdf   : > { %v6346_v40 = vsel %vm3424_vm4, %v6339_v13, %v6341_v49  ;;  %v11207_v23 = vadd.f32 %v6341_v49, %v6308_v27 }
 0xce0   : > { %v6355_v35 = vadd.f32 %v6346_v40, %v6307_v45 }
 0xce1   : > { %v6798_v58 = vpop.permute.xlu0 %6797 }
 0xce2   : > { %v6345_v43 = vpop.permute.xlu1 %6344  ;;  %v6812_v51 = vadd.f32 %v6798_v58, %v6764_v50 }
 0xce3   : > { %v6347_v15 = vsel %vm3424_vm4, %v6343_v30, %v6345_v43  ;;  %v11210_v25 = vadd.f32 %v6345_v43, %v6311_v47 }
 0xce4   : > { %v6358_v7 = vadd.f32 %v6347_v15, %v6310_v31  ;;  %v11805_v15 = vld [vmem:[#allocation54_spill] sm:$0xff] }
 0xce5   : > { %v11212_v6 = vpop.permute.xlu0 %6378 }
 0xce6   : > { %v6796_v37 = vpop.permute.xlu1 %6795 }
 0xce7   : > { %v6801_v24 = vsel %vm3424_vm4, %v6794_v2, %v6796_v37  ;;  %v11215_v16 = vadd.f32 %v6796_v37, %v6763_v55 }
 0xce8   : > { %v6810_v52 = vadd.f32 %v6801_v24, %v6762_v33 }
 0xce9   : > { %v6834_v60 = vpop.permute.xlu0 %6833 }
 0xcea   : > { %v6800_v21 = vpop.permute.xlu1 %6799  ;;  %v11217_v26 = vadd.f32 %v6834_v60, %v6809_v19  ;;  %v11219_v20 = vadd.f32 %v6834_v60, %v6812_v51  ;;  %v5723_v19 = vadd.f32 %v5717_v61, %v9446_v38 }
 0xceb   : > { %v6802_v18 = vsel %vm3424_vm4, %v6798_v58, %v6800_v21  ;;  %v11222_v36 = vadd.f32 %v6800_v21, %v6766_v3  ;;  %v11803_v58 = vld [vmem:[#allocation53_spill] sm:$0xff]  ;;  %v11809_v21 = vld [vmem:[#allocation44_spill] sm:$0xff] }
 0xcec   : > { %v6813_v56 = vadd.f32 %v6802_v18, %v6765_v32  ;;  %v11802_v32 = vld [vmem:[#allocation43_spill] sm:$0xff]  ;;  %v11804_v43 = vrot.slane %v11803_v58, 7  ;;  %v5843_v18 = vsel %vm3424_vm4, %v10607_v0, %v11809_v21  ;;  %v11812_v58 = vld [vmem:[#allocation52_spill] sm:$0xff] }
 0xced   : > { %v6425_v27 = vpop.permute.xlu0 %6424  ;;  %v5718_v2 = vmul.f32 %v11165_v9, %v11802_v32 }
 0xcee   : > { %v6381_v22 = vpop.permute.xlu1 %6380  ;;  %v5774_v51 = vadd.f32 %v11804_v43, %v5723_v19 }
 0xcef   : > { %v6382_v5 = vsel %vm3424_vm4, %v11212_v6, %v6381_v22 }
 0xcf0   : > { %v6387_v45 = vadd.f32 %v6382_v5, %v6355_v35  ;;  %v11226_v48 = vadd.f32 %v6382_v5, %v6358_v7  ;;  %v5724_v35 = vadd.f32 %v5718_v2, %v9446_v38  ;;  %v11806_v7 = vrot.slane %v11805_v15, 7  ;;  %v11810_v38 = vld [vmem:[#allocation33_spill] sm:$0xff] }
 0xcf1   : > { %v6429_v53 = vpop.permute.xlu0 %6428 }
 0xcf2   : > { %v6836_v57 = vpop.permute.xlu1 %6835  ;;  %v5775_v37 = vadd.f32 %v11806_v7, %v5724_v35 }
 0xcf3   : > { %v6837_v44 = vsel %vm3424_vm4, %v6834_v60, %v6836_v57 }
 0xcf4   : > { %v11229_v50 = vadd.f32 %v6837_v44, %v6810_v52  ;;  %v11231_v42 = vadd.f32 %v6837_v44, %v6813_v56  ;;  %v5810_v52 = vadd.f32 %v11808_v46, %v5774_v51  ;;  %v5811_v9 = vadd.f32 %v5805_v41, %v5775_v37 }
 0xcf5   : > { %v6433_v47 = vpop.permute.xlu0 %6432  ;;  %v5891_v56 = vsel %vm3424_vm4, %v10615_v1, %v11810_v38  ;;  %v5981_v41 = vsel %vm3702_vm5, %v10697_v54, %v11811_v34  ;;  %v5982_v1 = vsel %vm3702_vm5, %v11811_v34, %v11812_v58  ;;  %v6386_v54 = vadd.f32 %v11212_v6, %v11200_v14 }
 0xcf6   : > { %v6427_v31 = vpop.permute.xlu1 %6426  ;;  %v5852_v44 = vadd.f32 %v5843_v18, %v5810_v52  ;;  %v5853_v32 = vadd.f32 %v11809_v21, %v5811_v9  ;;  %v6389_v21 = vadd.f32 %v11212_v6, %v11203_v17 }
 0xcf7   : > { %v6436_v46 = vsel %vm3702_vm5, %v6425_v27, %v6427_v31 }
 0xcf8   : > { %v5900_v2 = vadd.f32 %v5891_v56, %v5852_v44  ;;  %v5901_v19 = vadd.f32 %v11810_v38, %v5853_v32  ;;  %v6391_v38 = vadd.f32 %v6381_v22, %v11210_v25  ;;  %v6843_v56 = vadd.f32 %v6836_v57, %v11215_v16 }
 0xcf9   : > { %v6880_v13 = vpop.permute.xlu0 %6879  ;;  %v6846_v44 = vadd.f32 %v6836_v57, %v11222_v36 }
 0xcfa   : > { %v6431_v4 = vpop.permute.xlu1 %6430  ;;  %v5932_v0 = vadd.f32 %v11034_v39, %v5900_v2  ;;  %v5933_v51 = vadd.f32 %v10625_v29, %v5901_v19  ;;  %v6437_v39 = vsel %vm3702_vm5, %v6427_v31, %v6429_v53  ;;  %v6388_v29 = vadd.f32 %v6381_v22, %v11207_v23 }
 0xcfb   : > { %v6438_v18 = vsel %vm3702_vm5, %v6431_v4, %v6433_v47  ;;  %v6447_v53 = vadd.f32 %v6436_v46, %v6387_v45  ;;  %v6449_v2 = vadd.f32 %v6431_v4, %v6389_v21  ;;  %v6901_v23 = vadd.f32 %v6880_v13, %v11217_v26 }
 0xcfc   : > { %v5992_v15 = vadd.f32 %v5981_v41, %v5932_v0  ;;  %v5993_v7 = vadd.f32 %v5982_v1, %v5933_v51  ;;  %v6448_v31 = vadd.f32 %v6437_v39, %v6388_v29  ;;  %v6450_v17 = vadd.f32 %v6438_v18, %v11226_v48 }
 0xcfd   : > { %v6884_v62 = vpop.permute.xlu0 %6883 }
 0xcfe   : > { %v6435_v55 = vpop.permute.xlu1 %6434  ;;  %v6059_v63 = vadd.f32 %v11042_v59, %v5992_v15  ;;  %v6060_v9 = vadd.f32 %v11050_v11, %v5993_v7  ;;  %v6446_v59 = vadd.f32 %v6425_v27, %v6386_v54 }
 0xcff   : > { %v6439_v14 = vsel %vm3702_vm5, %v6433_v47, %v6435_v55 }
 0xd00   : > { %v6451_v27 = vadd.f32 %v6439_v14, %v6391_v38 }
 0xd01   : > { %v11233_v33 = vpop.permute.xlu0 %6887 }
 0xd02   : > { %v6882_v30 = vpop.permute.xlu1 %6881 }
 0xd03   : > { %v6891_v11 = vsel %vm3702_vm5, %v6880_v13, %v6882_v30  ;;  %v6892_v16 = vsel %vm3702_vm5, %v6882_v30, %v6884_v62 }
 0xd04   : > { %v6902_v45 = vadd.f32 %v6891_v11, %v11229_v50 }
 0xd05   : > { %v11235_v10 = vpop.permute.xlu0 %6491 }
 0xd06   : > { %v11239_v3 = vpop.permute.xlu1 %6885  ;;  %v6513_v48 = vadd.f32 %v11235_v10, %v6446_v59 }
 0xd07   : > { %v6893_v57 = vsel %vm3702_vm5, %v11239_v3, %v11233_v33  ;;  %v6904_v34 = vadd.f32 %v11239_v3, %v11219_v20 }
 0xd08   : > { %v6905_v41 = vadd.f32 %v6893_v57, %v11231_v42 }
 0xd09   : > { %v11243_v49 = vpop.permute.xlu0 %6495 }
 0xd0a   : > { %v6890_v40 = vpop.permute.xlu1 %6889 }
 0xd0b   : > { %v6894_v47 = vsel %vm3702_vm5, %v11233_v33, %v6890_v40 }
 0xd0c   : > { %v6906_v40 = vadd.f32 %v6894_v47, %v6846_v44 }
 0xd0d   : > { %v11251_v24 = vpop.permute.xlu0 %6499 }
 0xd0e   : > { %v6494_v60 = vpop.permute.xlu1 %6493 }
 0xd0f   : > { %v6504_v50 = vsel %vm3702_vm5, %v6494_v60, %v11243_v49 }
 0xd10   : > { %v6515_v51 = vadd.f32 %v6504_v50, %v6448_v31 }
 0xd11   : > { %v11263_v5 = vpop.permute.xlu0 %6946 }
 0xd12   : > { %v11265_v61 = vpop.permute.xlu1 %6497  ;;  %v6968_v54 = vadd.f32 %v11263_v5, %v6901_v23 }
 0xd13   : > { %v6516_v26 = vadd.f32 %v11265_v61, %v6449_v2  ;;  %v6505_v15 = vsel %vm3702_vm5, %v11265_v61, %v11251_v24 }
 0xd14   : > { %v6517_v38 = vadd.f32 %v6505_v15, %v6450_v17 }
 0xd15   : > { %v11272_v35 = vpop.permute.xlu0 %6950 }
 0xd16   : > { %v6502_v43 = vpop.permute.xlu1 %6501 }
 0xd17   : > { %v6506_v7 = vsel %vm3702_vm5, %v11251_v24, %v6502_v43 }
 0xd18   : > { %v6518_v59 = vadd.f32 %v6506_v7, %v6451_v27 }
 0xd19   : > { %v11279_v37 = vpop.permute.xlu0 %6954 }
 0xd1a   : > { %v6949_v52 = vpop.permute.xlu1 %6948 }
 0xd1b   : > { %v6958_v20 = vsel %vm3702_vm5, %v11263_v5, %v6949_v52  ;;  %v6959_v46 = vsel %vm3702_vm5, %v6949_v52, %v11272_v35 }
 0xd1d   : > { %v6094_v32 = vpop.permute.xlu0 %6093 }
 0xd1e   : > { %v6953_v6 = vpop.permute.xlu1 %6952  ;;  %v6097_v25 = vsel %vm3702_vm5, %v11113_v28, %v6094_v32  ;;  %v6503_v28 = vsel %vm3702_vm5, %v11235_v10, %v6494_v60 }
 0xd1f   : > { %v6103_v22 = vadd.f32 %v6097_v25, %v6059_v63  ;;  %v6106_v36 = vadd.f32 %v6097_v25, %v11069_v8  ;;  %v6903_v8 = vadd.f32 %v6892_v16, %v6843_v56  ;;  %v6514_v58 = vadd.f32 %v6503_v28, %v6447_v53 }
 0xd20   : > { %v6969_v56 = vadd.f32 %v6958_v20, %v6902_v45  ;;  %v6960_v5 = vsel %vm3702_vm5, %v6953_v6, %v11279_v37  ;;  %v6971_v31 = vadd.f32 %v6953_v6, %v6904_v34 }
 0xd21   : > { %v6109_v13 = vmul.f32 0.4, %v6103_v22  ;;  %v6112_v4 = vmul.f32 0.4, %v6106_v36  ;;  %v6547_v62 = vpop.permute.xlu0 %6546  ;;  %v6972_v25 = vadd.f32 %v6960_v5, %v6905_v41 }
 0xd22   : > { %v6957_v55 = vpop.permute.xlu1 %6956  ;;  %v6557_v30 = vadd.f32 %v6547_v62, %v6513_v48  ;;  %v6560_v19 = vadd.f32 %v6547_v62, %v6516_v26 }
 0xd23   : > { %v6115_v0 = vmax.f32 %v6103_v22, %v6109_v13  ;;  %v6118_v33 = vmax.f32 %v6106_v36, %v6112_v4  ;;  %v6961_v35 = vsel %vm3702_vm5, %v11279_v37, %v6957_v55 }
 0xd24   : > { %v6563_v10 = vmul.f32 0.4, %v6557_v30  ;;  %v6566_v1 = vmul.f32 0.4, %v6560_v19  ;;  %v6973_v27 = vadd.f32 %v6961_v35, %v6906_v40 }
 0xd25   : > { %v6129_v49 = vrot.slane %v6115_v0, 2  ;;  %v6130_v60 = vrot.slane %v6118_v33, 2  ;;  %v6551_v43 = vpop.permute.xlu0 %6550 }
 0xd26   : > { %v6569_v42 = vmax.f32 %v6557_v30, %v6563_v10  ;;  %v6572_v3 = vmax.f32 %v6560_v19, %v6566_v1  ;;  %v6096_v63 = vpop.permute.xlu1 %6095 }
 0xd27   : > { %v6098_v39 = vsel %vm3702_vm5, %v6094_v32, %v6096_v63  ;;  %v6131_v61 = vsel %vm3850_vm6, %v6129_v49, %v6130_v60 }
 0xd28   : > { %v6581_v21 = vrot.slane %v6569_v42, 2  ;;  %v6582_v29 = vrot.slane %v6572_v3, 2  ;;  %v6104_v18 = vadd.f32 %v6098_v39, %v6060_v9  ;;  %v6107_v24 = vadd.f32 %v6098_v39, %v11078_v12  ;;  %6137 = vrot.lane.b32.xlu1 %v6131_v61, %s7603_s8 }
 0xd29   : > { %v6970_v9 = vadd.f32 %v6959_v46, %v6903_v8  ;;  %v7004_v48 = vpop.permute.xlu0 %7003 }
 0xd2a   : > { %v6110_v52 = vmul.f32 0.4, %v6104_v18  ;;  %v6113_v14 = vmul.f32 0.4, %v6107_v24  ;;  %v6549_v44 = vpop.permute.xlu1 %6548  ;;  %v6583_v53 = vsel %vm3850_vm6, %v6581_v21, %v6582_v29 }
 0xd2b   : > { %v6552_v12 = vsel %vm3702_vm5, %v6547_v62, %v6549_v44  ;;  %v6553_v11 = vsel %vm3702_vm5, %v6549_v44, %v6551_v43 }
 0xd2c   : > { %v6116_v32 = vmax.f32 %v6104_v18, %v6110_v52  ;;  %v6119_v2 = vmax.f32 %v6107_v24, %v6113_v14  ;;  %v6558_v17 = vadd.f32 %v6552_v12, %v6514_v58  ;;  %v6559_v23 = vadd.f32 %v6553_v11, %v6515_v51  ;;  %6590 = vrot.lane.b32.xlu1 %v6583_v53, %s7603_s8 }
 0xd2d   : > { %v6561_v37 = vadd.f32 %v6552_v12, %v6517_v38  ;;  %v6562_v16 = vadd.f32 %v6553_v11, %v6518_v59 }
 0xd2e   : > { %v6132_v22 = vrot.slane %v6116_v32, 2  ;;  %v6133_v36 = vrot.slane %v6119_v2, 2  ;;  %v6564_v45 = vmul.f32 0.4, %v6558_v17  ;;  %v6565_v57 = vmul.f32 0.4, %v6559_v23  ;;  %v7002_v6 = vpop.permute.xlu1 %7001 }
 0xd2f   : > { %v6567_v26 = vmul.f32 0.4, %v6561_v37  ;;  %v6568_v47 = vmul.f32 0.4, %v6562_v16  ;;  %v7007_v28 = vsel %vm3702_vm5, %v7002_v6, %v7004_v48  ;;  %v7012_v13 = vadd.f32 %v7002_v6, %v6968_v54  ;;  %v6136_v14 = vpop.permute.xlu0 %6135 }
 0xd30   : > { %v6570_v4 = vmax.f32 %v6558_v17, %v6564_v45  ;;  %v6571_v62 = vmax.f32 %v6559_v23, %v6565_v57  ;;  %v7013_v8 = vadd.f32 %v7007_v28, %v6969_v56  ;;  %v7015_v50 = vadd.f32 %v7002_v6, %v6971_v31 }
 0xd31   : > { %v6573_v55 = vmax.f32 %v6561_v37, %v6567_v26  ;;  %v6574_v30 = vmax.f32 %v6562_v16, %v6568_v47  ;;  %v7016_v19 = vadd.f32 %v7007_v28, %v6972_v25  ;;  %v7018_v34 = vmul.f32 0.4, %v7012_v13 }
 0xd32   : > { %v6584_v41 = vrot.slane %v6570_v4, 2  ;;  %v6587_v0 = vrot.slane %v6571_v62, 2  ;;  %v7019_v33 = vmul.f32 0.4, %v7013_v8  ;;  %v7021_v40 = vmul.f32 0.4, %v7015_v50  ;;  %v7006_v58 = vpop.permute.xlu1 %7005 }
 0xd33   : > { %v6585_v10 = vrot.slane %v6573_v55, 2  ;;  %v6588_v1 = vrot.slane %v6574_v30, 2  ;;  %v7022_v51 = vmul.f32 0.4, %v7016_v19  ;;  %v7024_v15 = vmax.f32 %v7012_v13, %v7018_v34 }
 0xd34   : > { %v7025_v49 = vmax.f32 %v7013_v8, %v7019_v33  ;;  %v7027_v60 = vmax.f32 %v7015_v50, %v7021_v40  ;;  %v6134_v7 = vsel %vm3850_vm6, %v6132_v22, %v6133_v36  ;;  %v7008_v20 = vsel %vm3702_vm5, %v7004_v48, %v7006_v58 }
 0xd35   : > { %v7028_v42 = vmax.f32 %v7016_v19, %v7022_v51  ;;  %v7036_v3 = vrot.slane %v7024_v15, 2  ;;  %6139 = vrot.lane.b32.xlu0 %v6134_v7, %s7603_s8  ;;  %v7014_v63 = vadd.f32 %v7008_v20, %v6970_v9  ;;  %v7017_v54 = vadd.f32 %v7008_v20, %v6973_v27 }
 0xd36   : > { %v7037_v46 = vrot.slane %v7027_v60, 2  ;;  %v7039_v39 = vrot.slane %v7025_v49, 2  ;;  %v6586_v61 = vsel %vm3850_vm6, %v6584_v41, %v6585_v10  ;;  %v6589_v21 = vsel %vm3850_vm6, %v6587_v0, %v6588_v1 }
 0xd37   : > { %v7040_v29 = vrot.slane %v7028_v42, 2  ;;  %v7020_v18 = vmul.f32 0.4, %v7014_v63  ;;  %v7023_v24 = vmul.f32 0.4, %v7017_v54  ;;  %6594 = vrot.lane.b32.xlu1 %v6589_v21, %s7603_s8 }
 0xd38   : > { %v7038_v43 = vsel %vm3850_vm6, %v7036_v3, %v7037_v46 }
 0xd39   : > { %v7026_v38 = vmax.f32 %v7014_v63, %v7020_v18  ;;  %v7029_v59 = vmax.f32 %v7017_v54, %v7023_v24  ;;  %6592 = vrot.lane.b32.xlu0 %v6586_v61, %s7603_s8  ;;  %v7041_v56 = vsel %vm3850_vm6, %v7039_v39, %v7040_v29 }
 0xd3b   : > { %v7042_v5 = vrot.slane %v7026_v38, 2  ;;  %v7043_v35 = vrot.slane %v7029_v59, 2  ;;  %7047 = vrot.lane.b32.xlu1 %v7041_v56, %s7603_s8 }
 0xd3d   : > { %7045 = vrot.lane.b32.xlu0 %v7038_v43, %s7603_s8  ;;  %v7044_v52 = vsel %vm3850_vm6, %v7042_v5, %v7043_v35 }
 0xd41   : > { %7049 = vrot.lane.b32.xlu0 %v7044_v52, %s7603_s8  ;;  %s7074_s8 = sshll.u32 %s9760_s10, 4  ;;  %s7075_s8 = int_to_ptr.vmem [resolvable:$true] %s7074_s8 }
 0xd42   : > { %s7508_s9 = scalar_lea.vmem %s7075_s8, 2048  ;;  %p7515_p0 = scmp.lt.s32.totalorder %s7075_s8, %s7513_s7 }
 0xd43   : > { %p7509_p10 = scmp.ne.s32.totalorder %s7075_s8, %s7508_s9  ;;  %p7516_p1 = scmp.lt.s32.totalorder %s7514_s11, %s7508_s9 }
 0xd45   : > { %p7510_p11 = pnand %p7509_p10, %p7671_p4  ;;  %p7517_p2 = por %p7516_p1, %p7515_p0 }
 0xd47   : > { %p7511_p13 = pneg %p7510_p11 }
 0xd49   : > { %p7518_p3 = pnand %p7517_p2, %p7511_p13 }
 0xd9a   : > { %v6138_v44 = vpop.permute.xlu1 %6137 }
 0xd9b   : > { %v6141_v53 = vsel %vm3673_vm2, %v6136_v14, %v6138_v44 }
 0xd9c   : > { %6145 = vst [vmem:[%s9760_s10 + $0x50] sm:$0xff] %v6141_v53 }
 0xd9e   : > { %v6591_v9 = vpop.permute.xlu1 %6590 }
 0xda7   : > { %v6140_v31 = vpop.permute.xlu0 %6139 }
 0xda8   : > { %v6142_v12 = vsel %vm3673_vm2, %v6138_v44, %v6140_v31 }
 0xda9   : > { %6146 = vst [vmem:[%s9760_s10 + $0x58] sm:$0xff] %v6142_v12  ;;  %v6595_v11 = vpop.permute.xlu1 %6594 }
 0xdab   : > { %v6593_v32 = vpop.permute.xlu0 %6592 }
 0xdac   : > { %v6596_v2 = vsel %vm3673_vm2, %v6591_v9, %v6593_v32  ;;  %v6597_v17 = vsel %vm3673_vm2, %v6593_v32, %v6595_v11 }
 0xdad   : > { %6600 = vst [vmem:[%s9760_s10 + $0x60] sm:$0xff] %v6596_v2  ;;  %6601 = vst [vmem:[%s9760_s10 + $0x68] sm:$0xff] %v6597_v17  ;;  %v7048_v23 = vpop.permute.xlu1 %7047 }
 0xdaf   : > { %v7046_v25 = vpop.permute.xlu0 %7045 }
 0xdb0   : > { %v7051_v27 = vsel %vm3673_vm2, %v7046_v25, %v7048_v23 }
 0xdb1   : > { %7055 = vst [vmem:[%s9760_s10 + $0x70] sm:$0xff] %v7051_v27 }
 0xdb3   : > { %v7050_v37 = vpop.permute.xlu0 %7049 }
 0xdb4   : > { %v7052_v16 = vsel %vm3673_vm2, %v7048_v23, %v7050_v37 }
 0xdb5   : > { %7056 = vst [vmem:[%s9760_s10 + $0x78] sm:$0xff] %v7052_v16 }
 0xdb6   : > { %7521 = shalt.err (!%p7518_p3)
}
 0xdb7   : > { %s7522_s10 = scalar_lea.hbm %s11368_s26, 2048  ;;  %s7526_s13 = scalar_lea.hbm %s11416_s4, 4096 }
 0xdb8   : > { %p7523_p5 = scmp.ne.s32.totalorder %s11368_s26, %s7522_s10  ;;  %p7527_p9 = scmp.lt.s32.totalorder %s11368_s26, %s11416_s4 }
 0xdb9   : > { %p7528_p12 = scmp.lt.s32.totalorder %s7526_s13, %s7522_s10 }
 0xdba   : > { %p7524_p6 = pnand %p7523_p5, %p7671_p4 }
 0xdbb   : > { %p7529_p10 = por %p7528_p12, %p7527_p9 }
 0xdbc   : > { %p7525_p7 = pneg %p7524_p6 }
 0xdbe   : > { %p7530_p11 = pnand %p7529_p10, %p7525_p7 }
 0xdc0   : > { %7533 = shalt.err (!%p7530_p11)
}
 0xdc1   : > { %7375 = dma.vmem_to_hbm [thread:$0]  (%p7671_p4), %s7075_s8, 2048, %s11368_s26, %s7058_s5  }
 0xdc2 PF: > { %p7387_p13 = scmp.ge.s32.totalorder %s7588_s20, 2  ;;  %s7086_s22 = sand.u32 1, %s7568_s15  }
 0xdc3   : > { %s7087_s29 = scalar_lea.sflag [#allocation4], %s7086_s22 }
 0xdc4   : > { %p7382_p0 = pnand %p7387_p13, %p7678_p8 }
 0xdc6   : > { %p7383_p1 = pneg %p7382_p0 }
 0xdc8   : > { %7563 = dma.done.wait (%p7383_p1), %s7087_s29, 2048  }
 0xdc9   : > { %7565 = vsyncadd (%p7383_p1), %s7087_s29, 4294965248  ;;  %s18_s20 = sadd.s32 1, %s7588_s20   ;;  %s11813_s15 = smov %s7572_s16 }
 0xdca   : > { %p15_p2 = scmp.ge.s32.totalorder %s18_s20, 4   ;;  %s11814_s16 = smov %s7576_s17 }
 0xdcb   : > { %s11815_s17 = smov %s7684_s28  ;;  %s11816_s18 = smov %s7584_s19 }
 0xdcc   : > { %s11817_s19 = smov %s11819_s23  ;;  %17 = sbr.rel (!%p15_p2) target bundleno = 5 (0x5), region = 249 }
 0xdd1   :  { %7092 = vsyncpa [#allocation4], 1 }
 0xdd2   :  { %7094 = vsyncpa [#allocation4 + $0x1], 1 }
 0xdd3   :  { %7095 = vsyncpa [#allocation5], 1 }
 0xdd4   :  { %7097 = vsyncpa [#allocation5 + $0x1], 1 }

</bundles_post_ra>
